<compile_context>
chip_gen: v5e
topology: v5e:2x2
jax: 0.10.0
libtpu: 0.0.40
codegen_flags: <defaults>
</compile_context>

<pallas_src>
import functools

import numpy as np
import jax
import jax.numpy as jnp
from jax import lax
from jax.experimental import pallas as pl
from jax.experimental.pallas import tpu as pltpu


def _group_norm(y, avg2, gamma, beta, eps):
    """GroupNorm on channel-major y (C, S).

    avg2 is a (2C, 2C) block-diagonal matrix with the group-average matrix in both
    blocks (avg[c, c'] = 1/(S*Cg) iff same group), so one tiny MXU matmul on the
    stacked (2C, 1) stats vector yields both the group mean and the group E[x^2].
    """
    C = y.shape[0]
    rowsum = jnp.sum(y, axis=1, keepdims=True)                                 # (C, 1)
    rowsq = jnp.sum(y * y, axis=1, keepdims=True)                              # (C, 1)
    stats = jnp.concatenate([rowsum, rowsq], axis=0)                           # (2C, 1)
    mom = jnp.dot(avg2, stats, preferred_element_type=jnp.float32)             # (2C, 1)
    mean, ex2 = mom[:C], mom[C:]
    var = jnp.maximum(ex2 - mean * mean, 0.0)        # clamp guards f32 cancellation
    inv = lax.rsqrt(var + eps)
    return (y - mean) * inv * gamma + beta


def _amb_kernel(x_ref, we_ref, ge_ref, be_ref, ae2_ref,
                coef_ref, mask_ref, gd_ref, bd_ref, ad2_ref,
                w1t_ref, b1r_ref, w2t_ref, b2r_ref,
                wp_ref, gp_ref, bp_ref, ap2_ref,
                out_ref, xbig_ref,
                *, S, margin, eps, groups):
    f32 = jnp.float32
    trans_b = (((1,), (1,)), ((), ()))    # contract the trailing axes of both operands

    # ---- expand_proj: 1x1x1 conv (Cin -> Ce) + GroupNorm(2) + ReLU ---------------
    # x_ref is (S, Cin) straight from NDHWC (no wrapper transpose); one MXU matmul in
    # A @ B^T form yields the channel-major (Ce, S) tile directly.
    y = lax.dot_general(we_ref[...], x_ref[...], trans_b,
                        preferred_element_type=f32)                            # (Ce, S)
    y = _group_norm(y, ae2_ref[...], ge_ref[...], be_ref[...], eps)
    y = jnp.maximum(y, 0.0)

    # ---- AdaptiveDilatedConv3d: softmax-weighted depthwise 3x3x3, dil in {1, 2} ---
    # Zero-margined flat spatial buffer.  Only the margins are zeroed (the centre S
    # columns are overwritten below); depth overflow of a tap lands in the margins,
    # H/W overflow is killed by one shared (sh, sw) mask per tap group.
    Ce = y.shape[0]
    xbig_ref[:, :margin] = jnp.zeros((Ce, margin), f32)
    xbig_ref[:, margin + S:] = jnp.zeros((Ce, margin), f32)
    xbig_ref[:, margin:margin + S] = y

    acc = jnp.zeros_like(y)
    for mask_row, taps in groups:
        inner = None
        for col, off in taps:                      # accumulate over the depth shifts
            patch = xbig_ref[:, margin + off:margin + off + S]                 # (Ce, S)
            term = coef_ref[:, col:col + 1] * patch
            inner = term if inner is None else inner + term
        if mask_row >= 0:                          # shared H/W boundary mask
            inner = inner * mask_ref[mask_row:mask_row + 1, :]
        acc = acc + inner
    z = _group_norm(acc, ad2_ref[...], gd_ref[...], bd_ref[...], eps)
    z = jnp.maximum(z, 0.0)

    # ---- SE block (row form); excitation folded into the pointwise weight --------
    sq = lax.dot_general(jnp.full((1, S), 1.0 / S, f32), z, trans_b,
                         preferred_element_type=f32)                           # (1, Ce)
    h = jnp.maximum(jnp.dot(sq, w1t_ref[...], preferred_element_type=f32)
                    + b1r_ref[...], 0.0)                                       # (1, Cr)
    u = jnp.dot(h, w2t_ref[...], preferred_element_type=f32) + b2r_ref[...]    # (1, Ce)
    e = 1.0 / (1.0 + jnp.exp(-u))                                              # sigmoid
    wp_eff = wp_ref[...] * e                                                   # (Cout, Ce)

    # ---- pointwise: 1x1x1 conv (Ce -> Cout) + GroupNorm(2), no activation --------
    o = jnp.dot(wp_eff, z, preferred_element_type=f32)                         # (Cout, S)
    o = _group_norm(o, ap2_ref[...], gp_ref[...], bp_ref[...], eps)
    out_ref[...] = o.astype(out_ref.dtype)                                     # lane-dense store


def amb_conv1(x_ndhwc, params, *, eps=1e-5):
    """AMBConv1 forward.  x_ndhwc: (N, D, H, W, Cin) -> (N, D, H, W, Cout)."""
    N, D, H, W, Cin = x_ndhwc.shape
    Ce = params["w_expand"].shape[0]
    Cout = params["w_pw"].shape[0]
    Cr = params["se_w1"].shape[0]
    S = D * H * W
    f32 = jnp.float32

    # Layout assumptions for the lane-dense channel-major tiles inside the kernel.
    assert S % 128 == 0, "flattened spatial size must be a multiple of 128 lanes"
    assert Ce % 8 == 0 and Cout % 8 == 0, "channel counts must be sublane-aligned"

    # Free reshape only (channels stay minor); the expand matmul inside the kernel
    # contracts the trailing Cin axis, so no XLA transpose op on the input side.
    x_sc = x_ndhwc.reshape(N, S, Cin).astype(f32)                              # (N, S, Cin)

    we = params["w_expand"].reshape(Ce, Cin).astype(f32)
    wp = params["w_pw"].reshape(Cout, Ce).astype(f32)
    w1t = params["se_w1"].reshape(Cr, Ce).T.astype(f32)                        # (Ce, Cr)
    b1r = params["se_b1"].reshape(1, Cr).astype(f32)
    w2t = params["se_w2"].reshape(Ce, Cr).T.astype(f32)                        # (Cr, Ce)
    b2r = params["se_b2"].reshape(1, Ce).astype(f32)
    ge = params["gamma_e"].reshape(Ce, 1).astype(f32)
    be = params["beta_e"].reshape(Ce, 1).astype(f32)
    gd = params["gamma_d"].reshape(Ce, 1).astype(f32)
    bd = params["beta_d"].reshape(Ce, 1).astype(f32)
    gp = params["gamma_p"].reshape(Cout, 1).astype(f32)
    bp = params["beta_p"].reshape(Cout, 1).astype(f32)

    # Fold softmax(dilation logits) into per-tap per-channel coefficients (hoisted),
    # deduping the centre tap shared by both dilations.
    ws = jax.nn.softmax(params["dil_logits"].astype(f32))
    dw = [params["dw_w1"].reshape(Ce, 3, 3, 3).astype(f32),
          params["dw_w2"].reshape(Ce, 3, 3, 3).astype(f32)]
    offsets, coef_cols, off_idx = [], [], {}
    for di, dil in enumerate((1, 2)):
        for kd in range(3):
            for kh in range(3):
                for kw in range(3):
                    off3 = ((kd - 1) * dil, (kh - 1) * dil, (kw - 1) * dil)
                    col = ws[di] * dw[di][:, kd, kh, kw]
                    if off3 in off_idx:
                        coef_cols[off_idx[off3]] = coef_cols[off_idx[off3]] + col
                    else:
                        off_idx[off3] = len(offsets)
                        offsets.append(off3)
                        coef_cols.append(col)
    T = len(offsets)                              # 53 (centre tap shared)
    coefT = jnp.stack(coef_cols, axis=1)          # (Ce, T)

    # Group taps by their (sh, sw) shift: one shared H/W boundary mask per group; the
    # zero margin of the flat buffer absorbs depth (sd) overflow, so no depth term.
    group_map = {}
    for t, (sd, sh, sw) in enumerate(offsets):
        group_map.setdefault((sh, sw), []).append((t, sd * H * W + sh * W + sw))
    hh = np.arange(H)[:, None]
    ww = np.arange(W)[None, :]
    mask_rows, groups = [], []
    for (sh, sw), taps in sorted(group_map.items()):
        valid = ((hh + sh >= 0) & (hh + sh < H) & (ww + sw >= 0) & (ww + sw < W))
        valid = np.broadcast_to(valid[None, :, :], (D, H, W)).reshape(S)
        if valid.all():
            mrow = -1                             # centre (0,0) group needs no mask
        else:
            mrow = len(mask_rows)
            mask_rows.append(valid.astype(np.float32))
        groups.append((mrow, tuple(taps)))
    groups = tuple(groups)
    mask = jnp.asarray(np.stack(mask_rows, axis=0) if mask_rows
                       else np.ones((1, S), np.float32))                       # (Gm, S)
    Gm = mask.shape[0]

    # Block-diagonal group-average matrices: one tiny matmul per GroupNorm gives both
    # the group mean and the group E[x^2] (hoisted out of the kernel).
    def avg2_mat(C, G):
        cg = C // G
        same = (np.arange(C)[:, None] // cg) == (np.arange(C)[None, :] // cg)
        a = same.astype(np.float32) / (S * cg)
        z2 = np.zeros((C, C), np.float32)
        return jnp.asarray(np.block([[a, z2], [z2, a]]))                       # (2C, 2C)
    ae2, ad2, ap2 = avg2_mat(Ce, 2), avg2_mat(Ce, 1), avg2_mat(Cout, 2)

    margin = 256                                   # lane-aligned, > max |flat offset|
    max_off = max(abs(o) for _, taps in groups for _, o in taps)
    assert max_off < margin
    padw = S + 2 * margin

    kernel = functools.partial(_amb_kernel, S=S, margin=margin, eps=eps, groups=groups)

    def full(shape):
        return pl.BlockSpec(shape, lambda n: (0,) * len(shape))

    out = pl.pallas_call(
        kernel,
        out_shape=jax.ShapeDtypeStruct((N, Cout, S), f32),
        grid=(N,),
        in_specs=[
            pl.BlockSpec((None, S, Cin), lambda n: (n, 0, 0)),   # x (per-sample)
            full((Ce, Cin)),                                     # expand weight
            full((Ce, 1)), full((Ce, 1)), full((2 * Ce, 2 * Ce)),      # expand GN
            full((Ce, T)),                                       # depthwise tap coeffs
            full((Gm, S)),                                       # shared (sh,sw) masks
            full((Ce, 1)), full((Ce, 1)), full((2 * Ce, 2 * Ce)),      # depthwise GN
            full((Ce, Cr)), full((1, Cr)),                       # SE fc1 (row form)
            full((Cr, Ce)), full((1, Ce)),                       # SE fc2 (row form)
            full((Cout, Ce)),                                    # pointwise weight
            full((Cout, 1)), full((Cout, 1)), full((2 * Cout, 2 * Cout)),  # pointwise GN
        ],
        out_specs=pl.BlockSpec((None, Cout, S), lambda n: (n, 0, 0)),
        scratch_shapes=[pltpu.VMEM((Ce, padw), f32)],
        compiler_params=pltpu.CompilerParams(
            dimension_semantics=("parallel",)),      # v7x: batch sharded over both TCs
    )(x_sc, we, ge, be, ae2, coefT, mask, gd, bd, ad2,
      w1t, b1r, w2t, b2r, wp, gp, bp, ap2)

    # Tiny output relayout back to the module's NDHWC layout.
    # TODO(synk): the output-side transpose stays a separate (tiny) XLA op; the kernel
    # keeps the lane-dense (Cout, S) store, which is the bigger win.
    return jnp.transpose(out.reshape(N, Cout, D, H, W), (0, 2, 3, 4, 1))


# ----------------------------- pure-JAX reference ---------------------------------
def _conv3d(x, w, *, padding=0, dilation=1, groups=1):
    return lax.conv_general_dilated(
        x, w, window_strides=(1, 1, 1),
        padding=[(padding, padding)] * 3,
        rhs_dilation=(dilation,) * 3,
        dimension_numbers=("NCDHW", "OIDHW", "NCDHW"),
        feature_group_count=groups)


def _group_norm_ref(x, num_groups, gamma, beta, eps=1e-5):
    n = x.shape[0]
    xr = x.reshape(n, num_groups, -1)
    mean = xr.mean(-1, keepdims=True)
    var = xr.var(-1, keepdims=True)
    xn = ((xr - mean) / jnp.sqrt(var + eps)).reshape(x.shape)
    return xn * gamma.reshape(1, -1, 1, 1, 1) + beta.reshape(1, -1, 1, 1, 1)


def _reference(x_ndhwc, p, *, eps=1e-5):
    Ce = p["w_expand"].shape[0]
    x = jnp.transpose(x_ndhwc, (0, 4, 1, 2, 3))                                # NCDHW
    y = _conv3d(x, p["w_expand"])
    y = jnp.maximum(_group_norm_ref(y, 2, p["gamma_e"], p["beta_e"], eps), 0.0)
    ws = jax.nn.softmax(p["dil_logits"])
    z = (ws[0] * _conv3d(y, p["dw_w1"], padding=1, dilation=1, groups=Ce)
         + ws[1] * _conv3d(y, p["dw_w2"], padding=2, dilation=2, groups=Ce))
    z = jnp.maximum(_group_norm_ref(z, 1, p["gamma_d"], p["beta_d"], eps), 0.0)
    s = z.mean(axis=(2, 3, 4))                                                 # (N, Ce)
    h = jnp.maximum(s @ p["se_w1"].reshape(-1, Ce).T + p["se_b1"], 0.0)
    e = jax.nn.sigmoid(h @ p["se_w2"].reshape(Ce, -1).T + p["se_b2"])
    z = z * e[:, :, None, None, None]
    o = _conv3d(z, p["w_pw"])
    o = _group_norm_ref(o, 2, p["gamma_p"], p["beta_p"], eps)
    return jnp.transpose(o, (0, 2, 3, 4, 1))                                   # NDHWC


if __name__ == "__main__":
    key = jax.random.PRNGKey(0)
    ks = jax.random.split(key, 16)

    N, in_ch, out_ch, expansion, ratio = 2, 4, 8, 4, 4
    D = H = W = 8
    Ce, Cr = expansion * in_ch, (expansion * in_ch) // ratio

    x = jax.random.normal(ks[0], (N, D, H, W, in_ch), jnp.float32)
    params = {
        "w_expand": jax.random.normal(ks[1], (Ce, in_ch, 1, 1, 1), jnp.float32) * 0.3,
        "gamma_e": 1.0 + 0.1 * jax.random.normal(ks[2], (Ce,), jnp.float32),
        "beta_e": 0.1 * jax.random.normal(ks[3], (Ce,), jnp.float32),
        "dw_w1": jax.random.normal(ks[4], (Ce, 1, 3, 3, 3), jnp.float32) * 0.2,
        "dw_w2": jax.random.normal(ks[5], (Ce, 1, 3, 3, 3), jnp.float32) * 0.2,
        "dil_logits": jax.random.normal(ks[6], (2,), jnp.float32),
        "gamma_d": 1.0 + 0.1 * jax.random.normal(ks[7], (Ce,), jnp.float32),
        "beta_d": 0.1 * jax.random.normal(ks[8], (Ce,), jnp.float32),
        "se_w1": jax.random.normal(ks[9], (Cr, Ce, 1, 1, 1), jnp.float32) * 0.3,
        "se_b1": 0.1 * jax.random.normal(ks[10], (Cr,), jnp.float32),
        "se_w2": jax.random.normal(ks[11], (Ce, Cr, 1, 1, 1), jnp.float32) * 0.3,
        "se_b2": 0.1 * jax.random.normal(ks[12], (Ce,), jnp.float32),
        "w_pw": jax.random.normal(ks[13], (out_ch, Ce, 1, 1, 1), jnp.float32) * 0.3,
        "gamma_p": 1.0 + 0.1 * jax.random.normal(ks[14], (out_ch,), jnp.float32),
        "beta_p": 0.1 * jax.random.normal(ks[15], (out_ch,), jnp.float32),
    }

    out = jax.jit(amb_conv1)(x, params)
    out = jax.block_until_ready(out)

    ref = _reference(x, params)
    assert out.shape == (N, D, H, W, out_ch), out.shape
    max_err = jnp.max(jnp.abs(out - ref))
    assert jnp.allclose(out, ref, rtol=1e-4, atol=1e-4), f"mismatch vs reference: {max_err}"

    print("KERNEL_OK")
</pallas_src>

<mosaic_0001>
module attributes {stable_mosaic.version = 11 : i64} {
  func.func @_amb_kernel(%arg0: i32, %arg1: memref<1x512x4xf32, #tpu.memory_space<vmem>>, %arg2: memref<16x4xf32, #tpu.memory_space<vmem>>, %arg3: memref<16x1xf32, #tpu.memory_space<vmem>>, %arg4: memref<16x1xf32, #tpu.memory_space<vmem>>, %arg5: memref<32x32xf32, #tpu.memory_space<vmem>>, %arg6: memref<16x53xf32, #tpu.memory_space<vmem>>, %arg7: memref<16x512xf32, #tpu.memory_space<vmem>>, %arg8: memref<16x1xf32, #tpu.memory_space<vmem>>, %arg9: memref<16x1xf32, #tpu.memory_space<vmem>>, %arg10: memref<32x32xf32, #tpu.memory_space<vmem>>, %arg11: memref<16x4xf32, #tpu.memory_space<vmem>>, %arg12: memref<1x4xf32, #tpu.memory_space<vmem>>, %arg13: memref<4x16xf32, #tpu.memory_space<vmem>>, %arg14: memref<1x16xf32, #tpu.memory_space<vmem>>, %arg15: memref<8x16xf32, #tpu.memory_space<vmem>>, %arg16: memref<8x1xf32, #tpu.memory_space<vmem>>, %arg17: memref<8x1xf32, #tpu.memory_space<vmem>>, %arg18: memref<16x16xf32, #tpu.memory_space<vmem>>, %arg19: memref<1x8x512xf32, #tpu.memory_space<vmem>>, %arg20: memref<16x1024xf32, #tpu.memory_space<vmem>>) attributes {dimension_semantics = [#tpu.dimension_semantics<parallel>], iteration_bounds = array<i64: 2>, scalar_prefetch = 0 : i64, scratch_operands = 1 : i64, tpu.core_type = #tpu.core_type<tc>, window_params = [{transform_indices = @transform_0, window_bounds = array<i64: 1, 512, 4>}, {pipeline_mode = #tpu.pipeline_mode<synchronous>, transform_indices = @transform_1, window_bounds = array<i64: 16, 4>}, {pipeline_mode = #tpu.pipeline_mode<synchronous>, transform_indices = @transform_2, window_bounds = array<i64: 16, 1>}, {pipeline_mode = #tpu.pipeline_mode<synchronous>, transform_indices = @transform_3, window_bounds = array<i64: 16, 1>}, {pipeline_mode = #tpu.pipeline_mode<synchronous>, transform_indices = @transform_4, window_bounds = array<i64: 32, 32>}, {pipeline_mode = #tpu.pipeline_mode<synchronous>, transform_indices = @transform_5, window_bounds = array<i64: 16, 53>}, {pipeline_mode = #tpu.pipeline_mode<synchronous>, transform_indices = @transform_6, window_bounds = array<i64: 16, 512>}, {pipeline_mode = #tpu.pipeline_mode<synchronous>, transform_indices = @transform_7, window_bounds = array<i64: 16, 1>}, {pipeline_mode = #tpu.pipeline_mode<synchronous>, transform_indices = @transform_8, window_bounds = array<i64: 16, 1>}, {pipeline_mode = #tpu.pipeline_mode<synchronous>, transform_indices = @transform_9, window_bounds = array<i64: 32, 32>}, {pipeline_mode = #tpu.pipeline_mode<synchronous>, transform_indices = @transform_10, window_bounds = array<i64: 16, 4>}, {pipeline_mode = #tpu.pipeline_mode<synchronous>, transform_indices = @transform_11, window_bounds = array<i64: 1, 4>}, {pipeline_mode = #tpu.pipeline_mode<synchronous>, transform_indices = @transform_12, window_bounds = array<i64: 4, 16>}, {pipeline_mode = #tpu.pipeline_mode<synchronous>, transform_indices = @transform_13, window_bounds = array<i64: 1, 16>}, {pipeline_mode = #tpu.pipeline_mode<synchronous>, transform_indices = @transform_14, window_bounds = array<i64: 8, 16>}, {pipeline_mode = #tpu.pipeline_mode<synchronous>, transform_indices = @transform_15, window_bounds = array<i64: 8, 1>}, {pipeline_mode = #tpu.pipeline_mode<synchronous>, transform_indices = @transform_16, window_bounds = array<i64: 8, 1>}, {pipeline_mode = #tpu.pipeline_mode<synchronous>, transform_indices = @transform_17, window_bounds = array<i64: 16, 16>}, {transform_indices = @transform_18, window_bounds = array<i64: 1, 8, 512>}]} {
    %c0 = arith.constant 0 : index
    %c0_0 = arith.constant 0 : index
    %0 = vector.load %arg2[%c0, %c0_0] : memref<16x4xf32, #tpu.memory_space<vmem>>, vector<16x4xf32>
    %c0_1 = arith.constant 0 : index
    %c0_2 = arith.constant 0 : index
    %c0_3 = arith.constant 0 : index
    %1 = vector.load %arg1[%c0_1, %c0_2, %c0_3] : memref<1x512x4xf32, #tpu.memory_space<vmem>>, vector<1x512x4xf32>
    %2 = vector.shape_cast %1 : vector<1x512x4xf32> to vector<512x4xf32>
    %cst = arith.constant dense<0.000000e+00> : vector<16x512xf32>
    %3 = tpu.matmul %0, %2, %cst {dimension_numbers = #tpu.dot_dimension_numbers<[1], [1], [0], [0], [0, 0, 1, 0], [], []>} : vector<16x4xf32>, vector<512x4xf32>, vector<16x512xf32> -> vector<16x512xf32>
    %c0_4 = arith.constant 0 : index
    %c0_5 = arith.constant 0 : index
    %4 = vector.load %arg5[%c0_4, %c0_5] : memref<32x32xf32, #tpu.memory_space<vmem>>, vector<32x32xf32>
    %c0_6 = arith.constant 0 : index
    %c0_7 = arith.constant 0 : index
    %5 = vector.load %arg3[%c0_6, %c0_7] : memref<16x1xf32, #tpu.memory_space<vmem>>, vector<16x1xf32>
    %c0_8 = arith.constant 0 : index
    %c0_9 = arith.constant 0 : index
    %6 = vector.load %arg4[%c0_8, %c0_9] : memref<16x1xf32, #tpu.memory_space<vmem>>, vector<16x1xf32>
    %cst_10 = arith.constant dense<0.000000e+00> : vector<16xf32>
    %7 = vector.multi_reduction <add>, %3, %cst_10 [1] : vector<16x512xf32> to vector<16xf32>
    %8 = vector.shape_cast %7 : vector<16xf32> to vector<16x1xf32>
    %9 = arith.mulf %3, %3 : vector<16x512xf32>
    %cst_11 = arith.constant dense<0.000000e+00> : vector<16xf32>
    %10 = vector.multi_reduction <add>, %9, %cst_11 [1] : vector<16x512xf32> to vector<16xf32>
    %11 = vector.shape_cast %10 : vector<16xf32> to vector<16x1xf32>
    %12 = tpu.concatenate %8, %11 in 0 : vector<16x1xf32>, vector<16x1xf32> -> vector<32x1xf32>
    %cst_12 = arith.constant dense<0.000000e+00> : vector<32x1xf32>
    %13 = tpu.matmul %4, %12, %cst_12 {dimension_numbers = #tpu.dot_dimension_numbers<[1], [0], [0], [1], [0, 0, 1, 1], [], []>} : vector<32x32xf32>, vector<32x1xf32>, vector<32x1xf32> -> vector<32x1xf32>
    %14 = vector.extract_strided_slice %13 {offsets = [0, 0], sizes = [16, 1], strides = [1, 1]} : vector<32x1xf32> to vector<16x1xf32>
    %15 = vector.extract_strided_slice %13 {offsets = [16, 0], sizes = [16, 1], strides = [1, 1]} : vector<32x1xf32> to vector<16x1xf32>
    %16 = arith.mulf %14, %14 : vector<16x1xf32>
    %17 = arith.subf %15, %16 : vector<16x1xf32>
    %cst_13 = arith.constant 0.000000e+00 : f32
    %18 = vector.broadcast %cst_13 : f32 to vector<16x1xf32>
    %19 = arith.maximumf %17, %18 : vector<16x1xf32>
    %cst_14 = arith.constant 9.99999974E-6 : f32
    %20 = vector.broadcast %cst_14 : f32 to vector<16x1xf32>
    %21 = arith.addf %19, %20 : vector<16x1xf32>
    %22 = math.rsqrt %21 : vector<16x1xf32>
    %23 = vector.broadcast %14 : vector<16x1xf32> to vector<16x512xf32>
    %24 = arith.subf %3, %23 : vector<16x512xf32>
    %25 = vector.broadcast %22 : vector<16x1xf32> to vector<16x512xf32>
    %26 = arith.mulf %24, %25 : vector<16x512xf32>
    %27 = vector.broadcast %5 : vector<16x1xf32> to vector<16x512xf32>
    %28 = arith.mulf %26, %27 : vector<16x512xf32>
    %29 = vector.broadcast %6 : vector<16x1xf32> to vector<16x512xf32>
    %30 = arith.addf %28, %29 : vector<16x512xf32>
    %cst_15 = arith.constant 0.000000e+00 : f32
    %31 = vector.broadcast %cst_15 : f32 to vector<16x512xf32>
    %32 = arith.maximumf %30, %31 : vector<16x512xf32>
    %cst_16 = arith.constant 0.000000e+00 : f32
    %33 = vector.broadcast %cst_16 : f32 to vector<16x256xf32>
    %c0_17 = arith.constant 0 : index
    %c0_18 = arith.constant 0 : index
    %34 = vector.load %arg20[%c0_17, %c0_18] : memref<16x1024xf32, #tpu.memory_space<vmem>>, vector<16x256xf32>
    tpu.vector_store %arg20[%c0_17, %c0_18], %33 {strides = array<i32>} : memref<16x1024xf32, #tpu.memory_space<vmem>>, vector<16x256xf32>,
    %cst_19 = arith.constant 0.000000e+00 : f32
    %35 = vector.broadcast %cst_19 : f32 to vector<16x256xf32>
    %c0_20 = arith.constant 0 : index
    %c768 = arith.constant 768 : index
    %36 = vector.load %arg20[%c0_20, %c768] : memref<16x1024xf32, #tpu.memory_space<vmem>>, vector<16x256xf32>
    tpu.vector_store %arg20[%c0_20, %c768], %35 {strides = array<i32>} : memref<16x1024xf32, #tpu.memory_space<vmem>>, vector<16x256xf32>,
    %c0_21 = arith.constant 0 : index
    %c256 = arith.constant 256 : index
    %37 = vector.load %arg20[%c0_21, %c256] : memref<16x1024xf32, #tpu.memory_space<vmem>>, vector<16x512xf32>
    tpu.vector_store %arg20[%c0_21, %c256], %32 {strides = array<i32>} : memref<16x1024xf32, #tpu.memory_space<vmem>>, vector<16x512xf32>,
    %cst_22 = arith.constant 0.000000e+00 : f32
    %38 = vector.broadcast %cst_22 : f32 to vector<16x512xf32>
    %c0_23 = arith.constant 0 : index
    %c110 = arith.constant 110 : index
    %39 = vector.load %arg20[%c0_23, %c110] : memref<16x1024xf32, #tpu.memory_space<vmem>>, vector<16x512xf32>
    %c0_24 = arith.constant 0 : index
    %c27 = arith.constant 27 : index
    %40 = vector.load %arg6[%c0_24, %c27] : memref<16x53xf32, #tpu.memory_space<vmem>>, vector<16x1xf32>
    %41 = vector.broadcast %40 : vector<16x1xf32> to vector<16x512xf32>
    %42 = arith.mulf %41, %39 : vector<16x512xf32>
    %c0_25 = arith.constant 0 : index
    %c238 = arith.constant 238 : index
    %43 = vector.load %arg20[%c0_25, %c238] : memref<16x1024xf32, #tpu.memory_space<vmem>>, vector<16x512xf32>
    %c0_26 = arith.constant 0 : index
    %c36 = arith.constant 36 : index
    %44 = vector.load %arg6[%c0_26, %c36] : memref<16x53xf32, #tpu.memory_space<vmem>>, vector<16x1xf32>
    %45 = vector.broadcast %44 : vector<16x1xf32> to vector<16x512xf32>
    %46 = arith.mulf %45, %43 : vector<16x512xf32>
    %47 = arith.addf %42, %46 : vector<16x512xf32>
    %c0_27 = arith.constant 0 : index
    %c366 = arith.constant 366 : index
    %48 = vector.load %arg20[%c0_27, %c366] : memref<16x1024xf32, #tpu.memory_space<vmem>>, vector<16x512xf32>
    %c0_28 = arith.constant 0 : index
    %c44 = arith.constant 44 : index
    %49 = vector.load %arg6[%c0_28, %c44] : memref<16x53xf32, #tpu.memory_space<vmem>>, vector<16x1xf32>
    %50 = vector.broadcast %49 : vector<16x1xf32> to vector<16x512xf32>
    %51 = arith.mulf %50, %48 : vector<16x512xf32>
    %52 = arith.addf %47, %51 : vector<16x512xf32>
    %c0_29 = arith.constant 0 : index
    %c0_30 = arith.constant 0 : index
    %53 = vector.load %arg7[%c0_29, %c0_30] : memref<16x512xf32, #tpu.memory_space<vmem>>, vector<1x512xf32>
    %54 = vector.broadcast %53 : vector<1x512xf32> to vector<16x512xf32>
    %55 = arith.mulf %52, %54 : vector<16x512xf32>
    %56 = arith.addf %38, %55 : vector<16x512xf32>
    %c0_31 = arith.constant 0 : index
    %c112 = arith.constant 112 : index
    %57 = vector.load %arg20[%c0_31, %c112] : memref<16x1024xf32, #tpu.memory_space<vmem>>, vector<16x512xf32>
    %c0_32 = arith.constant 0 : index
    %c28 = arith.constant 28 : index
    %58 = vector.load %arg6[%c0_32, %c28] : memref<16x53xf32, #tpu.memory_space<vmem>>, vector<16x1xf32>
    %59 = vector.broadcast %58 : vector<16x1xf32> to vector<16x512xf32>
    %60 = arith.mulf %59, %57 : vector<16x512xf32>
    %c0_33 = arith.constant 0 : index
    %c240 = arith.constant 240 : index
    %61 = vector.load %arg20[%c0_33, %c240] : memref<16x1024xf32, #tpu.memory_space<vmem>>, vector<16x512xf32>
    %c0_34 = arith.constant 0 : index
    %c37 = arith.constant 37 : index
    %62 = vector.load %arg6[%c0_34, %c37] : memref<16x53xf32, #tpu.memory_space<vmem>>, vector<16x1xf32>
    %63 = vector.broadcast %62 : vector<16x1xf32> to vector<16x512xf32>
    %64 = arith.mulf %63, %61 : vector<16x512xf32>
    %65 = arith.addf %60, %64 : vector<16x512xf32>
    %c0_35 = arith.constant 0 : index
    %c368 = arith.constant 368 : index
    %66 = vector.load %arg20[%c0_35, %c368] : memref<16x1024xf32, #tpu.memory_space<vmem>>, vector<16x512xf32>
    %c0_36 = arith.constant 0 : index
    %c45 = arith.constant 45 : index
    %67 = vector.load %arg6[%c0_36, %c45] : memref<16x53xf32, #tpu.memory_space<vmem>>, vector<16x1xf32>
    %68 = vector.broadcast %67 : vector<16x1xf32> to vector<16x512xf32>
    %69 = arith.mulf %68, %66 : vector<16x512xf32>
    %70 = arith.addf %65, %69 : vector<16x512xf32>
    %c1 = arith.constant 1 : index
    %c0_37 = arith.constant 0 : index
    %71 = vector.load %arg7[%c1, %c0_37] : memref<16x512xf32, #tpu.memory_space<vmem>>, vector<1x512xf32>
    %72 = vector.broadcast %71 : vector<1x512xf32> to vector<16x512xf32>
    %73 = arith.mulf %70, %72 : vector<16x512xf32>
    %74 = arith.addf %56, %73 : vector<16x512xf32>
    %c0_38 = arith.constant 0 : index
    %c114 = arith.constant 114 : index
    %75 = vector.load %arg20[%c0_38, %c114] : memref<16x1024xf32, #tpu.memory_space<vmem>>, vector<16x512xf32>
    %c0_39 = arith.constant 0 : index
    %c29 = arith.constant 29 : index
    %76 = vector.load %arg6[%c0_39, %c29] : memref<16x53xf32, #tpu.memory_space<vmem>>, vector<16x1xf32>
    %77 = vector.broadcast %76 : vector<16x1xf32> to vector<16x512xf32>
    %78 = arith.mulf %77, %75 : vector<16x512xf32>
    %c0_40 = arith.constant 0 : index
    %c242 = arith.constant 242 : index
    %79 = vector.load %arg20[%c0_40, %c242] : memref<16x1024xf32, #tpu.memory_space<vmem>>, vector<16x512xf32>
    %c0_41 = arith.constant 0 : index
    %c38 = arith.constant 38 : index
    %80 = vector.load %arg6[%c0_41, %c38] : memref<16x53xf32, #tpu.memory_space<vmem>>, vector<16x1xf32>
    %81 = vector.broadcast %80 : vector<16x1xf32> to vector<16x512xf32>
    %82 = arith.mulf %81, %79 : vector<16x512xf32>
    %83 = arith.addf %78, %82 : vector<16x512xf32>
    %c0_42 = arith.constant 0 : index
    %c370 = arith.constant 370 : index
    %84 = vector.load %arg20[%c0_42, %c370] : memref<16x1024xf32, #tpu.memory_space<vmem>>, vector<16x512xf32>
    %c0_43 = arith.constant 0 : index
    %c46 = arith.constant 46 : index
    %85 = vector.load %arg6[%c0_43, %c46] : memref<16x53xf32, #tpu.memory_space<vmem>>, vector<16x1xf32>
    %86 = vector.broadcast %85 : vector<16x1xf32> to vector<16x512xf32>
    %87 = arith.mulf %86, %84 : vector<16x512xf32>
    %88 = arith.addf %83, %87 : vector<16x512xf32>
    %c2 = arith.constant 2 : index
    %c0_44 = arith.constant 0 : index
    %89 = vector.load %arg7[%c2, %c0_44] : memref<16x512xf32, #tpu.memory_space<vmem>>, vector<1x512xf32>
    %90 = vector.broadcast %89 : vector<1x512xf32> to vector<16x512xf32>
    %91 = arith.mulf %88, %90 : vector<16x512xf32>
    %92 = arith.addf %74, %91 : vector<16x512xf32>
    %c0_45 = arith.constant 0 : index
    %c183 = arith.constant 183 : index
    %93 = vector.load %arg20[%c0_45, %c183] : memref<16x1024xf32, #tpu.memory_space<vmem>>, vector<16x512xf32>
    %c0_46 = arith.constant 0 : index
    %c0_47 = arith.constant 0 : index
    %94 = vector.load %arg6[%c0_46, %c0_47] : memref<16x53xf32, #tpu.memory_space<vmem>>, vector<16x1xf32>
    %95 = vector.broadcast %94 : vector<16x1xf32> to vector<16x512xf32>
    %96 = arith.mulf %95, %93 : vector<16x512xf32>
    %c0_48 = arith.constant 0 : index
    %c247 = arith.constant 247 : index
    %97 = vector.load %arg20[%c0_48, %c247] : memref<16x1024xf32, #tpu.memory_space<vmem>>, vector<16x512xf32>
    %c0_49 = arith.constant 0 : index
    %c9 = arith.constant 9 : index
    %98 = vector.load %arg6[%c0_49, %c9] : memref<16x53xf32, #tpu.memory_space<vmem>>, vector<16x1xf32>
    %99 = vector.broadcast %98 : vector<16x1xf32> to vector<16x512xf32>
    %100 = arith.mulf %99, %97 : vector<16x512xf32>
    %101 = arith.addf %96, %100 : vector<16x512xf32>
    %c0_50 = arith.constant 0 : index
    %c311 = arith.constant 311 : index
    %102 = vector.load %arg20[%c0_50, %c311] : memref<16x1024xf32, #tpu.memory_space<vmem>>, vector<16x512xf32>
    %c0_51 = arith.constant 0 : index
    %c18 = arith.constant 18 : index
    %103 = vector.load %arg6[%c0_51, %c18] : memref<16x53xf32, #tpu.memory_space<vmem>>, vector<16x1xf32>
    %104 = vector.broadcast %103 : vector<16x1xf32> to vector<16x512xf32>
    %105 = arith.mulf %104, %102 : vector<16x512xf32>
    %106 = arith.addf %101, %105 : vector<16x512xf32>
    %c3 = arith.constant 3 : index
    %c0_52 = arith.constant 0 : index
    %107 = vector.load %arg7[%c3, %c0_52] : memref<16x512xf32, #tpu.memory_space<vmem>>, vector<1x512xf32>
    %108 = vector.broadcast %107 : vector<1x512xf32> to vector<16x512xf32>
    %109 = arith.mulf %106, %108 : vector<16x512xf32>
    %110 = arith.addf %92, %109 : vector<16x512xf32>
    %c0_53 = arith.constant 0 : index
    %c184 = arith.constant 184 : index
    %111 = vector.load %arg20[%c0_53, %c184] : memref<16x1024xf32, #tpu.memory_space<vmem>>, vector<16x512xf32>
    %c0_54 = arith.constant 0 : index
    %c1_55 = arith.constant 1 : index
    %112 = vector.load %arg6[%c0_54, %c1_55] : memref<16x53xf32, #tpu.memory_space<vmem>>, vector<16x1xf32>
    %113 = vector.broadcast %112 : vector<16x1xf32> to vector<16x512xf32>
    %114 = arith.mulf %113, %111 : vector<16x512xf32>
    %c0_56 = arith.constant 0 : index
    %c248 = arith.constant 248 : index
    %115 = vector.load %arg20[%c0_56, %c248] : memref<16x1024xf32, #tpu.memory_space<vmem>>, vector<16x512xf32>
    %c0_57 = arith.constant 0 : index
    %c10 = arith.constant 10 : index
    %116 = vector.load %arg6[%c0_57, %c10] : memref<16x53xf32, #tpu.memory_space<vmem>>, vector<16x1xf32>
    %117 = vector.broadcast %116 : vector<16x1xf32> to vector<16x512xf32>
    %118 = arith.mulf %117, %115 : vector<16x512xf32>
    %119 = arith.addf %114, %118 : vector<16x512xf32>
    %c0_58 = arith.constant 0 : index
    %c312 = arith.constant 312 : index
    %120 = vector.load %arg20[%c0_58, %c312] : memref<16x1024xf32, #tpu.memory_space<vmem>>, vector<16x512xf32>
    %c0_59 = arith.constant 0 : index
    %c19 = arith.constant 19 : index
    %121 = vector.load %arg6[%c0_59, %c19] : memref<16x53xf32, #tpu.memory_space<vmem>>, vector<16x1xf32>
    %122 = vector.broadcast %121 : vector<16x1xf32> to vector<16x512xf32>
    %123 = arith.mulf %122, %120 : vector<16x512xf32>
    %124 = arith.addf %119, %123 : vector<16x512xf32>
    %c4 = arith.constant 4 : index
    %c0_60 = arith.constant 0 : index
    %125 = vector.load %arg7[%c4, %c0_60] : memref<16x512xf32, #tpu.memory_space<vmem>>, vector<1x512xf32>
    %126 = vector.broadcast %125 : vector<1x512xf32> to vector<16x512xf32>
    %127 = arith.mulf %124, %126 : vector<16x512xf32>
    %128 = arith.addf %110, %127 : vector<16x512xf32>
    %c0_61 = arith.constant 0 : index
    %c185 = arith.constant 185 : index
    %129 = vector.load %arg20[%c0_61, %c185] : memref<16x1024xf32, #tpu.memory_space<vmem>>, vector<16x512xf32>
    %c0_62 = arith.constant 0 : index
    %c2_63 = arith.constant 2 : index
    %130 = vector.load %arg6[%c0_62, %c2_63] : memref<16x53xf32, #tpu.memory_space<vmem>>, vector<16x1xf32>
    %131 = vector.broadcast %130 : vector<16x1xf32> to vector<16x512xf32>
    %132 = arith.mulf %131, %129 : vector<16x512xf32>
    %c0_64 = arith.constant 0 : index
    %c249 = arith.constant 249 : index
    %133 = vector.load %arg20[%c0_64, %c249] : memref<16x1024xf32, #tpu.memory_space<vmem>>, vector<16x512xf32>
    %c0_65 = arith.constant 0 : index
    %c11 = arith.constant 11 : index
    %134 = vector.load %arg6[%c0_65, %c11] : memref<16x53xf32, #tpu.memory_space<vmem>>, vector<16x1xf32>
    %135 = vector.broadcast %134 : vector<16x1xf32> to vector<16x512xf32>
    %136 = arith.mulf %135, %133 : vector<16x512xf32>
    %137 = arith.addf %132, %136 : vector<16x512xf32>
    %c0_66 = arith.constant 0 : index
    %c313 = arith.constant 313 : index
    %138 = vector.load %arg20[%c0_66, %c313] : memref<16x1024xf32, #tpu.memory_space<vmem>>, vector<16x512xf32>
    %c0_67 = arith.constant 0 : index
    %c20 = arith.constant 20 : index
    %139 = vector.load %arg6[%c0_67, %c20] : memref<16x53xf32, #tpu.memory_space<vmem>>, vector<16x1xf32>
    %140 = vector.broadcast %139 : vector<16x1xf32> to vector<16x512xf32>
    %141 = arith.mulf %140, %138 : vector<16x512xf32>
    %142 = arith.addf %137, %141 : vector<16x512xf32>
    %c5 = arith.constant 5 : index
    %c0_68 = arith.constant 0 : index
    %143 = vector.load %arg7[%c5, %c0_68] : memref<16x512xf32, #tpu.memory_space<vmem>>, vector<1x512xf32>
    %144 = vector.broadcast %143 : vector<1x512xf32> to vector<16x512xf32>
    %145 = arith.mulf %142, %144 : vector<16x512xf32>
    %146 = arith.addf %128, %145 : vector<16x512xf32>
    %c0_69 = arith.constant 0 : index
    %c126 = arith.constant 126 : index
    %147 = vector.load %arg20[%c0_69, %c126] : memref<16x1024xf32, #tpu.memory_space<vmem>>, vector<16x512xf32>
    %c0_70 = arith.constant 0 : index
    %c30 = arith.constant 30 : index
    %148 = vector.load %arg6[%c0_70, %c30] : memref<16x53xf32, #tpu.memory_space<vmem>>, vector<16x1xf32>
    %149 = vector.broadcast %148 : vector<16x1xf32> to vector<16x512xf32>
    %150 = arith.mulf %149, %147 : vector<16x512xf32>
    %c0_71 = arith.constant 0 : index
    %c254 = arith.constant 254 : index
    %151 = vector.load %arg20[%c0_71, %c254] : memref<16x1024xf32, #tpu.memory_space<vmem>>, vector<16x512xf32>
    %c0_72 = arith.constant 0 : index
    %c39 = arith.constant 39 : index
    %152 = vector.load %arg6[%c0_72, %c39] : memref<16x53xf32, #tpu.memory_space<vmem>>, vector<16x1xf32>
    %153 = vector.broadcast %152 : vector<16x1xf32> to vector<16x512xf32>
    %154 = arith.mulf %153, %151 : vector<16x512xf32>
    %155 = arith.addf %150, %154 : vector<16x512xf32>
    %c0_73 = arith.constant 0 : index
    %c382 = arith.constant 382 : index
    %156 = vector.load %arg20[%c0_73, %c382] : memref<16x1024xf32, #tpu.memory_space<vmem>>, vector<16x512xf32>
    %c0_74 = arith.constant 0 : index
    %c47 = arith.constant 47 : index
    %157 = vector.load %arg6[%c0_74, %c47] : memref<16x53xf32, #tpu.memory_space<vmem>>, vector<16x1xf32>
    %158 = vector.broadcast %157 : vector<16x1xf32> to vector<16x512xf32>
    %159 = arith.mulf %158, %156 : vector<16x512xf32>
    %160 = arith.addf %155, %159 : vector<16x512xf32>
    %c6 = arith.constant 6 : index
    %c0_75 = arith.constant 0 : index
    %161 = vector.load %arg7[%c6, %c0_75] : memref<16x512xf32, #tpu.memory_space<vmem>>, vector<1x512xf32>
    %162 = vector.broadcast %161 : vector<1x512xf32> to vector<16x512xf32>
    %163 = arith.mulf %160, %162 : vector<16x512xf32>
    %164 = arith.addf %146, %163 : vector<16x512xf32>
    %c0_76 = arith.constant 0 : index
    %c191 = arith.constant 191 : index
    %165 = vector.load %arg20[%c0_76, %c191] : memref<16x1024xf32, #tpu.memory_space<vmem>>, vector<16x512xf32>
    %c0_77 = arith.constant 0 : index
    %c3_78 = arith.constant 3 : index
    %166 = vector.load %arg6[%c0_77, %c3_78] : memref<16x53xf32, #tpu.memory_space<vmem>>, vector<16x1xf32>
    %167 = vector.broadcast %166 : vector<16x1xf32> to vector<16x512xf32>
    %168 = arith.mulf %167, %165 : vector<16x512xf32>
    %c0_79 = arith.constant 0 : index
    %c255 = arith.constant 255 : index
    %169 = vector.load %arg20[%c0_79, %c255] : memref<16x1024xf32, #tpu.memory_space<vmem>>, vector<16x512xf32>
    %c0_80 = arith.constant 0 : index
    %c12 = arith.constant 12 : index
    %170 = vector.load %arg6[%c0_80, %c12] : memref<16x53xf32, #tpu.memory_space<vmem>>, vector<16x1xf32>
    %171 = vector.broadcast %170 : vector<16x1xf32> to vector<16x512xf32>
    %172 = arith.mulf %171, %169 : vector<16x512xf32>
    %173 = arith.addf %168, %172 : vector<16x512xf32>
    %c0_81 = arith.constant 0 : index
    %c319 = arith.constant 319 : index
    %174 = vector.load %arg20[%c0_81, %c319] : memref<16x1024xf32, #tpu.memory_space<vmem>>, vector<16x512xf32>
    %c0_82 = arith.constant 0 : index
    %c21 = arith.constant 21 : index
    %175 = vector.load %arg6[%c0_82, %c21] : memref<16x53xf32, #tpu.memory_space<vmem>>, vector<16x1xf32>
    %176 = vector.broadcast %175 : vector<16x1xf32> to vector<16x512xf32>
    %177 = arith.mulf %176, %174 : vector<16x512xf32>
    %178 = arith.addf %173, %177 : vector<16x512xf32>
    %c7 = arith.constant 7 : index
    %c0_83 = arith.constant 0 : index
    %179 = vector.load %arg7[%c7, %c0_83] : memref<16x512xf32, #tpu.memory_space<vmem>>, vector<1x512xf32>
    %180 = vector.broadcast %179 : vector<1x512xf32> to vector<16x512xf32>
    %181 = arith.mulf %178, %180 : vector<16x512xf32>
    %182 = arith.addf %164, %181 : vector<16x512xf32>
    %c0_84 = arith.constant 0 : index
    %c192 = arith.constant 192 : index
    %183 = vector.load %arg20[%c0_84, %c192] : memref<16x1024xf32, #tpu.memory_space<vmem>>, vector<16x512xf32>
    %c0_85 = arith.constant 0 : index
    %c4_86 = arith.constant 4 : index
    %184 = vector.load %arg6[%c0_85, %c4_86] : memref<16x53xf32, #tpu.memory_space<vmem>>, vector<16x1xf32>
    %185 = vector.broadcast %184 : vector<16x1xf32> to vector<16x512xf32>
    %186 = arith.mulf %185, %183 : vector<16x512xf32>
    %c0_87 = arith.constant 0 : index
    %c256_88 = arith.constant 256 : index
    %187 = vector.load %arg20[%c0_87, %c256_88] : memref<16x1024xf32, #tpu.memory_space<vmem>>, vector<16x512xf32>
    %c0_89 = arith.constant 0 : index
    %c13 = arith.constant 13 : index
    %188 = vector.load %arg6[%c0_89, %c13] : memref<16x53xf32, #tpu.memory_space<vmem>>, vector<16x1xf32>
    %189 = vector.broadcast %188 : vector<16x1xf32> to vector<16x512xf32>
    %190 = arith.mulf %189, %187 : vector<16x512xf32>
    %191 = arith.addf %186, %190 : vector<16x512xf32>
    %c0_90 = arith.constant 0 : index
    %c320 = arith.constant 320 : index
    %192 = vector.load %arg20[%c0_90, %c320] : memref<16x1024xf32, #tpu.memory_space<vmem>>, vector<16x512xf32>
    %c0_91 = arith.constant 0 : index
    %c22 = arith.constant 22 : index
    %193 = vector.load %arg6[%c0_91, %c22] : memref<16x53xf32, #tpu.memory_space<vmem>>, vector<16x1xf32>
    %194 = vector.broadcast %193 : vector<16x1xf32> to vector<16x512xf32>
    %195 = arith.mulf %194, %192 : vector<16x512xf32>
    %196 = arith.addf %191, %195 : vector<16x512xf32>
    %c0_92 = arith.constant 0 : index
    %c128 = arith.constant 128 : index
    %197 = vector.load %arg20[%c0_92, %c128] : memref<16x1024xf32, #tpu.memory_space<vmem>>, vector<16x512xf32>
    %c0_93 = arith.constant 0 : index
    %c31 = arith.constant 31 : index
    %198 = vector.load %arg6[%c0_93, %c31] : memref<16x53xf32, #tpu.memory_space<vmem>>, vector<16x1xf32>
    %199 = vector.broadcast %198 : vector<16x1xf32> to vector<16x512xf32>
    %200 = arith.mulf %199, %197 : vector<16x512xf32>
    %201 = arith.addf %196, %200 : vector<16x512xf32>
    %c0_94 = arith.constant 0 : index
    %c384 = arith.constant 384 : index
    %202 = vector.load %arg20[%c0_94, %c384] : memref<16x1024xf32, #tpu.memory_space<vmem>>, vector<16x512xf32>
    %c0_95 = arith.constant 0 : index
    %c48 = arith.constant 48 : index
    %203 = vector.load %arg6[%c0_95, %c48] : memref<16x53xf32, #tpu.memory_space<vmem>>, vector<16x1xf32>
    %204 = vector.broadcast %203 : vector<16x1xf32> to vector<16x512xf32>
    %205 = arith.mulf %204, %202 : vector<16x512xf32>
    %206 = arith.addf %201, %205 : vector<16x512xf32>
    %207 = arith.addf %182, %206 : vector<16x512xf32>
    %c0_96 = arith.constant 0 : index
    %c193 = arith.constant 193 : index
    %208 = vector.load %arg20[%c0_96, %c193] : memref<16x1024xf32, #tpu.memory_space<vmem>>, vector<16x512xf32>
    %c0_97 = arith.constant 0 : index
    %c5_98 = arith.constant 5 : index
    %209 = vector.load %arg6[%c0_97, %c5_98] : memref<16x53xf32, #tpu.memory_space<vmem>>, vector<16x1xf32>
    %210 = vector.broadcast %209 : vector<16x1xf32> to vector<16x512xf32>
    %211 = arith.mulf %210, %208 : vector<16x512xf32>
    %c0_99 = arith.constant 0 : index
    %c257 = arith.constant 257 : index
    %212 = vector.load %arg20[%c0_99, %c257] : memref<16x1024xf32, #tpu.memory_space<vmem>>, vector<16x512xf32>
    %c0_100 = arith.constant 0 : index
    %c14 = arith.constant 14 : index
    %213 = vector.load %arg6[%c0_100, %c14] : memref<16x53xf32, #tpu.memory_space<vmem>>, vector<16x1xf32>
    %214 = vector.broadcast %213 : vector<16x1xf32> to vector<16x512xf32>
    %215 = arith.mulf %214, %212 : vector<16x512xf32>
    %216 = arith.addf %211, %215 : vector<16x512xf32>
    %c0_101 = arith.constant 0 : index
    %c321 = arith.constant 321 : index
    %217 = vector.load %arg20[%c0_101, %c321] : memref<16x1024xf32, #tpu.memory_space<vmem>>, vector<16x512xf32>
    %c0_102 = arith.constant 0 : index
    %c23 = arith.constant 23 : index
    %218 = vector.load %arg6[%c0_102, %c23] : memref<16x53xf32, #tpu.memory_space<vmem>>, vector<16x1xf32>
    %219 = vector.broadcast %218 : vector<16x1xf32> to vector<16x512xf32>
    %220 = arith.mulf %219, %217 : vector<16x512xf32>
    %221 = arith.addf %216, %220 : vector<16x512xf32>
    %c8 = arith.constant 8 : index
    %c0_103 = arith.constant 0 : index
    %222 = vector.load %arg7[%c8, %c0_103] : memref<16x512xf32, #tpu.memory_space<vmem>>, vector<1x512xf32>
    %223 = vector.broadcast %222 : vector<1x512xf32> to vector<16x512xf32>
    %224 = arith.mulf %221, %223 : vector<16x512xf32>
    %225 = arith.addf %207, %224 : vector<16x512xf32>
    %c0_104 = arith.constant 0 : index
    %c130 = arith.constant 130 : index
    %226 = vector.load %arg20[%c0_104, %c130] : memref<16x1024xf32, #tpu.memory_space<vmem>>, vector<16x512xf32>
    %c0_105 = arith.constant 0 : index
    %c32 = arith.constant 32 : index
    %227 = vector.load %arg6[%c0_105, %c32] : memref<16x53xf32, #tpu.memory_space<vmem>>, vector<16x1xf32>
    %228 = vector.broadcast %227 : vector<16x1xf32> to vector<16x512xf32>
    %229 = arith.mulf %228, %226 : vector<16x512xf32>
    %c0_106 = arith.constant 0 : index
    %c258 = arith.constant 258 : index
    %230 = vector.load %arg20[%c0_106, %c258] : memref<16x1024xf32, #tpu.memory_space<vmem>>, vector<16x512xf32>
    %c0_107 = arith.constant 0 : index
    %c40 = arith.constant 40 : index
    %231 = vector.load %arg6[%c0_107, %c40] : memref<16x53xf32, #tpu.memory_space<vmem>>, vector<16x1xf32>
    %232 = vector.broadcast %231 : vector<16x1xf32> to vector<16x512xf32>
    %233 = arith.mulf %232, %230 : vector<16x512xf32>
    %234 = arith.addf %229, %233 : vector<16x512xf32>
    %c0_108 = arith.constant 0 : index
    %c386 = arith.constant 386 : index
    %235 = vector.load %arg20[%c0_108, %c386] : memref<16x1024xf32, #tpu.memory_space<vmem>>, vector<16x512xf32>
    %c0_109 = arith.constant 0 : index
    %c49 = arith.constant 49 : index
    %236 = vector.load %arg6[%c0_109, %c49] : memref<16x53xf32, #tpu.memory_space<vmem>>, vector<16x1xf32>
    %237 = vector.broadcast %236 : vector<16x1xf32> to vector<16x512xf32>
    %238 = arith.mulf %237, %235 : vector<16x512xf32>
    %239 = arith.addf %234, %238 : vector<16x512xf32>
    %c9_110 = arith.constant 9 : index
    %c0_111 = arith.constant 0 : index
    %240 = vector.load %arg7[%c9_110, %c0_111] : memref<16x512xf32, #tpu.memory_space<vmem>>, vector<1x512xf32>
    %241 = vector.broadcast %240 : vector<1x512xf32> to vector<16x512xf32>
    %242 = arith.mulf %239, %241 : vector<16x512xf32>
    %243 = arith.addf %225, %242 : vector<16x512xf32>
    %c0_112 = arith.constant 0 : index
    %c199 = arith.constant 199 : index
    %244 = vector.load %arg20[%c0_112, %c199] : memref<16x1024xf32, #tpu.memory_space<vmem>>, vector<16x512xf32>
    %c0_113 = arith.constant 0 : index
    %c6_114 = arith.constant 6 : index
    %245 = vector.load %arg6[%c0_113, %c6_114] : memref<16x53xf32, #tpu.memory_space<vmem>>, vector<16x1xf32>
    %246 = vector.broadcast %245 : vector<16x1xf32> to vector<16x512xf32>
    %247 = arith.mulf %246, %244 : vector<16x512xf32>
    %c0_115 = arith.constant 0 : index
    %c263 = arith.constant 263 : index
    %248 = vector.load %arg20[%c0_115, %c263] : memref<16x1024xf32, #tpu.memory_space<vmem>>, vector<16x512xf32>
    %c0_116 = arith.constant 0 : index
    %c15 = arith.constant 15 : index
    %249 = vector.load %arg6[%c0_116, %c15] : memref<16x53xf32, #tpu.memory_space<vmem>>, vector<16x1xf32>
    %250 = vector.broadcast %249 : vector<16x1xf32> to vector<16x512xf32>
    %251 = arith.mulf %250, %248 : vector<16x512xf32>
    %252 = arith.addf %247, %251 : vector<16x512xf32>
    %c0_117 = arith.constant 0 : index
    %c327 = arith.constant 327 : index
    %253 = vector.load %arg20[%c0_117, %c327] : memref<16x1024xf32, #tpu.memory_space<vmem>>, vector<16x512xf32>
    %c0_118 = arith.constant 0 : index
    %c24 = arith.constant 24 : index
    %254 = vector.load %arg6[%c0_118, %c24] : memref<16x53xf32, #tpu.memory_space<vmem>>, vector<16x1xf32>
    %255 = vector.broadcast %254 : vector<16x1xf32> to vector<16x512xf32>
    %256 = arith.mulf %255, %253 : vector<16x512xf32>
    %257 = arith.addf %252, %256 : vector<16x512xf32>
    %c10_119 = arith.constant 10 : index
    %c0_120 = arith.constant 0 : index
    %258 = vector.load %arg7[%c10_119, %c0_120] : memref<16x512xf32, #tpu.memory_space<vmem>>, vector<1x512xf32>
    %259 = vector.broadcast %258 : vector<1x512xf32> to vector<16x512xf32>
    %260 = arith.mulf %257, %259 : vector<16x512xf32>
    %261 = arith.addf %243, %260 : vector<16x512xf32>
    %c0_121 = arith.constant 0 : index
    %c200 = arith.constant 200 : index
    %262 = vector.load %arg20[%c0_121, %c200] : memref<16x1024xf32, #tpu.memory_space<vmem>>, vector<16x512xf32>
    %c0_122 = arith.constant 0 : index
    %c7_123 = arith.constant 7 : index
    %263 = vector.load %arg6[%c0_122, %c7_123] : memref<16x53xf32, #tpu.memory_space<vmem>>, vector<16x1xf32>
    %264 = vector.broadcast %263 : vector<16x1xf32> to vector<16x512xf32>
    %265 = arith.mulf %264, %262 : vector<16x512xf32>
    %c0_124 = arith.constant 0 : index
    %c264 = arith.constant 264 : index
    %266 = vector.load %arg20[%c0_124, %c264] : memref<16x1024xf32, #tpu.memory_space<vmem>>, vector<16x512xf32>
    %c0_125 = arith.constant 0 : index
    %c16 = arith.constant 16 : index
    %267 = vector.load %arg6[%c0_125, %c16] : memref<16x53xf32, #tpu.memory_space<vmem>>, vector<16x1xf32>
    %268 = vector.broadcast %267 : vector<16x1xf32> to vector<16x512xf32>
    %269 = arith.mulf %268, %266 : vector<16x512xf32>
    %270 = arith.addf %265, %269 : vector<16x512xf32>
    %c0_126 = arith.constant 0 : index
    %c328 = arith.constant 328 : index
    %271 = vector.load %arg20[%c0_126, %c328] : memref<16x1024xf32, #tpu.memory_space<vmem>>, vector<16x512xf32>
    %c0_127 = arith.constant 0 : index
    %c25 = arith.constant 25 : index
    %272 = vector.load %arg6[%c0_127, %c25] : memref<16x53xf32, #tpu.memory_space<vmem>>, vector<16x1xf32>
    %273 = vector.broadcast %272 : vector<16x1xf32> to vector<16x512xf32>
    %274 = arith.mulf %273, %271 : vector<16x512xf32>
    %275 = arith.addf %270, %274 : vector<16x512xf32>
    %c11_128 = arith.constant 11 : index
    %c0_129 = arith.constant 0 : index
    %276 = vector.load %arg7[%c11_128, %c0_129] : memref<16x512xf32, #tpu.memory_space<vmem>>, vector<1x512xf32>
    %277 = vector.broadcast %276 : vector<1x512xf32> to vector<16x512xf32>
    %278 = arith.mulf %275, %277 : vector<16x512xf32>
    %279 = arith.addf %261, %278 : vector<16x512xf32>
    %c0_130 = arith.constant 0 : index
    %c201 = arith.constant 201 : index
    %280 = vector.load %arg20[%c0_130, %c201] : memref<16x1024xf32, #tpu.memory_space<vmem>>, vector<16x512xf32>
    %c0_131 = arith.constant 0 : index
    %c8_132 = arith.constant 8 : index
    %281 = vector.load %arg6[%c0_131, %c8_132] : memref<16x53xf32, #tpu.memory_space<vmem>>, vector<16x1xf32>
    %282 = vector.broadcast %281 : vector<16x1xf32> to vector<16x512xf32>
    %283 = arith.mulf %282, %280 : vector<16x512xf32>
    %c0_133 = arith.constant 0 : index
    %c265 = arith.constant 265 : index
    %284 = vector.load %arg20[%c0_133, %c265] : memref<16x1024xf32, #tpu.memory_space<vmem>>, vector<16x512xf32>
    %c0_134 = arith.constant 0 : index
    %c17 = arith.constant 17 : index
    %285 = vector.load %arg6[%c0_134, %c17] : memref<16x53xf32, #tpu.memory_space<vmem>>, vector<16x1xf32>
    %286 = vector.broadcast %285 : vector<16x1xf32> to vector<16x512xf32>
    %287 = arith.mulf %286, %284 : vector<16x512xf32>
    %288 = arith.addf %283, %287 : vector<16x512xf32>
    %c0_135 = arith.constant 0 : index
    %c329 = arith.constant 329 : index
    %289 = vector.load %arg20[%c0_135, %c329] : memref<16x1024xf32, #tpu.memory_space<vmem>>, vector<16x512xf32>
    %c0_136 = arith.constant 0 : index
    %c26 = arith.constant 26 : index
    %290 = vector.load %arg6[%c0_136, %c26] : memref<16x53xf32, #tpu.memory_space<vmem>>, vector<16x1xf32>
    %291 = vector.broadcast %290 : vector<16x1xf32> to vector<16x512xf32>
    %292 = arith.mulf %291, %289 : vector<16x512xf32>
    %293 = arith.addf %288, %292 : vector<16x512xf32>
    %c12_137 = arith.constant 12 : index
    %c0_138 = arith.constant 0 : index
    %294 = vector.load %arg7[%c12_137, %c0_138] : memref<16x512xf32, #tpu.memory_space<vmem>>, vector<1x512xf32>
    %295 = vector.broadcast %294 : vector<1x512xf32> to vector<16x512xf32>
    %296 = arith.mulf %293, %295 : vector<16x512xf32>
    %297 = arith.addf %279, %296 : vector<16x512xf32>
    %c0_139 = arith.constant 0 : index
    %c142 = arith.constant 142 : index
    %298 = vector.load %arg20[%c0_139, %c142] : memref<16x1024xf32, #tpu.memory_space<vmem>>, vector<16x512xf32>
    %c0_140 = arith.constant 0 : index
    %c33 = arith.constant 33 : index
    %299 = vector.load %arg6[%c0_140, %c33] : memref<16x53xf32, #tpu.memory_space<vmem>>, vector<16x1xf32>
    %300 = vector.broadcast %299 : vector<16x1xf32> to vector<16x512xf32>
    %301 = arith.mulf %300, %298 : vector<16x512xf32>
    %c0_141 = arith.constant 0 : index
    %c270 = arith.constant 270 : index
    %302 = vector.load %arg20[%c0_141, %c270] : memref<16x1024xf32, #tpu.memory_space<vmem>>, vector<16x512xf32>
    %c0_142 = arith.constant 0 : index
    %c41 = arith.constant 41 : index
    %303 = vector.load %arg6[%c0_142, %c41] : memref<16x53xf32, #tpu.memory_space<vmem>>, vector<16x1xf32>
    %304 = vector.broadcast %303 : vector<16x1xf32> to vector<16x512xf32>
    %305 = arith.mulf %304, %302 : vector<16x512xf32>
    %306 = arith.addf %301, %305 : vector<16x512xf32>
    %c0_143 = arith.constant 0 : index
    %c398 = arith.constant 398 : index
    %307 = vector.load %arg20[%c0_143, %c398] : memref<16x1024xf32, #tpu.memory_space<vmem>>, vector<16x512xf32>
    %c0_144 = arith.constant 0 : index
    %c50 = arith.constant 50 : index
    %308 = vector.load %arg6[%c0_144, %c50] : memref<16x53xf32, #tpu.memory_space<vmem>>, vector<16x1xf32>
    %309 = vector.broadcast %308 : vector<16x1xf32> to vector<16x512xf32>
    %310 = arith.mulf %309, %307 : vector<16x512xf32>
    %311 = arith.addf %306, %310 : vector<16x512xf32>
    %c13_145 = arith.constant 13 : index
    %c0_146 = arith.constant 0 : index
    %312 = vector.load %arg7[%c13_145, %c0_146] : memref<16x512xf32, #tpu.memory_space<vmem>>, vector<1x512xf32>
    %313 = vector.broadcast %312 : vector<1x512xf32> to vector<16x512xf32>
    %314 = arith.mulf %311, %313 : vector<16x512xf32>
    %315 = arith.addf %297, %314 : vector<16x512xf32>
    %c0_147 = arith.constant 0 : index
    %c144 = arith.constant 144 : index
    %316 = vector.load %arg20[%c0_147, %c144] : memref<16x1024xf32, #tpu.memory_space<vmem>>, vector<16x512xf32>
    %c0_148 = arith.constant 0 : index
    %c34 = arith.constant 34 : index
    %317 = vector.load %arg6[%c0_148, %c34] : memref<16x53xf32, #tpu.memory_space<vmem>>, vector<16x1xf32>
    %318 = vector.broadcast %317 : vector<16x1xf32> to vector<16x512xf32>
    %319 = arith.mulf %318, %316 : vector<16x512xf32>
    %c0_149 = arith.constant 0 : index
    %c272 = arith.constant 272 : index
    %320 = vector.load %arg20[%c0_149, %c272] : memref<16x1024xf32, #tpu.memory_space<vmem>>, vector<16x512xf32>
    %c0_150 = arith.constant 0 : index
    %c42 = arith.constant 42 : index
    %321 = vector.load %arg6[%c0_150, %c42] : memref<16x53xf32, #tpu.memory_space<vmem>>, vector<16x1xf32>
    %322 = vector.broadcast %321 : vector<16x1xf32> to vector<16x512xf32>
    %323 = arith.mulf %322, %320 : vector<16x512xf32>
    %324 = arith.addf %319, %323 : vector<16x512xf32>
    %c0_151 = arith.constant 0 : index
    %c400 = arith.constant 400 : index
    %325 = vector.load %arg20[%c0_151, %c400] : memref<16x1024xf32, #tpu.memory_space<vmem>>, vector<16x512xf32>
    %c0_152 = arith.constant 0 : index
    %c51 = arith.constant 51 : index
    %326 = vector.load %arg6[%c0_152, %c51] : memref<16x53xf32, #tpu.memory_space<vmem>>, vector<16x1xf32>
    %327 = vector.broadcast %326 : vector<16x1xf32> to vector<16x512xf32>
    %328 = arith.mulf %327, %325 : vector<16x512xf32>
    %329 = arith.addf %324, %328 : vector<16x512xf32>
    %c14_153 = arith.constant 14 : index
    %c0_154 = arith.constant 0 : index
    %330 = vector.load %arg7[%c14_153, %c0_154] : memref<16x512xf32, #tpu.memory_space<vmem>>, vector<1x512xf32>
    %331 = vector.broadcast %330 : vector<1x512xf32> to vector<16x512xf32>
    %332 = arith.mulf %329, %331 : vector<16x512xf32>
    %333 = arith.addf %315, %332 : vector<16x512xf32>
    %c0_155 = arith.constant 0 : index
    %c146 = arith.constant 146 : index
    %334 = vector.load %arg20[%c0_155, %c146] : memref<16x1024xf32, #tpu.memory_space<vmem>>, vector<16x512xf32>
    %c0_156 = arith.constant 0 : index
    %c35 = arith.constant 35 : index
    %335 = vector.load %arg6[%c0_156, %c35] : memref<16x53xf32, #tpu.memory_space<vmem>>, vector<16x1xf32>
    %336 = vector.broadcast %335 : vector<16x1xf32> to vector<16x512xf32>
    %337 = arith.mulf %336, %334 : vector<16x512xf32>
    %c0_157 = arith.constant 0 : index
    %c274 = arith.constant 274 : index
    %338 = vector.load %arg20[%c0_157, %c274] : memref<16x1024xf32, #tpu.memory_space<vmem>>, vector<16x512xf32>
    %c0_158 = arith.constant 0 : index
    %c43 = arith.constant 43 : index
    %339 = vector.load %arg6[%c0_158, %c43] : memref<16x53xf32, #tpu.memory_space<vmem>>, vector<16x1xf32>
    %340 = vector.broadcast %339 : vector<16x1xf32> to vector<16x512xf32>
    %341 = arith.mulf %340, %338 : vector<16x512xf32>
    %342 = arith.addf %337, %341 : vector<16x512xf32>
    %c0_159 = arith.constant 0 : index
    %c402 = arith.constant 402 : index
    %343 = vector.load %arg20[%c0_159, %c402] : memref<16x1024xf32, #tpu.memory_space<vmem>>, vector<16x512xf32>
    %c0_160 = arith.constant 0 : index
    %c52 = arith.constant 52 : index
    %344 = vector.load %arg6[%c0_160, %c52] : memref<16x53xf32, #tpu.memory_space<vmem>>, vector<16x1xf32>
    %345 = vector.broadcast %344 : vector<16x1xf32> to vector<16x512xf32>
    %346 = arith.mulf %345, %343 : vector<16x512xf32>
    %347 = arith.addf %342, %346 : vector<16x512xf32>
    %c15_161 = arith.constant 15 : index
    %c0_162 = arith.constant 0 : index
    %348 = vector.load %arg7[%c15_161, %c0_162] : memref<16x512xf32, #tpu.memory_space<vmem>>, vector<1x512xf32>
    %349 = vector.broadcast %348 : vector<1x512xf32> to vector<16x512xf32>
    %350 = arith.mulf %347, %349 : vector<16x512xf32>
    %351 = arith.addf %333, %350 : vector<16x512xf32>
    %c0_163 = arith.constant 0 : index
    %c0_164 = arith.constant 0 : index
    %352 = vector.load %arg10[%c0_163, %c0_164] : memref<32x32xf32, #tpu.memory_space<vmem>>, vector<32x32xf32>
    %c0_165 = arith.constant 0 : index
    %c0_166 = arith.constant 0 : index
    %353 = vector.load %arg8[%c0_165, %c0_166] : memref<16x1xf32, #tpu.memory_space<vmem>>, vector<16x1xf32>
    %c0_167 = arith.constant 0 : index
    %c0_168 = arith.constant 0 : index
    %354 = vector.load %arg9[%c0_167, %c0_168] : memref<16x1xf32, #tpu.memory_space<vmem>>, vector<16x1xf32>
    %cst_169 = arith.constant dense<0.000000e+00> : vector<16xf32>
    %355 = vector.multi_reduction <add>, %351, %cst_169 [1] : vector<16x512xf32> to vector<16xf32>
    %356 = vector.shape_cast %355 : vector<16xf32> to vector<16x1xf32>
    %357 = arith.mulf %351, %351 : vector<16x512xf32>
    %cst_170 = arith.constant dense<0.000000e+00> : vector<16xf32>
    %358 = vector.multi_reduction <add>, %357, %cst_170 [1] : vector<16x512xf32> to vector<16xf32>
    %359 = vector.shape_cast %358 : vector<16xf32> to vector<16x1xf32>
    %360 = tpu.concatenate %356, %359 in 0 : vector<16x1xf32>, vector<16x1xf32> -> vector<32x1xf32>
    %cst_171 = arith.constant dense<0.000000e+00> : vector<32x1xf32>
    %361 = tpu.matmul %352, %360, %cst_171 {dimension_numbers = #tpu.dot_dimension_numbers<[1], [0], [0], [1], [0, 0, 1, 1], [], []>} : vector<32x32xf32>, vector<32x1xf32>, vector<32x1xf32> -> vector<32x1xf32>
    %362 = vector.extract_strided_slice %361 {offsets = [0, 0], sizes = [16, 1], strides = [1, 1]} : vector<32x1xf32> to vector<16x1xf32>
    %363 = vector.extract_strided_slice %361 {offsets = [16, 0], sizes = [16, 1], strides = [1, 1]} : vector<32x1xf32> to vector<16x1xf32>
    %364 = arith.mulf %362, %362 : vector<16x1xf32>
    %365 = arith.subf %363, %364 : vector<16x1xf32>
    %cst_172 = arith.constant 0.000000e+00 : f32
    %366 = vector.broadcast %cst_172 : f32 to vector<16x1xf32>
    %367 = arith.maximumf %365, %366 : vector<16x1xf32>
    %cst_173 = arith.constant 9.99999974E-6 : f32
    %368 = vector.broadcast %cst_173 : f32 to vector<16x1xf32>
    %369 = arith.addf %367, %368 : vector<16x1xf32>
    %370 = math.rsqrt %369 : vector<16x1xf32>
    %371 = vector.broadcast %362 : vector<16x1xf32> to vector<16x512xf32>
    %372 = arith.subf %351, %371 : vector<16x512xf32>
    %373 = vector.broadcast %370 : vector<16x1xf32> to vector<16x512xf32>
    %374 = arith.mulf %372, %373 : vector<16x512xf32>
    %375 = vector.broadcast %353 : vector<16x1xf32> to vector<16x512xf32>
    %376 = arith.mulf %374, %375 : vector<16x512xf32>
    %377 = vector.broadcast %354 : vector<16x1xf32> to vector<16x512xf32>
    %378 = arith.addf %376, %377 : vector<16x512xf32>
    %cst_174 = arith.constant 0.000000e+00 : f32
    %379 = vector.broadcast %cst_174 : f32 to vector<16x512xf32>
    %380 = arith.maximumf %378, %379 : vector<16x512xf32>
    %cst_175 = arith.constant 0.001953125 : f32
    %381 = vector.broadcast %cst_175 : f32 to vector<1x512xf32>
    %cst_176 = arith.constant dense<0.000000e+00> : vector<1x16xf32>
    %382 = tpu.matmul %381, %380, %cst_176 {dimension_numbers = #tpu.dot_dimension_numbers<[1], [1], [0], [0], [0, 0, 1, 0], [], []>} : vector<1x512xf32>, vector<16x512xf32>, vector<1x16xf32> -> vector<1x16xf32>
    %c0_177 = arith.constant 0 : index
    %c0_178 = arith.constant 0 : index
    %383 = vector.load %arg11[%c0_177, %c0_178] : memref<16x4xf32, #tpu.memory_space<vmem>>, vector<16x4xf32>
    %cst_179 = arith.constant dense<0.000000e+00> : vector<1x4xf32>
    %384 = tpu.matmul %382, %383, %cst_179 {dimension_numbers = #tpu.dot_dimension_numbers<[1], [0], [0], [1], [0, 0, 1, 1], [], []>} : vector<1x16xf32>, vector<16x4xf32>, vector<1x4xf32> -> vector<1x4xf32>
    %c0_180 = arith.constant 0 : index
    %c0_181 = arith.constant 0 : index
    %385 = vector.load %arg12[%c0_180, %c0_181] : memref<1x4xf32, #tpu.memory_space<vmem>>, vector<1x4xf32>
    %386 = arith.addf %384, %385 : vector<1x4xf32>
    %cst_182 = arith.constant 0.000000e+00 : f32
    %387 = vector.broadcast %cst_182 : f32 to vector<1x4xf32>
    %388 = arith.maximumf %386, %387 : vector<1x4xf32>
    %c0_183 = arith.constant 0 : index
    %c0_184 = arith.constant 0 : index
    %389 = vector.load %arg13[%c0_183, %c0_184] : memref<4x16xf32, #tpu.memory_space<vmem>>, vector<4x16xf32>
    %cst_185 = arith.constant dense<0.000000e+00> : vector<1x16xf32>
    %390 = tpu.matmul %388, %389, %cst_185 {dimension_numbers = #tpu.dot_dimension_numbers<[1], [0], [0], [1], [0, 0, 1, 1], [], []>} : vector<1x4xf32>, vector<4x16xf32>, vector<1x16xf32> -> vector<1x16xf32>
    %c0_186 = arith.constant 0 : index
    %c0_187 = arith.constant 0 : index
    %391 = vector.load %arg14[%c0_186, %c0_187] : memref<1x16xf32, #tpu.memory_space<vmem>>, vector<1x16xf32>
    %392 = arith.addf %390, %391 : vector<1x16xf32>
    %cst_188 = arith.constant 0.000000e+00 : f32
    %393 = vector.broadcast %cst_188 : f32 to vector<1x16xf32>
    %394 = arith.subf %393, %392 : vector<1x16xf32>
    %395 = math.exp %394 : vector<1x16xf32>
    %cst_189 = arith.constant 1.000000e+00 : f32
    %396 = vector.broadcast %cst_189 : f32 to vector<1x16xf32>
    %397 = arith.addf %396, %395 : vector<1x16xf32>
    %cst_190 = arith.constant 1.000000e+00 : f32
    %398 = vector.broadcast %cst_190 : f32 to vector<1x16xf32>
    %399 = arith.divf %398, %397 : vector<1x16xf32>
    %c0_191 = arith.constant 0 : index
    %c0_192 = arith.constant 0 : index
    %400 = vector.load %arg15[%c0_191, %c0_192] : memref<8x16xf32, #tpu.memory_space<vmem>>, vector<8x16xf32>
    %401 = vector.broadcast %399 : vector<1x16xf32> to vector<8x16xf32>
    %402 = arith.mulf %400, %401 : vector<8x16xf32>
    %cst_193 = arith.constant dense<0.000000e+00> : vector<8x512xf32>
    %403 = tpu.matmul %402, %380, %cst_193 {dimension_numbers = #tpu.dot_dimension_numbers<[1], [0], [0], [1], [0, 0, 1, 1], [], []>} : vector<8x16xf32>, vector<16x512xf32>, vector<8x512xf32> -> vector<8x512xf32>
    %c0_194 = arith.constant 0 : index
    %c0_195 = arith.constant 0 : index
    %404 = vector.load %arg18[%c0_194, %c0_195] : memref<16x16xf32, #tpu.memory_space<vmem>>, vector<16x16xf32>
    %c0_196 = arith.constant 0 : index
    %c0_197 = arith.constant 0 : index
    %405 = vector.load %arg16[%c0_196, %c0_197] : memref<8x1xf32, #tpu.memory_space<vmem>>, vector<8x1xf32>
    %c0_198 = arith.constant 0 : index
    %c0_199 = arith.constant 0 : index
    %406 = vector.load %arg17[%c0_198, %c0_199] : memref<8x1xf32, #tpu.memory_space<vmem>>, vector<8x1xf32>
    %cst_200 = arith.constant dense<0.000000e+00> : vector<8xf32>
    %407 = vector.multi_reduction <add>, %403, %cst_200 [1] : vector<8x512xf32> to vector<8xf32>
    %408 = vector.shape_cast %407 : vector<8xf32> to vector<8x1xf32>
    %409 = arith.mulf %403, %403 : vector<8x512xf32>
    %cst_201 = arith.constant dense<0.000000e+00> : vector<8xf32>
    %410 = vector.multi_reduction <add>, %409, %cst_201 [1] : vector<8x512xf32> to vector<8xf32>
    %411 = vector.shape_cast %410 : vector<8xf32> to vector<8x1xf32>
    %412 = tpu.concatenate %408, %411 in 0 : vector<8x1xf32>, vector<8x1xf32> -> vector<16x1xf32>
    %cst_202 = arith.constant dense<0.000000e+00> : vector<16x1xf32>
    %413 = tpu.matmul %404, %412, %cst_202 {dimension_numbers = #tpu.dot_dimension_numbers<[1], [0], [0], [1], [0, 0, 1, 1], [], []>} : vector<16x16xf32>, vector<16x1xf32>, vector<16x1xf32> -> vector<16x1xf32>
    %414 = vector.extract_strided_slice %413 {offsets = [0, 0], sizes = [8, 1], strides = [1, 1]} : vector<16x1xf32> to vector<8x1xf32>
    %415 = vector.extract_strided_slice %413 {offsets = [8, 0], sizes = [8, 1], strides = [1, 1]} : vector<16x1xf32> to vector<8x1xf32>
    %416 = arith.mulf %414, %414 : vector<8x1xf32>
    %417 = arith.subf %415, %416 : vector<8x1xf32>
    %cst_203 = arith.constant 0.000000e+00 : f32
    %418 = vector.broadcast %cst_203 : f32 to vector<8x1xf32>
    %419 = arith.maximumf %417, %418 : vector<8x1xf32>
    %cst_204 = arith.constant 9.99999974E-6 : f32
    %420 = vector.broadcast %cst_204 : f32 to vector<8x1xf32>
    %421 = arith.addf %419, %420 : vector<8x1xf32>
    %422 = math.rsqrt %421 : vector<8x1xf32>
    %423 = vector.broadcast %414 : vector<8x1xf32> to vector<8x512xf32>
    %424 = arith.subf %403, %423 : vector<8x512xf32>
    %425 = vector.broadcast %422 : vector<8x1xf32> to vector<8x512xf32>
    %426 = arith.mulf %424, %425 : vector<8x512xf32>
    %427 = vector.broadcast %405 : vector<8x1xf32> to vector<8x512xf32>
    %428 = arith.mulf %426, %427 : vector<8x512xf32>
    %429 = vector.broadcast %406 : vector<8x1xf32> to vector<8x512xf32>
    %430 = arith.addf %428, %429 : vector<8x512xf32>
    %c0_205 = arith.constant 0 : index
    %c0_206 = arith.constant 0 : index
    %c0_207 = arith.constant 0 : index
    %431 = vector.load %arg19[%c0_205, %c0_206, %c0_207] : memref<1x8x512xf32, #tpu.memory_space<vmem>>, vector<1x8x512xf32>
    %432 = vector.shape_cast %431 : vector<1x8x512xf32> to vector<8x512xf32>
    %433 = vector.shape_cast %430 : vector<8x512xf32> to vector<1x8x512xf32>
    tpu.vector_store %arg19[%c0_205, %c0_206, %c0_207], %433 {strides = array<i32>} : memref<1x8x512xf32, #tpu.memory_space<vmem>>, vector<1x8x512xf32>,
    return
  }
  func.func @transform_0(%arg0: i32) -> (i32, i32, i32) {
    %c0_i32 = arith.constant 0 : i32
    %c0_i32_0 = arith.constant 0 : i32
    %c0_i32_1 = arith.constant 0 : i32
    return %arg0, %c0_i32, %c0_i32_0 : i32, i32, i32
  }
  func.func @transform_1(%arg0: i32) -> (i32, i32) {
    %c0_i32 = arith.constant 0 : i32
    %c0_i32_0 = arith.constant 0 : i32
    %c0_i32_1 = arith.constant 0 : i32
    return %c0_i32, %c0_i32_0 : i32, i32
  }
  func.func @transform_2(%arg0: i32) -> (i32, i32) {
    %c0_i32 = arith.constant 0 : i32
    %c0_i32_0 = arith.constant 0 : i32
    %c0_i32_1 = arith.constant 0 : i32
    return %c0_i32, %c0_i32_0 : i32, i32
  }
  func.func @transform_3(%arg0: i32) -> (i32, i32) {
    %c0_i32 = arith.constant 0 : i32
    %c0_i32_0 = arith.constant 0 : i32
    %c0_i32_1 = arith.constant 0 : i32
    return %c0_i32, %c0_i32_0 : i32, i32
  }
  func.func @transform_4(%arg0: i32) -> (i32, i32) {
    %c0_i32 = arith.constant 0 : i32
    %c0_i32_0 = arith.constant 0 : i32
    %c0_i32_1 = arith.constant 0 : i32
    return %c0_i32, %c0_i32_0 : i32, i32
  }
  func.func @transform_5(%arg0: i32) -> (i32, i32) {
    %c0_i32 = arith.constant 0 : i32
    %c0_i32_0 = arith.constant 0 : i32
    %c0_i32_1 = arith.constant 0 : i32
    return %c0_i32, %c0_i32_0 : i32, i32
  }
  func.func @transform_6(%arg0: i32) -> (i32, i32) {
    %c0_i32 = arith.constant 0 : i32
    %c0_i32_0 = arith.constant 0 : i32
    %c0_i32_1 = arith.constant 0 : i32
    return %c0_i32, %c0_i32_0 : i32, i32
  }
  func.func @transform_7(%arg0: i32) -> (i32, i32) {
    %c0_i32 = arith.constant 0 : i32
    %c0_i32_0 = arith.constant 0 : i32
    %c0_i32_1 = arith.constant 0 : i32
    return %c0_i32, %c0_i32_0 : i32, i32
  }
  func.func @transform_8(%arg0: i32) -> (i32, i32) {
    %c0_i32 = arith.constant 0 : i32
    %c0_i32_0 = arith.constant 0 : i32
    %c0_i32_1 = arith.constant 0 : i32
    return %c0_i32, %c0_i32_0 : i32, i32
  }
  func.func @transform_9(%arg0: i32) -> (i32, i32) {
    %c0_i32 = arith.constant 0 : i32
    %c0_i32_0 = arith.constant 0 : i32
    %c0_i32_1 = arith.constant 0 : i32
    return %c0_i32, %c0_i32_0 : i32, i32
  }
  func.func @transform_10(%arg0: i32) -> (i32, i32) {
    %c0_i32 = arith.constant 0 : i32
    %c0_i32_0 = arith.constant 0 : i32
    %c0_i32_1 = arith.constant 0 : i32
    return %c0_i32, %c0_i32_0 : i32, i32
  }
  func.func @transform_11(%arg0: i32) -> (i32, i32) {
    %c0_i32 = arith.constant 0 : i32
    %c0_i32_0 = arith.constant 0 : i32
    %c0_i32_1 = arith.constant 0 : i32
    return %c0_i32, %c0_i32_0 : i32, i32
  }
  func.func @transform_12(%arg0: i32) -> (i32, i32) {
    %c0_i32 = arith.constant 0 : i32
    %c0_i32_0 = arith.constant 0 : i32
    %c0_i32_1 = arith.constant 0 : i32
    return %c0_i32, %c0_i32_0 : i32, i32
  }
  func.func @transform_13(%arg0: i32) -> (i32, i32) {
    %c0_i32 = arith.constant 0 : i32
    %c0_i32_0 = arith.constant 0 : i32
    %c0_i32_1 = arith.constant 0 : i32
    return %c0_i32, %c0_i32_0 : i32, i32
  }
  func.func @transform_14(%arg0: i32) -> (i32, i32) {
    %c0_i32 = arith.constant 0 : i32
    %c0_i32_0 = arith.constant 0 : i32
    %c0_i32_1 = arith.constant 0 : i32
    return %c0_i32, %c0_i32_0 : i32, i32
  }
  func.func @transform_15(%arg0: i32) -> (i32, i32) {
    %c0_i32 = arith.constant 0 : i32
    %c0_i32_0 = arith.constant 0 : i32
    %c0_i32_1 = arith.constant 0 : i32
    return %c0_i32, %c0_i32_0 : i32, i32
  }
  func.func @transform_16(%arg0: i32) -> (i32, i32) {
    %c0_i32 = arith.constant 0 : i32
    %c0_i32_0 = arith.constant 0 : i32
    %c0_i32_1 = arith.constant 0 : i32
    return %c0_i32, %c0_i32_0 : i32, i32
  }
  func.func @transform_17(%arg0: i32) -> (i32, i32) {
    %c0_i32 = arith.constant 0 : i32
    %c0_i32_0 = arith.constant 0 : i32
    %c0_i32_1 = arith.constant 0 : i32
    return %c0_i32, %c0_i32_0 : i32, i32
  }
  func.func @transform_18(%arg0: i32) -> (i32, i32, i32) {
    %c0_i32 = arith.constant 0 : i32
    %c0_i32_0 = arith.constant 0 : i32
    %c0_i32_1 = arith.constant 0 : i32
    return %arg0, %c0_i32, %c0_i32_0 : i32, i32, i32
  }
}

</mosaic_0001>

<bundles_post_ra>
// kernel: amb_conv1.1
= control target key start
LH: loop header
LB: loop body
LE: loop exit
PB: predicated region body
PF: predicated region fallthrough
CT: control target
= control target key end

     0   :  { %s5762_s27 = smov 0   ;;  %s9684_s0 = inlined_call_operand.vmem [shape: f32[2,512,4], index: 0, kind: input, shape index: {}]   ;;  %s9685_s1 = inlined_call_operand.vmem [shape: f32[16,4], index: 1, kind: input, shape index: {}]   ;;  %s9686_s2 = inlined_call_operand.vmem [shape: f32[16,1], index: 2, kind: input, shape index: {}]   ;;  %s9687_s3 = inlined_call_operand.vmem [shape: f32[16,1], index: 3, kind: input, shape index: {}]   ;;  %s9688_s4 = inlined_call_operand.vmem [shape: f32[32,32], index: 4, kind: input, shape index: {}]   ;;  %s9689_s5 = inlined_call_operand.vmem [shape: f32[16,53], index: 5, kind: input, shape index: {}]   ;;  %s9690_s6 = inlined_call_operand.vmem [shape: f32[16,512], index: 6, kind: input, shape index: {}]   ;;  %s9691_s7 = inlined_call_operand.vmem [shape: f32[16,1], index: 7, kind: input, shape index: {}]   ;;  %s9692_s8 = inlined_call_operand.vmem [shape: f32[16,1], index: 8, kind: input, shape index: {}]   ;;  %s9693_s9 = inlined_call_operand.vmem [shape: f32[32,32], index: 9, kind: input, shape index: {}]   ;;  %s9694_s10 = inlined_call_operand.vmem [shape: f32[16,4], index: 10, kind: input, shape index: {}]   ;;  %s9695_s11 = inlined_call_operand.vmem [shape: f32[1,4], index: 11, kind: input, shape index: {}]   ;;  %s9696_s12 = inlined_call_operand.vmem [shape: f32[4,16], index: 12, kind: input, shape index: {}]   ;;  %s9697_s13 = inlined_call_operand.vmem [shape: f32[1,16], index: 13, kind: input, shape index: {}]   ;;  %s9698_s14 = inlined_call_operand.vmem [shape: f32[8,16], index: 14, kind: input, shape index: {}]   ;;  %s9699_s15 = inlined_call_operand.vmem [shape: f32[8,1], index: 15, kind: input, shape index: {}]   ;;  %s9700_s16 = inlined_call_operand.vmem [shape: f32[8,1], index: 16, kind: input, shape index: {}]   ;;  %s9701_s17 = inlined_call_operand.vmem [shape: f32[16,16], index: 17, kind: input, shape index: {}]   ;;  %s9702_s18 = inlined_call_operand.vmem [shape: f32[2,8,512], index: 18, kind: output, shape index: {}]  }
   0x1   :  { %10019 = sst [smem:[#allocation183_spill]] %s9684_s0 }
   0x2   :  { %10020 = sst [smem:[#allocation184_spill]] %s9685_s1 }
   0x3   :  { %10021 = sst [smem:[#allocation185_spill]] %s9686_s2 }
   0x4 LB: > { %s5218_s28 = sadd.s32 4294967295, %s5581_s27   ;;  %p5222_p0 = scmp.ge.s32.totalorder %s5581_s27, 1  ;;  %s5581_s27 = sphi %s5762_s27, %s28_s27  }
   0x5   : > { %p512_p1 = scmp.lt.s32.totalorder %s5581_s27, 3 }
   0x7   : > { %p513_p2 = pnand %p5222_p0, %p512_p1 }
   0x9   : > { %516 = sbr.rel (%p513_p2) target bundleno = 3649 (0xe41), region = 92 }
   0xe   : > { %v5773_v0 = vld [vmem:[%s9689_s5] sm:$0xff]  ;;  %s10022_s1 = sld [smem:[#allocation185_spill]]  ;;  %v5583_v2 = vmov 27   ;;  %v9705_v3 = vmov 0   ;;  %v5782_v4 = vld [vmem:[%s9689_s5 + $0x8] sm:$0xff]  ;;  %v5585_v5 = vmov 36  }
   0xf   : > { %5428 = vset.pattern.permute.xlu1 %v5583_v2  ;;  %5427 = vset.pattern.permute.xlu2 %v9705_v3  ;;  %v1243_v6 = vld [vmem:[%s9690_s6] ss:$8 sm:$0xf]  ;;  %s5586_s25 = smov 110   ;;  %v5587_v9 = vmov 28   ;;  %v5588_v11 = vmov 44  }
  0x10   : > { %1149 = vperm.xlu1 %5428, %v5773_v0   ;;  %5431 = vset.pattern.permute.xlu0 %v5585_v5  ;;  %v1247_v8 = vperm.slane %v1243_v6, 2  ;;  %v939_v10 = vld [vmem:[%s9687_s3] sm:$0xff]  ;;  %v940_v13 = vld [vmem:[%s9687_s3 + $0x8] sm:$0xff]  ;;  %v1246_v14 = vperm.slane %v1243_v6, 1  ;;  %s5589_s21 = smov 112   ;;  %v5590_v17 = vmov 29  }
  0x11   : > { %1182 = vperm.xlu0 %5431, %v5782_v4   ;;  %v5303_v12 = vld [vmem:[%s9690_s6 + $0x1] ss:$8 sm:$0xf]  ;;  %v5591_v18 = vmov 37   ;;  %v1245_v19 = vperm.slane %v1243_v6, 0  ;;  %v5592_v20 = vmov 45  }
  0x12   : > { %v1363_v15 = vperm.slane %v5303_v12, 0  ;;  %v1366_v16 = vperm.slane %v5303_v12, 3  ;;  %v5304_v21 = vld [vmem:[%s9690_s6 + $0x2] ss:$8 sm:$0xf]  ;;  %v1248_v23 = vperm.slane %v1243_v6, 3 }
  0x13   : > { %v1530_v22 = vperm.slane %v5304_v21, 0  ;;  %s5593_s23 = smov 114   ;;  %v1365_v24 = vperm.slane %v5303_v12, 2  ;;  %v1533_v25 = vperm.slane %v5304_v21, 3  ;;  %v5594_v26 = vmov 38   ;;  %s5598_s26 = smov 55  }
  0x14   : > { %v937_v1 = vld [vmem:[%s10022_s1] sm:$0xff]  ;;  %v938_v7 = vld [vmem:[%s10022_s1 + $0x8] sm:$0xff]  ;;  %v1364_v27 = vperm.slane %v5303_v12, 1  ;;  %v5595_v28 = vmov 46   ;;  %v1532_v30 = vperm.slane %v5304_v21, 2  ;;  %v1531_v32 = vperm.slane %v5304_v21, 1 }
  0x15   : > { %1077 = vperm.xlu2 %5427, %v937_v1   ;;  %v5596_v34 = vmov 9   ;;  %v5597_v51 = vmov 18   ;;  %v5305_v54 = vld [vmem:[%s9690_s6 + $0x3] ss:$8 sm:$0xf]  ;;  %v5599_v59 = vmov 10  }
  0x16   : > { %v1747_v55 = vperm.slane %v5305_v54, 1  ;;  %v1749_v58 = vperm.slane %v5305_v54, 3  ;;  %v5600_v62 = vmov 1   ;;  %s5601_s29 = smov 64   ;;  %p566_p3 = scmp.lt.s32.totalorder %s5218_s28, 1  ;;  %vm642_vm0 = vcmask 31744  }
  0x17   : > { %s10037_s20 = sld [smem:[#allocation183_spill]]  ;;  %s5603_s24 = smov 56   ;;  %vm969_vm1 = vcmask 261120   ;;  %vm1375_vm8 = vcmask 916480   ;;  %vm1542_vm9 = vcmask 932864   ;;  %vm1686_vm10 = vcmask 523264  }
  0x18   : > { %5430 = vset.pattern.permute.xlu1 %v5585_v5  ;;  %v1746_v5 = vperm.slane %v5305_v54, 0  ;;  %s10778_s28 = smov (!%p566_p3, %s5218_s28), 1  ;;  %s10044_s0 = sld [smem:[#allocation184_spill]]  ;;  %vm1758_vm11 = vcmask 449536   ;;  %vm1972_vm12 = vcmask 457728   ;;  %vm2187_vm13 = vcmask 465920  }
  0x19   : > { %1178 = vperm.xlu1 %5430, %v5773_v0   ;;  %1253 = vrot.lane.b32.xlu0 %v1247_v8, %s5586_s25  ;;  %s5333_s30 = sshll.u32 %s10778_s28, 9  ;;  %s5632_s2 = smov 124   ;;  %vm1424_vm14 = vcmask 1031168   ;;  %vm2567_vm15 = vcmask 515072  }
  0x1a   : > { %5435 = vset.pattern.permute.xlu0 %v5587_v9  ;;  %s5658_s19 = smov 45  }
  0x1d   : > { %1082 = vperm.xlu2 %5427, %v938_v7   ;;  %v1748_v7 = vperm.slane %v5305_v54, 2  ;;  %s5933_s22 = scalar_lea.vmem %s10037_s20, %s5333_s30  ;;  %s5622_s30 = smov 126  }
  0x1e   : > { %v609_v21 = vld [vmem:[%s5933_s22 + $0xf8] sm:$0xff]  ;;  %v638_v54 = vld [vmem:[%s5933_s22 + $0x1e0] sm:$0xff]  ;;  %s5638_s20 = smov 71  }
  0x1f   : > { %5245 = vmatpush.xpose.msk.msra.mxu1 %vm642_vm0, %v609_v21 }
  0x21   : > { %5433 = vset.pattern.permute.xlu1 %v5588_v11  ;;  %1291 = vperm.xlu0 %5435, %v5782_v4  }
  0x22   : > { %1220 = vperm.xlu1 %5433, %v5782_v4  }
  0x25   : > { %1095 = vperm.xlu2 %5427, %v939_v10  }
  0x29   : > { %1367 = vrot.lane.b32.xlu0 %v1363_v15, %s5589_s21 }
  0x2a   : > { %1251 = vrot.lane.b32.xlu1 %v1246_v14, %s5586_s25  ;;  %5441 = vset.pattern.permute.xlu0 %v5590_v17 }
  0x2b   : > { %5434 = vset.pattern.permute.xlu1 %v5587_v9 }
  0x2d   : > { %1100 = vperm.xlu2 %5427, %v940_v13  }
  0x31   : > { %1373 = vrot.lane.b32.xlu0 %v1366_v16, %s5589_s21  ;;  %v625_v16 = vld [vmem:[%s5933_s22 + $0x178] sm:$0xff] }
  0x32   : > { %1287 = vperm.xlu1 %5434, %v5773_v0   ;;  %5263 = vmatpush.xpose.msk.msra.mxu2 %vm642_vm0, %v625_v16  ;;  %v620_v16 = vld [vmem:[%s5933_s22 + $0x150] sm:$0xff] }
  0x35   : > { %5429 = vset.pattern.permute.xlu2 %v5583_v2 }
  0x36   : > { %1154 = vperm.xlu2 %5429, %v5782_v4  }
  0x39   : > { %1458 = vperm.xlu0 %5441, %v5782_v4  }
  0x3a   : > { %5437 = vset.pattern.permute.xlu1 %v5591_v18 }
  0x3b   : > { %1309 = vperm.xlu1 %5437, %v5782_v4  }
  0x3e   : > { %5432 = vset.pattern.permute.xlu2 %v5588_v11 }
  0x3f   : > { %1216 = vperm.xlu2 %5432, %v5773_v0  }
  0x41   : > { %1534 = vrot.lane.b32.xlu0 %v1530_v22, %s5593_s23  ;;  %v624_v22 = vld [vmem:[%s5933_s22 + $0x170] sm:$0xff] }
  0x42   : > { %5450 = vset.pattern.permute.xlu0 %v5597_v51  ;;  %5264 = vmatpush.xpose.msk.msra.mxu2 %vm642_vm0, %v624_v22 }
  0x43   : > { %5439 = vset.pattern.permute.xlu1 %v5592_v20 }
  0x44   : > { %1337 = vperm.xlu1 %5439, %v5782_v4  }
  0x47   : > { %1249 = vrot.lane.b32.xlu2 %v1245_v19, %s5586_s25 }
  0x48   : > { %5436 = vset.pattern.permute.xlu2 %v5591_v18 }
  0x49   : > { %1540 = vrot.lane.b32.xlu0 %v1533_v25, %s5593_s23  ;;  %v608_v25 = vld [vmem:[%s5933_s22 + $0xf0] sm:$0xff] }
  0x4a   : > { %5246 = vmatpush.xpose.msk.msra.mxu1 %vm642_vm0, %v608_v25  ;;  %v619_v25 = vld [vmem:[%s5933_s22 + $0x148] sm:$0xff] }
  0x4c   : > { %1371 = vrot.lane.b32.xlu1 %v1365_v24, %s5589_s21  ;;  %v592_v24 = vld [vmem:[%s5933_s22 + $0x70] sm:$0xff] }
  0x4d   : > { %5440 = vset.pattern.permute.xlu1 %v5590_v17  ;;  %v641_v17 = vld [vmem:[%s5933_s22 + $0x1f8] sm:$0xff] }
  0x4e   : > { %5281 = vmatpush.xpose.msk.msra.mxu3 %vm642_vm0, %v641_v17  ;;  %v5602_v17 = vmov 19  }
  0x4f   : > { %1255 = vrot.lane.b32.xlu2 %v1248_v23, %s5586_s25  ;;  %v640_v23 = vld [vmem:[%s5933_s22 + $0x1f0] sm:$0xff]  ;;  %s5625_s25 = smov 63  }
  0x51   : > { %1720 = vperm.xlu0 %5450, %v5782_v4  }
  0x52   : > { %5282 = vmatpush.xpose.msk.msra.mxu3 %vm642_vm0, %v640_v23  ;;  %v588_v23 = vld [vmem:[%s5933_s22 + $0x50] sm:$0xff] }
  0x54   : > { %1454 = vperm.xlu1 %5440, %v5773_v0  }
  0x57   : > { %1305 = vperm.xlu2 %5436, %v5773_v0  }
  0x59   : > { %5453 = vset.pattern.permute.xlu0 %v5599_v59 }
  0x5c   : > { %5443 = vset.pattern.permute.xlu1 %v5594_v26 }
  0x5d   : > { %1476 = vperm.xlu1 %5443, %v5782_v4  }
  0x5f   : > { %5438 = vset.pattern.permute.xlu2 %v5592_v20  ;;  %v593_v20 = vld [vmem:[%s5933_s22 + $0x78] sm:$0xff] }
  0x60   : > { %1333 = vperm.xlu2 %5438, %v5773_v0   ;;  %5227 = vmatpush.xpose.msk.msra.mxu0 %vm642_vm0, %v593_v20  ;;  %v636_v20 = vld [vmem:[%s5933_s22 + $0x1d0] sm:$0xff] }
  0x64   : > { %5228 = vmatpush.xpose.msk.msra.mxu0 %vm642_vm0, %v592_v24  ;;  %v604_v24 = vld [vmem:[%s5933_s22 + $0xd0] sm:$0xff] }
  0x65   : > { %5445 = vset.pattern.permute.xlu1 %v5595_v28 }
  0x66   : > { %1504 = vperm.xlu1 %5445, %v5782_v4  }
  0x68   : > { %1369 = vrot.lane.b32.xlu2 %v1364_v27, %s5589_s21  ;;  %v639_v27 = vld [vmem:[%s5933_s22 + $0x1e8] sm:$0xff] }
  0x69   : > { %5442 = vset.pattern.permute.xlu2 %v5594_v26  ;;  %v623_v26 = vld [vmem:[%s5933_s22 + $0x168] sm:$0xff]  ;;  %5283 = vmatpush.xpose.msk.msra.mxu3 %vm642_vm0, %v639_v27 }
  0x6a   : > { %5265 = vmatpush.xpose.msk.msra.mxu2 %vm642_vm0, %v623_v26  ;;  %v635_v26 = vld [vmem:[%s5933_s22 + $0x1c8] sm:$0xff] }
  0x6b   : > { %v587_v27 = vld [vmem:[%s5933_s22 + $0x48] sm:$0xff] }
  0x6d   : > { %5284 = vmatpush.xpose.msk.msra.mxu3 %vm642_vm0, %v638_v54 }
  0x6e   : > { %1538 = vrot.lane.b32.xlu1 %v1532_v30, %s5593_s23  ;;  %v607_v30 = vld [vmem:[%s5933_s22 + $0xe8] sm:$0xff] }
  0x6f   : > { %v5828_v29 = vpop.permute.xlu2 %1077  ;;  %5446 = vset.pattern.permute.xlu1 %v9705_v3  ;;  %5247 = vmatpush.xpose.msk.msra.mxu1 %vm642_vm0, %v607_v30  ;;  %v618_v30 = vld [vmem:[%s5933_s22 + $0x140] sm:$0xff] }
  0x70   : > { %1472 = vperm.xlu2 %5442, %v5773_v0  }
  0x76   : > { %1621 = vperm.xlu1 %5446, %v5773_v0  }
  0x77   : > { %v5833_v31 = vpop.permute.xlu2 %1082 }
  0x78   : > { %5444 = vset.pattern.permute.xlu2 %v5595_v28  ;;  %v591_v28 = vld [vmem:[%s5933_s22 + $0x68] sm:$0xff] }
  0x79   : > { %1500 = vperm.xlu2 %5444, %v5773_v0   ;;  %5229 = vmatpush.xpose.msk.msra.mxu0 %vm642_vm0, %v591_v28  ;;  %v603_v28 = vld [vmem:[%s5933_s22 + $0xc8] sm:$0xff] }
  0x7e   : > { %5448 = vset.pattern.permute.xlu1 %v5596_v34 }
  0x7f   : > { %v5837_v33 = vpop.permute.xlu2 %1095  ;;  %1643 = vperm.xlu1 %5448, %v5782_v4  }
  0x81   : > { %1536 = vrot.lane.b32.xlu2 %v1531_v32, %s5593_s23  ;;  %s5607_s23 = smov 57  }
  0x82   : > { %5447 = vset.pattern.permute.xlu2 %v5596_v34  ;;  %v5841_v35 = vpop.permute.xlu1 %1149 }
  0x83   : > { %10023 = vst [vmem:[#allocation3_spill] sm:$0xff] %v5841_v35  ;;  %v5911_v10 = vpop.permute.xlu0 %1182 }
  0x84   : > { %10034 = vst [vmem:[#allocation14_spill] sm:$0xff] %v5911_v10 }
  0x87   : > { %v5843_v36 = vpop.permute.xlu2 %1100  ;;  %5449 = vset.pattern.permute.xlu1 %v5597_v51  ;;  %v622_v51 = vld [vmem:[%s5933_s22 + $0x160] sm:$0xff] }
  0x88   : > { %1716 = vperm.xlu1 %5449, %v5773_v0   ;;  %5266 = vmatpush.xpose.msk.msra.mxu2 %vm642_vm0, %v622_v51  ;;  %v634_v51 = vld [vmem:[%s5933_s22 + $0x1c0] sm:$0xff] }
  0x89   : > { %1639 = vperm.xlu2 %5447, %v5773_v0  }
  0x8b   : > { %v5846_v37 = vpop.permute.xlu1 %1178  ;;  %v5913_v11 = vpop.permute.xlu0 %1253 }
  0x8c   : > { %10024 = vst [vmem:[#allocation4_spill] sm:$0xff] %v5846_v37 }
  0x8d   : > { %10035 = vst [vmem:[#allocation15_spill] sm:$0xff] %v5913_v11 }
  0x90   : > { %v5848_v38 = vpop.permute.xlu2 %1154  ;;  %1752 = vrot.lane.b32.xlu1 %v1747_v55, %s5598_s26  ;;  %v590_v55 = vld [vmem:[%s5933_s22 + $0x60] sm:$0xff] }
  0x91   : > { %10025 = vst [vmem:[#allocation5_spill] sm:$0xff] %v5848_v38  ;;  %5451 = vset.pattern.permute.xlu2 %v5600_v62  ;;  %5452 = vset.pattern.permute.xlu1 %v5600_v62  ;;  %v637_v62 = vld [vmem:[%s5933_s22 + $0x1d8] sm:$0xff] }
  0x92   : > { %5230 = vmatpush.xpose.msk.msra.mxu0 %vm642_vm0, %v590_v55  ;;  %5285 = vmatpush.xpose.msk.msra.mxu3 %vm642_vm0, %v637_v62  ;;  %v602_v62 = vld [vmem:[%s5933_s22 + $0xc0] sm:$0xff] }
  0x93   : > { %v5915_v12 = vpop.permute.xlu0 %1291 }
  0x94   : > { %v5850_v39 = vpop.permute.xlu1 %1220 }
  0x95   : > { %10026 = vst [vmem:[#allocation6_spill] sm:$0xff] %v5850_v39 }
  0x96   : > { %5286 = vmatpush.xpose.msk.msra.mxu3 %vm642_vm0, %v636_v20  ;;  %v616_v20 = vld [vmem:[%s5933_s22 + $0x130] sm:$0xff] }
  0x98   : > { %1756 = vrot.lane.b32.xlu1 %v1749_v58, %s5598_s26  ;;  %v606_v58 = vld [vmem:[%s5933_s22 + $0xe0] sm:$0xff] }
  0x99   : > { %v5852_v40 = vpop.permute.xlu2 %1216  ;;  %5248 = vmatpush.xpose.msk.msra.mxu1 %vm642_vm0, %v606_v58 }
  0x9a   : > { %10027 = vst [vmem:[#allocation7_spill] sm:$0xff] %v5852_v40  ;;  %5287 = vmatpush.xpose.msk.msra.mxu3 %vm642_vm0, %v635_v26  ;;  %v584_v26 = vld [vmem:[%s5933_s22 + $0x30] sm:$0xff] }
  0x9b   : > { %v5917_v13 = vpop.permute.xlu0 %1367 }
  0x9c   : > { %v5854_v41 = vpop.permute.xlu1 %1251 }
  0x9d   : > { %10028 = vst [vmem:[#allocation8_spill] sm:$0xff] %v5854_v41 }
  0x9e   : > { %5288 = vmatpush.xpose.msk.msra.mxu3 %vm642_vm0, %v634_v51  ;;  %v631_v51 = vld [vmem:[%s5933_s22 + $0x1a8] sm:$0xff] }
  0xa0   : > { %1840 = vperm.xlu1 %5452, %v5782_v4  }
  0xa1   : > { %v5856_v42 = vpop.permute.xlu2 %1249 }
  0xa2   : > { %10029 = vst [vmem:[#allocation9_spill] sm:$0xff] %v5856_v42 }
  0xa3   : > { %v5919_v14 = vpop.permute.xlu0 %1373 }
  0xa4   : > { %v5858_v43 = vpop.permute.xlu1 %1287 }
  0xa8   : > { %5456 = vset.pattern.permute.xlu1 %v5602_v17 }
  0xa9   : > { %v5860_v44 = vpop.permute.xlu2 %1255 }
  0xaa   : > { %10030 = vst [vmem:[#allocation10_spill] sm:$0xff] %v5860_v44 }
  0xab   : > { %v5927_v15 = vpop.permute.xlu0 %1458 }
  0xac   : > { %10036 = vst [vmem:[#allocation16_spill] sm:$0xff] %v5927_v15 }
  0xad   : > { %v5864_v46 = vpop.permute.xlu1 %1309 }
  0xb1   : > { %v5862_v45 = vpop.permute.xlu2 %1305 }
  0xb3   : > { %v5939_v18 = vpop.permute.xlu0 %1534 }
  0xb6   : > { %v5868_v48 = vpop.permute.xlu1 %1337 }
  0xba   : > { %v5866_v47 = vpop.permute.xlu2 %1333 }
  0xbb   : > { %v5961_v32 = vpop.permute.xlu0 %1540 }
  0xbe   : > { %v5872_v50 = vpop.permute.xlu1 %1371 }
  0xc2   : > { %v5870_v49 = vpop.permute.xlu2 %1369 }
  0xc6   : > { %v5876_v52 = vpop.permute.xlu1 %1454 }
  0xca   : > { %v5878_v53 = vpop.permute.xlu2 %1472 }
  0xcf   : > { %v5886_v57 = vpop.permute.xlu1 %1476 }
  0xd0   : > { %10031 = vst [vmem:[#allocation11_spill] sm:$0xff] %v5886_v57 }
  0xd3   : > { %v5884_v56 = vpop.permute.xlu2 %1500 }
  0xd8   : > { %v5891_v61 = vpop.permute.xlu1 %1504 }
  0xd9   : > { %10032 = vst [vmem:[#allocation12_spill] sm:$0xff] %v5891_v61 }
  0xdb   : > { %v5889_v60 = vpop.permute.xlu2 %1536 }
  0xe0   : > { %v5897_v2 = vpop.permute.xlu1 %1538 }
  0xe3   : > { %v5893_v63 = vpop.permute.xlu2 %1639 }
  0xe4   : > { %v1646_v1 = vmul.f32 0.0, %v5893_v63 }
  0xe6   : > { %1666 = vrot.lane.b32.xlu2 %v1646_v1, %s5601_s29  ;;  %v589_v1 = vld [vmem:[%s5933_s22 + $0x58] sm:$0xff] }
  0xe7   : > { %5231 = vmatpush.xpose.msk.msra.mxu0 %vm642_vm0, %v589_v1  ;;  %v617_v1 = vld [vmem:[%s5933_s22 + $0x138] sm:$0xff] }
  0xe8   : > { %v5900_v6 = vpop.permute.xlu1 %1621 }
  0xe9   : > { %10033 = vst [vmem:[#allocation13_spill] sm:$0xff] %v5900_v6 }
  0xeb   : > { %5232 = vmatpush.xpose.msk.msra.mxu0 %vm642_vm0, %v588_v23  ;;  %v5604_v23 = vmov 2  }
  0xee   : > { %1750 = vrot.lane.b32.xlu2 %v1746_v5, %s5598_s26  ;;  %v605_v5 = vld [vmem:[%s5933_s22 + $0xd8] sm:$0xff] }
  0xef   : > { %5249 = vmatpush.xpose.msk.msra.mxu1 %vm642_vm0, %v605_v5  ;;  %5233 = vmatpush.xpose.msk.msra.mxu0 %vm642_vm0, %v587_v27  ;;  %v633_v5 = vld [vmem:[%s5933_s22 + $0x1b8] sm:$0xff]  ;;  %v600_v27 = vld [vmem:[%s5933_s22 + $0xb0] sm:$0xff] }
  0xf0   : > { %5289 = vmatpush.xpose.msk.msra.mxu3 %vm642_vm0, %v633_v5  ;;  %v5605_v5 = vmov 11  }
  0xf1   : > { %v5903_v8 = vpop.permute.xlu1 %1643 }
  0xf2   : > { %v1651_v9 = vmul.f32 0.0, %v5903_v8 }
  0xf3   : > { %5250 = vmatpush.xpose.msk.msra.mxu1 %vm642_vm0, %v604_v24 }
  0xf4   : > { %1676 = vrot.lane.b32.xlu0 %v1651_v9, %s5601_s29  ;;  %v5986_v9 = vpop.permute.xlu0 %1720 }
  0xf5   : > { %10040 = vst [vmem:[#allocation19_spill] sm:$0xff] %v5986_v9 }
  0xf6   : > { %1754 = vrot.lane.b32.xlu2 %v1748_v7, %s5598_s26  ;;  %v5984_v7 = vld [vmem:[%s9690_s6 + $0x4] ss:$8 sm:$0xf] }
  0xf7   : > { %v1960_v21 = vperm.slane %v5984_v7, 0  ;;  %v1963_v54 = vperm.slane %v5984_v7, 3  ;;  %5251 = vmatpush.xpose.msk.msra.mxu1 %vm642_vm0, %v603_v28  ;;  %v615_v28 = vld [vmem:[%s5933_s22 + $0x128] sm:$0xff] }
  0xfb   : > { %5252 = vmatpush.xpose.msk.msra.mxu1 %vm642_vm0, %v602_v62  ;;  %v614_v62 = vld [vmem:[%s5933_s22 + $0x120] sm:$0xff] }
  0xfc   : > { %1854 = vperm.xlu0 %5453, %v5773_v0  }
  0xfe   : > { %1836 = vperm.xlu2 %5451, %v5773_v0  }
 0x104   : > { %1964 = vrot.lane.b32.xlu0 %v1960_v21, %s5603_s24  ;;  %v632_v21 = vld [vmem:[%s5933_s22 + $0x1b0] sm:$0xff] }
 0x105   : > { %5458 = vset.pattern.permute.xlu0 %v5604_v23  ;;  %5290 = vmatpush.xpose.msk.msra.mxu3 %vm642_vm0, %v632_v21  ;;  %v613_v21 = vld [vmem:[%s5933_s22 + $0x118] sm:$0xff] }
 0x106   : > { %5454 = vset.pattern.permute.xlu2 %v5599_v59  ;;  %v621_v59 = vld [vmem:[%s5933_s22 + $0x158] sm:$0xff] }
 0x107   : > { %1858 = vperm.xlu2 %5454, %v5782_v4   ;;  %5267 = vmatpush.xpose.msk.msra.mxu2 %vm642_vm0, %v621_v59  ;;  %v586_v59 = vld [vmem:[%s5933_s22 + $0x40] sm:$0xff] }
 0x108   : > { %5234 = vmatpush.xpose.msk.msra.mxu0 %vm642_vm0, %v586_v59  ;;  %v599_v59 = vld [vmem:[%s5933_s22 + $0xa8] sm:$0xff] }
 0x109   : > { %5291 = vmatpush.xpose.msk.msra.mxu3 %vm642_vm0, %v631_v51  ;;  %v612_v51 = vld [vmem:[%s5933_s22 + $0x110] sm:$0xff] }
 0x10b   : > { %5268 = vmatpush.xpose.msk.msra.mxu2 %vm642_vm0, %v620_v16  ;;  %v585_v16 = vld [vmem:[%s5933_s22 + $0x38] sm:$0xff] }
 0x10c   : > { %1970 = vrot.lane.b32.xlu0 %v1963_v54, %s5603_s24  ;;  %5235 = vmatpush.xpose.msk.msra.mxu0 %vm642_vm0, %v585_v16  ;;  %v583_v54 = vld [vmem:[%s5933_s22 + $0x28] sm:$0xff] }
 0x10f   : > { %5455 = vset.pattern.permute.xlu2 %v5602_v17  ;;  %5269 = vmatpush.xpose.msk.msra.mxu2 %vm642_vm0, %v619_v25  ;;  %v601_v17 = vld [vmem:[%s5933_s22 + $0xb8] sm:$0xff] }
 0x110   : > { %1930 = vperm.xlu2 %5455, %v5773_v0   ;;  %5253 = vmatpush.xpose.msk.msra.mxu1 %vm642_vm0, %v601_v17  ;;  %v582_v17 = vld [vmem:[%s5933_s22 + $0x20] sm:$0xff] }
 0x111   : > { %5236 = vmatpush.xpose.msk.msra.mxu0 %vm642_vm0, %v584_v26  ;;  %v1961_v26 = vperm.slane %v5984_v7, 1 }
 0x113   : > { %5270 = vmatpush.xpose.msk.msra.mxu2 %vm642_vm0, %v618_v30 }
 0x114   : > { %2055 = vperm.xlu0 %5458, %v5782_v4   ;;  %5254 = vmatpush.xpose.msk.msra.mxu1 %vm642_vm0, %v600_v27  ;;  %v581_v27 = vld [vmem:[%s5933_s22 + $0x18] sm:$0xff] }
 0x115   : > { %5237 = vmatpush.xpose.msk.msra.mxu0 %vm642_vm0, %v583_v54  ;;  %v628_v54 = vld [vmem:[%s5933_s22 + $0x190] sm:$0xff] }
 0x117   : > { %5271 = vmatpush.xpose.msk.msra.mxu2 %vm642_vm0, %v617_v1  ;;  %v630_v1 = vld [vmem:[%s5933_s22 + $0x1a0] sm:$0xff] }
 0x118   : > { %5459 = vset.pattern.permute.xlu2 %v5605_v5  ;;  %5255 = vmatpush.xpose.msk.msra.mxu1 %vm642_vm0, %v599_v59  ;;  %v580_v59 = vld [vmem:[%s5933_s22 + $0x10] sm:$0xff] }
 0x119   : > { %5292 = vmatpush.xpose.msk.msra.mxu3 %vm642_vm0, %v630_v1  ;;  %5238 = vmatpush.xpose.msk.msra.mxu0 %vm642_vm0, %v582_v17  ;;  %v611_v1 = vld [vmem:[%s5933_s22 + $0x108] sm:$0xff] }
 0x11a   : > { %1966 = vrot.lane.b32.xlu2 %v1961_v26, %s5603_s24  ;;  %v579_v17 = vld [vmem:[%s5933_s22 + $0x8] sm:$0xff]  ;;  %v1962_v26 = vperm.slane %v5984_v7, 2 }
 0x11b   : > { %5272 = vmatpush.xpose.msk.msra.mxu2 %vm642_vm0, %v616_v20  ;;  %v598_v20 = vld [vmem:[%s5933_s22 + $0xa0] sm:$0xff]  ;;  %v577_v7 = vld [vmem:[%s10044_s0 + $0x8] sm:$0xff] }
 0x11c   : > { %5256 = vmatpush.xpose.msk.msra.mxu1 %vm642_vm0, %v598_v20  ;;  %v595_v20 = vld [vmem:[%s5933_s22 + $0x88] sm:$0xff] }
 0x11d   : > { %5239 = vmatpush.xpose.msk.msra.mxu0 %vm642_vm0, %v581_v27  ;;  %v576_v27 = vld [vmem:[%s10044_s0] sm:$0xff] }
 0x11f   : > { %5273 = vmatpush.xpose.msk.msra.mxu2 %vm642_vm0, %v615_v28  ;;  %v597_v28 = vld [vmem:[%s5933_s22 + $0x98] sm:$0xff] }
 0x120   : > { %5257 = vmatpush.xpose.msk.msra.mxu1 %vm642_vm0, %v597_v28  ;;  %v578_v28 = vld [vmem:[%s5933_s22] sm:$0xff] }
 0x121   : > { %5240 = vmatpush.xpose.msk.msra.mxu0 %vm642_vm0, %v580_v59 }
 0x122   : > { %2069 = vperm.xlu2 %5459, %v5773_v0  }
 0x123   : > { %5274 = vmatpush.xpose.msk.msra.mxu2 %vm642_vm0, %v614_v62  ;;  %v596_v62 = vld [vmem:[%s5933_s22 + $0x90] sm:$0xff] }
 0x124   : > { %5258 = vmatpush.xpose.msk.msra.mxu1 %vm642_vm0, %v596_v62 }
 0x125   : > { %5241 = vmatpush.xpose.msk.msra.mxu0 %vm642_vm0, %v579_v17 }
 0x127   : > { %5275 = vmatpush.xpose.msk.msra.mxu2 %vm642_vm0, %v613_v21  ;;  %v610_v21 = vld [vmem:[%s5933_s22 + $0x100] sm:$0xff] }
 0x128   : > { %5259 = vmatpush.xpose.msk.msra.mxu1 %vm642_vm0, %v595_v20 }
 0x129   : > { %5242 = vmatpush.xpose.msk.msra.mxu0 %vm642_vm0, %v578_v28 }
 0x12b   : > { %5276 = vmatpush.xpose.msk.msra.mxu2 %vm642_vm0, %v612_v51  ;;  %v594_v51 = vld [vmem:[%s5933_s22 + $0x80] sm:$0xff] }
 0x12c   : > { %5260 = vmatpush.xpose.msk.msra.mxu1 %vm642_vm0, %v594_v51  ;;  %5243 = vmatmul.msk.f32.vlgmr.msra.gmra.mxu0 %vm642_vm0, %v576_v27 }
 0x12f   : > { %5277 = vmatpush.xpose.msk.msra.mxu2 %vm642_vm0, %v611_v1  ;;  %5261 = vmatmul.msk.f32.vlgmr.msra.gmra.mxu1 %vm642_vm0, %v576_v27  ;;  %v5606_v1 = vmov 20  }
 0x130   : > { %5462 = vset.pattern.permute.xlu0 %v5606_v1 }
 0x133   : > { %5278 = vmatpush.xpose.msk.msra.mxu2 %vm642_vm0, %v610_v21 }
 0x134   : > { %5244 = vmatmul.msk.f32.gmra.mxu0 %vm642_vm0, %v577_v7 }
 0x136   : > { %5279 = vmatmul.msk.f32.vlgmr.msra.gmra.mxu2 %vm642_vm0, %v576_v27 }
 0x137   : > { %5262 = vmatmul.msk.f32.gmra.mxu1 %vm642_vm0, %v577_v7 }
 0x13e   : > { %5280 = vmatmul.msk.f32.gmra.mxu2 %vm642_vm0, %v577_v7 }
 0x140   : > { %v5941_v19 = vpop.permute.xlu2 %1666 }
 0x141   : > { %10038 = vst [vmem:[#allocation17_spill] sm:$0xff] %v5941_v19 }
 0x148   : > { %v5963_v34 = vpop.permute.xlu2 %1750 }
 0x149   : > { %10039 = vst [vmem:[#allocation18_spill] sm:$0xff] %v5963_v34 }
 0x150   : > { %v5992_v22 = vpop.permute.xlu2 %1754 }
 0x151   : > { %10041 = vst [vmem:[#allocation20_spill] sm:$0xff] %v5992_v22 }
 0x158   : > { %v6018_v58 = vpop.permute.xlu2 %1836 }
 0x159   : > { %10043 = vst [vmem:[#allocation22_spill] sm:$0xff] %v6018_v58 }
 0x161   : > { %v6046_v30 = vpop.permute.xlu2 %1858 }
 0x162   : > { %v1866_v16 = vmul.f32 0.0, %v6046_v30 }
 0x166   : > { %v6012_v55 = vpop.permute.xlu0 %1676 }
 0x167   : > { %10042 = vst [vmem:[#allocation21_spill] sm:$0xff] %v6012_v55 }
 0x16a   : > { %v6139_v20 = vpop.permute.xlu2 %1930 }
 0x16b   : > { %10050 = vst [vmem:[#allocation28_spill] sm:$0xff] %v6139_v20 }
 0x16e   : > { %v6034_v24 = vpop.permute.xlu0 %1854 }
 0x16f   : > { %v1861_v25 = vmul.f32 0.0, %v6034_v24 }
 0x171   : > { %1881 = vrot.lane.b32.xlu1 %v1861_v25, %s5601_s29  ;;  %v629_v25 = vld [vmem:[%s5933_s22 + $0x198] sm:$0xff] }
 0x172   : > { %5293 = vmatpush.xpose.msk.msra.mxu3 %vm642_vm0, %v629_v25  ;;  %v626_v25 = vld [vmem:[%s5933_s22 + $0x180] sm:$0xff] }
 0x176   : > { %5294 = vmatpush.xpose.msk.msra.mxu3 %vm642_vm0, %v628_v54 }
 0x179   : > { %1891 = vrot.lane.b32.xlu1 %v1866_v16, %s5601_s29  ;;  %v627_v16 = vld [vmem:[%s5933_s22 + $0x188] sm:$0xff]  ;;  %s5630_s22 = smov 65  }
 0x17a   : > { %5295 = vmatpush.xpose.msk.msra.mxu3 %vm642_vm0, %v627_v16 }
 0x17e   : > { %5296 = vmatpush.xpose.msk.msra.mxu3 %vm642_vm0, %v626_v25  ;;  %v6144_v25 = vpop.permute.xlu2 %1966 }
 0x17f   : > { %10052 = vst [vmem:[#allocation30_spill] sm:$0xff] %v6144_v25 }
 0x181   : > { %1934 = vperm.xlu1 %5456, %v5782_v4   ;;  %5297 = vmatmul.msk.f32.vlgmr.msra.gmra.mxu3 %vm642_vm0, %v576_v27 }
 0x186   : > { %v6148_v27 = vpop.permute.xlu2 %2069 }
 0x187   : > { %v2076_v28 = vmul.f32 0.0, %v6148_v27 }
 0x189   : > { %1968 = vrot.lane.b32.xlu1 %v1962_v26, %s5603_s24  ;;  %5298 = vmatmul.msk.f32.gmra.mxu3 %vm642_vm0, %v577_v7  ;;  %s5636_s24 = smov 54  }
 0x18a   : > { %5457 = vset.pattern.permute.xlu1 %v5604_v23  ;;  %v6122_v23 = vpop.permute.xlu1 %1716  ;;  %2096 = vrot.lane.b32.xlu2 %v2076_v28, %s5601_s29 }
 0x18b   : > { %10045 = vst [vmem:[#allocation23_spill] sm:$0xff] %v6122_v23 }
 0x191   : > { %2051 = vperm.xlu1 %5457, %v5773_v0  }
 0x192   : > { %v6124_v54 = vpop.permute.xlu1 %1752 }
 0x193   : > { %10046 = vst [vmem:[#allocation24_spill] sm:$0xff] %v6124_v54 }
 0x199   : > { %5460 = vset.pattern.permute.xlu1 %v5605_v5  ;;  %v6136_v5 = vld [vmem:[%s9690_s6 + $0x5] ss:$8 sm:$0xf] }
 0x19a   : > { %2073 = vperm.xlu1 %5460, %v5782_v4   ;;  %v6126_v59 = vpop.permute.xlu1 %1756  ;;  %v2176_v17 = vperm.slane %v6136_v5, 1  ;;  %v2175_v7 = vperm.slane %v6136_v5, 0 }
 0x19b   : > { %10047 = vst [vmem:[#allocation25_spill] sm:$0xff] %v6126_v59 }
 0x19c   : > { %2179 = vrot.lane.b32.xlu2 %v2175_v7, %s5607_s23 }
 0x1a2   : > { %v6128_v62 = vpop.permute.xlu1 %1840  ;;  %5461 = vset.pattern.permute.xlu1 %v5606_v1 }
 0x1a3   : > { %10048 = vst [vmem:[#allocation26_spill] sm:$0xff] %v6128_v62  ;;  %2145 = vperm.xlu1 %5461, %v5773_v0  }
 0x1a9   : > { %v6160_v3 = vpop.f32.mrf.mxu0 }
 0x1aa   : > { %v951_v28 = vmul.f32 %v6160_v3, %v6160_v3 }
 0x1ab   : > { %2181 = vrot.lane.b32.xlu1 %v2176_v17, %s5607_s23  ;;  %v2177_v17 = vperm.slane %v6136_v5, 2 }
 0x1ac   : > { %v6162_v39 = vpop.f32.mrf.mxu1 }
 0x1ad   : > { %2183 = vrot.lane.b32.xlu2 %v2177_v17, %s5607_s23  ;;  %v952_v44 = vmul.f32 %v6162_v39, %v6162_v39 }
 0x1af   : > { %v959_v17 = vadd.f32 %v952_v44, %v951_v28 }
 0x1b1   : > { %v6180_v37 = vpop.f32.mrf.mxu0 }
 0x1b9   : > { %v6171_v42 = vpop.f32.mrf.mxu2 }
 0x1ba   : > { %v953_v41 = vmul.f32 %v6171_v42, %v6171_v42 }
 0x1bc   : > { %v960_v10 = vadd.f32 %v959_v17, %v953_v41 }
 0x1c1   : > { %v6188_v44 = vpop.f32.mrf.mxu2 }
 0x1c2   : > { %v957_v28 = vmul.f32 %v6188_v44, %v6188_v44 }
 0x1e3   : > { %v6131_v16 = vpop.permute.xlu1 %1881 }
 0x1e4   : > { %10049 = vst [vmem:[#allocation27_spill] sm:$0xff] %v6131_v16  ;;  %v955_v16 = vmul.f32 %v6180_v37, %v6180_v37 }
 0x1eb   : > { %v6142_v21 = vpop.permute.xlu1 %1891 }
 0x1ec   : > { %10051 = vst [vmem:[#allocation29_spill] sm:$0xff] %v6142_v21 }
 0x1f3   : > { %v6146_v26 = vpop.permute.xlu1 %1934 }
 0x1f4   : > { %10053 = vst [vmem:[#allocation31_spill] sm:$0xff] %v6146_v26  ;;  %v5608_v26 = vmov 12  }
 0x1f5   : > { %5465 = vset.pattern.permute.xlu1 %v5608_v26 }
 0x1fb   : > { %v6152_v51 = vpop.permute.xlu1 %1968 }
 0x1fc   : > { %10054 = vst [vmem:[#allocation32_spill] sm:$0xff] %v6152_v51 }
 0x203   : > { %v6156_v1 = vpop.permute.xlu1 %2051 }
 0x204   : > { %10055 = vst [vmem:[#allocation33_spill] sm:$0xff] %v6156_v1  ;;  %v6176_v11 = vpop.f32.mrf.mxu3  ;;  %v6182_v1 = vpop.f32.mrf.mxu1 }
 0x205   : > { %v954_v35 = vmul.f32 %v6176_v11, %v6176_v11  ;;  %v956_v55 = vmul.f32 %v6182_v1, %v6182_v1 }
 0x207   : > { %v961_v38 = vadd.f32 %v960_v10, %v954_v35 }
 0x209   : > { %962 = vadd.xlane.f32.xlu1 %v961_v38  ;;  %v941_v38 = vadd.f32 %v6162_v39, %v6160_v3 }
 0x20b   : > { %v942_v54 = vadd.f32 %v941_v38, %v6171_v42 }
 0x20c   : > { %v6164_v40 = vpop.permute.xlu1 %2073  ;;  %v6193_v35 = vpop.f32.mrf.mxu3 }
 0x20d   : > { %v2081_v7 = vmul.f32 0.0, %v6164_v40  ;;  %v958_v41 = vmul.f32 %v6193_v35, %v6193_v35 }
 0x20f   : > { %2106 = vrot.lane.b32.xlu0 %v2081_v7, %s5601_s29  ;;  %v964_v7 = vadd.f32 %v956_v55, %v955_v16  ;;  %v946_v55 = vadd.f32 %v6182_v1, %v6180_v37  ;;  %v943_v16 = vadd.f32 %v942_v54, %v6176_v11 }
 0x211   : > { %v965_v10 = vadd.f32 %v964_v7, %v957_v28  ;;  %v947_v62 = vadd.f32 %v946_v55, %v6188_v44  ;;  %v5609_v7 = vmov 13  }
 0x212   : > { %5464 = vset.pattern.permute.xlu2 %v5609_v7  ;;  %v5614_v7 = vmov 16  }
 0x213   : > { %v966_v17 = vadd.f32 %v965_v10, %v958_v41  ;;  %v948_v28 = vadd.f32 %v947_v62, %v6193_v35  ;;  %v5610_v41 = vmov 14   ;;  %2668 = vperm.xlu2 %5464, %v5782_v4   ;;  %v5611_v62 = vmov 31   ;;  %v6219_v10 = vpop.permute.xlu0 %1964 }
 0x214   : > { %10058 = vst [vmem:[#allocation36_spill] sm:$0xff] %v6219_v10  ;;  %v5627_v10 = vmov 32  }
 0x215   : > { %967 = vadd.xlane.f32.xlu1 %v966_v17  ;;  %v6212_v54 = vpop.permute.xlu1 %2145 }
 0x216   : > { %10056 = vst [vmem:[#allocation34_spill] sm:$0xff] %v6212_v54  ;;  %v5620_v54 = vmov 47  }
 0x217   : > { %2149 = vperm.xlu0 %5462, %v5782_v4  }
 0x21b   : > { %2664 = vperm.xlu2 %5464, %v5773_v0   ;;  %v6221_v55 = vpop.permute.xlu0 %1970 }
 0x21c   : > { %10059 = vst [vmem:[#allocation37_spill] sm:$0xff] %v6221_v55 }
 0x21f   : > { %5463 = vset.pattern.permute.xlu0 %v5608_v26  ;;  %v2178_v26 = vperm.slane %v6136_v5, 3  ;;  %v6216_v5 = vpop.permute.xlu1 %2181 }
 0x220   : > { %10057 = vst [vmem:[#allocation35_spill] sm:$0xff] %v6216_v5 }
 0x223   : > { %5468 = vset.pattern.permute.xlu2 %v5611_v62 }
 0x224   : > { %2758 = vperm.xlu2 %5468, %v5773_v0  }
 0x22c   : > { %5470 = vset.pattern.permute.xlu2 %v5610_v41 }
 0x22d   : > { %2967 = vperm.xlu2 %5470, %v5773_v0  }
 0x22e   : > { %2185 = vrot.lane.b32.xlu1 %v2178_v26, %s5607_s23  ;;  %v6225_v26 = vpop.permute.xlu0 %2055  ;;  %s5650_s23 = smov 18  }
 0x22f   : > { %10060 = vst [vmem:[#allocation38_spill] sm:$0xff] %v6225_v26 }
 0x236   : > { %2449 = vperm.xlu1 %5465, %v5773_v0  }
 0x23e   : > { %5466 = vset.pattern.permute.xlu1 %v5611_v62  ;;  %v5615_v62 = vmov 30  }
 0x23f   : > { %2762 = vperm.xlu1 %5466, %v5782_v4  }
 0x241   : > { %944 = vadd.xlane.f32.xlu0 %v943_v16  ;;  %v5612_v16 = vmov 15  }
 0x242   : > { %5472 = vset.pattern.permute.xlu2 %v5612_v16 }
 0x243   : > { %3359 = vperm.xlu2 %5472, %v5773_v0  }
 0x249   : > { %949 = vadd.xlane.f32.xlu0 %v948_v28  ;;  %v5613_v28 = vmov 48  }
 0x24a   : > { %5469 = vset.pattern.permute.xlu1 %v5613_v28  ;;  %v5617_v28 = vmov 3  }
 0x24b   : > { %2828 = vperm.xlu1 %5469, %v5782_v4   ;;  %5474 = vset.pattern.permute.xlu2 %v5614_v7 }
 0x24c   : > { %3574 = vperm.xlu2 %5474, %v5773_v0  }
 0x253   : > { %2824 = vperm.xlu1 %5469, %v5773_v0  }
 0x254   : > { %5477 = vset.pattern.permute.xlu2 %v5615_v62 }
 0x255   : > { %2270 = vperm.xlu2 %5477, %v5782_v4  }
 0x25b   : > { %5473 = vset.pattern.permute.xlu1 %v5614_v7  ;;  %v5618_v7 = vmov 39  }
 0x25c   : > { %3578 = vperm.xlu1 %5473, %v5782_v4  }
 0x25d   : > { %2453 = vperm.xlu0 %5463, %v5782_v4   ;;  %2266 = vperm.xlu2 %5477, %v5773_v0  }
 0x265   : > { %5467 = vset.pattern.permute.xlu0 %v5610_v41  ;;  %5480 = vset.pattern.permute.xlu2 %v5617_v28 }
 0x266   : > { %2971 = vperm.xlu0 %5467, %v5782_v4   ;;  %2435 = vperm.xlu2 %5480, %v5782_v4  }
 0x26e   : > { %5471 = vset.pattern.permute.xlu0 %v5612_v16 }
 0x26f   : > { %3363 = vperm.xlu0 %5471, %v5782_v4  }
 0x27c   : > { %v963_v17 = vpop.xlane.xlu1 %962 }
 0x281   : > { %v6230_v41 = vpop.permute.xlu0 %2106 }
 0x282   : > { %10061 = vst [vmem:[#allocation39_spill] sm:$0xff] %v6230_v41  ;;  %v5619_v41 = vmov 21  }
 0x283   : > { %5484 = vset.pattern.permute.xlu2 %v5619_v41 }
 0x288   : > { %v968_v38 = vpop.xlane.xlu1 %967 }
 0x289   : > { %994 = vmatpush.msrb.mxu0 %v968_v38  ;;  %v5616_v38 = vmov 17  }
 0x28a   : > { %5475 = vset.pattern.permute.xlu1 %v5616_v38  ;;  %5476 = vset.pattern.permute.xlu0 %v5616_v38  ;;  %v933_v38 = vld [vmem:[%s9688_s4] sm:$0xff] }
 0x28b   : > { %995 = vmatpush.msrb.mxu0 %v963_v17  ;;  %v6234_v17 = vpop.permute.xlu0 %2149  ;;  %3793 = vperm.xlu1 %5475, %v5782_v4  }
 0x28c   : > { %10062 = vst [vmem:[#allocation40_spill] sm:$0xff] %v6234_v17  ;;  %3789 = vperm.xlu0 %5476, %v5773_v0  }
 0x293   : > { %5478 = vset.pattern.permute.xlu1 %v5618_v7  ;;  %v934_v7 = vld [vmem:[%s9688_s4 + $0x8] sm:$0xff] }
 0x294   : > { %2288 = vperm.xlu1 %5478, %v5782_v4   ;;  %5479 = vset.pattern.permute.xlu0 %v5620_v54 }
 0x295   : > { %2316 = vperm.xlu0 %5479, %v5782_v4  }
 0x29c   : > { %2284 = vperm.xlu1 %5478, %v5773_v0  }
 0x29d   : > { %5483 = vset.pattern.permute.xlu0 %v5617_v28  ;;  %v936_v28 = vld [vmem:[%s9688_s4 + $0x18] sm:$0xff] }
 0x29e   : > { %2431 = vperm.xlu0 %5483, %v5773_v0  }
 0x2a6   : > { %5487 = vset.pattern.permute.xlu0 %v5619_v41 }
 0x2b4   : > { %v945_v16 = vpop.xlane.xlu0 %944 }
 0x2bc   : > { %v950_v62 = vpop.xlane.xlu0 %949 }
 0x2bd   : > { %996 = vmatpush.msrb.mxu0 %v950_v62  ;;  %v5621_v62 = vmov 4  }
 0x2be   : > { %5481 = vset.pattern.permute.xlu1 %v5621_v62 }
 0x2bf   : > { %997 = vmatpush.msrb.mxu0 %v945_v16  ;;  %2650 = vperm.xlu1 %5481, %v5782_v4   ;;  %v935_v16 = vld [vmem:[%s9688_s4 + $0x10] sm:$0xff] }
 0x2c0   : > { %5299 = vmatmul.msk.f32.vlgmr.msrb.gmra.mxu0 %vm969_vm1, %v933_v38 }
 0x2c7   : > { %5482 = vset.pattern.permute.xlu1 %v5620_v54  ;;  %v5623_v54 = vmov 22  }
 0x2c8   : > { %5300 = vmatmul.msk.f32.gmra.mxu0 %vm969_vm1, %v934_v7  ;;  %v5308_v7 = vld [vmem:[%s9690_s6 + $0x6] ss:$8 sm:$0xf]  ;;  %2312 = vperm.xlu1 %5482, %v5773_v0  }
 0x2c9   : > { %v2343_v17 = vperm.slane %v5308_v7, 1  ;;  %v2342_v26 = vperm.slane %v5308_v7, 0 }
 0x2cb   : > { %2348 = vrot.lane.b32.xlu0 %v2343_v17, %s5622_s30 }
 0x2cf   : > { %v6256_v38 = vpop.permute.xlu0 %2453 }
 0x2d0   : > { %5301 = vmatmul.msk.f32.gmra.mxu0 %vm969_vm1, %v935_v16  ;;  %v2461_v5 = vmul.f32 0.0, %v6256_v38  ;;  %5485 = vset.pattern.permute.xlu1 %v5621_v62  ;;  %v6273_v16 = vpop.permute.xlu1 %2185  ;;  %v2345_v62 = vperm.slane %v5308_v7, 3 }
 0x2d1   : > { %10064 = vst [vmem:[#allocation42_spill] sm:$0xff] %v6273_v16  ;;  %2646 = vperm.xlu1 %5485, %v5773_v0   ;;  %v5626_v16 = vmov 23  }
 0x2d2   : > { %2486 = vrot.lane.b32.xlu2 %v2461_v5, %s5601_s29  ;;  %v6271_v5 = vpop.permute.xlu2 %2096 }
 0x2d3   : > { %10063 = vst [vmem:[#allocation41_spill] sm:$0xff] %v6271_v5  ;;  %v5624_v5 = vmov 5  }
 0x2d8   : > { %5302 = vmatmul.msk.f32.gmra.mxu0 %vm969_vm1, %v936_v28  ;;  %v6279_v17 = vpop.permute.xlu1 %2449  ;;  %v2344_v28 = vperm.slane %v5308_v7, 2 }
 0x2d9   : > { %2346 = vrot.lane.b32.xlu1 %v2342_v26, %s5622_s30  ;;  %v2456_v41 = vmul.f32 0.0, %v6279_v17  ;;  %v5309_v26 = vld [vmem:[%s9690_s6 + $0x7] ss:$8 sm:$0xf] }
 0x2da   : > { %2529 = vperm.xlu2 %5484, %v5782_v4   ;;  %v6277_v55 = vpop.permute.xlu2 %2179  ;;  %5488 = vset.pattern.permute.xlu1 %v5624_v5  ;;  %v2556_v7 = vperm.slane %v5309_v26, 1 }
 0x2db   : > { %10065 = vst [vmem:[#allocation43_spill] sm:$0xff] %v6277_v55  ;;  %2476 = vrot.lane.b32.xlu0 %v2456_v41, %s5601_s29  ;;  %v2555_v55 = vperm.slane %v5309_v26, 0 }
 0x2e1   : > { %2352 = vrot.lane.b32.xlu1 %v2345_v62, %s5622_s30  ;;  %v6303_v62 = vpop.permute.xlu1 %2762 }
 0x2e2   : > { %5486 = vset.pattern.permute.xlu2 %v5623_v54  ;;  %v6286_v0 = vpop.permute.xlu2 %2183  ;;  %v5569_v54 = vld [vmem:[%s9689_s5 + $0x8] sm:$0xff] }
 0x2e3   : > { %2734 = vperm.xlu2 %5486, %v5782_v4   ;;  %10066 = vst [vmem:[#allocation44_spill] sm:$0xff] %v6286_v0  ;;  %v6291_v4 = vld [vmem:[%s9689_s5] sm:$0xff]  ;;  %v2769_v0 = vmul.f32 0.0, %v6303_v62 }
 0x2e4   : > { %10067 = vst [vmem:[#allocation45_spill] sm:$0xff] %v6291_v4  ;;  %2525 = vperm.xlu0 %5487, %v6291_v4  }
 0x2e9   : > { %2953 = vperm.xlu1 %5488, %v5569_v54  }
 0x2ea   : > { %v6301_v41 = vpop.permute.xlu2 %2668 }
 0x2eb   : > { %2350 = vrot.lane.b32.xlu2 %v2344_v28, %s5622_s30  ;;  %v2557_v28 = vperm.slane %v5309_v26, 2 }
 0x2ec   : > { %2561 = vrot.lane.b32.xlu0 %v2556_v7, %s5625_s25  ;;  %v2558_v7 = vperm.slane %v5309_v26, 3  ;;  %v10068_v26 = vmov 0  }
 0x2ed   : > { %5489 = vset.pattern.permute.xlu0 %v5624_v5  ;;  %v5628_v5 = vmov 40  }
 0x2f1   : > { %2559 = vrot.lane.b32.xlu1 %v2555_v55, %s5625_s25  ;;  %v5629_v55 = vmov 6  }
 0x2f2   : > { %5491 = vset.pattern.permute.xlu1 %v5627_v10  ;;  %v6307_v21 = vpop.permute.xlu2 %2664 }
 0x2f3   : > { %2730 = vperm.xlu2 %5486, %v6291_v4  }
 0x2f4   : > { %2789 = vrot.lane.b32.xlu0 %v2769_v0, %s5601_s29  ;;  %v5310_v0 = vld [vmem:[%s9690_s6 + $0x20] ss:$8 sm:$0xf] }
 0x2f5   : > { %v3075_v51 = vperm.slane %v5310_v0, 2 }
 0x2f9   : > { %3168 = vperm.xlu1 %5491, %v5569_v54  }
 0x2fa   : > { %v6310_v9 = vpop.permute.xlu2 %2758 }
 0x2fb   : > { %2563 = vrot.lane.b32.xlu2 %v2557_v28, %s5625_s25  ;;  %v2765_v28 = vmul.f32 0.0, %v6310_v9 }
 0x2fc   : > { %5490 = vset.pattern.permute.xlu2 %v5626_v16  ;;  %2949 = vperm.xlu0 %5489, %v6291_v4  }
 0x301   : > { %2565 = vrot.lane.b32.xlu1 %v2558_v7, %s5625_s25  ;;  %v3074_v7 = vperm.slane %v5310_v0, 1  ;;  %s5634_s25 = smov 2  }
 0x302   : > { %5493 = vset.pattern.permute.xlu1 %v5626_v16  ;;  %v6324_v16 = vpop.permute.xlu1 %2828 }
 0x303   : > { %3047 = vperm.xlu2 %5490, %v5569_v54  }
 0x304   : > { %2781 = vrot.lane.b32.xlu0 %v2765_v28, %s5601_s29  ;;  %v2838_v28 = vmul.f32 0.0, %v6324_v16 }
 0x305   : > { %5494 = vset.pattern.permute.xlu0 %v5627_v10  ;;  %v5631_v10 = vmov 49  }
 0x309   : > { %3043 = vperm.xlu1 %5493, %v6291_v4  }
 0x30b   : > { %5492 = vset.pattern.permute.xlu2 %v5628_v5  ;;  %v6326_v5 = vpop.permute.xlu0 %2971 }
 0x30c   : > { %3186 = vperm.xlu2 %5492, %v5569_v54   ;;  %3164 = vperm.xlu0 %5494, %v6291_v4   ;;  %v2983_v25 = vmul.f32 0.0, %v6326_v5 }
 0x311   : > { %5496 = vset.pattern.permute.xlu1 %v5631_v10 }
 0x312   : > { %3224 = vperm.xlu1 %5496, %v5569_v54  }
 0x313   : > { %v6340_v6 = vpop.permute.xlu0 %3363 }
 0x314   : > { %3182 = vperm.xlu2 %5492, %v6291_v4   ;;  %5495 = vset.pattern.permute.xlu0 %v10068_v26 }
 0x315   : > { %1625 = vperm.xlu0 %5495, %v5569_v54  }
 0x31a   : > { %5499 = vset.pattern.permute.xlu1 %v10068_v26 }
 0x31b   : > { %3012 = vrot.lane.b32.xlu1 %v2983_v25, %s5601_s29 }
 0x31c   : > { %5497 = vset.pattern.permute.xlu2 %v5629_v55 }
 0x31d   : > { %3345 = vperm.xlu2 %5497, %v5569_v54   ;;  %2861 = vrot.lane.b32.xlu0 %v2838_v28, %s5601_s29 }
 0x323   : > { %3081 = vrot.lane.b32.xlu1 %v3075_v51, %s5630_s22 }
 0x325   : > { %3079 = vrot.lane.b32.xlu2 %v3074_v7, %s5630_s22  ;;  %v3073_v7 = vperm.slane %v5310_v0, 0 }
 0x326   : > { %5498 = vset.pattern.permute.xlu2 %v10068_v26  ;;  %v6334_v26 = vpop.permute.xlu2 %2967 }
 0x327   : > { %3077 = vrot.lane.b32.xlu0 %v3073_v7, %s5630_s22 }
 0x32e   : > { %v6336_v22 = vpop.permute.xlu2 %3359 }
 0x336   : > { %v6338_v25 = vpop.permute.xlu2 %3574 }
 0x337   : > { %10069 = vst [vmem:[#allocation46_spill] sm:$0xff] %v6338_v25 }
 0x33d   : > { %v999_v54 = vpop.f32.mrf.mxu0 }
 0x33e   : > { %1041 = vperm.xlu2 %5498, %v999_v54   ;;  %v1011_v59 = vmul.f32 %v999_v54, %v999_v54  ;;  %v6342_v15 = vpop.permute.xlu2 %2270 }
 0x33f   : > { %10070 = vst [vmem:[#allocation47_spill] sm:$0xff] %v6342_v15 }
 0x345   : > { %v1002_v20 = vpop.f32.mrf.mxu0 }
 0x346   : > { %1046 = vperm.xlu2 %5498, %v1002_v20   ;;  %v1012_v23 = vmul.f32 %v1002_v20, %v1002_v20 }
 0x34d   : > { %v1005_v58 = vpop.f32.mrf.mxu0 }
 0x34e   : > { %v1013_v34 = vsub.f32 %v1005_v58, %v1011_v59  ;;  %5501 = vset.pattern.permute.xlu2 %v5629_v55  ;;  %v6344_v59 = vpop.permute.xlu0 %3789 }
 0x34f   : > { %10071 = vst [vmem:[#allocation48_spill] sm:$0xff] %v6344_v59 }
 0x350   : > { %v1015_v28 = vmax.f32 %v1013_v34, 0.0 }
 0x352   : > { %v1017_v0 = vadd.f32 1e-05, %v1015_v28 }
 0x354   : > { %5554 = vrsqrt.f32 %v1017_v0  ;;  %vm1025_vm3 = vweird.f32 %v1017_v0 }
 0x355   : > { %v1008_v7 = vpop.f32.mrf.mxu0 }
 0x356   : > { %v1014_v51 = vsub.f32 %v1008_v7, %v1012_v23  ;;  %v6348_v15 = vpop.permute.xlu0 %2316 }
 0x357   : > { %10073 = vst [vmem:[#allocation50_spill] sm:$0xff] %v6348_v15 }
 0x358   : > { %v1016_v19 = vmax.f32 %v1014_v51, 0.0  ;;  %v6346_v51 = vpop.permute.xlu2 %2266 }
 0x359   : > { %10072 = vst [vmem:[#allocation49_spill] sm:$0xff] %v6346_v51 }
 0x35a   : > { %v5555_v4 = vpop.eup %5554  ;;  %v1018_v61 = vadd.f32 1e-05, %v1016_v19 }
 0x35b   : > { %v1020_v57 = vmul.f32 %v5555_v4, %v1017_v0  ;;  %vm1026_vm2 = vweird.f32 %v5555_v4 }
 0x35c   : > { %5556 = vrsqrt.f32 %v1018_v61  ;;  %vm1027_vm4 = vmor %vm1025_vm3, %vm1026_vm2  ;;  %vm1035_vm6 = vweird.f32 %v1018_v61  ;;  %vm3085_vm2 = vcmask 531456   ;;  %vm3262_vm3 = vcmask 15360  }
 0x35d   : > { %v1021_v54 = vmul.f32 %v5555_v4, %v1020_v57 }
 0x35e   : > { %v6352_v0 = vpop.permute.xlu0 %2431 }
 0x35f   : > { %v1022_v58 = vmul.f32 0.5, %v1021_v54  ;;  %10075 = vst [vmem:[#allocation52_spill] sm:$0xff] %v6352_v0 }
 0x361   : > { %v1023_v34 = vsub.f32 1.5, %v1022_v58  ;;  %v6350_v58 = vpop.permute.xlu2 %2435 }
 0x362   : > { %v5557_v55 = vpop.eup %5556  ;;  %10074 = vst [vmem:[#allocation51_spill] sm:$0xff] %v6350_v58 }
 0x363   : > { %v1030_v20 = vmul.f32 %v5557_v55, %v1018_v61  ;;  %v1024_v28 = vmul.f32 %v5555_v4, %v1023_v34  ;;  %vm1036_vm5 = vweird.f32 %v5557_v55 }
 0x364   : > { %vm1037_vm7 = vmor %vm1035_vm6, %vm1036_vm5  ;;  %vm3692_vm5 = vcmask 588800   ;;  %vm3907_vm6 = vcmask 596992  }
 0x365   : > { %v1031_v23 = vmul.f32 %v5557_v55, %v1030_v20  ;;  %v1028_v7 = vsel %vm1027_vm4, %v5555_v4, %v1024_v28  ;;  %vm3477_vm4 = vcmask 580608  }
 0x366   : > { %1059 = vperm.xlu0 %5495, %v1028_v7   ;;  %v6356_v4 = vpop.permute.xlu0 %2348 }
 0x367   : > { %v1032_v19 = vmul.f32 0.5, %v1031_v23  ;;  %10077 = vst [vmem:[#allocation54_spill] sm:$0xff] %v6356_v4  ;;  %v6362_v23 = vpop.permute.xlu1 %2824 }
 0x369   : > { %v1033_v25 = vsub.f32 1.5, %v1032_v19  ;;  %v6354_v34 = vpop.permute.xlu2 %2486 }
 0x36a   : > { %10076 = vst [vmem:[#allocation53_spill] sm:$0xff] %v6354_v34 }
 0x36b   : > { %v1034_v57 = vmul.f32 %v5557_v55, %v1033_v25 }
 0x36d   : > { %v1038_v54 = vsel %vm1037_vm7, %v5557_v55, %v1034_v57  ;;  %vm1257_vm7 = vcmask 900096  }
 0x36e   : > { %1064 = vperm.xlu1 %5499, %v1038_v54   ;;  %5500 = vset.pattern.permute.xlu0 %v5631_v10  ;;  %v6360_v28 = vpop.permute.xlu0 %2476 }
 0x36f   : > { %10079 = vst [vmem:[#allocation56_spill] sm:$0xff] %v6360_v28  ;;  %v6368_v55 = vpop.permute.xlu1 %3578 }
 0x371   : > { %v6358_v20 = vpop.permute.xlu2 %2529 }
 0x372   : > { %10078 = vst [vmem:[#allocation55_spill] sm:$0xff] %v6358_v20 }
 0x376   : > { %v6366_v25 = vpop.permute.xlu0 %2525 }
 0x377   : > { %10081 = vst [vmem:[#allocation58_spill] sm:$0xff] %v6366_v25  ;;  %v6374_v19 = vpop.permute.xlu1 %3793 }
 0x379   : > { %v6364_v61 = vpop.permute.xlu2 %2734 }
 0x37a   : > { %10080 = vst [vmem:[#allocation57_spill] sm:$0xff] %v6364_v61 }
 0x37e   : > { %v6372_v7 = vpop.permute.xlu0 %2561 }
 0x37f   : > { %10083 = vst [vmem:[#allocation60_spill] sm:$0xff] %v6372_v7  ;;  %v6380_v34 = vpop.permute.xlu1 %2288 }
 0x380   : > { %10086 = vst [vmem:[#allocation63_spill] sm:$0xff] %v6380_v34 }
 0x381   : > { %v6370_v10 = vpop.permute.xlu2 %2350 }
 0x382   : > { %10082 = vst [vmem:[#allocation59_spill] sm:$0xff] %v6370_v10 }
 0x386   : > { %v6378_v54 = vpop.permute.xlu0 %2789 }
 0x387   : > { %10085 = vst [vmem:[#allocation62_spill] sm:$0xff] %v6378_v54  ;;  %v6386_v61 = vpop.permute.xlu1 %2284 }
 0x388   : > { %10089 = vst [vmem:[#allocation66_spill] sm:$0xff] %v6386_v61 }
 0x389   : > { %v6376_v57 = vpop.permute.xlu2 %2730 }
 0x38a   : > { %10084 = vst [vmem:[#allocation61_spill] sm:$0xff] %v6376_v57 }
 0x38e   : > { %v6384_v28 = vpop.permute.xlu0 %2949 }
 0x38f   : > { %10088 = vst [vmem:[#allocation65_spill] sm:$0xff] %v6384_v28  ;;  %v6392_v10 = vpop.permute.xlu1 %2650 }
 0x390   : > { %10092 = vst [vmem:[#allocation69_spill] sm:$0xff] %v6392_v10 }
 0x391   : > { %v6382_v0 = vpop.permute.xlu2 %2563 }
 0x392   : > { %10087 = vst [vmem:[#allocation64_spill] sm:$0xff] %v6382_v0 }
 0x396   : > { %v6390_v20 = vpop.permute.xlu0 %2781 }
 0x397   : > { %10091 = vst [vmem:[#allocation68_spill] sm:$0xff] %v6390_v20  ;;  %v6398_v57 = vpop.permute.xlu1 %2312 }
 0x398   : > { %10095 = vst [vmem:[#allocation72_spill] sm:$0xff] %v6398_v57 }
 0x399   : > { %v6388_v25 = vpop.permute.xlu2 %3047 }
 0x39a   : > { %10090 = vst [vmem:[#allocation67_spill] sm:$0xff] %v6388_v25 }
 0x39e   : > { %v6396_v58 = vpop.permute.xlu0 %3164 }
 0x39f   : > { %10094 = vst [vmem:[#allocation71_spill] sm:$0xff] %v6396_v58  ;;  %v6404_v0 = vpop.permute.xlu1 %2646 }
 0x3a0   : > { %10097 = vst [vmem:[#allocation74_spill] sm:$0xff] %v6404_v0 }
 0x3a1   : > { %v6394_v7 = vpop.permute.xlu2 %3186 }
 0x3a2   : > { %10093 = vst [vmem:[#allocation70_spill] sm:$0xff] %v6394_v7 }
 0x3a6   : > { %v6402_v51 = vpop.permute.xlu0 %1625 }
 0x3a7   : > { %v6410_v25 = vpop.permute.xlu1 %2346 }
 0x3a8   : > { %10100 = vst [vmem:[#allocation77_spill] sm:$0xff] %v6410_v25 }
 0x3a9   : > { %v6400_v54 = vpop.permute.xlu2 %3182 }
 0x3aa   : > { %10096 = vst [vmem:[#allocation73_spill] sm:$0xff] %v6400_v54 }
 0x3ae   : > { %v6408_v61 = vpop.permute.xlu0 %2861 }
 0x3af   : > { %10099 = vst [vmem:[#allocation76_spill] sm:$0xff] %v6408_v61  ;;  %v6416_v7 = vpop.permute.xlu1 %2352 }
 0x3b0   : > { %10103 = vst [vmem:[#allocation80_spill] sm:$0xff] %v6416_v7 }
 0x3b1   : > { %v6406_v28 = vpop.permute.xlu2 %3345 }
 0x3b2   : > { %10098 = vst [vmem:[#allocation75_spill] sm:$0xff] %v6406_v28 }
 0x3b6   : > { %v6414_v10 = vpop.permute.xlu0 %3077 }
 0x3b7   : > { %10102 = vst [vmem:[#allocation79_spill] sm:$0xff] %v6414_v10  ;;  %v6419_v15 = vpop.permute.xlu1 %2953 }
 0x3b8   : > { %10104 = vst [vmem:[#allocation81_spill] sm:$0xff] %v6419_v15 }
 0x3b9   : > { %v6412_v20 = vpop.permute.xlu2 %3079 }
 0x3ba   : > { %10101 = vst [vmem:[#allocation78_spill] sm:$0xff] %v6412_v20 }
 0x3bf   : > { %v6425_v34 = vpop.permute.xlu1 %2559 }
 0x3c0   : > { %10105 = vst [vmem:[#allocation82_spill] sm:$0xff] %v6425_v34  ;;  %v10177_v34 = vld [vmem:[#allocation24_spill] sm:$0xff] }
 0x3c1   : > { %v1042_v58 = vpop.permute.xlu2 %1041 }
 0x3c2   : > { %v1051_v54 = vsub.f32 %v6171_v42, %v1042_v58  ;;  %v1050_v28 = vsub.f32 %v6162_v39, %v1042_v58  ;;  %v1049_v10 = vsub.f32 %v6160_v3, %v1042_v58 }
 0x3d8   : > { %v1060_v57 = vpop.permute.xlu0 %1059 }
 0x3d9   : > { %v1069_v4 = vmul.f32 %v1060_v57, %v1051_v54  ;;  %v1068_v61 = vmul.f32 %v1060_v57, %v1050_v28  ;;  %v1067_v59 = vmul.f32 %v1060_v57, %v1049_v10  ;;  %v6438_v28 = vpop.permute.xlu1 %3168 }
 0x3da   : > { %10107 = vst [vmem:[#allocation84_spill] sm:$0xff] %v6438_v28  ;;  %v1479_v28 = vmul.f32 0.0, %v5878_v53 }
 0x3db   : > { %v1087_v0 = vmul.f32 %v5828_v29, %v1069_v4  ;;  %v1086_v20 = vmul.f32 %v5828_v29, %v1068_v61  ;;  %v1085_v4 = vmul.f32 %v5828_v29, %v1067_v59 }
 0x3dd   : > { %v1105_v25 = vadd.f32 %v5837_v33, %v1087_v0  ;;  %v1104_v42 = vadd.f32 %v5837_v33, %v1086_v20  ;;  %v1052_v0 = vsub.f32 %v6176_v11, %v1042_v58  ;;  %v1103_v3 = vadd.f32 %v5837_v33, %v1085_v4 }
 0x3df   : > { %v6428_v7 = vmax.f32 %v1105_v25, 0.0  ;;  %v6435_v39 = vmax.f32 %v1104_v42, 0.0  ;;  %v1070_v61 = vmul.f32 %v1060_v57, %v1052_v0  ;;  %v6445_v10 = vmax.f32 %v1103_v3, 0.0 }
 0x3e1   : > { %10106 = vst [vmem:[#allocation83_spill] sm:$0xff] %v6428_v7  ;;  %v1649_v54 = vmul.f32 %v5893_v63, %v6428_v7  ;;  %v1648_v25 = vmul.f32 %v5893_v63, %v6435_v39  ;;  %v1088_v20 = vmul.f32 %v5828_v29, %v1070_v61  ;;  %v1647_v42 = vmul.f32 %v5893_v63, %v6445_v10  ;;  %v6450_v11 = vpop.permute.xlu1 %2565 }
 0x3e2   : > { %10108 = vst [vmem:[#allocation85_spill] sm:$0xff] %v6445_v10  ;;  %v1864_v58 = vmul.f32 %v6034_v24, %v6428_v7  ;;  %v2078_v4 = vmul.f32 %v6148_v27, %v6435_v39  ;;  %v1863_v61 = vmul.f32 %v6034_v24, %v6435_v39 }
 0x3e3   : > { %1672 = vrot.lane.b32.xlu2 %v1649_v54, %s5601_s29  ;;  %1670 = vrot.lane.b32.xlu0 %v1648_v25, %s5601_s29  ;;  %v1106_v59 = vadd.f32 %v5837_v33, %v1088_v20  ;;  %10109 = vst [vmem:[#allocation86_spill] sm:$0xff] %v6450_v11  ;;  %v1862_v54 = vmul.f32 %v6034_v24, %v6445_v10 }
 0x3e4   : > { %1668 = vrot.lane.b32.xlu1 %v1647_v42, %s5601_s29  ;;  %v2079_v25 = vmul.f32 %v6148_v27, %v6428_v7  ;;  %v2077_v20 = vmul.f32 %v6148_v27, %v6445_v10 }
 0x3e5   : > { %v6455_v57 = vmax.f32 %v1106_v59, 0.0  ;;  %v2457_v59 = vmul.f32 %v6279_v17, %v6445_v10 }
 0x3e7   : > { %v1650_v29 = vmul.f32 %v5893_v63, %v6455_v57  ;;  %v1865_v0 = vmul.f32 %v6034_v24, %v6455_v57  ;;  %v2459_v63 = vmul.f32 %v6279_v17, %v6428_v7  ;;  %v2672_v24 = vmul.f32 %v6307_v21, %v6435_v39 }
 0x3e9   : > { %v6463_v33 = vpop.permute.xlu1 %3043 }
 0x3ea   : > { %10110 = vst [vmem:[#allocation87_spill] sm:$0xff] %v6463_v33 }
 0x3eb   : > { %1887 = vrot.lane.b32.xlu0 %v1864_v58, %s5601_s29  ;;  %1883 = vrot.lane.b32.xlu2 %v1862_v54, %s5601_s29  ;;  %v2080_v58 = vmul.f32 %v6148_v27, %v6455_v57  ;;  %v2976_v54 = vmul.f32 %v6334_v26, %v6428_v7  ;;  %v2458_v27 = vmul.f32 %v6279_v17, %v6435_v39 }
 0x3ec   : > { %1674 = vrot.lane.b32.xlu1 %v1650_v29, %s5601_s29  ;;  %v2673_v29 = vmul.f32 %v6307_v21, %v6428_v7 }
 0x3f1   : > { %v6477_v3 = vpop.permute.xlu1 %3224 }
 0x3f2   : > { %10111 = vst [vmem:[#allocation88_spill] sm:$0xff] %v6477_v3 }
 0x3f3   : > { %2100 = vrot.lane.b32.xlu0 %v2078_v4, %s5601_s29  ;;  %1889 = vrot.lane.b32.xlu2 %v1865_v0, %s5601_s29  ;;  %v1296_v4 = vmul.f32 %v5858_v43, %v6445_v10  ;;  %v1314_v0 = vmul.f32 %v5862_v45, %v6435_v39 }
 0x3f4   : > { %1885 = vrot.lane.b32.xlu1 %v1863_v61, %s5601_s29 }
 0x3f9   : > { %v6491_v42 = vpop.permute.xlu1 %3012 }
 0x3fa   : > { %10112 = vst [vmem:[#allocation89_spill] sm:$0xff] %v6491_v42  ;;  %v1509_v42 = vmul.f32 %v5884_v56, %v6428_v7 }
 0x3fb   : > { %2482 = vrot.lane.b32.xlu0 %v2459_v63, %s5601_s29  ;;  %2102 = vrot.lane.b32.xlu2 %v2079_v25, %s5601_s29  ;;  %v2831_v63 = vmul.f32 %v6362_v23, %v6435_v39  ;;  %v1324_v25 = vadd.f32 %v1314_v0, %v1296_v4 }
 0x3fc   : > { %2098 = vrot.lane.b32.xlu1 %v2077_v20, %s5601_s29  ;;  %v2460_v20 = vmul.f32 %v6279_v17, %v6455_v57  ;;  %v2671_v17 = vmul.f32 %v6307_v21, %v6445_v10 }
 0x401   : > { %v6507_v61 = vpop.permute.xlu1 %3081 }
 0x402   : > { %10113 = vst [vmem:[#allocation90_spill] sm:$0xff] %v6507_v61 }
 0x403   : > { %2689 = vrot.lane.b32.xlu0 %v2672_v24, %s5601_s29  ;;  %2478 = vrot.lane.b32.xlu2 %v2457_v59, %s5601_s29  ;;  %v1342_v24 = vmul.f32 %v5866_v47, %v6428_v7  ;;  %v6519_v59 = vpop.permute.xlu2 %1046 }
 0x404   : > { %2104 = vrot.lane.b32.xlu1 %v2080_v58, %s5601_s29  ;;  %v1463_v58 = vmul.f32 %v5876_v52, %v6445_v10  ;;  %v1055_v0 = vsub.f32 %v6188_v44, %v6519_v59 }
 0x409   : > { %v1065_v4 = vpop.permute.xlu1 %1064 }
 0x40b   : > { %2998 = vrot.lane.b32.xlu0 %v2976_v54, %s5601_s29  ;;  %2691 = vrot.lane.b32.xlu2 %v2673_v29, %s5601_s29  ;;  %v1352_v54 = vadd.f32 %v1342_v24, %v1324_v25  ;;  %v1481_v29 = vmul.f32 %v5878_v53, %v6435_v39  ;;  %v2766_v24 = vmul.f32 %v6310_v9, %v6445_v10 }
 0x40c   : > { %2480 = vrot.lane.b32.xlu1 %v2458_v27, %s5601_s29  ;;  %v6533_v27 = vsel %vm1375_vm8, %v5870_v49, %v5872_v50 }
 0x40d   : > { %v1386_v25 = vmul.f32 %v6533_v27, %v1352_v54  ;;  %v6551_v54 = vsel %vm1542_vm9, %v5889_v60, %v5897_v2 }
 0x413   : > { %2847 = vrot.lane.b32.xlu0 %v2831_v63, %s5601_s29  ;;  %2484 = vrot.lane.b32.xlu2 %v2460_v20, %s5601_s29  ;;  %v1073_v63 = vmul.f32 %v1065_v4, %v1055_v0  ;;  %v1491_v20 = vadd.f32 %v1481_v29, %v1463_v58  ;;  %v1053_v58 = vsub.f32 %v6180_v37, %v6519_v59 }
 0x414   : > { %2687 = vrot.lane.b32.xlu1 %v2671_v17, %s5601_s29  ;;  %v2674_v17 = vmul.f32 %v6307_v21, %v6455_v57 }
 0x415   : > { %v1091_v44 = vmul.f32 %v5833_v31, %v1073_v63  ;;  %v1519_v3 = vadd.f32 %v1509_v42, %v1491_v20  ;;  %v1071_v29 = vmul.f32 %v1065_v4, %v1053_v58  ;;  %v2974_v42 = vmul.f32 %v6334_v26, %v6445_v10 }
 0x416   : > { %v2767_v63 = vmul.f32 %v6310_v9, %v6435_v39  ;;  %v1056_v20 = vsub.f32 %v6193_v35, %v6519_v59  ;;  %v2975_v35 = vmul.f32 %v6334_v26, %v6435_v39 }
 0x417   : > { %v1109_v0 = vadd.f32 %v5843_v36, %v1091_v44  ;;  %v1089_v37 = vmul.f32 %v5833_v31, %v1071_v29 }
 0x419   : > { %v6561_v21 = vmax.f32 %v1109_v0, 0.0  ;;  %v1312_v0 = vmul.f32 0.0, %v5862_v45 }
 0x41b   : > { %1408 = vrot.lane.b32.xlu0 %v1386_v25, %s5622_s30  ;;  %2783 = vrot.lane.b32.xlu2 %v2766_v24, %s5601_s29  ;;  %v1553_v25 = vmul.f32 %v6551_v54, %v1519_v3  ;;  %v1074_v3 = vmul.f32 %v1065_v4, %v1056_v20  ;;  %v1107_v24 = vadd.f32 %v5843_v36, %v1089_v37  ;;  %v1294_v37 = vmul.f32 0.0, %v5858_v43 }
 0x41c   : > { %2693 = vrot.lane.b32.xlu1 %v2674_v17, %s5601_s29  ;;  %v1654_v44 = vmul.f32 %v5903_v8, %v6561_v21  ;;  %v2832_v17 = vmul.f32 %v6362_v23, %v6428_v7  ;;  %v1340_v20 = vmul.f32 %v5866_v47, %v6445_v10 }
 0x41d   : > { %v1092_v58 = vmul.f32 %v5833_v31, %v1074_v3  ;;  %v6576_v29 = vmax.f32 %v1107_v24, 0.0  ;;  %v1322_v3 = vadd.f32 %v1312_v0, %v1294_v37  ;;  %v1313_v0 = vmul.f32 %v5862_v45, %v6445_v10 }
 0x41f   : > { %10114 = vst [vmem:[#allocation91_spill] sm:$0xff] %v6576_v29 }
 0x423   : > { %1575 = vrot.lane.b32.xlu0 %v1553_v25, %s5632_s2  ;;  %2994 = vrot.lane.b32.xlu2 %v2974_v42, %s5601_s29  ;;  %v1110_v25 = vadd.f32 %v5843_v36, %v1092_v58  ;;  %v1867_v42 = vmul.f32 %v6046_v30, %v6576_v29  ;;  %v1054_v58 = vsub.f32 %v6182_v1, %v6519_v59 }
 0x424   : > { %2785 = vrot.lane.b32.xlu1 %v2767_v63, %s5601_s29  ;;  %v2977_v63 = vmul.f32 %v6334_v26, %v6455_v57 }
 0x425   : > { %v6592_v24 = vmax.f32 %v1110_v25, 0.0  ;;  %v1072_v33 = vmul.f32 %v1065_v4, %v1054_v58  ;;  %v1297_v4 = vmul.f32 %v5858_v43, %v6435_v39  ;;  %v1341_v58 = vmul.f32 %v5866_v47, %v6435_v39 }
 0x427   : > { %10115 = vst [vmem:[#allocation92_spill] sm:$0xff] %v6592_v24 }
 0x42b   : > { %1682 = vrot.lane.b32.xlu0 %v1654_v44, %s5601_s29  ;;  %2849 = vrot.lane.b32.xlu2 %v2832_v17, %s5601_s29  ;;  %v2768_v44 = vmul.f32 %v6310_v9, %v6428_v7  ;;  %v1350_v17 = vadd.f32 %v1340_v20, %v1322_v3  ;;  %v1507_v9 = vmul.f32 %v5884_v56, %v6445_v10 }
 0x42c   : > { %2996 = vrot.lane.b32.xlu1 %v2975_v35, %s5601_s29  ;;  %v1461_v35 = vmul.f32 0.0, %v5876_v52  ;;  %v1315_v20 = vmul.f32 %v5862_v45, %v6428_v7  ;;  %v1323_v3 = vadd.f32 %v1313_v0, %v1294_v37 }
 0x42d   : > { %v1384_v25 = vmul.f32 %v5917_v13, %v1350_v17 }
 0x42e   : > { %v1489_v59 = vadd.f32 %v1479_v28, %v1461_v35  ;;  %v1298_v28 = vmul.f32 %v5858_v43, %v6428_v7  ;;  %v1325_v37 = vadd.f32 %v1315_v20, %v1297_v4  ;;  %v1351_v0 = vadd.f32 %v1341_v58, %v1323_v3 }
 0x42f   : > { %v1464_v43 = vmul.f32 %v5876_v52, %v6435_v39  ;;  %v1480_v58 = vmul.f32 %v5878_v53, %v6445_v10 }
 0x430   : > { %v1517_v17 = vadd.f32 %v1507_v9, %v1489_v59  ;;  %v1343_v9 = vmul.f32 %v5866_v47, %v6455_v57  ;;  %v1482_v59 = vmul.f32 %v5878_v53, %v6428_v7 }
 0x433   : > { %1893 = vrot.lane.b32.xlu0 %v1867_v42, %s5601_s29  ;;  %3000 = vrot.lane.b32.xlu2 %v2977_v63, %s5601_s29  ;;  %v1870_v42 = vmul.f32 %v6046_v30, %v6592_v24  ;;  %v1090_v63 = vmul.f32 %v5833_v31, %v1072_v33  ;;  %v2084_v31 = vmul.f32 %v6164_v40, %v6561_v21 }
 0x434   : > { %2787 = vrot.lane.b32.xlu1 %v2768_v44, %s5601_s29  ;;  %v2833_v44 = vmul.f32 %v6362_v23, %v6455_v57  ;;  %v1316_v33 = vmul.f32 %v5862_v45, %v6455_v57 }
 0x436   : > { %v1326_v4 = vadd.f32 %v1316_v33, %v1298_v28  ;;  %v1492_v28 = vadd.f32 %v1482_v59, %v1464_v43  ;;  %v1490_v33 = vadd.f32 %v1480_v58, %v1461_v35  ;;  %v1465_v35 = vmul.f32 %v5876_v52, %v6428_v7 }
 0x437   : > { %v1483_v59 = vmul.f32 %v5878_v53, %v6455_v57  ;;  %v1511_v53 = vmul.f32 0.0, %v5884_v56  ;;  %v2979_v58 = vmul.f32 %v6326_v5, %v6576_v29 }
 0x43b   : > { %1899 = vrot.lane.b32.xlu0 %v1870_v42, %s5601_s29  ;;  %1404 = vrot.lane.b32.xlu2 %v1384_v25, %s5622_s30  ;;  %v1108_v42 = vadd.f32 %v5843_v36, %v1090_v63  ;;  %v1551_v25 = vmul.f32 %v5939_v18, %v1517_v17  ;;  %v6637_v36 = vsel %vm1375_vm8, %v5917_v13, %v5870_v49 }
 0x43c   : > { %2851 = vrot.lane.b32.xlu1 %v2833_v44, %s5601_s29  ;;  %v1353_v63 = vadd.f32 %v1343_v9, %v1325_v37  ;;  %v1385_v20 = vmul.f32 %v6637_v36, %v1351_v0  ;;  %v1344_v44 = vmul.f32 0.0, %v5866_v47  ;;  %v6653_v49 = vsel %vm1375_vm8, %v5872_v50, %v5919_v14 }
 0x43d   : > { %v6610_v1 = vpop.permute.xlu2 %1672  ;;  %v6641_v45 = vmax.f32 %v1108_v42, 0.0  ;;  %v1510_v47 = vmul.f32 %v5884_v56, %v6455_v57  ;;  %v6673_v9 = vsel %vm1542_vm9, %v5897_v2, %v5961_v32  ;;  %v6689_v2 = vsel %vm1542_vm9, %v5939_v18, %v5889_v60 }
 0x43e   : > { %v1354_v42 = vadd.f32 %v1344_v44, %v1326_v4  ;;  %v1493_v44 = vadd.f32 %v1483_v59, %v1465_v35  ;;  %v2837_v59 = vmul.f32 %v6324_v16, %v6592_v24  ;;  %vm2919_vm9 = vcmask 375808  }
 0x43f   : > { %v2463_v17 = vmul.f32 %v6256_v38, %v6641_v45  ;;  %v1520_v50 = vadd.f32 %v1510_v47, %v1492_v28  ;;  %v2676_v43 = vmul.f32 %v6301_v41, %v6641_v45 }
 0x440   : > { %v1388_v37 = vmul.f32 %v5919_v14, %v1354_v42  ;;  %v1521_v28 = vadd.f32 %v1511_v53, %v1493_v44  ;;  %v6740_v53 = vmul.f32 0.0, %v5915_v12 }
 0x442   : > { %v1555_v47 = vmul.f32 %v5961_v32, %v1521_v28  ;;  %v3371_v28 = vmul.f32 %v6340_v6, %v6576_v29 }
 0x443   : > { %2112 = vrot.lane.b32.xlu0 %v2084_v31, %s5601_s29  ;;  %1571 = vrot.lane.b32.xlu2 %v1551_v25, %s5632_s2  ;;  %v1387_v31 = vmul.f32 %v6653_v49, %v1353_v63  ;;  %v1508_v25 = vmul.f32 %v5884_v56, %v6435_v39  ;;  %v1554_v63 = vmul.f32 %v6673_v9, %v1520_v50 }
 0x444   : > { %1406 = vrot.lane.b32.xlu1 %v1385_v20, %s5622_s30 }
 0x445   : > { %v6646_v3 = vpop.permute.xlu2 %1883  ;;  %v1518_v4 = vadd.f32 %v1508_v25, %v1490_v33  ;;  %v2772_v33 = vmul.f32 %v6303_v62, %v6561_v21 }
 0x447   : > { %v1552_v52 = vmul.f32 %v6689_v2, %v1518_v4 }
 0x44b   : > { %2490 = vrot.lane.b32.xlu0 %v2463_v17, %s5601_s29  ;;  %1410 = vrot.lane.b32.xlu2 %v1387_v31, %s5622_s30  ;;  %v1652_v31 = vmul.f32 %v5903_v8, %v6576_v29 }
 0x44c   : > { %1412 = vrot.lane.b32.xlu1 %v1388_v37, %s5622_s30  ;;  %v1655_v37 = vmul.f32 %v5903_v8, %v6592_v24 }
 0x44d   : > { %v6665_v0 = vpop.permute.xlu2 %1889 }
 0x453   : > { %2697 = vrot.lane.b32.xlu0 %v2676_v43, %s5601_s29  ;;  %1577 = vrot.lane.b32.xlu2 %v1554_v63, %s5632_s2  ;;  %v1653_v43 = vmul.f32 %v5903_v8, %v6641_v45  ;;  %v1868_v63 = vmul.f32 %v6046_v30, %v6641_v45  ;;  %v1869_v8 = vmul.f32 %v6046_v30, %v6561_v21 }
 0x454   : > { %1573 = vrot.lane.b32.xlu1 %v1552_v52, %s5632_s2  ;;  %v2082_v30 = vmul.f32 %v6164_v40, %v6576_v29 }
 0x455   : > { %v6683_v20 = vpop.permute.xlu0 %1670  ;;  %v6692_v17 = vpop.permute.xlu2 %2102 }
 0x456   : > { %10116 = vst [vmem:[#allocation93_spill] sm:$0xff] %v6692_v17  ;;  %v6698_v42 = vpop.permute.xlu1 %1668 }
 0x45b   : > { %3004 = vrot.lane.b32.xlu0 %v2979_v58, %s5601_s29  ;;  %1678 = vrot.lane.b32.xlu2 %v1652_v31, %s5601_s29  ;;  %v1317_v58 = vmul.f32 0.0, %v5864_v46  ;;  %v1345_v31 = vmul.f32 %v5868_v48, %v6576_v29 }
 0x45c   : > { %1579 = vrot.lane.b32.xlu1 %v1555_v47, %s5632_s2 }
 0x45d   : > { %v6704_v60 = vpop.permute.xlu0 %1887  ;;  %v6707_v56 = vpop.permute.xlu2 %2478 }
 0x45e   : > { %10117 = vst [vmem:[#allocation94_spill] sm:$0xff] %v6707_v56  ;;  %v6712_v50 = vpop.permute.xlu1 %1674 }
 0x463   : > { %2795 = vrot.lane.b32.xlu0 %v2772_v33, %s5601_s29  ;;  %1684 = vrot.lane.b32.xlu2 %v1655_v37, %s5601_s29  ;;  %v1327_v33 = vadd.f32 %v1317_v58, %v6740_v53  ;;  %v10127_v58 = vld [vmem:[#allocation12_spill] sm:$0xff] }
 0x464   : > { %1680 = vrot.lane.b32.xlu1 %v1653_v43, %s5601_s29 }
 0x465   : > { %v6718_v25 = vpop.permute.xlu0 %2100  ;;  %v6722_v35 = vpop.permute.xlu2 %2691  ;;  %v1355_v43 = vadd.f32 %v1345_v31, %v1327_v33  ;;  %v2085_v31 = vmul.f32 %v6164_v40, %v6592_v24 }
 0x466   : > { %10118 = vst [vmem:[#allocation95_spill] sm:$0xff] %v6718_v25  ;;  %v6727_v4 = vpop.permute.xlu1 %1885 }
 0x467   : > { %10119 = vst [vmem:[#allocation96_spill] sm:$0xff] %v6722_v35  ;;  %v10126_v35 = vld [vmem:[#allocation11_spill] sm:$0xff] }
 0x46b   : > { %2859 = vrot.lane.b32.xlu0 %v2837_v59, %s5601_s29  ;;  %1895 = vrot.lane.b32.xlu2 %v1868_v63, %s5601_s29  ;;  %v2083_v59 = vmul.f32 %v6164_v40, %v6641_v45 }
 0x46c   : > { %1897 = vrot.lane.b32.xlu1 %v1869_v8, %s5601_s29  ;;  %v10125_v8 = vld [vmem:[#allocation16_spill] sm:$0xff] }
 0x46d   : > { %v6733_v44 = vpop.permute.xlu0 %2482  ;;  %v6737_v52 = vpop.permute.xlu2 %2484 }
 0x46e   : > { %10120 = vst [vmem:[#allocation97_spill] sm:$0xff] %v6733_v44  ;;  %v6748_v47 = vpop.permute.xlu1 %2098  ;;  %v1484_v44 = vmul.f32 0.0, %v10126_v35 }
 0x46f   : > { %10121 = vst [vmem:[#allocation98_spill] sm:$0xff] %v6737_v52  ;;  %v6762_v52 = vmul.f32 0.0, %v10125_v8 }
 0x470   : > { %10122 = vst [vmem:[#allocation99_spill] sm:$0xff] %v6748_v47  ;;  %v1348_v47 = vmul.f32 %v5868_v48, %v6592_v24 }
 0x471   : > { %v1494_v33 = vadd.f32 %v1484_v44, %v6762_v52 }
 0x473   : > { %3396 = vrot.lane.b32.xlu0 %v3371_v28, %s5601_s29  ;;  %2108 = vrot.lane.b32.xlu2 %v2082_v30, %s5601_s29  ;;  %v1389_v28 = vmul.f32 %v5917_v13, %v1355_v43  ;;  %v1512_v30 = vmul.f32 %v10127_v58, %v6576_v29  ;;  %v1320_v13 = vmul.f32 %v5864_v46, %v6561_v21 }
 0x474   : > { %2110 = vrot.lane.b32.xlu1 %v2083_v59, %s5601_s29 }
 0x475   : > { %v6755_v37 = vpop.permute.xlu0 %2689  ;;  %v6759_v63 = vpop.permute.xlu2 %2783  ;;  %v1522_v59 = vadd.f32 %v1512_v30, %v1494_v33  ;;  %v1469_v30 = vmul.f32 %v10125_v8, %v6641_v45  ;;  %v2675_v33 = vmul.f32 %v6301_v41, %v6576_v29 }
 0x476   : > { %10123 = vst [vmem:[#allocation100_spill] sm:$0xff] %v6755_v37  ;;  %v6769_v61 = vpop.permute.xlu1 %2104  ;;  %v2462_v37 = vmul.f32 %v6256_v38, %v6576_v29 }
 0x477   : > { %10124 = vst [vmem:[#allocation101_spill] sm:$0xff] %v6759_v63  ;;  %v1302_v63 = vmul.f32 %v5915_v12, %v6641_v45  ;;  %v1556_v44 = vmul.f32 %v5939_v18, %v1522_v59 }
 0x478   : > { %10128 = vst [vmem:[#allocation16_spill] sm:$0xff] %v6769_v61 }
 0x479   : > { %v1330_v40 = vadd.f32 %v1320_v13, %v1302_v63 }
 0x47b   : > { %1414 = vrot.lane.b32.xlu0 %v1389_v28, %s5622_s30  ;;  %2114 = vrot.lane.b32.xlu2 %v2085_v31, %s5601_s29  ;;  %v2464_v31 = vmul.f32 %v6256_v38, %v6561_v21  ;;  %v1358_v63 = vadd.f32 %v1348_v47, %v1330_v40  ;;  %v1515_v47 = vmul.f32 %v10127_v58, %v6592_v24 }
 0x47c   : > { %2488 = vrot.lane.b32.xlu1 %v2462_v37, %s5601_s29  ;;  %v1487_v37 = vmul.f32 %v10126_v35, %v6561_v21 }
 0x47d   : > { %v6780_v43 = vpop.permute.xlu0 %2998  ;;  %v6784_v15 = vpop.permute.xlu2 %2994 }
 0x47e   : > { %10129 = vst [vmem:[#allocation11_spill] sm:$0xff] %v6780_v43  ;;  %v6788_v28 = vpop.permute.xlu1 %2480  ;;  %v1497_v59 = vadd.f32 %v1487_v37, %v1469_v30  ;;  %v2678_v30 = vmul.f32 %v6301_v41, %v6592_v24 }
 0x47f   : > { %10130 = vst [vmem:[#allocation12_spill] sm:$0xff] %v6784_v15  ;;  %v2677_v15 = vmul.f32 %v6301_v41, %v6561_v21  ;;  %v2771_v41 = vmul.f32 %v6303_v62, %v6641_v45 }
 0x480   : > { %10131 = vst [vmem:[#allocation102_spill] sm:$0xff] %v6788_v28  ;;  %v1525_v40 = vadd.f32 %v1515_v47, %v1497_v59  ;;  %v10141_v47 = vld [vmem:[#allocation45_spill] sm:$0xff] }
 0x483   : > { %1581 = vrot.lane.b32.xlu0 %v1556_v44, %s5632_s2  ;;  %2492 = vrot.lane.b32.xlu2 %v2464_v31, %s5601_s29  ;;  %v1392_v44 = vmul.f32 %v6653_v49, %v1358_v63  ;;  %v1559_v49 = vmul.f32 %v6673_v9, %v1525_v40  ;;  %v2770_v9 = vmul.f32 %v6303_v62, %v6576_v29 }
 0x484   : > { %2695 = vrot.lane.b32.xlu1 %v2675_v33, %s5601_s29  ;;  %v2465_v33 = vmul.f32 %v6256_v38, %v6592_v24  ;;  %v2981_v40 = vmul.f32 %v6326_v5, %v6561_v21  ;;  %v2980_v62 = vmul.f32 %v6326_v5, %v6641_v45 }
 0x485   : > { %v6800_v18 = vpop.permute.xlu0 %2847  ;;  %v6804_v13 = vpop.permute.xlu2 %2849 }
 0x486   : > { %10132 = vst [vmem:[#allocation103_spill] sm:$0xff] %v6800_v18  ;;  %v6808_v31 = vpop.permute.xlu1 %2687 }
 0x487   : > { %10133 = vst [vmem:[#allocation104_spill] sm:$0xff] %v6804_v13  ;;  %v1347_v13 = vmul.f32 %v5868_v48, %v6561_v21 }
 0x488   : > { %10134 = vst [vmem:[#allocation105_spill] sm:$0xff] %v6808_v31 }
 0x48b   : > { %1420 = vrot.lane.b32.xlu0 %v1392_v44, %s5622_s30  ;;  %2699 = vrot.lane.b32.xlu2 %v2677_v15, %s5601_s29 }
 0x48c   : > { %2701 = vrot.lane.b32.xlu1 %v2678_v30, %s5601_s29 }
 0x48d   : > { %v6816_v28 = vpop.permute.xlu0 %1408  ;;  %v6820_v37 = vpop.permute.xlu2 %3000 }
 0x48e   : > { %10135 = vst [vmem:[#allocation106_spill] sm:$0xff] %v6816_v28  ;;  %v6824_v63 = vpop.permute.xlu1 %2693 }
 0x48f   : > { %10136 = vst [vmem:[#allocation107_spill] sm:$0xff] %v6820_v37 }
 0x490   : > { %10137 = vst [vmem:[#allocation108_spill] sm:$0xff] %v6824_v63 }
 0x493   : > { %1587 = vrot.lane.b32.xlu0 %v1559_v49, %s5632_s2  ;;  %2494 = vrot.lane.b32.xlu2 %v2465_v33, %s5601_s29  ;;  %v2978_v49 = vmul.f32 0.0, %v6334_v26  ;;  %v2836_v26 = vmul.f32 %v6324_v16, %v6561_v21 }
 0x494   : > { %2793 = vrot.lane.b32.xlu1 %v2771_v41, %s5601_s29  ;;  %v6860_v41 = vld [vmem:[%s9690_s6 + $0x21] ss:$8 sm:$0xf] }
 0x495   : > { %v6830_v15 = vpop.permute.xlu0 %1575  ;;  %v6834_v59 = vpop.permute.xlu2 %1404 }
 0x496   : > { %10138 = vst [vmem:[#allocation109_spill] sm:$0xff] %v6830_v15  ;;  %v6837_v44 = vpop.permute.xlu1 %2785 }
 0x497   : > { %10139 = vst [vmem:[#allocation110_spill] sm:$0xff] %v6834_v59  ;;  %v3251_v59 = vperm.slane %v6860_v41, 1 }
 0x498   : > { %10140 = vst [vmem:[#allocation111_spill] sm:$0xff] %v6837_v44 }
 0x49b   : > { %3220 = vperm.xlu0 %5500, %v10141_v47   ;;  %2791 = vrot.lane.b32.xlu2 %v2770_v9, %s5601_s29 }
 0x49c   : > { %3008 = vrot.lane.b32.xlu1 %v2981_v40, %s5601_s29 }
 0x49d   : > { %v6843_v38 = vpop.permute.xlu0 %1682  ;;  %v6847_v30 = vpop.permute.xlu2 %1571 }
 0x49e   : > { %10142 = vst [vmem:[#allocation45_spill] sm:$0xff] %v6847_v30  ;;  %v6851_v33 = vpop.permute.xlu1 %2996  ;;  %v5633_v30 = vmov 24  }
 0x49f   : > { %10143 = vst [vmem:[#allocation112_spill] sm:$0xff] %v6851_v33  ;;  %5502 = vset.pattern.permute.xlu1 %v5633_v30 }
 0x4a3   : > { %3002 = vrot.lane.b32.xlu0 %v2978_v49, %s5601_s29  ;;  %3006 = vrot.lane.b32.xlu2 %v2980_v62, %s5601_s29  ;;  %v1301_v49 = vmul.f32 %v5915_v12, %v6576_v29  ;;  %v1319_v62 = vmul.f32 %v5864_v46, %v6641_v45 }
 0x4a4   : > { %5504 = vset.pattern.permute.xlu0 %v5633_v30  ;;  %2857 = vrot.lane.b32.xlu1 %v2836_v26, %s5601_s29  ;;  %v2835_v30 = vmul.f32 %v6324_v16, %v6641_v45  ;;  %v3373_v26 = vmul.f32 %v6340_v6, %v6561_v21  ;;  %v3367_v16 = vmul.f32 %v6336_v22, %v6435_v39 }
 0x4a5   : > { %v6862_v9 = vpop.permute.xlu0 %1893  ;;  %v6866_v40 = vpop.permute.xlu2 %1410 }
 0x4a6   : > { %10144 = vst [vmem:[#allocation113_spill] sm:$0xff] %v6866_v40  ;;  %v6874_v15 = vpop.permute.xlu1 %2787  ;;  %v1329_v40 = vadd.f32 %v1319_v62, %v1301_v49 }
 0x4a7   : > { %10145 = vst [vmem:[#allocation114_spill] sm:$0xff] %v6874_v15  ;;  %v1318_v15 = vmul.f32 %v5864_v46, %v6576_v29 }
 0x4a8   : > { %v1357_v49 = vadd.f32 %v1347_v13, %v1329_v40  ;;  %v1514_v13 = vmul.f32 %v10127_v58, %v6561_v21 }
 0x4aa   : > { %v1391_v37 = vmul.f32 %v6533_v27, %v1357_v49  ;;  %v1346_v27 = vmul.f32 %v5868_v48, %v6641_v45 }
 0x4ab   : > { %3256 = vrot.lane.b32.xlu0 %v3251_v59, %s5634_s25  ;;  %2855 = vrot.lane.b32.xlu2 %v2835_v30, %s5601_s29  ;;  %v1468_v59 = vmul.f32 %v10125_v8, %v6576_v29  ;;  %v1486_v30 = vmul.f32 %v10126_v35, %v6641_v45 }
 0x4ac   : > { %3400 = vrot.lane.b32.xlu1 %v3373_v26, %s5601_s29 }
 0x4ad   : > { %v6880_v28 = vpop.permute.xlu0 %1899  ;;  %v6884_v63 = vpop.permute.xlu2 %1577  ;;  %v1496_v44 = vadd.f32 %v1486_v30, %v1468_v59  ;;  %v3372_v59 = vmul.f32 %v6340_v6, %v6641_v45 }
 0x4ae   : > { %10146 = vst [vmem:[#allocation115_spill] sm:$0xff] %v6884_v63  ;;  %v6895_v62 = vpop.permute.xlu1 %2851  ;;  %v2982_v63 = vmul.f32 %v6326_v5, %v6592_v24  ;;  %v3586_v5 = vmul.f32 %v6368_v55, %v6576_v29 }
 0x4af   : > { %10147 = vst [vmem:[#allocation116_spill] sm:$0xff] %v6895_v62  ;;  %v1524_v40 = vadd.f32 %v1514_v13, %v1496_v44 }
 0x4b1   : > { %v1558_v44 = vmul.f32 %v6551_v54, %v1524_v40 }
 0x4b3   : > { %3388 = vrot.lane.b32.xlu0 %v3367_v16, %s5601_s29  ;;  %3010 = vrot.lane.b32.xlu2 %v2982_v63, %s5601_s29  ;;  %v1328_v63 = vadd.f32 %v1318_v15, %v6740_v53  ;;  %v1321_v53 = vmul.f32 %v5864_v46, %v6592_v24 }
 0x4b4   : > { %1418 = vrot.lane.b32.xlu1 %v1391_v37, %s5622_s30  ;;  %v1303_v37 = vmul.f32 %v5915_v12, %v6561_v21  ;;  %v1485_v12 = vmul.f32 %v10126_v35, %v6576_v29 }
 0x4b5   : > { %v6901_v26 = vpop.permute.xlu0 %2112  ;;  %v6906_v33 = vpop.permute.xlu2 %1678  ;;  %v1356_v15 = vadd.f32 %v1346_v27, %v1328_v63  ;;  %v10152_v63 = vld [vmem:[#allocation17_spill] sm:$0xff] }
 0x4b6   : > { %v6914_v16 = vpop.permute.xlu1 %1406  ;;  %v1331_v13 = vadd.f32 %v1321_v53, %v1303_v37  ;;  %v1687_v40 = vsel %vm1686_vm10, %v10152_v63, %v6698_v42  ;;  %v10153_v27 = vld [vmem:[#allocation13_spill] sm:$0xff]  ;;  %v3369_v53 = vmul.f32 %v6336_v22, %v6455_v57  ;;  %v1513_v63 = vmul.f32 %v10127_v58, %v6641_v45 }
 0x4b7   : > { %10148 = vst [vmem:[#allocation117_spill] sm:$0xff] %v6914_v16  ;;  %v1628_v37 = vmul.f32 0.0, %v10153_v27 }
 0x4bb   : > { %3611 = vrot.lane.b32.xlu0 %v3586_v5, %s5601_s29  ;;  %3398 = vrot.lane.b32.xlu2 %v3372_v59, %s5601_s29  ;;  %v1390_v5 = vmul.f32 %v6637_v36, %v1356_v15  ;;  %v1349_v59 = vmul.f32 0.0, %v5868_v48  ;;  %v6951_v48 = vld [vmem:[%s9689_s5 + $0x8] sm:$0xff]  ;;  %v1495_v15 = vadd.f32 %v1485_v12, %v6762_v52  ;;  %v2834_v52 = vmul.f32 0.0, %v6362_v23 }
 0x4bc   : > { %1585 = vrot.lane.b32.xlu1 %v1558_v44, %s5632_s2  ;;  %v3250_v23 = vperm.slane %v6860_v41, 0 }
 0x4bd   : > { %v6922_v30 = vpop.permute.xlu0 %2490  ;;  %v6929_v49 = vpop.permute.xlu2 %1684  ;;  %v1359_v54 = vadd.f32 %v1349_v59, %v1331_v13 }
 0x4be   : > { %10149 = vst [vmem:[#allocation118_spill] sm:$0xff] %v6922_v30  ;;  %v6933_v16 = vpop.permute.xlu1 %1412 }
 0x4bf   : > { %10150 = vst [vmem:[#allocation119_spill] sm:$0xff] %v6933_v16  ;;  %v1393_v44 = vmul.f32 %v5919_v14, %v1359_v54  ;;  %v1523_v16 = vadd.f32 %v1513_v63, %v1495_v15  ;;  %v1690_v14 = vsel %vm1686_vm10, %v6610_v1, %v6712_v50  ;;  %v1631_v54 = vmul.f32 %v10153_v27, %v6428_v7 }
 0x4c3   : > { %3435 = vperm.xlu0 %5504, %v10141_v47   ;;  %1416 = vrot.lane.b32.xlu2 %v1390_v5, %s5622_s30  ;;  %v1705_v47 = vadd.f32 %v1687_v40, %v1628_v37  ;;  %v10155_v5 = vld [vmem:[#allocation23_spill] sm:$0xff] }
 0x4c4   : > { %3439 = vperm.xlu1 %5502, %v6951_v48   ;;  %v1723_v59 = vmul.f32 %v10155_v5, %v6445_v10  ;;  %v1726_v15 = vmul.f32 %v10155_v5, %v6455_v57 }
 0x4c5   : > { %v6938_v46 = vpop.permute.xlu0 %2697  ;;  %v6945_v36 = vpop.permute.xlu2 %1895 }
 0x4c6   : > { %10151 = vst [vmem:[#allocation120_spill] sm:$0xff] %v6938_v46  ;;  %v6958_v13 = vpop.permute.xlu1 %1573  ;;  %v1733_v40 = vadd.f32 %v1723_v59, %v1705_v47  ;;  %v1557_v47 = vmul.f32 %v6689_v2, %v1523_v16  ;;  %v1488_v2 = vmul.f32 %v10126_v35, %v6592_v24  ;;  %v1903_v16 = vsel %vm1686_vm10, %v6727_v4, %v6704_v60 }
 0x4c7   : > { %10154 = vst [vmem:[#allocation17_spill] sm:$0xff] %v6958_v13  ;;  %v10158_v13 = vld [vmem:[#allocation18_spill] sm:$0xff]  ;;  %v5637_v46 = vmov 7  }
 0x4cb   : > { %3392 = vrot.lane.b32.xlu0 %v3369_v53, %s5601_s29  ;;  %1422 = vrot.lane.b32.xlu2 %v1393_v44, %s5622_s30  ;;  %v1708_v53 = vadd.f32 %v1690_v14, %v1631_v54  ;;  %v1767_v44 = vmul.f32 %v10158_v13, %v1733_v40  ;;  %v1470_v14 = vmul.f32 %v10125_v8, %v6561_v21  ;;  %s5647_s30 = smov 14  }
 0x4cc   : > { %2853 = vrot.lane.b32.xlu1 %v2834_v52, %s5601_s29  ;;  %v10162_v52 = vld [vmem:[#allocation22_spill] sm:$0xff] }
 0x4cd   : > { %v6966_v37 = vpop.permute.xlu0 %3004  ;;  %v6972_v12 = vpop.permute.xlu2 %2108  ;;  %v1736_v63 = vadd.f32 %v1726_v15, %v1708_v53  ;;  %v1845_v54 = vmul.f32 %v10162_v52, %v6435_v39  ;;  %v10163_v53 = vld [vmem:[#allocation25_spill] sm:$0xff] }
 0x4ce   : > { %10156 = vst [vmem:[#allocation13_spill] sm:$0xff] %v6966_v37  ;;  %v6979_v59 = vpop.permute.xlu1 %1579 }
 0x4cf   : > { %10157 = vst [vmem:[#allocation23_spill] sm:$0xff] %v6972_v12  ;;  %v1921_v35 = vadd.f32 %v1903_v16, %v1845_v54  ;;  %v10168_v54 = vld [vmem:[#allocation32_spill] sm:$0xff]  ;;  %v10170_v12 = vld [vmem:[#allocation19_spill] sm:$0xff] }
 0x4d0   : > { %10159 = vst [vmem:[#allocation18_spill] sm:$0xff] %v6979_v59  ;;  %v1498_v59 = vadd.f32 %v1488_v2, %v1470_v14  ;;  %v3366_v2 = vmul.f32 %v6336_v22, %v6445_v10 }
 0x4d3   : > { %1787 = vrot.lane.b32.xlu0 %v1767_v44, %s5598_s26  ;;  %1583 = vrot.lane.b32.xlu2 %v1557_v47, %s5632_s2  ;;  %v5635_v44 = vmov 25   ;;  %v10164_v47 = vld [vmem:[#allocation20_spill] sm:$0xff] }
 0x4d4   : > { %5505 = vset.pattern.permute.xlu1 %v5635_v44  ;;  %5507 = vset.pattern.permute.xlu0 %v5635_v44  ;;  %v7002_v8 = vsel %vm1758_vm11, %v10164_v47, %v10163_v53  ;;  %v1516_v44 = vmul.f32 0.0, %v10127_v58  ;;  %v1637_v58 = vmul.f32 %v6402_v51, %v6592_v24 }
 0x4d5   : > { %v6986_v37 = vpop.permute.xlu0 %2795  ;;  %v6995_v40 = vpop.permute.xlu2 %2114  ;;  %3254 = vrot.lane.b32.xlu1 %v3250_v23, %s5634_s25  ;;  %v1770_v15 = vmul.f32 %v7002_v8, %v1736_v63 }
 0x4d6   : > { %10160 = vst [vmem:[#allocation121_spill] sm:$0xff] %v6986_v37  ;;  %v7006_v62 = vpop.permute.xlu1 %1680  ;;  %v7015_v37 = vld [vmem:[%s9689_s5] sm:$0xff]  ;;  %v1526_v14 = vadd.f32 %v1516_v44, %v1498_v59 }
 0x4d7   : > { %10161 = vst [vmem:[#allocation122_spill] sm:$0xff] %v6995_v40  ;;  %v10165_v40 = vld [vmem:[#allocation28_spill] sm:$0xff] }
 0x4d8   : > { %v1939_v43 = vmul.f32 %v10165_v40, %v6428_v7  ;;  %v1560_v59 = vmul.f32 %v5961_v32, %v1526_v14  ;;  %v3374_v32 = vmul.f32 %v6340_v6, %v6592_v24 }
 0x4da   : > { %v1949_v23 = vadd.f32 %v1939_v43, %v1921_v35  ;;  %v1714_v43 = vadd.f32 %v6929_v49, %v1637_v58 }
 0x4db   : > { %1793 = vrot.lane.b32.xlu0 %v1770_v15, %s5598_s26  ;;  %3341 = vperm.xlu2 %5501, %v7015_v37   ;;  %v10169_v15 = vld [vmem:[#allocation30_spill] sm:$0xff] }
 0x4dc   : > { %v7029_v18 = vsel %vm1972_vm12, %v10169_v15, %v10168_v54 }
 0x4dd   : > { %v7018_v63 = vpop.permute.xlu0 %2859  ;;  %v7022_v16 = vpop.permute.xlu2 %2492  ;;  %3386 = vrot.lane.b32.xlu1 %v3366_v2, %s5601_s29  ;;  %v1983_v35 = vmul.f32 %v7029_v18, %v1949_v23  ;;  %v1692_v23 = vsel %vm1686_vm10, %v6906_v33, %v7006_v62  ;;  %v1634_v2 = vmul.f32 %v6402_v51, %v6576_v29 }
 0x4de   : > { %10166 = vst [vmem:[#allocation22_spill] sm:$0xff] %v7018_v63  ;;  %v7035_v44 = vpop.permute.xlu1 %1897  ;;  %v1732_v63 = vmul.f32 0.0, %v10170_v12 }
 0x4df   : > { %10167 = vst [vmem:[#allocation25_spill] sm:$0xff] %v7022_v16  ;;  %v1711_v58 = vadd.f32 %v1692_v23, %v1634_v2  ;;  %v3588_v23 = vmul.f32 %v6368_v55, %v6561_v21 }
 0x4e0   : > { %v1742_v31 = vadd.f32 %v1732_v63, %v1714_v43 }
 0x4e2   : > { %v1776_v63 = vmul.f32 %v10163_v53, %v1742_v31 }
 0x4e3   : > { %2005 = vrot.lane.b32.xlu0 %v1983_v35, %s5636_s24  ;;  %1589 = vrot.lane.b32.xlu2 %v1560_v59, %s5632_s2  ;;  %s5642_s2 = smov 72  }
 0x4e4   : > { %5503 = vset.pattern.permute.xlu2 %v5637_v46  ;;  %v1729_v46 = vmul.f32 %v10170_v12, %v6641_v45 }
 0x4e5   : > { %v7040_v11 = vpop.permute.xlu0 %3396  ;;  %v7047_v14 = vpop.permute.xlu2 %2699  ;;  %3402 = vrot.lane.b32.xlu1 %v3374_v32, %s5601_s29  ;;  %v10176_v32 = vld [vmem:[#allocation26_spill] sm:$0xff] }
 0x4e6   : > { %10171 = vst [vmem:[#allocation20_spill] sm:$0xff] %v7040_v11  ;;  %v7053_v43 = vpop.permute.xlu1 %2110  ;;  %v1739_v35 = vadd.f32 %v1729_v46, %v1711_v58  ;;  %v10174_v11 = vld [vmem:[#allocation29_spill] sm:$0xff]  ;;  %v1848_v2 = vmul.f32 0.0, %v10176_v32 }
 0x4e7   : > { %10172 = vst [vmem:[#allocation28_spill] sm:$0xff] %v7047_v14  ;;  %v1905_v14 = vsel %vm1686_vm10, %v10174_v11, %v6862_v9  ;;  %v5572_v58 = vld [vmem:[%s9690_s6 + $0x20] ss:$8 sm:$0xf] }
 0x4e8   : > { %v3076_v46 = vperm.slane %v5572_v58, 3  ;;  %v1924_v11 = vadd.f32 %v1905_v14, %v1848_v2  ;;  %v1851_v14 = vmul.f32 %v10176_v32, %v6561_v21 }
 0x4eb   : > { %1805 = vrot.lane.b32.xlu0 %v1776_v63, %s5598_s26  ;;  %3560 = vperm.xlu2 %5503, %v6951_v48   ;;  %v7072_v63 = vsel %vm1758_vm11, %v10158_v13, %v10177_v34 }
 0x4ed   : > { %v7059_v59 = vpop.permute.xlu0 %1414  ;;  %v7066_v31 = vpop.permute.xlu2 %2494  ;;  %3615 = vrot.lane.b32.xlu1 %v3588_v23, %s5601_s29  ;;  %v1908_v23 = vsel %vm1686_vm10, %v7035_v44, %v6880_v28 }
 0x4ee   : > { %10173 = vst [vmem:[#allocation32_spill] sm:$0xff] %v7059_v59  ;;  %v1773_v59 = vmul.f32 %v7072_v63, %v1739_v35  ;;  %v7079_v56 = vpop.permute.xlu1 %2488  ;;  %v3252_v35 = vperm.slane %v6860_v41, 2  ;;  %v1927_v2 = vadd.f32 %v1908_v23, %v1851_v14  ;;  %v10186_v14 = vld [vmem:[#allocation37_spill] sm:$0xff] }
 0x4ef   : > { %10175 = vst [vmem:[#allocation30_spill] sm:$0xff] %v7066_v31  ;;  %v10179_v31 = vld [vmem:[#allocation31_spill] sm:$0xff] }
 0x4f0   : > { %10178 = vst [vmem:[#allocation19_spill] sm:$0xff] %v7079_v56  ;;  %v1942_v30 = vmul.f32 %v10179_v31, %v6576_v29 }
 0x4f2   : > { %v1952_v16 = vadd.f32 %v1942_v30, %v1924_v11  ;;  %v1945_v30 = vmul.f32 %v10179_v31, %v6592_v24  ;;  %v1847_v11 = vmul.f32 %v10162_v52, %v6455_v57 }
 0x4f3   : > { %1799 = vrot.lane.b32.xlu0 %v1773_v59, %s5598_s26  ;;  %3083 = vrot.lane.b32.xlu2 %v3076_v46, %s5630_s22  ;;  %v10182_v59 = vld [vmem:[#allocation36_spill] sm:$0xff]  ;;  %s5649_s22 = smov 16  }
 0x4f4   : > { %v1986_v56 = vmul.f32 %v10182_v59, %v1952_v16  ;;  %v1923_v23 = vadd.f32 %v6665_v0, %v1847_v11 }
 0x4f5   : > { %v7085_v61 = vpop.permute.xlu0 %1581  ;;  %v7090_v58 = vpop.permute.xlu2 %2791  ;;  %3654 = vperm.xlu1 %5505, %v6951_v48  }
 0x4f6   : > { %10180 = vst [vmem:[#allocation29_spill] sm:$0xff] %v7085_v61  ;;  %v7097_v46 = vpop.permute.xlu1 %2695  ;;  %v3253_v61 = vperm.slane %v6860_v41, 3 }
 0x4f7   : > { %10181 = vst [vmem:[#allocation26_spill] sm:$0xff] %v7090_v58  ;;  %v1955_v58 = vadd.f32 %v1945_v30, %v1927_v2  ;;  %v3368_v2 = vmul.f32 %v6336_v22, %v6428_v7  ;;  %v1689_v30 = vsel %vm1686_vm10, %v6683_v20, %v6610_v1 }
 0x4f8   : > { %10183 = vst [vmem:[#allocation24_spill] sm:$0xff] %v7097_v46  ;;  %v7114_v46 = vsel %vm1972_vm12, %v10168_v54, %v10186_v14  ;;  %v1630_v54 = vmul.f32 %v10153_v27, %v6435_v39 }
 0x4fa   : > { %v1707_v11 = vadd.f32 %v1689_v30, %v1630_v54  ;;  %v1902_v30 = vsel %vm1686_vm10, %v6646_v3, %v6727_v4  ;;  %v7158_v54 = vsel %vm1758_vm11, %v10177_v34, %v10164_v47  ;;  %v1938_v4 = vmul.f32 %v10165_v40, %v6435_v39  ;;  %v10194_v34 = vld [vmem:[#allocation21_spill] sm:$0xff] }
 0x4fb   : > { %2011 = vrot.lane.b32.xlu0 %v1986_v56, %s5636_s24  ;;  %3258 = vrot.lane.b32.xlu2 %v3252_v35, %s5634_s25  ;;  %v1941_v56 = vmul.f32 0.0, %v10165_v40  ;;  %v1989_v35 = vmul.f32 %v7114_v46, %v1955_v58  ;;  %v1691_v47 = vsel %vm1686_vm10, %v10194_v34, %v6906_v33  ;;  %v1728_v33 = vmul.f32 %v10170_v12, %v6576_v29 }
 0x4fd   : > { %v7106_v25 = vpop.permute.xlu0 %1420  ;;  %v7109_v16 = vpop.permute.xlu2 %3006  ;;  %3260 = vrot.lane.b32.xlu1 %v3253_v61, %s5634_s25  ;;  %v1951_v17 = vadd.f32 %v1941_v56, %v1923_v23  ;;  %v7133_v61 = vld [vmem:[%s9690_s6 + $0x22] ss:$8 sm:$0xf]  ;;  %s5659_s25 = smov 108  }
 0x4fe   : > { %10184 = vst [vmem:[#allocation31_spill] sm:$0xff] %v7106_v25  ;;  %v7119_v41 = vpop.permute.xlu1 %2701  ;;  %v3466_v1 = vperm.slane %v7133_v61, 1 }
 0x4ff   : > { %10185 = vst [vmem:[#allocation36_spill] sm:$0xff] %v7109_v16  ;;  %v1985_v23 = vmul.f32 %v10186_v14, %v1951_v17  ;;  %v3587_v16 = vmul.f32 %v6368_v55, %v6641_v45  ;;  %v1844_v17 = vmul.f32 %v10162_v52, %v6445_v10 }
 0x500   : > { %10187 = vst [vmem:[#allocation37_spill] sm:$0xff] %v7119_v41 }
 0x503   : > { %2017 = vrot.lane.b32.xlu0 %v1989_v35, %s5636_s24  ;;  %3390 = vrot.lane.b32.xlu2 %v3368_v2, %s5601_s29  ;;  %v1725_v35 = vmul.f32 %v10155_v5, %v6428_v7 }
 0x505   : > { %v7135_v58 = vpop.permute.xlu0 %1587  ;;  %v7138_v56 = vpop.permute.xlu2 %2855  ;;  %2009 = vrot.lane.b32.xlu1 %v1985_v23, %s5636_s24  ;;  %v1735_v2 = vadd.f32 %v1725_v35, %v1707_v11  ;;  %v1920_v23 = vadd.f32 %v1902_v30, %v1844_v17  ;;  %v7181_v30 = vsel %vm1972_vm12, %v10182_v59, %v10169_v15  ;;  %v1694_v15 = vsel %vm1686_vm10, %v6843_v38, %v6929_v49 }
 0x506   : > { %10188 = vst [vmem:[#allocation123_spill] sm:$0xff] %v7135_v58  ;;  %v7144_v25 = vpop.permute.xlu1 %2793  ;;  %v1632_v49 = vmul.f32 %v10153_v27, %v6455_v57  ;;  %vm1591_vm12 = vcmask 1014784  }
 0x507   : > { %10189 = vst [vmem:[#allocation124_spill] sm:$0xff] %v7138_v56  ;;  %v1769_v35 = vmul.f32 %v7158_v54, %v1735_v2  ;;  %v1948_v56 = vadd.f32 %v1938_v4, %v1920_v23  ;;  %v1633_v2 = vmul.f32 0.0, %v6402_v51 }
 0x509   : > { %v1710_v23 = vadd.f32 %v1691_v47, %v1633_v2  ;;  %v5639_v47 = vmov 8  }
 0x50b   : > { %3471 = vrot.lane.b32.xlu0 %v3466_v1, %s5638_s20  ;;  %3613 = vrot.lane.b32.xlu2 %v3587_v16, %s5601_s29  ;;  %v10192_v1 = vld [vmem:[#allocation46_spill] sm:$0xff]  ;;  %v1738_v34 = vadd.f32 %v1728_v33, %v1710_v23 }
 0x50c   : > { %v3582_v16 = vmul.f32 %v10192_v1, %v6435_v39 }
 0x50d   : > { %v7160_v11 = vpop.permute.xlu0 %3220  ;;  %v7163_v58 = vpop.permute.xlu2 %3010  ;;  %1791 = vrot.lane.b32.xlu1 %v1769_v35, %s5598_s26  ;;  %v1982_v35 = vmul.f32 %v7181_v30, %v1948_v56  ;;  %v1636_v56 = vmul.f32 %v6402_v51, %v6561_v21  ;;  %v1772_v23 = vmul.f32 %v10158_v13, %v1738_v34  ;;  %v3375_v13 = vmul.f32 0.0, %v6340_v6 }
 0x50e   : > { %10190 = vst [vmem:[#allocation125_spill] sm:$0xff] %v7160_v11  ;;  %v7170_v41 = vpop.permute.xlu1 %3008  ;;  %v1850_v34 = vmul.f32 %v10176_v32, %v6641_v45  ;;  %v1944_v6 = vmul.f32 %v10179_v31, %v6561_v21 }
 0x50f   : > { %10191 = vst [vmem:[#allocation126_spill] sm:$0xff] %v7163_v58 }
 0x510   : > { %10193 = vst [vmem:[#allocation46_spill] sm:$0xff] %v7170_v41 }
 0x513   : > { %3603 = vrot.lane.b32.xlu0 %v3582_v16, %s5601_s29  ;;  %3556 = vperm.xlu2 %5503, %v7015_v37   ;;  %v3801_v16 = vmul.f32 %v6374_v19, %v6576_v29 }
 0x515   : > { %v7183_v17 = vpop.permute.xlu0 %3002  ;;  %v7186_v4 = vpop.permute.xlu2 %3398  ;;  %2003 = vrot.lane.b32.xlu1 %v1982_v35, %s5636_s24  ;;  %v1713_v35 = vadd.f32 %v1694_v15, %v1636_v56  ;;  %v1907_v15 = vsel %vm1686_vm10, %v6945_v36, %v7035_v44  ;;  %v1727_v56 = vmul.f32 0.0, %v10155_v5  ;;  %v1688_v44 = vsel %vm1686_vm10, %v6698_v42, %v6683_v20 }
 0x516   : > { %10195 = vst [vmem:[#allocation21_spill] sm:$0xff] %v7183_v17  ;;  %v7193_v58 = vpop.permute.xlu1 %2857  ;;  %v1724_v20 = vmul.f32 %v10155_v5, %v6435_v39  ;;  %v1843_v5 = vmul.f32 0.0, %v10162_v52 }
 0x517   : > { %10196 = vst [vmem:[#allocation127_spill] sm:$0xff] %v7186_v4  ;;  %v1731_v4 = vmul.f32 %v10170_v12, %v6592_v24 }
 0x51b   : > { %3826 = vrot.lane.b32.xlu0 %v3801_v16, %s5601_s29  ;;  %5506 = vset.pattern.permute.xlu2 %v5639_v47  ;;  %v1741_v16 = vadd.f32 %v1731_v4, %v1713_v35  ;;  %v1709_v47 = vadd.f32 %v6712_v50, %v1632_v49  ;;  %v1926_v35 = vadd.f32 %v1907_v15, %v1850_v34 }
 0x51c   : > { %3775 = vperm.xlu2 %5506, %v6951_v48  }
 0x51d   : > { %v7202_v2 = vpop.permute.xlu0 %3256  ;;  %v7205_v33 = vpop.permute.xlu2 %1416  ;;  %1797 = vrot.lane.b32.xlu1 %v1772_v23, %s5598_s26  ;;  %v1775_v50 = vmul.f32 %v7002_v8, %v1741_v16  ;;  %v1737_v49 = vadd.f32 %v1727_v56, %v1709_v47  ;;  %v1954_v15 = vadd.f32 %v1944_v6, %v1926_v35  ;;  %v5640_v47 = vmov 33   ;;  %v10205_v35 = vld [vmem:[#allocation27_spill] sm:$0xff] }
 0x51e   : > { %10197 = vst [vmem:[#allocation128_spill] sm:$0xff] %v7202_v2  ;;  %v7212_v17 = vpop.permute.xlu1 %3400  ;;  %v7265_v6 = vld [vmem:[%s9690_s6 + $0x23] ss:$8 sm:$0xf] }
 0x51f   : > { %10198 = vst [vmem:[#allocation129_spill] sm:$0xff] %v7205_v33  ;;  %v3370_v33 = vmul.f32 0.0, %v6336_v22  ;;  %v1771_v16 = vmul.f32 %v10163_v53, %v1737_v49  ;;  %v1988_v22 = vmul.f32 %v7029_v18, %v1954_v15  ;;  %v3590_v53 = vmul.f32 0.0, %v6368_v55 }
 0x520   : > { %10199 = vst [vmem:[#allocation130_spill] sm:$0xff] %v7212_v17 }
 0x523   : > { %3650 = vperm.xlu0 %5507, %v7015_v37  }
 0x524   : > { %3404 = vrot.lane.b32.xlu2 %v3375_v13, %s5601_s29  ;;  %v1629_v13 = vmul.f32 %v10153_v27, %v6445_v10 }
 0x525   : > { %v7224_v4 = vpop.permute.xlu0 %3388  ;;  %v7227_v23 = vpop.permute.xlu2 %1422  ;;  %1803 = vrot.lane.b32.xlu1 %v1775_v50, %s5598_s26 }
 0x526   : > { %10200 = vst [vmem:[#allocation131_spill] sm:$0xff] %v7224_v4  ;;  %v7238_v34 = vpop.permute.xlu1 %1418  ;;  %v1706_v8 = vadd.f32 %v1688_v44, %v1629_v13  ;;  %v3465_v44 = vperm.slane %v7133_v61, 0  ;;  %v10256_v4 = vld [vmem:[#allocation44_spill] sm:$0xff] }
 0x527   : > { %10201 = vst [vmem:[#allocation132_spill] sm:$0xff] %v7227_v23 }
 0x528   : > { %10202 = vst [vmem:[#allocation133_spill] sm:$0xff] %v7238_v34  ;;  %v1734_v56 = vadd.f32 %v1724_v20, %v1706_v8  ;;  %v1904_v20 = vsel %vm1686_vm10, %v6704_v60, %v6665_v0  ;;  %v3581_v0 = vmul.f32 %v10192_v1, %v6445_v10  ;;  %v10254_v34 = vld [vmem:[#allocation33_spill] sm:$0xff] }
 0x52a   : > { %v1768_v18 = vmul.f32 %v7072_v63, %v1734_v56  ;;  %v5641_v63 = vmov 26  }
 0x52b   : > { %3394 = vrot.lane.b32.xlu0 %v3370_v33, %s5601_s29  ;;  %v1901_v33 = vsel %vm1686_vm10, %v10205_v35, %v6646_v3  ;;  %v1937_v3 = vmul.f32 %v10165_v40, %v6445_v10  ;;  %5508 = vset.pattern.permute.xlu1 %v5641_v63 }
 0x52c   : > { %1795 = vrot.lane.b32.xlu2 %v1771_v16, %s5598_s26  ;;  %5512 = vset.pattern.permute.xlu0 %v5640_v47  ;;  %v1919_v49 = vadd.f32 %v1901_v33, %v1843_v5  ;;  %v3682_v16 = vperm.slane %v7265_v6, 2  ;;  %v1940_v5 = vmul.f32 %v10165_v40, %v6455_v57 }
 0x52d   : > { %v7245_v42 = vpop.permute.xlu0 %3611  ;;  %v7249_v27 = vpop.permute.xlu2 %1583  ;;  %2015 = vrot.lane.b32.xlu1 %v1988_v22, %s5636_s24  ;;  %v1846_v22 = vmul.f32 %v10162_v52, %v6428_v7 }
 0x52e   : > { %10203 = vst [vmem:[#allocation134_spill] sm:$0xff] %v7245_v42  ;;  %v7257_v50 = vpop.permute.xlu1 %1585  ;;  %v1947_v8 = vadd.f32 %v1937_v3, %v1919_v49  ;;  %v1852_v49 = vmul.f32 %v10176_v32, %v6592_v24 }
 0x52f   : > { %10204 = vst [vmem:[#allocation135_spill] sm:$0xff] %v7249_v27  ;;  %v1922_v35 = vadd.f32 %v1904_v20, %v1846_v22  ;;  %v3589_v20 = vmul.f32 %v6368_v55, %v6592_v24  ;;  %v1730_v55 = vmul.f32 %v10170_v12, %v6561_v21  ;;  %v3585_v12 = vmul.f32 0.0, %v10192_v1 }
 0x530   : > { %10206 = vst [vmem:[#allocation27_spill] sm:$0xff] %v7257_v50  ;;  %v1981_v33 = vmul.f32 %v10182_v59, %v1947_v8  ;;  %v10212_v59 = vld [vmem:[#allocation48_spill] sm:$0xff]  ;;  %v1928_v40 = vadd.f32 %v6880_v28, %v1852_v49  ;;  %v1946_v8 = vmul.f32 0.0, %v10179_v31  ;;  %v1693_v28 = vsel %vm1686_vm10, %v7006_v62, %v6843_v38  ;;  %v10253_v50 = vld [vmem:[#allocation95_spill] sm:$0xff] }
 0x531   : > { %v1950_v52 = vadd.f32 %v1940_v5, %v1922_v35  ;;  %v3803_v38 = vmul.f32 %v6374_v19, %v6561_v21  ;;  %v1906_v49 = vsel %vm1686_vm10, %v6862_v9, %v6945_v36  ;;  %v1943_v9 = vmul.f32 %v10179_v31, %v6641_v45  ;;  %v7360_v31 = vld [vmem:[%s9690_s6 + $0x24] ss:$8 sm:$0xf] }
 0x532   : > { %v1956_v35 = vadd.f32 %v1946_v8, %v1928_v40  ;;  %v9839_v8 = vmov 42  }
 0x533   : > { %3619 = vrot.lane.b32.xlu0 %v3590_v53, %s5601_s29  ;;  %v1984_v3 = vmul.f32 %v7114_v46, %v1950_v52  ;;  %v1635_v46 = vmul.f32 %v6402_v51, %v6641_v45 }
 0x534   : > { %1789 = vrot.lane.b32.xlu2 %v1768_v18, %s5598_s26  ;;  %v3798_v18 = vmul.f32 %v10212_v59, %v6428_v7 }
 0x535   : > { %v7270_v13 = vpop.permute.xlu0 %3435  ;;  %v7272_v15 = vpop.permute.xlu2 %3341  ;;  %3469 = vrot.lane.b32.xlu1 %v3465_v44, %s5638_s20  ;;  %v1712_v5 = vadd.f32 %v1693_v28, %v1635_v46 }
 0x536   : > { %10207 = vst [vmem:[#allocation136_spill] sm:$0xff] %v7270_v13  ;;  %v7282_v56 = vpop.permute.xlu1 %3439 }
 0x537   : > { %10208 = vst [vmem:[#allocation137_spill] sm:$0xff] %v7272_v15  ;;  %v1740_v51 = vadd.f32 %v1730_v55, %v1712_v5  ;;  %v5644_v55 = vmov 41   ;;  %v10303_v15 = vld [vmem:[#allocation30_spill] sm:$0xff] }
 0x538   : > { %10209 = vst [vmem:[#allocation138_spill] sm:$0xff] %v7282_v56 }
 0x53b   : > { %3688 = vrot.lane.b32.xlu0 %v3682_v16, %s5642_s2 }
 0x53c   : > { %2001 = vrot.lane.b32.xlu2 %v1981_v33, %s5636_s24 }
 0x53d   : > { %v7289_v53 = vpop.permute.xlu0 %3392  ;;  %v7293_v60 = vpop.permute.xlu2 %1589  ;;  %3601 = vrot.lane.b32.xlu1 %v3581_v0, %s5601_s29  ;;  %v1990_v0 = vmul.f32 %v10186_v14, %v1956_v35  ;;  %v1849_v14 = vmul.f32 %v10176_v32, %v6576_v29  ;;  %v3805_v35 = vmul.f32 0.0, %v6374_v19 }
 0x53e   : > { %10210 = vst [vmem:[#allocation139_spill] sm:$0xff] %v7289_v53  ;;  %v7300_v44 = vpop.permute.xlu1 %2853  ;;  %v5651_v53 = vmov 34  }
 0x53f   : > { %10211 = vst [vmem:[#allocation140_spill] sm:$0xff] %v7293_v60  ;;  %v1925_v40 = vadd.f32 %v1906_v49, %v1849_v14  ;;  %v3584_v14 = vmul.f32 %v10192_v1, %v6455_v57  ;;  %v3468_v60 = vperm.slane %v7133_v61, 3 }
 0x540   : > { %10213 = vst [vmem:[#allocation48_spill] sm:$0xff] %v7300_v44 }
 0x543   : > { %3820 = vrot.lane.b32.xlu0 %v3798_v18, %s5601_s29 }
 0x544   : > { %2007 = vrot.lane.b32.xlu2 %v1984_v3, %s5636_s24  ;;  %v1774_v3 = vmul.f32 %v7158_v54, %v1740_v51 }
 0x545   : > { %v7307_v16 = vpop.permute.xlu0 %1787  ;;  %v7311_v22 = vpop.permute.xlu2 %3560  ;;  %3617 = vrot.lane.b32.xlu1 %v3589_v20, %s5601_s29  ;;  %v1953_v20 = vadd.f32 %v1943_v9, %v1925_v40  ;;  %v3583_v40 = vmul.f32 %v10192_v1, %v6428_v7  ;;  %v7403_v1 = vld [vmem:[%s9690_s6 + $0x25] ss:$8 sm:$0xf] }
 0x546   : > { %10214 = vst [vmem:[#allocation141_spill] sm:$0xff] %v7307_v16  ;;  %v4065_v13 = vperm.slane %v7403_v1, 3 }
 0x547   : > { %10215 = vst [vmem:[#allocation142_spill] sm:$0xff] %v7311_v22  ;;  %v7319_v33 = vpop.permute.xlu1 %3254  ;;  %v1987_v54 = vmul.f32 %v7181_v30, %v1953_v20 }
 0x548   : > { %10216 = vst [vmem:[#allocation143_spill] sm:$0xff] %v7319_v33 }
 0x54b   : > { %3986 = vperm.xlu0 %5512, %v7015_v37  }
 0x54c   : > { %2019 = vrot.lane.b32.xlu2 %v1990_v0, %s5636_s24  ;;  %v3897_v0 = vperm.slane %v7360_v31, 2 }
 0x54d   : > { %v7326_v52 = vpop.permute.xlu0 %1793  ;;  %v7330_v62 = vpop.permute.xlu2 %3083  ;;  %3830 = vrot.lane.b32.xlu1 %v3803_v38, %s5601_s29  ;;  %v3467_v38 = vperm.slane %v7133_v61, 2 }
 0x54e   : > { %10217 = vst [vmem:[#allocation144_spill] sm:$0xff] %v7326_v52 }
 0x54f   : > { %10218 = vst [vmem:[#allocation145_spill] sm:$0xff] %v7330_v62  ;;  %v7339_v18 = vpop.permute.xlu1 %3386 }
 0x550   : > { %10219 = vst [vmem:[#allocation146_spill] sm:$0xff] %v7339_v18 }
 0x553   : > { %3609 = vrot.lane.b32.xlu0 %v3585_v12, %s5601_s29 }
 0x554   : > { %5519 = vset.pattern.permute.xlu0 %v9839_v8  ;;  %1801 = vrot.lane.b32.xlu2 %v1774_v3, %s5598_s26  ;;  %s5645_s26 = smov 73   ;;  %v3681_v3 = vperm.slane %v7265_v6, 1 }
 0x555   : > { %v7347_v36 = vpop.permute.xlu0 %2005  ;;  %v7349_v32 = vpop.permute.xlu2 %3258  ;;  %3869 = vperm.xlu1 %5508, %v6951_v48  }
 0x556   : > { %10220 = vst [vmem:[#allocation147_spill] sm:$0xff] %v7347_v36 }
 0x557   : > { %10221 = vst [vmem:[#allocation148_spill] sm:$0xff] %v7349_v32  ;;  %v7353_v28 = vpop.permute.xlu1 %3402  ;;  %v10259_v32 = vld [vmem:[#allocation34_spill] sm:$0xff] }
 0x558   : > { %10222 = vst [vmem:[#allocation149_spill] sm:$0xff] %v7353_v28  ;;  %v10295_v28 = vld [vmem:[#allocation52_spill] sm:$0xff] }
 0x55b   : > { %3834 = vrot.lane.b32.xlu0 %v3805_v35, %s5601_s29  ;;  %v3898_v35 = vperm.slane %v7360_v31, 3 }
 0x55c   : > { %2013 = vrot.lane.b32.xlu2 %v1987_v54, %s5636_s24 }
 0x55d   : > { %v7363_v46 = vpop.permute.xlu0 %1805  ;;  %v7365_v5 = vpop.permute.xlu2 %3390  ;;  %5510 = vset.pattern.permute.xlu1 %v5644_v55 }
 0x55e   : > { %10223 = vst [vmem:[#allocation150_spill] sm:$0xff] %v7363_v46  ;;  %4008 = vperm.xlu1 %5510, %v6951_v48   ;;  %v9844_v46 = vmov 50  }
 0x55f   : > { %10224 = vst [vmem:[#allocation151_spill] sm:$0xff] %v7365_v5  ;;  %v7370_v30 = vpop.permute.xlu1 %3615  ;;  %v10257_v5 = vld [vmem:[#allocation35_spill] sm:$0xff] }
 0x560   : > { %10225 = vst [vmem:[#allocation152_spill] sm:$0xff] %v7370_v30 }
 0x563   : > { %3903 = vrot.lane.b32.xlu0 %v3897_v0, %s5645_s26  ;;  %v9838_v0 = vmov 43  }
 0x564   : > { %3473 = vrot.lane.b32.xlu2 %v3467_v38, %s5638_s20 }
 0x565   : > { %v7374_v51 = vpop.permute.xlu0 %1799  ;;  %v7376_v49 = vpop.permute.xlu2 %3613 }
 0x566   : > { %10226 = vst [vmem:[#allocation153_spill] sm:$0xff] %v7374_v51  ;;  %3607 = vrot.lane.b32.xlu1 %v3584_v14, %s5601_s29  ;;  %v3797_v14 = vmul.f32 %v10212_v59, %v6435_v39 }
 0x567   : > { %10227 = vst [vmem:[#allocation154_spill] sm:$0xff] %v7376_v49  ;;  %v7381_v12 = vpop.permute.xlu1 %3654  ;;  %5511 = vset.pattern.permute.xlu1 %v5641_v63  ;;  %v3802_v63 = vmul.f32 %v6374_v19, %v6641_v45 }
 0x568   : > { %10228 = vst [vmem:[#allocation155_spill] sm:$0xff] %v7381_v12 }
 0x56b   : > { %4171 = vperm.xlu0 %5519, %v7015_v37  }
 0x56c   : > { %3605 = vrot.lane.b32.xlu2 %v3583_v40, %s5601_s29 }
 0x56d   : > { %v7389_v9 = vpop.permute.xlu0 %2011  ;;  %v7391_v20 = vpop.permute.xlu2 %3556 }
 0x56e   : > { %10229 = vst [vmem:[#allocation156_spill] sm:$0xff] %v7389_v9  ;;  %3686 = vrot.lane.b32.xlu1 %v3681_v3, %s5642_s2  ;;  %v4064_v3 = vperm.slane %v7403_v1, 2  ;;  %v10245_v9 = vmov 42  }
 0x56f   : > { %10230 = vst [vmem:[#allocation157_spill] sm:$0xff] %v7391_v20  ;;  %v7395_v54 = vpop.permute.xlu1 %3260 }
 0x570   : > { %10231 = vst [vmem:[#allocation158_spill] sm:$0xff] %v7395_v54  ;;  %v2154_v54 = vmul.f32 %v10259_v32, %v6428_v7 }
 0x573   : > { %3905 = vrot.lane.b32.xlu0 %v3898_v35, %s5645_s26 }
 0x574   : > { %5524 = vset.pattern.permute.xlu0 %v9838_v0  ;;  %3828 = vrot.lane.b32.xlu2 %v3802_v63, %s5601_s29 }
 0x575   : > { %v7407_v38 = vpop.permute.xlu0 %2017 }
 0x576   : > { %10232 = vst [vmem:[#allocation159_spill] sm:$0xff] %v7407_v38  ;;  %v7411_v40 = vpop.permute.xlu2 %3775  ;;  %3818 = vrot.lane.b32.xlu1 %v3797_v14, %s5601_s29  ;;  %v7430_v14 = vld [vmem:[%s9690_s6 + $0x26] ss:$8 sm:$0xf] }
 0x577   : > { %10233 = vst [vmem:[#allocation160_spill] sm:$0xff] %v7411_v40  ;;  %v7415_v35 = vpop.permute.xlu1 %2009 }
 0x578   : > { %10234 = vst [vmem:[#allocation161_spill] sm:$0xff] %v7415_v35  ;;  %v4231_v35 = vperm.slane %v7430_v14, 2 }
 0x57b   : > { %4070 = vrot.lane.b32.xlu0 %v4064_v3, %s5647_s30 }
 0x57c   : > { %3771 = vperm.xlu2 %5506, %v7015_v37  }
 0x57d   : > { %v7419_v0 = vpop.permute.xlu0 %3471 }
 0x57e   : > { %10235 = vst [vmem:[#allocation162_spill] sm:$0xff] %v7419_v0  ;;  %v7421_v63 = vpop.permute.xlu2 %3404  ;;  %3865 = vperm.xlu1 %5511, %v7015_v37   ;;  %v2189_v0 = vsel %vm2187_vm13, %v10257_v5, %v10256_v4 }
 0x57f   : > { %10236 = vst [vmem:[#allocation163_spill] sm:$0xff] %v7421_v63  ;;  %v7424_v8 = vpop.permute.xlu1 %1791  ;;  %v5653_v63 = vmov 35  }
 0x580   : > { %10237 = vst [vmem:[#allocation164_spill] sm:$0xff] %v7424_v8  ;;  %v10250_v8 = vld [vmem:[#allocation40_spill] sm:$0xff] }
 0x581   : > { %v2159_v51 = vmul.f32 %v10250_v8, %v6561_v21 }
 0x583   : > { %4338 = vperm.xlu0 %5524, %v7015_v37  }
 0x584   : > { %5509 = vset.pattern.permute.xlu2 %v5640_v47  ;;  %v7448_v47 = vld [vmem:[%s9690_s6 + $0x27] ss:$8 sm:$0xf] }
 0x585   : > { %v7433_v3 = vpop.permute.xlu0 %3603  ;;  %3990 = vperm.xlu2 %5509, %v6951_v48   ;;  %v4396_v23 = vperm.slane %v7448_v47, 0 }
 0x586   : > { %10238 = vst [vmem:[#allocation165_spill] sm:$0xff] %v7433_v3  ;;  %v7436_v38 = vpop.permute.xlu2 %1795  ;;  %5514 = vset.pattern.permute.xlu1 %v9844_v46 }
 0x587   : > { %10239 = vst [vmem:[#allocation166_spill] sm:$0xff] %v7436_v38  ;;  %v7440_v16 = vpop.permute.xlu1 %2003  ;;  %4036 = vperm.xlu1 %5514, %v6951_v48   ;;  %v10241_v38 = vmov 0  }
 0x588   : > { %10240 = vst [vmem:[#allocation167_spill] sm:$0xff] %v7440_v16 }
 0x58b   : > { %4237 = vrot.lane.b32.xlu0 %v4231_v35, %s5649_s22  ;;  %v3680_v35 = vperm.slane %v7265_v6, 0 }
 0x58c   : > { %5526 = vset.pattern.permute.xlu0 %v10241_v38 }
 0x58d   : > { %v7451_v52 = vpop.permute.xlu0 %3826  ;;  %3475 = vrot.lane.b32.xlu2 %v3468_v60, %s5638_s20  ;;  %v2122_v60 = vsel %vm1686_vm10, %v7053_v43, %v6901_v26  ;;  %s5652_s20 = smov 53  }
 0x58e   : > { %10242 = vst [vmem:[#allocation168_spill] sm:$0xff] %v7451_v52  ;;  %v7454_v46 = vpop.permute.xlu2 %1789  ;;  %5513 = vset.pattern.permute.xlu2 %v5644_v55  ;;  %v10247_v55 = vld [vmem:[#allocation38_spill] sm:$0xff] }
 0x58f   : > { %10243 = vst [vmem:[#allocation169_spill] sm:$0xff] %v7454_v46  ;;  %v7457_v61 = vpop.permute.xlu1 %1797  ;;  %5516 = vset.pattern.permute.xlu1 %v10245_v9  ;;  %v4399_v9 = vperm.slane %v7448_v47, 3  ;;  %v3799_v46 = vmul.f32 %v10212_v59, %v6455_v57 }
 0x590   : > { %10244 = vst [vmem:[#allocation170_spill] sm:$0xff] %v7457_v61  ;;  %4175 = vperm.xlu1 %5516, %v6951_v48   ;;  %v2065_v61 = vmul.f32 %v10247_v55, %v6641_v45 }
 0x592   : > { %v2141_v27 = vadd.f32 %v2122_v60, %v2065_v61  ;;  %v10252_v60 = vld [vmem:[#allocation93_spill] sm:$0xff] }
 0x593   : > { %4400 = vrot.lane.b32.xlu0 %v4396_v23, %s5650_s23 }
 0x595   : > { %v7463_v16 = vpop.permute.xlu0 %3650  ;;  %3684 = vrot.lane.b32.xlu2 %v3680_v35, %s5642_s2  ;;  %v3796_v35 = vmul.f32 %v10212_v59, %v6445_v10 }
 0x596   : > { %10246 = vst [vmem:[#allocation171_spill] sm:$0xff] %v7463_v16  ;;  %v7471_v36 = vpop.permute.xlu2 %2001 }
 0x597   : > { %10248 = vst [vmem:[#allocation38_spill] sm:$0xff] %v7471_v36  ;;  %v7476_v23 = vpop.permute.xlu1 %1803  ;;  %v2169_v36 = vadd.f32 %v2159_v51, %v2141_v27 }
 0x598   : > { %10249 = vst [vmem:[#allocation172_spill] sm:$0xff] %v7476_v23  ;;  %3822 = vrot.lane.b32.xlu1 %v3799_v46, %s5601_s29  ;;  %v2118_v23 = vsel %vm1686_vm10, %v10253_v50, %v10252_v60  ;;  %v2060_v46 = vmul.f32 %v10254_v34, %v6435_v39 }
 0x599   : > { %5518 = vset.pattern.permute.xlu1 %v5651_v53  ;;  %v2203_v51 = vmul.f32 %v2189_v0, %v2169_v36  ;;  %v10262_v36 = vld [vmem:[#allocation47_spill] sm:$0xff] }
 0x59a   : > { %v2136_v27 = vadd.f32 %v2118_v23, %v2060_v46  ;;  %v7512_v23 = vmul.f32 0.0, %v10262_v36 }
 0x59b   : > { %4406 = vrot.lane.b32.xlu0 %v4399_v9, %s5650_s23  ;;  %v3896_v9 = vperm.slane %v7360_v31, 1 }
 0x59c   : > { %v2164_v52 = vadd.f32 %v2154_v54, %v2136_v27 }
 0x59d   : > { %v7484_v61 = vpop.permute.xlu0 %3394  ;;  %3816 = vrot.lane.b32.xlu2 %v3796_v35, %s5601_s29  ;;  %v3804_v35 = vmul.f32 %v6374_v19, %v6592_v24  ;;  %v10265_v19 = vld [vmem:[#allocation50_spill] sm:$0xff] }
 0x59e   : > { %10251 = vst [vmem:[#allocation40_spill] sm:$0xff] %v7484_v61  ;;  %v7492_v42 = vpop.permute.xlu2 %2007  ;;  %v2325_v20 = vmul.f32 %v10265_v19, %v6641_v45 }
 0x59f   : > { %10255 = vst [vmem:[#allocation93_spill] sm:$0xff] %v7492_v42  ;;  %v7498_v61 = vpop.permute.xlu1 %2015  ;;  %v10260_v42 = vld [vmem:[#allocation63_spill] sm:$0xff] }
 0x5a0   : > { %10258 = vst [vmem:[#allocation95_spill] sm:$0xff] %v7498_v61  ;;  %3901 = vrot.lane.b32.xlu1 %v3896_v9, %s5645_s26  ;;  %v2297_v40 = vmul.f32 %v10260_v42, %v6576_v29  ;;  %v2198_v61 = vmul.f32 %v2189_v0, %v2164_v52  ;;  %v2061_v52 = vmul.f32 %v10254_v34, %v6428_v7 }
 0x5a2   : > { %v2307_v9 = vadd.f32 %v2297_v40, %v7512_v23  ;;  %v10269_v40 = vld [vmem:[#allocation54_spill] sm:$0xff] }
 0x5a3   : > { %2230 = vrot.lane.b32.xlu0 %v2203_v51, %s5652_s20 }
 0x5a4   : > { %v2335_v54 = vadd.f32 %v2325_v20, %v2307_v9  ;;  %v2155_v9 = vmul.f32 %v10259_v32, %v6455_v57 }
 0x5a5   : > { %v7508_v16 = vpop.permute.xlu0 %3619  ;;  %3832 = vrot.lane.b32.xlu2 %v3804_v35, %s5601_s29  ;;  %v10267_v35 = vld [vmem:[#allocation16_spill] sm:$0xff] }
 0x5a6   : > { %10261 = vst [vmem:[#allocation33_spill] sm:$0xff] %v7508_v16  ;;  %v7514_v46 = vpop.permute.xlu2 %2019  ;;  %v2119_v16 = vsel %vm1686_vm10, %v10252_v60, %v10267_v35  ;;  %v10272_v60 = vld [vmem:[#allocation66_spill] sm:$0xff]  ;;  %v2328_v35 = vmul.f32 0.0, %v10265_v19 }
 0x5a7   : > { %10263 = vst [vmem:[#allocation44_spill] sm:$0xff] %v7514_v46  ;;  %v7517_v51 = vpop.permute.xlu1 %3469  ;;  %v10270_v46 = vld [vmem:[#allocation77_spill] sm:$0xff]  ;;  %v2137_v44 = vadd.f32 %v2119_v16, %v2061_v52 }
 0x5a8   : > { %10264 = vst [vmem:[#allocation35_spill] sm:$0xff] %v7517_v51  ;;  %4153 = vperm.xlu1 %5518, %v7015_v37   ;;  %v2354_v3 = vsel %vm1424_vm14, %v10270_v46, %v10269_v40 }
 0x5ab   : > { %2220 = vrot.lane.b32.xlu0 %v2198_v61, %s5652_s20  ;;  %v2368_v61 = vmul.f32 %v2354_v3, %v2335_v54  ;;  %v10274_v54 = vld [vmem:[#allocation49_spill] sm:$0xff] }
 0x5ac   : > { %v7547_v16 = vmul.f32 0.0, %v10274_v54 }
 0x5ad   : > { %v7523_v27 = vpop.permute.xlu0 %3688  ;;  %4004 = vperm.xlu2 %5513, %v7015_v37  }
 0x5ae   : > { %10266 = vst [vmem:[#allocation34_spill] sm:$0xff] %v7523_v27  ;;  %v7531_v0 = vpop.permute.xlu2 %1801  ;;  %v2165_v27 = vadd.f32 %v2155_v9, %v2137_v44  ;;  %v10279_v9 = vld [vmem:[#allocation72_spill] sm:$0xff] }
 0x5af   : > { %10268 = vst [vmem:[#allocation63_spill] sm:$0xff] %v7531_v0  ;;  %v7536_v20 = vpop.permute.xlu1 %3601  ;;  %v2292_v0 = vmul.f32 %v10272_v60, %v6445_v10 }
 0x5b0   : > { %10271 = vst [vmem:[#allocation47_spill] sm:$0xff] %v7536_v20  ;;  %5521 = vset.pattern.permute.xlu1 %v5653_v63  ;;  %v10276_v20 = vld [vmem:[#allocation42_spill] sm:$0xff] }
 0x5b1   : > { %4324 = vperm.xlu1 %5521, %v6951_v48   ;;  %v7555_v63 = vsel %vm2187_vm13, %v10256_v4, %v10276_v20  ;;  %v2282_v4 = vmul.f32 %v10262_v36, %v6561_v21 }
 0x5b2   : > { %10277 = vst [vmem:[#allocation66_spill] sm:$0xff] %v7555_v63  ;;  %v2199_v22 = vmul.f32 %v7555_v63, %v2165_v27 }
 0x5b3   : > { %2394 = vrot.lane.b32.xlu0 %v2368_v61, %s5589_s21  ;;  %v2302_v61 = vadd.f32 %v2292_v0, %v7547_v16  ;;  %v2300_v0 = vmul.f32 %v10260_v42, %v6592_v24 }
 0x5b5   : > { %v7544_v12 = vpop.permute.xlu0 %3820  ;;  %5515 = vset.pattern.permute.xlu2 %v5651_v53  ;;  %v3800_v53 = vmul.f32 0.0, %v10212_v59 }
 0x5b6   : > { %10273 = vst [vmem:[#allocation50_spill] sm:$0xff] %v7544_v12  ;;  %4157 = vperm.xlu2 %5515, %v6951_v48   ;;  %v7550_v52 = vpop.permute.xlu2 %2013  ;;  %v2320_v12 = vmul.f32 %v10279_v9, %v6435_v39 }
 0x5b7   : > { %10275 = vst [vmem:[#allocation77_spill] sm:$0xff] %v7550_v52  ;;  %v7559_v44 = vpop.permute.xlu1 %3617  ;;  %v3683_v52 = vperm.slane %v7265_v6, 3  ;;  %v2310_v6 = vadd.f32 %v2300_v0, %v2282_v4  ;;  %v10287_v4 = vld [vmem:[#allocation51_spill] sm:$0xff] }
 0x5b8   : > { %10278 = vst [vmem:[#allocation49_spill] sm:$0xff] %v7559_v44  ;;  %v2330_v27 = vadd.f32 %v2320_v12, %v2302_v61  ;;  %v4063_v44 = vperm.slane %v7403_v1, 1  ;;  %v3895_v12 = vperm.slane %v7360_v31, 0 }
 0x5b9   : > { %3824 = vrot.lane.b32.xlu1 %v3800_v53, %s5601_s29  ;;  %v2338_v61 = vadd.f32 %v2328_v35, %v2310_v6  ;;  %v10291_v35 = vld [vmem:[#allocation55_spill] sm:$0xff]  ;;  %s5654_s29 = smov 47  }
 0x5ba   : > { %v2363_v30 = vmul.f32 %v2354_v3, %v2330_v27  ;;  %v2445_v3 = vmul.f32 %v10287_v4, %v6641_v45  ;;  %v10289_v27 = vld [vmem:[#allocation80_spill] sm:$0xff] }
 0x5bb   : > { %2222 = vrot.lane.b32.xlu0 %v2199_v22, %s5652_s20  ;;  %v10282_v22 = vmov 50  }
 0x5bd   : > { %v7571_v49 = vpop.permute.xlu0 %3986 }
 0x5be   : > { %10280 = vst [vmem:[#allocation72_spill] sm:$0xff] %v7571_v49  ;;  %3690 = vrot.lane.b32.xlu2 %v3683_v52, %s5642_s2  ;;  %v7574_v59 = vpop.permute.xlu2 %3473  ;;  %v10285_v49 = vld [vmem:[#allocation25_spill] sm:$0xff]  ;;  %s5656_s2 = smov 46  }
 0x5bf   : > { %10281 = vst [vmem:[#allocation173_spill] sm:$0xff] %v7574_v59  ;;  %5517 = vset.pattern.permute.xlu2 %v10282_v22  ;;  %v7578_v53 = vpop.permute.xlu1 %3830  ;;  %v10286_v59 = vld [vmem:[#allocation118_spill] sm:$0xff] }
 0x5c0   : > { %10283 = vst [vmem:[#allocation174_spill] sm:$0xff] %v7578_v53  ;;  %v2502_v17 = vsel %vm1686_vm10, %v10286_v59, %v10285_v49 }
 0x5c1   : > { %4068 = vrot.lane.b32.xlu1 %v4063_v44, %s5647_s30  ;;  %v2521_v22 = vadd.f32 %v2502_v17, %v2445_v3  ;;  %v2539_v44 = vmul.f32 %v10291_v35, %v6561_v21  ;;  %v10297_v3 = vld [vmem:[#allocation64_spill] sm:$0xff] }
 0x5c3   : > { %2384 = vrot.lane.b32.xlu0 %v2363_v30, %s5589_s21  ;;  %v2371_v30 = vmul.f32 %v10289_v27, %v2338_v61  ;;  %v2549_v6 = vadd.f32 %v2539_v44, %v2521_v22  ;;  %v2438_v61 = vmul.f32 0.0, %v10295_v28 }
 0x5c5   : > { %v7584_v52 = vpop.permute.xlu0 %3609 }
 0x5c6   : > { %10284 = vst [vmem:[#allocation175_spill] sm:$0xff] %v7584_v52  ;;  %3899 = vrot.lane.b32.xlu2 %v3895_v12, %s5645_s26  ;;  %v7592_v0 = vpop.permute.xlu2 %3605  ;;  %v10293_v52 = vld [vmem:[#allocation94_spill] sm:$0xff]  ;;  %v10294_v12 = vld [vmem:[#allocation56_spill] sm:$0xff]  ;;  %s5660_s26 = smov 39  }
 0x5c7   : > { %10288 = vst [vmem:[#allocation25_spill] sm:$0xff] %v7592_v0  ;;  %v7595_v31 = vpop.permute.xlu1 %3869  ;;  %v2496_v0 = vsel %vm1686_vm10, %v10294_v12, %v10293_v52 }
 0x5c8   : > { %10290 = vst [vmem:[#allocation118_spill] sm:$0xff] %v7595_v31  ;;  %v10298_v31 = vld [vmem:[#allocation60_spill] sm:$0xff]  ;;  %v2514_v22 = vadd.f32 %v2496_v0, %v2438_v61  ;;  %v2503_v0 = vsel %vm1686_vm10, %v10285_v49, %v10303_v15  ;;  %v5655_v61 = vmov 51  }
 0x5c9   : > { %4320 = vperm.xlu1 %5521, %v7015_v37  }
 0x5cb   : > { %2400 = vrot.lane.b32.xlu0 %v2371_v30, %s5589_s21  ;;  %v7613_v30 = vsel %vm2567_vm15, %v10298_v31, %v10297_v3 }
 0x5cc   : > { %10299 = vst [vmem:[#allocation55_spill] sm:$0xff] %v7613_v30  ;;  %v2583_v44 = vmul.f32 %v7613_v30, %v2549_v6  ;;  %v2446_v6 = vmul.f32 %v10287_v4, %v6561_v21  ;;  %v10309_v30 = vld [vmem:[#allocation120_spill] sm:$0xff] }
 0x5cd   : > { %v7601_v53 = vpop.permute.xlu0 %3834 }
 0x5ce   : > { %10292 = vst [vmem:[#allocation51_spill] sm:$0xff] %v7601_v53  ;;  %4032 = vperm.xlu2 %5517, %v7015_v37   ;;  %v7608_v17 = vpop.permute.xlu2 %3828  ;;  %v10300_v53 = vld [vmem:[#allocation58_spill] sm:$0xff] }
 0x5cf   : > { %10296 = vst [vmem:[#allocation80_spill] sm:$0xff] %v7608_v17  ;;  %v2532_v18 = vmul.f32 %v10300_v53, %v6445_v10  ;;  %v10316_v53 = vld [vmem:[#allocation57_spill] sm:$0xff] }
 0x5d0   : > { %v7619_v12 = vpop.permute.xlu1 %4008  ;;  %v2744_v56 = vmul.f32 %v10316_v53, %v6561_v21 }
 0x5d1   : > { %10301 = vst [vmem:[#allocation56_spill] sm:$0xff] %v7619_v12  ;;  %4072 = vrot.lane.b32.xlu1 %v4065_v13, %s5647_s30  ;;  %v2542_v17 = vadd.f32 %v2532_v18, %v2514_v22  ;;  %v2522_v13 = vadd.f32 %v2503_v0, %v2446_v6  ;;  %v10305_v18 = vld [vmem:[#allocation82_spill] sm:$0xff]  ;;  %v10310_v0 = vld [vmem:[#allocation69_spill] sm:$0xff] }
 0x5d2   : > { %5527 = vset.pattern.permute.xlu1 %v10241_v38  ;;  %v2660_v6 = vmul.f32 %v10310_v0, %v6641_v45 }
 0x5d3   : > { %2610 = vrot.lane.b32.xlu0 %v2583_v44, %s5654_s29  ;;  %v4230_v44 = vperm.slane %v7430_v14, 1  ;;  %v2576_v22 = vmul.f32 %v10305_v18, %v2542_v17  ;;  %v10311_v17 = vld [vmem:[#allocation86_spill] sm:$0xff] }
 0x5d4   : > { %v7652_v40 = vsel %vm2567_vm15, %v10297_v3, %v10311_v17  ;;  %v10318_v3 = vld [vmem:[#allocation26_spill] sm:$0xff] }
 0x5d5   : > { %v7623_v52 = vpop.permute.xlu0 %3903 }
 0x5d6   : > { %10302 = vst [vmem:[#allocation64_spill] sm:$0xff] %v7623_v52  ;;  %5520 = vset.pattern.permute.xlu2 %v5655_v61  ;;  %v7631_v12 = vpop.permute.xlu2 %3771  ;;  %v2540_v52 = vmul.f32 %v10291_v35, %v6592_v24 }
 0x5d7   : > { %10304 = vst [vmem:[#allocation60_spill] sm:$0xff] %v7631_v12  ;;  %4203 = vperm.xlu2 %5520, %v6951_v48   ;;  %v10308_v12 = vld [vmem:[#allocation28_spill] sm:$0xff] }
 0x5d8   : > { %v7638_v20 = vpop.permute.xlu1 %3607  ;;  %v2550_v49 = vadd.f32 %v2540_v52, %v2522_v13  ;;  %v2707_v51 = vsel %vm1686_vm10, %v10309_v30, %v10308_v12  ;;  %10312 = vst [vmem:[#allocation28_spill] sm:$0xff] %v7652_v40 }
 0x5d9   : > { %10306 = vst [vmem:[#allocation82_spill] sm:$0xff] %v7638_v20  ;;  %4235 = vrot.lane.b32.xlu1 %v4230_v44, %s5649_s22  ;;  %v4232_v20 = vperm.slane %v7430_v14, 3  ;;  %v2726_v52 = vadd.f32 %v2707_v51, %v2660_v6  ;;  %v10319_v51 = vld [vmem:[#allocation105_spill] sm:$0xff] }
 0x5da   : > { %v2584_v13 = vmul.f32 %v7652_v40, %v2550_v49  ;;  %v4062_v49 = vperm.slane %v7403_v1, 0  ;;  %v10321_v40 = vld [vmem:[#allocation22_spill] sm:$0xff] }
 0x5db   : > { %2596 = vrot.lane.b32.xlu0 %v2576_v22, %s5654_s29  ;;  %v10313_v22 = vmov 43   ;;  %v2867_v17 = vsel %vm1686_vm10, %v7193_v58, %v10321_v40 }
 0x5dd   : > { %v7642_v15 = vpop.permute.xlu0 %4171 }
 0x5de   : > { %10307 = vst [vmem:[#allocation176_spill] sm:$0xff] %v7642_v15  ;;  %v10315_v15 = vld [vmem:[#allocation74_spill] sm:$0xff] }
 0x5df   : > { %5522 = vset.pattern.permute.xlu2 %v10313_v22  ;;  %v7656_v44 = vpop.permute.xlu2 %3990  ;;  %v2653_v30 = vmul.f32 0.0, %v10315_v15  ;;  %v2801_v22 = vsel %vm1686_vm10, %v10318_v3, %v7144_v25  ;;  %v10323_v15 = vld [vmem:[#allocation23_spill] sm:$0xff] }
 0x5e0   : > { %10314 = vst [vmem:[#allocation69_spill] sm:$0xff] %v7656_v44  ;;  %4342 = vperm.xlu2 %5522, %v6951_v48   ;;  %v7663_v63 = vpop.permute.xlu1 %3686  ;;  %v2754_v48 = vadd.f32 %v2744_v56, %v2726_v52  ;;  %v2121_v3 = vsel %vm1686_vm10, %v10323_v15, %v7053_v43  ;;  %v4398_v56 = vperm.slane %v7448_v47, 2  ;;  %v2158_v43 = vmul.f32 %v10250_v8, %v6641_v45 }
 0x5e1   : > { %10317 = vst [vmem:[#allocation57_spill] sm:$0xff] %v7663_v63  ;;  %4239 = vrot.lane.b32.xlu1 %v4232_v20, %s5649_s22  ;;  %v2719_v6 = vadd.f32 %v10319_v51, %v2653_v30  ;;  %v10322_v63 = vld [vmem:[#allocation61_spill] sm:$0xff]  ;;  %v2064_v20 = vmul.f32 %v10247_v55, %v6576_v29 }
 0x5e2   : > { %v2820_v28 = vadd.f32 %v2801_v22, %v2754_v48  ;;  %v10326_v22 = vld [vmem:[#allocation37_spill] sm:$0xff] }
 0x5e3   : > { %2612 = vrot.lane.b32.xlu0 %v2584_v13, %s5654_s29  ;;  %v2737_v13 = vmul.f32 %v10322_v63, %v6445_v10  ;;  %v2708_v48 = vsel %vm1686_vm10, %v10308_v12, %v10326_v22  ;;  %v10331_v12 = vld [vmem:[#allocation43_spill] sm:$0xff] }
 0x5e4   : > { %v2886_v52 = vadd.f32 %v2867_v17, %v2820_v28  ;;  %v2661_v17 = vmul.f32 %v10310_v0, %v6561_v21 }
 0x5e5   : > { %v7671_v44 = vpop.permute.xlu0 %3905  ;;  %v2747_v1 = vadd.f32 %v2737_v13, %v2719_v6  ;;  %v10327_v6 = vld [vmem:[#allocation68_spill] sm:$0xff] }
 0x5e6   : > { %10320 = vst [vmem:[#allocation177_spill] sm:$0xff] %v7671_v44  ;;  %v2140_v44 = vadd.f32 %v2121_v3, %v2064_v20  ;;  %v2727_v20 = vadd.f32 %v2708_v48, %v2661_v17 }
 0x5e7   : > { %v7685_v30 = vpop.permute.xlu2 %3475  ;;  %v2813_v28 = vadd.f32 %v10327_v6, %v2747_v1  ;;  %v2745_v1 = vmul.f32 %v10316_v53, %v6592_v24  ;;  %v10333_v6 = vld [vmem:[#allocation121_spill] sm:$0xff] }
 0x5e8   : > { %10324 = vst [vmem:[#allocation22_spill] sm:$0xff] %v7685_v30  ;;  %4066 = vrot.lane.b32.xlu2 %v4062_v49, %s5647_s30  ;;  %v7688_v51 = vpop.permute.xlu1 %3818  ;;  %v2168_v3 = vadd.f32 %v2158_v43, %v2140_v44  ;;  %v10329_v49 = vld [vmem:[#allocation99_spill] sm:$0xff]  ;;  %s5665_s30 = smov 92  }
 0x5e9   : > { %5523 = vset.pattern.permute.xlu2 %v5655_v61  ;;  %10325 = vst [vmem:[#allocation61_spill] sm:$0xff] %v7688_v51  ;;  %4404 = vrot.lane.b32.xlu1 %v4398_v56, %s5650_s23  ;;  %v2117_v13 = vsel %vm1686_vm10, %v10329_v49, %v10253_v50  ;;  %v2188_v56 = vsel %vm2187_vm13, %v10331_v12, %v10257_v5  ;;  %v10332_v44 = vld [vmem:[#allocation103_spill] sm:$0xff]  ;;  %vm4074_vm13 = vcmask 113664  }
 0x5ea   : > { %v2879_v43 = vadd.f32 %v10332_v44, %v2813_v28  ;;  %v2802_v50 = vsel %vm1686_vm10, %v7144_v25, %v10333_v6  ;;  %v2202_v48 = vmul.f32 %v2188_v56, %v2168_v3  ;;  %v2755_v17 = vadd.f32 %v2745_v1, %v2727_v20  ;;  %v10337_v25 = vld [vmem:[#allocation81_spill] sm:$0xff]  ;;  %v10338_v1 = vld [vmem:[#allocation76_spill] sm:$0xff] }
 0x5eb   : > { %2913 = vrot.lane.b32.xlu0 %v2886_v52, %s5656_s2  ;;  %v2059_v52 = vmul.f32 %v10254_v34, %v6445_v10  ;;  %v2153_v5 = vmul.f32 %v10259_v32, %v6435_v39  ;;  %v2963_v3 = vmul.f32 %v10337_v25, %v6641_v45  ;;  %v2296_v20 = vmul.f32 0.0, %v10260_v42 }
 0x5ec   : > { %v2157_v25 = vmul.f32 %v10250_v8, %v6576_v29 }
 0x5ed   : > { %v7700_v61 = vpop.permute.xlu0 %4070 }
 0x5ee   : > { %10328 = vst [vmem:[#allocation23_spill] sm:$0xff] %v7700_v61  ;;  %v2135_v61 = vadd.f32 %v2117_v13, %v2059_v52  ;;  %v10336_v13 = vld [vmem:[#allocation36_spill] sm:$0xff] }
 0x5ef   : > { %v7707_v51 = vpop.permute.xlu2 %3684  ;;  %v3019_v52 = vsel %vm1686_vm10, %v10336_v13, %v7170_v41  ;;  %v2662_v41 = vmul.f32 %v10310_v0, %v6592_v24 }
 0x5f0   : > { %10330 = vst [vmem:[#allocation37_spill] sm:$0xff] %v7707_v51  ;;  %4199 = vperm.xlu2 %5523, %v7015_v37   ;;  %v7719_v30 = vpop.permute.xlu1 %3865  ;;  %v2821_v51 = vadd.f32 %v2802_v50, %v2755_v17  ;;  %v2163_v28 = vadd.f32 %v2153_v5, %v2135_v61  ;;  %v3039_v50 = vadd.f32 %v3019_v52, %v2963_v3  ;;  %v5657_v17 = vmov 52  }
 0x5f1   : > { %10334 = vst [vmem:[#allocation99_spill] sm:$0xff] %v7719_v30  ;;  %2228 = vrot.lane.b32.xlu1 %v2202_v48, %s5652_s20  ;;  %v2324_v61 = vmul.f32 %v10265_v19, %v6576_v29 }
 0x5f2   : > { %v2197_v5 = vmul.f32 %v2188_v56, %v2163_v28  ;;  %v2728_v56 = vadd.f32 %v10326_v22, %v2662_v41 }
 0x5f3   : > { %2899 = vrot.lane.b32.xlu0 %v2879_v43, %s5656_s2  ;;  %v2868_v43 = vsel %vm1686_vm10, %v10321_v40, %v10338_v1  ;;  %v10340_v40 = vld [vmem:[#allocation67_spill] sm:$0xff] }
 0x5f4   : > { %v2887_v48 = vadd.f32 %v2868_v43, %v2821_v51  ;;  %v3057_v44 = vmul.f32 %v10340_v40, %v6561_v21  ;;  %v2306_v51 = vadd.f32 %v2296_v20, %v7512_v23  ;;  %v2299_v43 = vmul.f32 %v10260_v42, %v6561_v21  ;;  %v10343_v20 = vld [vmem:[#allocation90_spill] sm:$0xff] }
 0x5f5   : > { %v7725_v37 = vpop.permute.xlu0 %4338  ;;  %v2746_v23 = vmul.f32 0.0, %v10316_v53 }
 0x5f6   : > { %10335 = vst [vmem:[#allocation43_spill] sm:$0xff] %v7725_v37  ;;  %v5573_v37 = vld [vmem:[%s9689_s5 + $0x8] sm:$0xff]  ;;  %v3067_v28 = vadd.f32 %v3057_v44, %v3039_v50 }
 0x5f7   : > { %v7736_v30 = vpop.permute.xlu2 %3816  ;;  %v2756_v41 = vadd.f32 %v2746_v23, %v2728_v56  ;;  %v2291_v23 = vmul.f32 0.0, %v10272_v60 }
 0x5f8   : > { %10339 = vst [vmem:[#allocation121_spill] sm:$0xff] %v7736_v30  ;;  %5525 = vset.pattern.permute.xlu2 %v5657_v17  ;;  %v2334_v17 = vadd.f32 %v2324_v61, %v2306_v51 }
 0x5f9   : > { %4370 = vperm.xlu2 %5525, %v5573_v37   ;;  %2218 = vrot.lane.b32.xlu1 %v2197_v5, %s5652_s20  ;;  %v7750_v52 = vpop.permute.xlu1 %4036  ;;  %v2281_v37 = vmul.f32 %v10262_v36, %v6641_v45  ;;  %v10344_v5 = vld [vmem:[#allocation78_spill] sm:$0xff]  ;;  %v2822_v61 = vadd.f32 %v10333_v6, %v2756_v41 }
 0x5fa   : > { %10341 = vst [vmem:[#allocation76_spill] sm:$0xff] %v7750_v52  ;;  %v3087_v52 = vsel %vm3085_vm2, %v10344_v5, %v10343_v20  ;;  %v2367_v50 = vmul.f32 %v10270_v46, %v2334_v17  ;;  %v10350_v17 = vld [vmem:[#allocation65_spill] sm:$0xff] }
 0x5fb   : > { %2915 = vrot.lane.b32.xlu0 %v2887_v48, %s5656_s2  ;;  %v4229_v48 = vperm.slane %v7430_v14, 0  ;;  %v3101_v22 = vmul.f32 %v3087_v52, %v3067_v28  ;;  %v2309_v44 = vadd.f32 %v2299_v43, %v2281_v37  ;;  %v2327_v14 = vmul.f32 %v10265_v19, %v6592_v24  ;;  %v10348_v28 = vld [vmem:[#allocation11_spill] sm:$0xff]  ;;  %v10349_v37 = vld [vmem:[#allocation112_spill] sm:$0xff] }
 0x5fc   : > { %v3015_v43 = vsel %vm1686_vm10, %v10349_v37, %v10348_v28 }
 0x5fd   : > { %v7753_v3 = vpop.permute.xlu0 %4237  ;;  %v2337_v56 = vadd.f32 %v2327_v14, %v2309_v44  ;;  %v2319_v44 = vmul.f32 %v10279_v9, %v6445_v10 }
 0x5fe   : > { %10342 = vst [vmem:[#allocation178_spill] sm:$0xff] %v7753_v3  ;;  %v2888_v3 = vadd.f32 %v10338_v1, %v2822_v61  ;;  %v2063_v1 = vmul.f32 0.0, %v10247_v55  ;;  %v10354_v61 = vld [vmem:[#allocation39_spill] sm:$0xff] }
 0x5ff   : > { %v7764_v30 = vpop.permute.xlu2 %3832 }
 0x600   : > { %10345 = vst [vmem:[#allocation90_spill] sm:$0xff] %v7764_v30 }
 0x601   : > { %4233 = vrot.lane.b32.xlu2 %v4229_v48, %s5649_s22  ;;  %2392 = vrot.lane.b32.xlu1 %v2367_v50, %s5589_s21  ;;  %v2958_v48 = vmul.f32 %v10350_v17, %v6435_v39  ;;  %v10352_v50 = vld [vmem:[#allocation59_spill] sm:$0xff] }
 0x602   : > { %v7773_v51 = vpop.permute.xlu1 %4175  ;;  %v2356_v6 = vsel %vm1424_vm14, %v10352_v50, %v10289_v27 }
 0x603   : > { %3128 = vrot.lane.b32.xlu0 %v3101_v22, %s5658_s19  ;;  %10346 = vst [vmem:[#allocation179_spill] sm:$0xff] %v7773_v51  ;;  %v3034_v41 = vadd.f32 %v3015_v43, %v2958_v48  ;;  %v2370_v14 = vmul.f32 %v2356_v6, %v2337_v56  ;;  %v10353_v51 = vld [vmem:[#allocation87_spill] sm:$0xff]  ;;  %v2120_v56 = vsel %vm1686_vm10, %v10354_v61, %v10323_v15 }
 0x604   : > { %v3052_v37 = vmul.f32 %v10353_v51, %v6428_v7  ;;  %v2139_v15 = vadd.f32 %v2120_v56, %v2063_v1 }
 0x605   : > { %v7775_v30 = vpop.permute.xlu0 %4400 }
 0x606   : > { %10347 = vst [vmem:[#allocation180_spill] sm:$0xff] %v7775_v30  ;;  %v5574_v30 = vld [vmem:[%s9689_s5] sm:$0xff]  ;;  %v3062_v43 = vadd.f32 %v3052_v37, %v3034_v41  ;;  %v10357_v37 = vld [vmem:[#allocation84_spill] sm:$0xff] }
 0x607   : > { %v7783_v22 = vpop.permute.xlu2 %4004  ;;  %v3177_v41 = vmul.f32 %v10357_v37, %v6576_v29 }
 0x608   : > { %10351 = vst [vmem:[#allocation11_spill] sm:$0xff] %v7783_v22  ;;  %v2301_v22 = vadd.f32 %v2291_v23, %v7547_v16  ;;  %v4397_v23 = vperm.slane %v7448_v47, 1  ;;  %v2322_v47 = vmul.f32 %v10279_v9, %v6455_v57 }
 0x609   : > { %4366 = vperm.xlu2 %5525, %v5574_v30   ;;  %2398 = vrot.lane.b32.xlu1 %v2370_v14, %s5589_s21  ;;  %v2276_v30 = vmul.f32 %v10274_v54, %v6435_v39  ;;  %v10358_v14 = vld [vmem:[#allocation70_spill] sm:$0xff] }
 0x60a   : > { %v7803_v48 = vpop.permute.xlu1 %3822  ;;  %v2329_v16 = vadd.f32 %v2319_v44, %v2301_v22  ;;  %v3195_v40 = vmul.f32 %v10358_v14, %v6641_v45  ;;  %v2167_v44 = vadd.f32 %v2157_v25, %v2139_v15  ;;  %v3263_v25 = vsel %vm3262_vm3, %v7319_v33, %v7202_v2  ;;  %v10377_v2 = vld [vmem:[#allocation102_spill] sm:$0xff] }
 0x60b   : > { %2917 = vrot.lane.b32.xlu0 %v2888_v3, %s5656_s2  ;;  %10355 = vst [vmem:[#allocation65_spill] sm:$0xff] %v7803_v48  ;;  %v2294_v3 = vmul.f32 %v10272_v60, %v6428_v7  ;;  %v3096_v48 = vmul.f32 %v3087_v52, %v3062_v43  ;;  %v10360_v52 = vld [vmem:[#allocation88_spill] sm:$0xff]  ;;  %v10361_v43 = vld [vmem:[#allocation41_spill] sm:$0xff]  ;;  %v2959_v15 = vmul.f32 %v10350_v17, %v6428_v7 }
 0x60c   : > { %v2362_v13 = vmul.f32 %v10270_v46, %v2329_v16  ;;  %v3205_v22 = vadd.f32 %v3195_v40, %v3177_v41  ;;  %v3233_v46 = vmul.f32 %v10360_v52, %v6561_v21  ;;  %v2116_v1 = vsel %vm1686_vm10, %v10361_v43, %v10329_v49 }
 0x60d   : > { %v7805_v5 = vpop.permute.xlu0 %4406  ;;  %v2444_v41 = vmul.f32 %v10287_v4, %v6576_v29 }
 0x60e   : > { %10356 = vst [vmem:[#allocation59_spill] sm:$0xff] %v7805_v5  ;;  %v2304_v5 = vadd.f32 %v2294_v3, %v2276_v30  ;;  %v3243_v3 = vadd.f32 %v3233_v46, %v3205_v22 }
 0x610   : > { %v7816_v61 = vpop.permute.xlu2 %4157 }
 0x611   : > { %10359 = vst [vmem:[#allocation87_spill] sm:$0xff] %v7816_v61  ;;  %4402 = vrot.lane.b32.xlu2 %v4397_v23, %s5650_s23  ;;  %2382 = vrot.lane.b32.xlu1 %v2362_v13, %s5589_s21  ;;  %v10364_v13 = vld [vmem:[#allocation19_spill] sm:$0xff] }
 0x612   : > { %5528 = vset.pattern.permute.xlu2 %v10241_v38  ;;  %v7832_v56 = vpop.permute.xlu1 %3901  ;;  %v2058_v38 = vmul.f32 0.0, %v10254_v34  ;;  %v2501_v30 = vsel %vm1686_vm10, %v10364_v13, %v10286_v59  ;;  %v10365_v23 = vld [vmem:[#allocation107_spill] sm:$0xff]  ;;  %v2152_v59 = vmul.f32 %v10259_v32, %v6445_v10 }
 0x613   : > { %3118 = vrot.lane.b32.xlu0 %v3096_v48, %s5658_s19  ;;  %10362 = vst [vmem:[#allocation39_spill] sm:$0xff] %v7832_v56  ;;  %v2332_v48 = vadd.f32 %v2322_v47, %v2304_v5  ;;  %v3016_v49 = vsel %vm1686_vm10, %v10348_v28, %v10365_v23  ;;  %v2201_v5 = vmul.f32 %v10331_v12, %v2167_v44 }
 0x614   : > { %v2134_v16 = vadd.f32 %v2116_v1, %v2058_v38  ;;  %v3277_v47 = vmul.f32 %v3263_v25, %v3243_v3  ;;  %v2520_v22 = vadd.f32 %v2501_v30, %v2444_v41  ;;  %v3035_v46 = vadd.f32 %v3016_v49, %v2959_v15 }
 0x615   : > { %v7834_v40 = vpop.permute.xlu0 %2230  ;;  %v2538_v44 = vmul.f32 %v10291_v35, %v6641_v45  ;;  %v2277_v1 = vmul.f32 %v10274_v54, %v6428_v7  ;;  %v7878_v41 = vsel %vm3085_vm2, %v10343_v20, %v7330_v62  ;;  %v2323_v20 = vmul.f32 0.0, %v10279_v9 }
 0x616   : > { %10363 = vst [vmem:[#allocation84_spill] sm:$0xff] %v7834_v40  ;;  %v2365_v40 = vmul.f32 %v2356_v6, %v2332_v48  ;;  %v2162_v28 = vadd.f32 %v2152_v59, %v2134_v16  ;;  %v3053_v6 = vmul.f32 %v10353_v51, %v6455_v57  ;;  %v10367_v48 = vld [vmem:[#allocation122_spill] sm:$0xff]  ;;  %v2295_v16 = vmul.f32 %v10272_v60, %v6455_v57  ;;  %v10371_v59 = vld [vmem:[#allocation71_spill] sm:$0xff] }
 0x617   : > { %v2123_v38 = vsel %vm1686_vm10, %v6901_v26, %v10367_v48  ;;  %v2548_v49 = vadd.f32 %v2538_v44, %v2520_v22  ;;  %10370 = vst [vmem:[#allocation107_spill] sm:$0xff] %v7878_v41 }
 0x618   : > { %v7851_v43 = vpop.permute.xlu2 %3690  ;;  %v2196_v26 = vmul.f32 %v10331_v12, %v2162_v28  ;;  %v2160_v12 = vmul.f32 %v10250_v8, %v6592_v24 }
 0x619   : > { %10366 = vst [vmem:[#allocation70_spill] sm:$0xff] %v7851_v43  ;;  %2226 = vrot.lane.b32.xlu2 %v2201_v5, %s5652_s20  ;;  %2388 = vrot.lane.b32.xlu1 %v2365_v40, %s5589_s21  ;;  %v2066_v40 = vmul.f32 %v10247_v55, %v6561_v21  ;;  %v3063_v5 = vadd.f32 %v3053_v6, %v3035_v46 }
 0x61a   : > { %v7867_v30 = vpop.permute.xlu1 %4153  ;;  %v2305_v46 = vadd.f32 %v2295_v16, %v2277_v1  ;;  %v2280_v6 = vmul.f32 %v10262_v36, %v6576_v29  ;;  %v10378_v36 = vld [vmem:[#allocation52_spill] sm:$0xff] }
 0x61b   : > { %3303 = vrot.lane.b32.xlu0 %v3277_v47, %s5659_s25  ;;  %10368 = vst [vmem:[#allocation41_spill] sm:$0xff] %v7867_v30  ;;  %v2142_v15 = vadd.f32 %v2123_v38, %v2066_v40  ;;  %v7884_v47 = vsel %vm2567_vm15, %v10305_v18, %v10298_v31  ;;  %v10372_v30 = vld [vmem:[#allocation73_spill] sm:$0xff]  ;;  %v3097_v44 = vmul.f32 %v7878_v41, %v3063_v5  ;;  %vm4241_vm15 = vcmask 130048  }
 0x61c   : > { %v3190_v22 = vmul.f32 %v10372_v30, %v6435_v39  ;;  %v2582_v28 = vmul.f32 %v7884_v47, %v2548_v49  ;;  %v3228_v31 = vmul.f32 %v7160_v11, %v6428_v7  ;;  %v2298_v38 = vmul.f32 %v10260_v42, %v6641_v45  ;;  %v10379_v30 = vld [vmem:[#allocation66_spill] sm:$0xff] }
 0x61d   : > { %v7869_v3 = vpop.permute.xlu0 %2220  ;;  %v2170_v40 = vadd.f32 %v2160_v12, %v2142_v15  ;;  %v2333_v49 = vadd.f32 %v2323_v20, %v2305_v46  ;;  %v2440_v11 = vmul.f32 %v10378_v36, %v6435_v39  ;;  %v10381_v46 = vld [vmem:[#allocation75_spill] sm:$0xff] }
 0x61e   : > { %10369 = vst [vmem:[#allocation19_spill] sm:$0xff] %v7869_v3  ;;  %v3172_v3 = vmul.f32 %v10371_v59, %v6445_v10  ;;  %v2308_v59 = vadd.f32 %v2298_v38, %v2280_v6 }
 0x61f   : > { %v2204_v42 = vmul.f32 %v10379_v30, %v2170_v40  ;;  %v10384_v40 = vld [vmem:[#allocation20_spill] sm:$0xff] }
 0x620   : > { %v7891_v61 = vpop.permute.xlu2 %3899  ;;  %v3200_v1 = vadd.f32 %v3190_v22, %v3172_v3  ;;  %v2326_v3 = vmul.f32 %v10265_v19, %v6561_v21  ;;  %v2366_v22 = vmul.f32 %v10289_v27, %v2333_v49  ;;  %v10386_v27 = vld [vmem:[#allocation24_spill] sm:$0xff] }
 0x621   : > { %10373 = vst [vmem:[#allocation122_spill] sm:$0xff] %v7891_v61  ;;  %2216 = vrot.lane.b32.xlu2 %v2196_v26, %s5652_s20  ;;  %2608 = vrot.lane.b32.xlu1 %v2582_v28, %s5654_s29  ;;  %v10376_v26 = vld [vmem:[#allocation97_spill] sm:$0xff]  ;;  %v3353_v28 = vmul.f32 0.0, %v10381_v46 }
 0x622   : > { %v2498_v41 = vsel %vm1686_vm10, %v10377_v2, %v10376_v26  ;;  %v2336_v38 = vadd.f32 %v2326_v3, %v2308_v59  ;;  %v2659_v59 = vmul.f32 %v10310_v0, %v6576_v29 }
 0x623   : > { %3120 = vrot.lane.b32.xlu0 %v3097_v44, %s5658_s19  ;;  %v7908_v5 = vpop.permute.xlu1 %4324  ;;  %v3238_v44 = vadd.f32 %v3228_v31, %v3200_v1  ;;  %v2516_v20 = vadd.f32 %v2498_v41, %v2440_v11  ;;  %v10382_v31 = vld [vmem:[#allocation138_spill] sm:$0xff]  ;;  %v3429_v19 = vadd.f32 %v10384_v40, %v3353_v28  ;;  %v10385_v1 = vld [vmem:[#allocation120_spill] sm:$0xff]  ;;  %v2743_v40 = vmul.f32 %v10316_v53, %v6641_v45 }
 0x624   : > { %10375 = vst [vmem:[#allocation182_spill] sm:$0xff] %v7908_v5  ;;  %v3447_v6 = vmul.f32 %v10382_v31, %v6576_v29  ;;  %v2706_v11 = vsel %vm1686_vm10, %v10386_v27, %v10385_v1  ;;  %v10390_v5 = vld [vmem:[#allocation21_spill] sm:$0xff] }
 0x625   : > { %v7906_v16 = vpop.permute.xlu0 %2394  ;;  %v3272_v15 = vmul.f32 %v3263_v25, %v3238_v44  ;;  %v10383_v25 = vld [vmem:[#allocation58_spill] sm:$0xff]  ;;  %v2067_v44 = vmul.f32 %v10247_v55, %v6592_v24  ;;  %v2725_v1 = vadd.f32 %v2706_v11, %v2659_v59  ;;  %v2960_v55 = vmul.f32 %v10350_v17, %v6455_v57 }
 0x626   : > { %10374 = vst [vmem:[#allocation181_spill] sm:$0xff] %v7906_v16  ;;  %v2534_v30 = vmul.f32 %v10383_v25, %v6428_v7  ;;  %v3054_v11 = vmul.f32 0.0, %v10353_v51  ;;  %v10396_v59 = vld [vmem:[#allocation26_spill] sm:$0xff] }
 0x627   : > { %v2143_v16 = vadd.f32 %v10367_v48, %v2067_v44 }
 0x628   : > { %v7916_v12 = vpop.permute.xlu2 %4032  ;;  %v2544_v49 = vadd.f32 %v2534_v30, %v2516_v20  ;;  %v3017_v20 = vsel %vm1686_vm10, %v10365_v23, %v10390_v5  ;;  %v10391_v30 = vld [vmem:[#allocation35_spill] sm:$0xff]  ;;  %v2275_v23 = vmul.f32 %v10274_v54, %v6445_v10  ;;  %v2293_v5 = vmul.f32 %v10272_v60, %v6435_v39 }
 0x629   : > { %10380 = vst [vmem:[#allocation97_spill] sm:$0xff] %v7916_v12  ;;  %2232 = vrot.lane.b32.xlu2 %v2204_v42, %s5652_s20  ;;  %2390 = vrot.lane.b32.xlu1 %v2366_v22, %s5589_s21  ;;  %v3457_v22 = vadd.f32 %v3447_v6, %v3429_v19  ;;  %v3036_v48 = vadd.f32 %v3017_v20, %v2960_v55  ;;  %v10400_v55 = vld [vmem:[#allocation137_spill] sm:$0xff] }
 0x62a   : > { %v2753_v19 = vadd.f32 %v2743_v40, %v2725_v1  ;;  %v2303_v60 = vadd.f32 %v2293_v5, %v2275_v23 }
 0x62b   : > { %3293 = vrot.lane.b32.xlu0 %v3272_v15, %s5659_s25  ;;  %v7939_v42 = vpop.permute.xlu1 %3824  ;;  %v10389_v15 = vld [vmem:[#allocation54_spill] sm:$0xff] }
 0x62c   : > { %10388 = vst [vmem:[#allocation52_spill] sm:$0xff] %v7939_v42  ;;  %v2355_v3 = vsel %vm1424_vm14, %v10389_v15, %v10352_v50  ;;  %v2161_v42 = vmul.f32 0.0, %v10250_v8  ;;  %v10392_v50 = vld [vmem:[#allocation55_spill] sm:$0xff]  ;;  %v10397_v15 = vld [vmem:[#allocation62_spill] sm:$0xff] }
 0x62d   : > { %v7933_v41 = vpop.permute.xlu0 %2222  ;;  %v2369_v28 = vmul.f32 %v2355_v3, %v2336_v38  ;;  %v2578_v6 = vmul.f32 %v10392_v50, %v2544_v49  ;;  %v3348_v50 = vmul.f32 0.0, %v10400_v55 }
 0x62e   : > { %10387 = vst [vmem:[#allocation102_spill] sm:$0xff] %v7933_v41  ;;  %v3491_v41 = vmul.f32 %v10391_v30, %v3457_v22  ;;  %v2171_v8 = vadd.f32 %v2161_v42, %v2143_v16  ;;  %v10398_v22 = vld [vmem:[#allocation124_spill] sm:$0xff]  ;;  %v2447_v16 = vmul.f32 %v10287_v4, %v6592_v24  ;;  %v10399_v42 = vld [vmem:[#allocation42_spill] sm:$0xff] }
 0x62f   : > { %v2866_v54 = vsel %vm1686_vm10, %v10398_v22, %v7193_v58  ;;  %v10402_v58 = vld [vmem:[#allocation146_spill] sm:$0xff] }
 0x630   : > { %v2205_v1 = vmul.f32 %v10399_v42, %v2171_v8  ;;  %v2541_v8 = vmul.f32 0.0, %v10291_v35 }
 0x631   : > { %v7955_v38 = vpop.permute.xlu2 %4203  ;;  %2396 = vrot.lane.b32.xlu2 %v2369_v28, %s5589_s21  ;;  %2600 = vrot.lane.b32.xlu1 %v2578_v6, %s5654_s29  ;;  %v3064_v28 = vadd.f32 %v3054_v11, %v3036_v48  ;;  %v2321_v6 = vmul.f32 %v10279_v9, %v6428_v7  ;;  %v3424_v48 = vadd.f32 %v10402_v58, %v3348_v50  ;;  %v10405_v11 = vld [vmem:[#allocation136_spill] sm:$0xff]  ;;  %v10412_v58 = vld [vmem:[#allocation130_spill] sm:$0xff] }
 0x632   : > { %10393 = vst [vmem:[#allocation66_spill] sm:$0xff] %v7955_v38 }
 0x633   : > { %3516 = vrot.lane.b32.xlu0 %v3491_v41, %s5660_s26  ;;  %v7967_v44 = vpop.permute.xlu1 %4068  ;;  %v2800_v41 = vsel %vm1686_vm10, %v10397_v15, %v10396_v59  ;;  %v3098_v20 = vmul.f32 %v7330_v62, %v3064_v28  ;;  %v10401_v59 = vld [vmem:[#allocation30_spill] sm:$0xff]  ;;  %v2331_v5 = vadd.f32 %v2321_v6, %v2303_v60  ;;  %v10409_v60 = vld [vmem:[#allocation100_spill] sm:$0xff]  ;;  %v10424_v62 = vld [vmem:[#allocation81_spill] sm:$0xff] }
 0x634   : > { %10395 = vst [vmem:[#allocation138_spill] sm:$0xff] %v7967_v44  ;;  %v2819_v40 = vadd.f32 %v2800_v41, %v2753_v19  ;;  %v10404_v19 = vld [vmem:[#allocation53_spill] sm:$0xff]  ;;  %v3442_v41 = vmul.f32 %v10405_v11, %v6445_v10  ;;  %v10410_v6 = vld [vmem:[#allocation74_spill] sm:$0xff]  ;;  %v2962_v38 = vmul.f32 %v10424_v62, %v6576_v29  ;;  %v10425_v11 = vld [vmem:[#allocation36_spill] sm:$0xff]  ;;  %v2156_v62 = vmul.f32 0.0, %v10259_v32 }
 0x635   : > { %v7965_v49 = vpop.permute.xlu0 %2384  ;;  %v2500_v9 = vsel %vm1686_vm10, %v10404_v19, %v10364_v13  ;;  %v10411_v19 = vld [vmem:[#allocation149_spill] sm:$0xff]  ;;  %v10434_v32 = vld [vmem:[#allocation94_spill] sm:$0xff] }
 0x636   : > { %10394 = vst [vmem:[#allocation75_spill] sm:$0xff] %v7965_v49  ;;  %v2523_v49 = vadd.f32 %v10401_v59, %v2447_v16  ;;  %v2885_v44 = vadd.f32 %v2866_v54, %v2819_v40  ;;  %v2443_v16 = vmul.f32 0.0, %v10287_v4  ;;  %v3452_v50 = vadd.f32 %v3442_v41, %v3424_v48 }
 0x637   : > { %v2655_v59 = vmul.f32 %v10410_v6, %v6435_v39 }
 0x638   : > { %v2551_v28 = vadd.f32 %v2541_v8, %v2523_v49  ;;  %v2519_v13 = vadd.f32 %v2500_v9, %v2443_v16  ;;  %v3356_v49 = vmul.f32 %v10381_v46, %v6561_v21  ;;  %v3486_v4 = vmul.f32 %v10391_v30, %v3452_v50  ;;  %v10415_v16 = vld [vmem:[#allocation111_spill] sm:$0xff] }
 0x639   : > { %2234 = vrot.lane.b32.xlu2 %v2205_v1, %s5652_s20  ;;  %2911 = vrot.lane.b32.xlu1 %v2885_v44, %s5656_s2  ;;  %v10408_v1 = vld [vmem:[#allocation96_spill] sm:$0xff]  ;;  %v2364_v44 = vmul.f32 %v2355_v3, %v2331_v5  ;;  %v2739_v9 = vmul.f32 %v10322_v63, %v6428_v7 }
 0x63a   : > { %v7985_v23 = vpop.permute.xlu2 %4342 }
 0x63b   : > { %10403 = vst [vmem:[#allocation58_spill] sm:$0xff] %v7985_v23  ;;  %3122 = vrot.lane.b32.xlu0 %v3098_v20, %s5658_s19  ;;  %v7998_v40 = vpop.permute.xlu1 %4320  ;;  %v2704_v20 = vsel %vm1686_vm10, %v10409_v60, %v10408_v1  ;;  %v3412_v23 = vsel %vm1686_vm10, %v10412_v58, %v10411_v19  ;;  %v10428_v58 = vld [vmem:[#allocation152_spill] sm:$0xff] }
 0x63c   : > { %10407 = vst [vmem:[#allocation24_spill] sm:$0xff] %v7998_v40  ;;  %v2721_v8 = vadd.f32 %v2704_v20, %v2655_v59  ;;  %v10413_v40 = vld [vmem:[#allocation86_spill] sm:$0xff]  ;;  %v3432_v3 = vadd.f32 %v3412_v23, %v3356_v49  ;;  %v10416_v20 = vld [vmem:[#allocation101_spill] sm:$0xff]  ;;  %v2062_v23 = vmul.f32 %v10254_v34, %v6455_v57 }
 0x63d   : > { %v7995_v54 = vpop.permute.xlu0 %2400  ;;  %v2585_v48 = vmul.f32 %v10413_v40, %v2551_v28  ;;  %v2798_v50 = vsel %vm1686_vm10, %v10416_v20, %v10415_v16  ;;  %v10418_v59 = vld [vmem:[#allocation22_spill] sm:$0xff]  ;;  %v10419_v49 = vld [vmem:[#allocation173_spill] sm:$0xff] }
 0x63e   : > { %10406 = vst [vmem:[#allocation120_spill] sm:$0xff] %v7995_v54  ;;  %v2537_v54 = vmul.f32 %v10291_v35, %v6576_v29  ;;  %v3450_v35 = vmul.f32 %v10382_v31, %v6592_v24  ;;  %v10430_v40 = vld [vmem:[#allocation142_spill] sm:$0xff] }
 0x640   : > { %v2547_v41 = vadd.f32 %v2537_v54, %v2519_v13  ;;  %v8033_v54 = vsel %vm3477_vm4, %v10419_v49, %v10418_v59  ;;  %v3460_v34 = vadd.f32 %v3450_v35, %v3432_v3  ;;  %v10429_v49 = vld [vmem:[#allocation154_spill] sm:$0xff]  ;;  %v10431_v3 = vld [vmem:[#allocation155_spill] sm:$0xff] }
 0x641   : > { %2386 = vrot.lane.b32.xlu2 %v2364_v44, %s5589_s21  ;;  %2614 = vrot.lane.b32.xlu1 %v2585_v48, %s5654_s29  ;;  %v2749_v44 = vadd.f32 %v2739_v9, %v2721_v8  ;;  %10420 = vst [vmem:[#allocation55_spill] sm:$0xff] %v8033_v54  ;;  %v10423_v48 = vld [vmem:[#allocation104_spill] sm:$0xff]  ;;  %s5661_s21 = smov 38  }
 0x642   : > { %v8015_v5 = vpop.permute.xlu2 %4066  ;;  %v10427_v8 = vld [vmem:[#allocation16_spill] sm:$0xff]  ;;  %v3494_v43 = vmul.f32 %v8033_v54, %v3460_v34 }
 0x643   : > { %10414 = vst [vmem:[#allocation54_spill] sm:$0xff] %v8015_v5  ;;  %3506 = vrot.lane.b32.xlu0 %v3486_v4, %s5660_s26  ;;  %v8035_v13 = vpop.permute.xlu1 %4072  ;;  %v10422_v4 = vld [vmem:[#allocation116_spill] sm:$0xff]  ;;  %v2138_v9 = vadd.f32 %v10427_v8, %v2062_v23  ;;  %v2815_v12 = vadd.f32 %v2798_v50, %v2749_v44  ;;  %v3626_v5 = vsel %vm1686_vm10, %v10429_v49, %v10428_v58  ;;  %v10437_v44 = vld [vmem:[#allocation57_spill] sm:$0xff]  ;;  %v10440_v8 = vld [vmem:[#allocation163_spill] sm:$0xff] }
 0x644   : > { %10421 = vst [vmem:[#allocation26_spill] sm:$0xff] %v8035_v13  ;;  %v2864_v30 = vsel %vm1686_vm10, %v10423_v48, %v10422_v4  ;;  %v2581_v13 = vmul.f32 %v10305_v18, %v2547_v41  ;;  %v3570_v48 = vmul.f32 %v10430_v40, %v6641_v45  ;;  %v3664_v50 = vmul.f32 %v10431_v3, %v6561_v21  ;;  %v10433_v41 = vld [vmem:[#allocation67_spill] sm:$0xff]  ;;  %v10491_v3 = vld [vmem:[#allocation6_spill] sm:$0xff]  ;;  %v10493_v49 = vld [vmem:[#allocation61_spill] sm:$0xff] }
 0x645   : > { %v8026_v28 = vpop.permute.xlu0 %2610  ;;  %v2881_v20 = vadd.f32 %v2864_v30, %v2815_v12  ;;  %v2166_v18 = vadd.f32 %v2156_v62, %v2138_v9  ;;  %v3056_v23 = vmul.f32 %v10433_v41, %v6641_v45  ;;  %v2497_v12 = vsel %vm1686_vm10, %v10434_v32, %v10377_v2  ;;  %v10442_v32 = vld [vmem:[#allocation79_spill] sm:$0xff] }
 0x646   : > { %10417 = vst [vmem:[#allocation21_spill] sm:$0xff] %v8026_v28  ;;  %v10426_v28 = vld [vmem:[#allocation13_spill] sm:$0xff]  ;;  %v2656_v2 = vmul.f32 %v10410_v6, %v6428_v7  ;;  %v3357_v58 = vmul.f32 %v10381_v46, %v6592_v24 }
 0x647   : > { %v3018_v55 = vsel %vm1686_vm10, %v10426_v28, %v10425_v11  ;;  %v3646_v11 = vadd.f32 %v3626_v5, %v3570_v48  ;;  %v10436_v5 = vld [vmem:[#allocation34_spill] sm:$0xff]  ;;  %v2200_v9 = vmul.f32 %v10399_v42, %v2166_v18  ;;  %v2658_v18 = vmul.f32 0.0, %v10310_v0 }
 0x648   : > { %v3038_v33 = vadd.f32 %v3018_v55, %v2962_v38  ;;  %v2439_v38 = vmul.f32 %v10378_v36, %v6445_v10  ;;  %v2957_v0 = vmul.f32 %v10350_v17, %v6445_v10 }
 0x649   : > { %2606 = vrot.lane.b32.xlu2 %v2581_v13, %s5654_s29  ;;  %2903 = vrot.lane.b32.xlu1 %v2881_v20, %s5656_s2  ;;  %v10439_v13 = vld [vmem:[#allocation108_spill] sm:$0xff]  ;;  %v3674_v48 = vadd.f32 %v3664_v50, %v3646_v11  ;;  %v2533_v11 = vmul.f32 %v10383_v25, %v6435_v39 }
 0x64a   : > { %v8057_v35 = vpop.permute.xlu2 %4199  ;;  %v3066_v55 = vadd.f32 %v3056_v23, %v3038_v33  ;;  %v2705_v20 = vsel %vm1686_vm10, %v10408_v1, %v10439_v13  ;;  %v2515_v34 = vadd.f32 %v2497_v12, %v2439_v38  ;;  %v3413_v33 = vsel %vm1686_vm10, %v10411_v19, %v10440_v8  ;;  %v10441_v23 = vld [vmem:[#allocation78_spill] sm:$0xff] }
 0x64b   : > { %10432 = vst [vmem:[#allocation62_spill] sm:$0xff] %v8057_v35  ;;  %3522 = vrot.lane.b32.xlu0 %v3494_v43, %s5660_s26  ;;  %v8073_v43 = vsel %vm3692_vm5, %v10437_v44, %v10436_v5  ;;  %v8075_v62 = vpop.permute.xlu1 %4235  ;;  %v2722_v50 = vadd.f32 %v2705_v20, %v2656_v2  ;;  %v3433_v38 = vadd.f32 %v3413_v33, %v3357_v58  ;;  %v10444_v8 = vld [vmem:[#allocation114_spill] sm:$0xff]  ;;  %v3451_v20 = vmul.f32 0.0, %v10382_v31 }
 0x64c   : > { %10438 = vst [vmem:[#allocation42_spill] sm:$0xff] %v8075_v62  ;;  %v3708_v1 = vmul.f32 %v8073_v43, %v3674_v48  ;;  %v2543_v42 = vadd.f32 %v2533_v11, %v2515_v34  ;;  %v2740_v19 = vmul.f32 %v10322_v63, %v6455_v57  ;;  %v2724_v34 = vadd.f32 %v10386_v27, %v2658_v18  ;;  %v10449_v11 = vld [vmem:[#allocation48_spill] sm:$0xff]  ;;  %v10451_v27 = vld [vmem:[#allocation165_spill] sm:$0xff] }
 0x64d   : > { %v8066_v30 = vpop.permute.xlu0 %2596 }
 0x64e   : > { %10435 = vst [vmem:[#allocation124_spill] sm:$0xff] %v8066_v30  ;;  %v3086_v30 = vsel %vm3085_vm2, %v10442_v32, %v10441_v23  ;;  %v2750_v2 = vadd.f32 %v2740_v19, %v2722_v50  ;;  %v10448_v23 = vld [vmem:[#allocation12_spill] sm:$0xff]  ;;  %v2742_v50 = vmul.f32 %v10316_v53, %v6576_v29  ;;  %v10450_v19 = vld [vmem:[#allocation25_spill] sm:$0xff]  ;;  %v3051_v53 = vmul.f32 %v10353_v51, %v6435_v39 }
 0x64f   : > { %v3100_v12 = vmul.f32 %v3086_v30, %v3066_v55  ;;  %v2799_v55 = vsel %vm1686_vm10, %v10415_v16, %v10444_v8  ;;  %v2865_v16 = vsel %vm1686_vm10, %v10422_v4, %v10449_v11  ;;  %v3622_v18 = vsel %vm1686_vm10, %v10451_v27, %v10450_v19  ;;  %v10490_v27 = vld [vmem:[#allocation7_spill] sm:$0xff] }
 0x650   : > { %v2752_v44 = vadd.f32 %v2742_v50, %v2724_v34  ;;  %v10459_v50 = vld [vmem:[#allocation168_spill] sm:$0xff]  ;;  %vm2021_vm2 = vcmask 441344  }
 0x651   : > { %2224 = vrot.lane.b32.xlu2 %v2200_v9, %s5652_s20  ;;  %3126 = vrot.lane.b32.xlu1 %v3100_v12, %s5658_s19  ;;  %v10447_v9 = vld [vmem:[#allocation112_spill] sm:$0xff]  ;;  %v3461_v12 = vadd.f32 %v3451_v20, %v3433_v38  ;;  %s5662_s20 = smov 37  }
 0x653   : > { %3735 = vrot.lane.b32.xlu0 %v3708_v1, %s5661_s21  ;;  %v8100_v48 = vpop.permute.xlu2 %4370  ;;  %v8109_v33 = vpop.permute.xlu1 %4239  ;;  %v3014_v1 = vsel %vm1686_vm10, %v10448_v23, %v10447_v9  ;;  %v3495_v9 = vmul.f32 %v10418_v59, %v3461_v12  ;;  %v10458_v12 = vld [vmem:[#allocation80_spill] sm:$0xff] }
 0x654   : > { %10443 = vst [vmem:[#allocation30_spill] sm:$0xff] %v8100_v48  ;;  %v2816_v48 = vadd.f32 %v2799_v55, %v2750_v2  ;;  %v3033_v35 = vadd.f32 %v3014_v1, %v2957_v0  ;;  %v10455_v55 = vld [vmem:[#allocation171_spill] sm:$0xff]  ;;  %v2818_v2 = vadd.f32 %v10397_v15, %v2752_v44  ;;  %v10461_v15 = vld [vmem:[#allocation160_spill] sm:$0xff] }
 0x655   : > { %v8106_v58 = vpop.permute.xlu0 %2612  ;;  %10446 = vst [vmem:[#allocation96_spill] sm:$0xff] %v8109_v33  ;;  %v10452_v33 = vld [vmem:[#allocation157_spill] sm:$0xff]  ;;  %v3659_v20 = vmul.f32 %v10455_v55, %v6428_v7  ;;  %v3784_v44 = vmul.f32 %v10461_v15, %v6576_v29  ;;  %v10489_v15 = vld [vmem:[#allocation103_spill] sm:$0xff] }
 0x656   : > { %10445 = vst [vmem:[#allocation53_spill] sm:$0xff] %v8106_v58  ;;  %v2577_v58 = vmul.f32 %v7884_v47, %v2543_v42  ;;  %v3565_v54 = vmul.f32 %v10452_v33, %v6435_v39  ;;  %v2882_v62 = vadd.f32 %v2865_v16, %v2816_v48  ;;  %v10454_v47 = vld [vmem:[#allocation98_spill] sm:$0xff]  ;;  %v2884_v16 = vadd.f32 %v10398_v22, %v2818_v2 }
 0x657   : > { %v2499_v42 = vsel %vm1686_vm10, %v10376_v26, %v10454_v47  ;;  %v3194_v26 = vmul.f32 %v10358_v14, %v6576_v29  ;;  %v2654_v22 = vmul.f32 %v10410_v6, %v6445_v10  ;;  %v3566_v59 = vmul.f32 %v10452_v33, %v6428_v7 }
 0x658   : > { %v3641_v4 = vadd.f32 %v3622_v18, %v3565_v54  ;;  %v2441_v54 = vmul.f32 %v10378_v36, %v6428_v7  ;;  %v3840_v18 = vsel %vm1686_vm10, %v10459_v50, %v10458_v12  ;;  %v2741_v50 = vmul.f32 0.0, %v10322_v63 }
 0x659   : > { %2598 = vrot.lane.b32.xlu2 %v2577_v58, %s5654_s29  ;;  %2905 = vrot.lane.b32.xlu1 %v2882_v62, %s5656_s2  ;;  %v3061_v58 = vadd.f32 %v3051_v53, %v3033_v35  ;;  %v3176_v62 = vmul.f32 0.0, %v10357_v37 }
 0x65a   : > { %v3669_v0 = vadd.f32 %v3659_v20, %v3641_v4  ;;  %v2517_v1 = vadd.f32 %v2499_v42, %v2441_v54  ;;  %v2535_v4 = vmul.f32 %v10383_v25, %v6455_v57  ;;  %v3860_v20 = vadd.f32 %v3840_v18, %v3784_v44 }
 0x65b   : > { %3524 = vrot.lane.b32.xlu0 %v3495_v9, %s5660_s26  ;;  %v8133_v38 = vpop.permute.xlu2 %4233  ;;  %v8145_v34 = vpop.permute.xlu1 %4404  ;;  %v10460_v9 = vld [vmem:[#allocation105_spill] sm:$0xff]  ;;  %v3095_v42 = vmul.f32 %v3086_v30, %v3061_v58  ;;  %v3232_v30 = vmul.f32 %v10360_v52, %v6641_v45  ;;  %v2738_v58 = vmul.f32 %v10322_v63, %v6435_v39  ;;  %v2657_v18 = vmul.f32 %v10410_v6, %v6455_v57  ;;  %v10472_v6 = vld [vmem:[#allocation3_spill] sm:$0xff] }
 0x65c   : > { %10453 = vst [vmem:[#allocation100_spill] sm:$0xff] %v8133_v38  ;;  %v2703_v35 = vsel %vm1686_vm10, %v10460_v9, %v10409_v60  ;;  %v3703_v53 = vmul.f32 %v8073_v43, %v3669_v0  ;;  %v2545_v54 = vadd.f32 %v2535_v4, %v2517_v1  ;;  %v3204_v60 = vadd.f32 %v3194_v26, %v3176_v62  ;;  %v10463_v43 = vld [vmem:[#allocation118_spill] sm:$0xff] }
 0x65d   : > { %v8140_v48 = vpop.permute.xlu0 %2913  ;;  %10457 = vst [vmem:[#allocation149_spill] sm:$0xff] %v8145_v34  ;;  %v2720_v2 = vadd.f32 %v2703_v35, %v2654_v22  ;;  %v3878_v0 = vmul.f32 %v10463_v43, %v6641_v45  ;;  %v8180_v62 = vsel %vm3907_vm6, %v7891_v61, %v7832_v56  ;;  %v10467_v4 = vld [vmem:[#allocation82_spill] sm:$0xff]  ;;  %v3660_v63 = vmul.f32 %v10455_v55, %v6455_v57  ;;  %v10488_v43 = vld [vmem:[#allocation104_spill] sm:$0xff] }
 0x65e   : > { %10456 = vst [vmem:[#allocation74_spill] sm:$0xff] %v8140_v48  ;;  %v3623_v22 = vsel %vm1686_vm10, %v10450_v19, %v10467_v4  ;;  %v10471_v56 = vld [vmem:[#allocation14_spill] sm:$0xff]  ;;  %v2863_v48 = vsel %vm1686_vm10, %v10489_v15, %v10488_v43  ;;  %v2536_v15 = vmul.f32 0.0, %v10383_v25  ;;  %v10495_v43 = vld [vmem:[#allocation60_spill] sm:$0xff]  ;;  %v1159_v25 = vmul.f32 %v10472_v6, %v6445_v10 }
 0x65f   : > { %v3888_v35 = vadd.f32 %v3878_v0, %v3860_v20  ;;  %v2748_v44 = vadd.f32 %v2738_v58, %v2720_v2  ;;  %v8199_v20 = vmul.f32 0.0, %v10472_v6  ;;  %v2723_v2 = vadd.f32 %v10439_v13, %v2657_v18  ;;  %v10475_v0 = vld [vmem:[#allocation68_spill] sm:$0xff]  ;;  %v10477_v18 = vld [vmem:[#allocation15_spill] sm:$0xff] }
 0x660   : > { %v3642_v58 = vadd.f32 %v3623_v22, %v3566_v59  ;;  %v10482_v22 = vld [vmem:[#allocation10_spill] sm:$0xff] }
 0x661   : > { %2909 = vrot.lane.b32.xlu2 %v2884_v16, %s5656_s2  ;;  %3116 = vrot.lane.b32.xlu1 %v3095_v42, %s5658_s19  ;;  %v10466_v16 = vld [vmem:[#allocation4_spill] sm:$0xff]  ;;  %v3922_v61 = vmul.f32 %v8180_v62, %v3888_v35 }
 0x662   : > { %v1185_v26 = vmul.f32 0.0, %v10466_v16  ;;  %v10468_v42 = vld [vmem:[#allocation28_spill] sm:$0xff] }
 0x663   : > { %3725 = vrot.lane.b32.xlu0 %v3703_v53, %s5661_s21  ;;  %v8167_v9 = vpop.permute.xlu2 %4366  ;;  %v8182_v1 = vpop.permute.xlu1 %2228  ;;  %v3242_v53 = vadd.f32 %v3232_v30, %v3204_v60  ;;  %v2579_v38 = vmul.f32 %v10468_v42, %v2545_v54  ;;  %v10473_v60 = vld [vmem:[#allocation143_spill] sm:$0xff]  ;;  %v10474_v54 = vld [vmem:[#allocation101_spill] sm:$0xff] }
 0x664   : > { %10462 = vst [vmem:[#allocation111_spill] sm:$0xff] %v8167_v9  ;;  %v1190_v9 = vmul.f32 0.0, %v10471_v56  ;;  %v2797_v30 = vsel %vm1686_vm10, %v10475_v0, %v10474_v54  ;;  %v8209_v35 = vadd.f32 %v1185_v26, %v8199_v20  ;;  %v2751_v54 = vadd.f32 %v2741_v50, %v2723_v2  ;;  %v10484_v0 = vld [vmem:[#allocation81_spill] sm:$0xff] }
 0x665   : > { %v8171_v34 = vpop.permute.xlu0 %2899  ;;  %10465 = vst [vmem:[#allocation36_spill] sm:$0xff] %v8182_v1  ;;  %v3276_v19 = vmul.f32 %v10473_v60, %v3242_v53  ;;  %v2814_v42 = vadd.f32 %v2797_v30, %v2748_v44  ;;  %v2961_v30 = vmul.f32 0.0, %v10484_v0  ;;  %v8249_v1 = vmul.f32 0.0, %v10490_v27  ;;  %v10504_v0 = vld [vmem:[#allocation69_spill] sm:$0xff] }
 0x666   : > { %10464 = vst [vmem:[#allocation116_spill] sm:$0xff] %v8171_v34  ;;  %v10469_v34 = vld [vmem:[#allocation5_spill] sm:$0xff]  ;;  %v3670_v50 = vadd.f32 %v3660_v63, %v3642_v58  ;;  %v2817_v2 = vadd.f32 %v10444_v8, %v2751_v54  ;;  %v8267_v58 = vmul.f32 0.0, %v10350_v17  ;;  %v8279_v63 = vmul.f32 %v10472_v6, %v6435_v39 }
 0x667   : > { %v8192_v12 = vmul.f32 0.0, %v10469_v34  ;;  %v3037_v40 = vadd.f32 %v10426_v28, %v2961_v30  ;;  %v3055_v28 = vmul.f32 %v10433_v41, %v6576_v29  ;;  %v8283_v17 = vmul.f32 %v10472_v6, %v6428_v7 }
 0x668   : > { %v2883_v8 = vadd.f32 %v10449_v11, %v2817_v2  ;;  %v1186_v11 = vmul.f32 %v10466_v16, %v6445_v10  ;;  %v10498_v2 = vld [vmem:[#allocation71_spill] sm:$0xff]  ;;  %v1187_v6 = vmul.f32 %v10466_v16, %v6435_v39 }
 0x669   : > { %10470 = vst [vmem:[#allocation13_spill] sm:$0xff] %v8192_v12  ;;  %2602 = vrot.lane.b32.xlu2 %v2579_v38, %s5654_s29  ;;  %3301 = vrot.lane.b32.xlu1 %v3276_v19, %s5659_s25  ;;  %v10478_v38 = vld [vmem:[#allocation8_spill] sm:$0xff]  ;;  %v8221_v59 = vadd.f32 %v1190_v9, %v8192_v12  ;;  %v8235_v19 = vsel %vm1257_vm7, %v10477_v18, %v10482_v22  ;;  %v10485_v9 = vld [vmem:[#allocation70_spill] sm:$0xff]  ;;  %v8260_v22 = vmul.f32 0.0, %v10360_v52 }
 0x66a   : > { %v8218_v53 = vsel %vm1257_vm7, %v10478_v38, %v10477_v18  ;;  %10483 = vst [vmem:[#allocation34_spill] sm:$0xff] %v8235_v19  ;;  %v8252_v18 = vmul.f32 0.0, %v10491_v3  ;;  %v3065_v30 = vadd.f32 %v3055_v28, %v3037_v40  ;;  %v10500_v40 = vld [vmem:[#allocation99_spill] sm:$0xff]  ;;  %v1164_v52 = vmul.f32 %v10469_v34, %v6576_v29 }
 0x66b   : > { %3948 = vrot.lane.b32.xlu0 %v3922_v61, %s5662_s20  ;;  %v8213_v13 = vpop.permute.xlu2 %4402  ;;  %v10479_v61 = vld [vmem:[#allocation9_spill] sm:$0xff] }
 0x66c   : > { %10476 = vst [vmem:[#allocation16_spill] sm:$0xff] %v8213_v13  ;;  %v8226_v26 = vsel %vm1257_vm7, %v10479_v61, %v10478_v38  ;;  %v8241_v13 = vsel %vm3692_vm5, %v10436_v5, %v10485_v9  ;;  %v8243_v38 = vpop.permute.xlu1 %2218  ;;  %v10494_v5 = vld [vmem:[#allocation121_spill] sm:$0xff]  ;;  %v3779_v9 = vmul.f32 %v10495_v43, %v6445_v10  ;;  %v2442_v43 = vmul.f32 %v10378_v36, %v6455_v57 }
 0x66d   : > { %10480 = vst [vmem:[#allocation67_spill] sm:$0xff] %v8226_v26  ;;  %v8230_v44 = vpop.permute.xlu0 %2915  ;;  %v3836_v12 = vsel %vm1686_vm10, %v10494_v5, %v10493_v49  ;;  %v3171_v49 = vmul.f32 0.0, %v10498_v2  ;;  %v1225_v5 = vmul.f32 %v10490_v27, %v6428_v7  ;;  %v3099_v36 = vmul.f32 %v10442_v32, %v3065_v30  ;;  %v10506_v30 = vld [vmem:[#allocation56_spill] sm:$0xff] }
 0x66e   : > { %10481 = vst [vmem:[#allocation94_spill] sm:$0xff] %v8230_v44  ;;  %v3855_v54 = vadd.f32 %v3836_v12, %v3779_v9  ;;  %v1188_v12 = vmul.f32 %v10466_v16, %v6428_v7  ;;  %v1223_v9 = vmul.f32 %v10490_v27, %v6445_v10  ;;  %v3998_v26 = vmul.f32 0.0, %v10504_v0 }
 0x66f   : > { %10486 = vst [vmem:[#allocation108_spill] sm:$0xff] %v8241_v13  ;;  %vm3134_vm7 = vcmask 367616  }
 0x670   : > { %10487 = vst [vmem:[#allocation163_spill] sm:$0xff] %v8243_v38  ;;  %v2880_v38 = vadd.f32 %v2863_v48, %v2814_v42  ;;  %v10496_v48 = vld [vmem:[#allocation73_spill] sm:$0xff] }
 0x671   : > { %10492 = vst [vmem:[#allocation78_spill] sm:$0xff] %v8252_v18  ;;  %v3704_v18 = vmul.f32 %v8241_v13, %v3670_v50  ;;  %v3189_v42 = vmul.f32 %v10496_v48, %v6445_v10  ;;  %2907 = vrot.lane.b32.xlu1 %v2883_v8, %s5656_s2  ;;  %v8308_v8 = vmul.f32 %v10498_v2, %v6428_v7 }
 0x672   : > { %2901 = vrot.lane.b32.xlu2 %v2880_v38, %s5656_s2  ;;  %v10497_v38 = vld [vmem:[#allocation125_spill] sm:$0xff]  ;;  %v3197_v7 = vmul.f32 %v10358_v14, %v6592_v24  ;;  %s5663_s2 = smov 96  }
 0x673   : > { %3727 = vrot.lane.b32.xlu0 %v3704_v18, %s5661_s21  ;;  %v3227_v50 = vmul.f32 %v10497_v38, %v6435_v39  ;;  %v8292_v13 = vpop.permute.xlu2 %2226  ;;  %v3873_v18 = vmul.f32 %v10500_v40, %v6435_v39  ;;  %10502 = vst [vmem:[#allocation112_spill] sm:$0xff] %v8308_v8  ;;  %v1192_v40 = vmul.f32 %v10471_v56, %v6641_v45 }
 0x674   : > { %10499 = vst [vmem:[#allocation79_spill] sm:$0xff] %v8292_v13  ;;  %v3199_v13 = vadd.f32 %v3189_v42, %v3171_v49  ;;  %v8312_v38 = vpop.permute.xlu1 %2392  ;;  %v2518_v8 = vadd.f32 %v10454_v47, %v2442_v43  ;;  %v8326_v49 = vmul.f32 %v10496_v48, %v6455_v57  ;;  %v1197_v42 = vadd.f32 %v1187_v6, %v1159_v25 }
 0x675   : > { %v8302_v28 = vpop.permute.xlu0 %3128  ;;  %10503 = vst [vmem:[#allocation12_spill] sm:$0xff] %v8312_v38  ;;  %v3883_v19 = vadd.f32 %v3873_v18, %v3855_v54  ;;  %v8332_v54 = vmul.f32 %v10471_v56, %v6576_v29  ;;  %v1228_v18 = vmul.f32 %v10491_v3, %v6576_v29  ;;  %v1233_v47 = vadd.f32 %v1223_v9, %v8209_v35 }
 0x676   : > { %10501 = vst [vmem:[#allocation114_spill] sm:$0xff] %v8302_v28  ;;  %v3179_v28 = vmul.f32 %v10357_v37, %v6561_v21  ;;  %v3237_v2 = vadd.f32 %v3227_v50, %v3199_v13  ;;  %v8341_v43 = vmul.f32 %v10469_v34, %v6641_v45  ;;  %v4016_v50 = vmul.f32 %v10506_v30, %v6576_v29 }
 0x677   : > { %v3917_v38 = vmul.f32 %v8180_v62, %v3883_v19  ;;  %v1202_v62 = vadd.f32 %v1192_v40, %v1164_v52  ;;  %v10505_v19 = vld [vmem:[#allocation76_spill] sm:$0xff]  ;;  %v8350_v35 = vmul.f32 %v10469_v34, %v6561_v21  ;;  %v1230_v9 = vmul.f32 %v10491_v3, %v6561_v21 }
 0x678   : > { %v3271_v13 = vmul.f32 %v10473_v60, %v3237_v2  ;;  %v4044_v25 = vmul.f32 %v10505_v19, %v6641_v45  ;;  %v8354_v60 = vmul.f32 %v10471_v56, %v6561_v21  ;;  %v2546_v2 = vadd.f32 %v2536_v15, %v2518_v8 }
 0x679   : > { %v3207_v6 = vadd.f32 %v3197_v7, %v3179_v28  ;;  %v1235_v40 = vadd.f32 %v1225_v5, %v1197_v42  ;;  %v1238_v34 = vadd.f32 %v1228_v18, %v8221_v59  ;;  %v8363_v19 = vmul.f32 %v10479_v61, %v1233_v47  ;;  %v10511_v42 = vld [vmem:[#allocation148_spill] sm:$0xff]  ;;  %v10513_v47 = vld [vmem:[#allocation175_spill] sm:$0xff] }
 0x67a   : > { %3124 = vrot.lane.b32.xlu2 %v3099_v36, %s5658_s19  ;;  %3291 = vrot.lane.b32.xlu1 %v3271_v13, %s5659_s25  ;;  %v4026_v36 = vadd.f32 %v4016_v50, %v3998_v26  ;;  %v1189_v15 = vmul.f32 %v10466_v16, %v6455_v57  ;;  %v1240_v8 = vadd.f32 %v1230_v9, %v1202_v62  ;;  %v10510_v26 = vld [vmem:[#allocation158_spill] sm:$0xff] }
 0x67b   : > { %3938 = vrot.lane.b32.xlu0 %v3917_v38, %s5662_s20  ;;  %v8357_v52 = vpop.permute.xlu2 %2216  ;;  %v1196_v5 = vadd.f32 %v1186_v11, %v8199_v20  ;;  %v8377_v13 = vsel %vm3262_vm3, %v10511_v42, %v10510_v26  ;;  %v3032_v18 = vadd.f32 %v10448_v23, %v8267_v58  ;;  %v3245_v16 = vadd.f32 %v8260_v22, %v3207_v6 }
 0x67c   : > { %10507 = vst [vmem:[#allocation48_spill] sm:$0xff] %v8357_v52  ;;  %v8367_v7 = vpop.permute.xlu1 %2398  ;;  %v4054_v59 = vadd.f32 %v4044_v25, %v4026_v36  ;;  %v3624_v50 = vsel %vm1686_vm10, %v10467_v4, %v10513_v47  ;;  %v1224_v20 = vmul.f32 %v10490_v27, %v6435_v39  ;;  %v1198_v11 = vadd.f32 %v1188_v12, %v8279_v63  ;;  %v10515_v25 = vld [vmem:[#allocation54_spill] sm:$0xff]  ;;  %v10517_v63 = vld [vmem:[#allocation127_spill] sm:$0xff] }
 0x67d   : > { %v2918_v38 = vpop.permute.xlu0 %2917  ;;  %10508 = vst [vmem:[#allocation25_spill] sm:$0xff] %v8367_v7  ;;  %v3567_v62 = vmul.f32 %v10452_v33, %v6455_v57  ;;  %v3050_v23 = vmul.f32 %v10353_v51, %v6445_v10  ;;  %v1199_v58 = vadd.f32 %v1189_v15, %v8283_v17  ;;  %v1226_v4 = vmul.f32 %v10490_v27, %v6455_v57  ;;  %v10516_v36 = vld [vmem:[#allocation130_spill] sm:$0xff] }
 0x67e   : > { %v8371_v28 = vsel %vm2919_vm9, %v8230_v44, %v2918_v38  ;;  %10512 = vst [vmem:[#allocation105_spill] sm:$0xff] %v8377_v13  ;;  %v10514_v38 = vld [vmem:[#allocation86_spill] sm:$0xff]  ;;  %v4088_v9 = vmul.f32 %v10515_v25, %v4054_v59  ;;  %v1234_v6 = vadd.f32 %v1224_v20, %v1196_v5  ;;  %v3411_v12 = vsel %vm1686_vm10, %v10517_v63, %v10516_v36 }
 0x67f   : > { %10509 = vst [vmem:[#allocation98_spill] sm:$0xff] %v8371_v28  ;;  %v2580_v44 = vmul.f32 %v10514_v38, %v2546_v2  ;;  %v3279_v2 = vmul.f32 %v8377_v13, %v3245_v16  ;;  %v3643_v47 = vadd.f32 %v3624_v50, %v3567_v62  ;;  %v3661_v59 = vmul.f32 0.0, %v10455_v55 }
 0x680   : > { %v8405_v51 = vmul.f32 %v8218_v53, %v1235_v40  ;;  %v3060_v17 = vadd.f32 %v3050_v23, %v3032_v18  ;;  %v3355_v27 = vmul.f32 %v10381_v46, %v6641_v45  ;;  %v8415_v5 = vmul.f32 %v10479_v61, %v1238_v34  ;;  %v10522_v61 = vld [vmem:[#allocation67_spill] sm:$0xff] }
 0x681   : > { %v8418_v16 = vmul.f32 %v8218_v53, %v1240_v8  ;;  %v1236_v50 = vadd.f32 %v1226_v4, %v1198_v11  ;;  %v8421_v40 = vmul.f32 0.0, %v10433_v41  ;;  %v1237_v38 = vadd.f32 %v8249_v1, %v1199_v58  ;;  %v10523_v53 = vld [vmem:[#allocation126_spill] sm:$0xff]  ;;  %v10525_v4 = vld [vmem:[#allocation173_spill] sm:$0xff] }
 0x682   : > { %2604 = vrot.lane.b32.xlu2 %v2580_v44, %s5654_s29  ;;  %v3449_v44 = vmul.f32 %v10382_v31, %v6561_v21  ;;  %3307 = vrot.lane.b32.xlu1 %v3279_v2, %s5659_s25  ;;  %10519 = vst [vmem:[#allocation82_spill] sm:$0xff] %v8415_v5  ;;  %v3431_v20 = vadd.f32 %v3411_v12, %v3355_v27  ;;  %v3193_v62 = vmul.f32 0.0, %v10496_v48  ;;  %v10524_v8 = vld [vmem:[#allocation46_spill] sm:$0xff]  ;;  %v10527_v58 = vld [vmem:[#allocation81_spill] sm:$0xff]  ;;  %v10533_v5 = vld [vmem:[#allocation71_spill] sm:$0xff]  ;;  %s5664_s29 = smov 94  }
 0x683   : > { %4113 = vrot.lane.b32.xlu0 %v4088_v9, %s5663_s2  ;;  %v8412_v15 = vpop.permute.xlu2 %2232  ;;  %v3198_v9 = vmul.f32 0.0, %v10358_v14  ;;  %v8431_v34 = vmul.f32 %v10522_v61, %v1234_v6  ;;  %v3020_v11 = vsel %vm1686_vm10, %v10524_v8, %v10523_v53  ;;  %v10526_v2 = vld [vmem:[#allocation162_spill] sm:$0xff]  ;;  %v3671_v1 = vadd.f32 %v3661_v59, %v3643_v47 }
 0x684   : > { %10518 = vst [vmem:[#allocation4_spill] sm:$0xff] %v8412_v15  ;;  %v8428_v23 = vpop.permute.xlu1 %2382  ;;  %v8439_v36 = vsel %vm3477_vm4, %v10526_v2, %v10525_v4  ;;  %v2964_v12 = vmul.f32 %v10527_v58, %v6561_v21  ;;  %v3180_v27 = vmul.f32 %v10357_v37, %v6592_v24  ;;  %v3459_v28 = vadd.f32 %v3449_v44, %v3431_v20  ;;  %v10530_v15 = vld [vmem:[#allocation11_spill] sm:$0xff]  ;;  %v10531_v4 = vld [vmem:[#allocation72_spill] sm:$0xff]  ;;  %v10532_v47 = vld [vmem:[#allocation10_spill] sm:$0xff] }
 0x685   : > { %v8423_v18 = vpop.permute.xlu0 %3118  ;;  %10521 = vst [vmem:[#allocation5_spill] sm:$0xff] %v8428_v23  ;;  %v3094_v6 = vmul.f32 %v10442_v32, %v3060_v17  ;;  %v10528_v23 = vld [vmem:[#allocation34_spill] sm:$0xff]  ;;  %v4011_v13 = vmul.f32 %v10530_v15, %v6445_v10  ;;  %v3993_v55 = vmul.f32 0.0, %v10531_v4  ;;  %v8454_v59 = vmul.f32 %v10532_v47, %v1237_v38  ;;  %v10534_v17 = vld [vmem:[#allocation83_spill] sm:$0xff]  ;;  %v10535_v38 = vld [vmem:[#allocation97_spill] sm:$0xff] }
 0x686   : > { %10520 = vst [vmem:[#allocation28_spill] sm:$0xff] %v8423_v18  ;;  %v8447_v52 = vmul.f32 %v10528_v23, %v1236_v50  ;;  %v10529_v18 = vld [vmem:[#allocation70_spill] sm:$0xff]  ;;  %v3040_v2 = vadd.f32 %v3020_v11, %v2964_v12  ;;  %v3173_v33 = vmul.f32 %v10533_v5, %v6435_v39  ;;  %v3493_v44 = vmul.f32 %v8439_v36, %v3459_v28  ;;  %v10536_v12 = vld [vmem:[#allocation13_spill] sm:$0xff]  ;;  %v10542_v4 = vld [vmem:[#allocation131_spill] sm:$0xff] }
 0x687   : > { %v3705_v8 = vmul.f32 %v10529_v18, %v3671_v1  ;;  %v1194_v32 = vmul.f32 %v10471_v56, %v6592_v24  ;;  %v3191_v50 = vmul.f32 %v10496_v48, %v10534_v17  ;;  %v3175_v20 = vmul.f32 %v10533_v5, %v6455_v57  ;;  %v10537_v18 = vld [vmem:[#allocation112_spill] sm:$0xff] }
 0x688   : > { %v4039_v1 = vmul.f32 %v10535_v38, %v6435_v39  ;;  %v3058_v11 = vmul.f32 %v10433_v41, %v6592_v24  ;;  %v1203_v28 = vadd.f32 %v8354_v60, %v8341_v43  ;;  %v1201_v56 = vadd.f32 %v8332_v54, %v10536_v12 }
 0x689   : > { %v2965_v5 = vmul.f32 %v10527_v58, %v6592_v24  ;;  %v8484_v41 = vadd.f32 %v8326_v49, %v10537_v18  ;;  %v4021_v38 = vadd.f32 %v4011_v13, %v3993_v55  ;;  %v1229_v54 = vmul.f32 %v10491_v3, %v6641_v45 }
 0x68a   : > { %3114 = vrot.lane.b32.xlu2 %v3094_v6, %s5658_s19  ;;  %v3208_v6 = vadd.f32 %v3198_v9, %v3180_v27  ;;  %3520 = vrot.lane.b32.xlu1 %v3493_v44, %s5660_s26  ;;  %v3068_v60 = vadd.f32 %v3058_v11, %v3040_v2  ;;  %v3178_v9 = vmul.f32 %v10357_v37, %v6641_v45  ;;  %v10540_v2 = vld [vmem:[#allocation107_spill] sm:$0xff] }
 0x68b   : > { %3729 = vrot.lane.b32.xlu0 %v3705_v8, %s5661_s21  ;;  %v8476_v48 = vpop.permute.xlu2 %2396  ;;  %v1231_v8 = vmul.f32 %v10491_v3, %v6592_v24  ;;  %v3196_v58 = vmul.f32 %v10358_v14, %v6561_v21  ;;  %v1204_v44 = vadd.f32 %v1194_v32, %v8350_v35  ;;  %v8497_v12 = vadd.f32 %v3191_v50, %v3173_v33  ;;  %v10541_v37 = vld [vmem:[#allocation151_spill] sm:$0xff]  ;;  %v10543_v35 = vld [vmem:[#allocation113_spill] sm:$0xff] }
 0x68c   : > { %v8494_v27 = vpop.permute.xlu1 %2388  ;;  %v8499_v49 = vadd.f32 %v3193_v62, %v3175_v20  ;;  %v4049_v55 = vadd.f32 %v4039_v1, %v4021_v38  ;;  %v1239_v18 = vadd.f32 %v1229_v54, %v1201_v56  ;;  %v3102_v11 = vmul.f32 %v10540_v2, %v3068_v60  ;;  %v10544_v62 = vld [vmem:[#allocation106_spill] sm:$0xff]  ;;  %v10545_v20 = vld [vmem:[#allocation137_spill] sm:$0xff]  ;;  %v10548_v54 = vld [vmem:[#allocation115_spill] sm:$0xff] }
 0x68d   : > { %v8486_v43 = vpop.permute.xlu0 %3303  ;;  %v1241_v13 = vadd.f32 %v1231_v8, %v1203_v28  ;;  %v3246_v3 = vadd.f32 %v8260_v22, %v3208_v6  ;;  %v3407_v14 = vsel %vm1686_vm10, %v10542_v4, %v10541_v37  ;;  %v4001_v15 = vmul.f32 %v10504_v0, %v6561_v21  ;;  %v10546_v28 = vld [vmem:[#allocation78_spill] sm:$0xff]  ;;  %v10547_v8 = vld [vmem:[#allocation76_spill] sm:$0xff] }
 0x68e   : > { %10538 = vst [vmem:[#allocation14_spill] sm:$0xff] %v8486_v43  ;;  %v4083_v33 = vmul.f32 %v10515_v25, %v4049_v55  ;;  %v1427_v32 = vsel %vm1424_vm14, %v10544_v62, %v10543_v35  ;;  %v3206_v50 = vadd.f32 %v3196_v58, %v3178_v9  ;;  %v3350_v38 = vmul.f32 %v10545_v20, %v6435_v39  ;;  %v10549_v9 = vld [vmem:[#allocation109_spill] sm:$0xff] }
 0x68f   : > { %10539 = vst [vmem:[#allocation3_spill] sm:$0xff] %v8499_v49  ;;  %v3280_v22 = vmul.f32 %v10510_v26, %v3246_v3  ;;  %v8518_v1 = vmul.f32 %v10381_v46, %v6576_v29  ;;  %v1242_v56 = vadd.f32 %v10546_v28, %v1204_v44  ;;  %v4019_v6 = vmul.f32 %v10506_v30, %v6592_v24  ;;  %v10550_v46 = vld [vmem:[#allocation88_spill] sm:$0xff]  ;;  %v10565_v26 = vld [vmem:[#allocation17_spill] sm:$0xff] }
 0x690   : > { %v8524_v60 = vmul.f32 0.0, %v10547_v8  ;;  %v1594_v58 = vsel %vm1591_vm12, %v10549_v9, %v10548_v54  ;;  %v8531_v55 = vmul.f32 %v10528_v23, %v1241_v13  ;;  %v3234_v2 = vmul.f32 %v10550_v46, %v6592_v24  ;;  %v10552_v28 = vld [vmem:[#allocation128_spill] sm:$0xff]  ;;  %v10556_v46 = vld [vmem:[#allocation23_spill] sm:$0xff]  ;;  %v10566_v49 = vld [vmem:[#allocation45_spill] sm:$0xff] }
 0x691   : > { %v1445_v3 = vadd.f32 %v1427_v32, %v8405_v51  ;;  %v4029_v25 = vadd.f32 %v4019_v6, %v4001_v15  ;;  %v8547_v23 = vmul.f32 %v10522_v61, %v1239_v18  ;;  %v8564_v61 = vmul.f32 %v10532_v47, %v1242_v56  ;;  %v10560_v6 = vld [vmem:[#allocation110_spill] sm:$0xff]  ;;  %v10561_v8 = vld [vmem:[#allocation119_spill] sm:$0xff] }
 0x692   : > { %3130 = vrot.lane.b32.xlu2 %v3102_v11, %s5658_s19  ;;  %v3426_v11 = vadd.f32 %v3407_v14, %v3350_v38  ;;  %3309 = vrot.lane.b32.xlu1 %v3280_v22, %s5659_s25  ;;  %v3244_v13 = vadd.f32 %v3234_v2, %v3206_v50  ;;  %v10554_v14 = vld [vmem:[#allocation136_spill] sm:$0xff]  ;;  %v10555_v22 = vld [vmem:[#allocation26_spill] sm:$0xff]  ;;  %v10559_v50 = vld [vmem:[#allocation117_spill] sm:$0xff] }
 0x693   : > { %4103 = vrot.lane.b32.xlu0 %v4083_v33, %s5663_s2  ;;  %v8536_v44 = vpop.permute.xlu2 %2234  ;;  %v8542_v33 = vsel %vm3262_vm3, %v10552_v28, %v10511_v42  ;;  %v3444_v38 = vmul.f32 %v10554_v14, %v10534_v17  ;;  %v8554_v51 = vsel %vm4074_vm13, %v10556_v46, %v10555_v22  ;;  %v8558_v42 = vadd.f32 %v1594_v58, %v1445_v3  ;;  %v10558_v28 = vld [vmem:[#allocation89_spill] sm:$0xff]  ;;  %v10563_v47 = vld [vmem:[#allocation134_spill] sm:$0xff] }
 0x694   : > { %10551 = vst [vmem:[#allocation143_spill] sm:$0xff] %v8536_v44  ;;  %v8556_v32 = vpop.permute.xlu1 %2608  ;;  %v3021_v15 = vsel %vm1686_vm10, %v10523_v53, %v10558_v28  ;;  %v4057_v18 = vadd.f32 %v8524_v60, %v4029_v25  ;;  %v1425_v2 = vsel %vm1424_vm14, %v10560_v6, %v10559_v50  ;;  %v1426_v46 = vsel %vm1424_vm14, %v10559_v50, %v10544_v62  ;;  %v10562_v28 = vld [vmem:[#allocation154_spill] sm:$0xff]  ;;  %v10564_v44 = vld [vmem:[#allocation87_spill] sm:$0xff] }
 0x695   : > { %v8544_v43 = vpop.permute.xlu0 %3120  ;;  %10557 = vst [vmem:[#allocation68_spill] sm:$0xff] %v8554_v51  ;;  %v3278_v58 = vmul.f32 %v8542_v33, %v3244_v13  ;;  %v3454_v3 = vadd.f32 %v3444_v38, %v3426_v11  ;;  %v1428_v53 = vsel %vm1424_vm14, %v10543_v35, %v10561_v8  ;;  %v3625_v56 = vsel %vm1686_vm10, %v10563_v47, %v10562_v28  ;;  %v10567_v11 = vld [vmem:[#allocation142_spill] sm:$0xff]  ;;  %v10568_v28 = vld [vmem:[#allocation179_spill] sm:$0xff]  ;;  %v10586_v47 = vld [vmem:[#allocation125_spill] sm:$0xff] }
 0x696   : > { %10553 = vst [vmem:[#allocation101_spill] sm:$0xff] %v8544_v43  ;;  %v4091_v25 = vmul.f32 %v8554_v51, %v4057_v18  ;;  %v4167_v6 = vmul.f32 %v10564_v44, %v6641_v45  ;;  %v1592_v62 = vsel %vm1591_vm12, %v10566_v49, %v10565_v26  ;;  %v3041_v50 = vadd.f32 %v3021_v15, %v2965_v5  ;;  %v10569_v51 = vld [vmem:[#allocation66_spill] sm:$0xff] }
 0x697   : > { %v3569_v13 = vmul.f32 %v10567_v11, %v6576_v29  ;;  %v3488_v38 = vmul.f32 %v8439_v36, %v3454_v3  ;;  %v1443_v35 = vadd.f32 %v1425_v2, %v8363_v19  ;;  %v4185_v18 = vmul.f32 %v10568_v28, %v6561_v21  ;;  %v10570_v36 = vld [vmem:[#allocation155_spill] sm:$0xff] }
 0x698   : > { %v4213_v44 = vmul.f32 %v10569_v51, %v6592_v24  ;;  %v1444_v5 = vadd.f32 %v1426_v46, %v8431_v34  ;;  %v1447_v49 = vadd.f32 %v10561_v8, %v8454_v59  ;;  %v1446_v2 = vadd.f32 %v1428_v53, %v8447_v52  ;;  %v10574_v59 = vld [vmem:[#allocation18_spill] sm:$0xff] }
 0x699   : > { %v3645_v15 = vadd.f32 %v3625_v56, %v3569_v13  ;;  %v1593_v3 = vsel %vm1591_vm12, %v10565_v26, %v10549_v9  ;;  %v4195_v34 = vadd.f32 %v4185_v18, %v4167_v6  ;;  %v1595_v8 = vsel %vm1591_vm12, %v10548_v54, %v10574_v59  ;;  %v10575_v13 = vld [vmem:[#allocation31_spill] sm:$0xff]  ;;  %v10577_v52 = vld [vmem:[#allocation178_spill] sm:$0xff]  ;;  %v10583_v18 = vld [vmem:[#allocation37_spill] sm:$0xff] }
 0x69a   : > { %3305 = vrot.lane.b32.xlu2 %v3278_v58, %s5659_s25  ;;  %v3663_v58 = vmul.f32 %v10570_v36, %v6641_v45  ;;  %3510 = vrot.lane.b32.xlu1 %v3488_v38, %s5660_s26  ;;  %v3069_v56 = vadd.f32 %v8421_v40, %v3041_v50  ;;  %v10576_v38 = vld [vmem:[#allocation133_spill] sm:$0xff]  ;;  %v10578_v53 = vld [vmem:[#allocation42_spill] sm:$0xff]  ;;  %v10580_v9 = vld [vmem:[#allocation123_spill] sm:$0xff]  ;;  %vm2236_vm3 = vcmask 433152  }
 0x69b   : > { %4119 = vrot.lane.b32.xlu0 %v4091_v25, %s5663_s2  ;;  %v8602_v19 = vpop.permute.xlu2 %2386  ;;  %v8608_v25 = vadd.f32 %v1592_v62, %v1443_v35  ;;  %v1431_v51 = vsel %vm1424_vm14, %v10576_v38, %v10575_v13  ;;  %v8622_v28 = vsel %vm4241_vm15, %v10578_v53, %v10577_v52  ;;  %v10581_v6 = vld [vmem:[#allocation27_spill] sm:$0xff]  ;;  %v10582_v35 = vld [vmem:[#allocation57_spill] sm:$0xff]  ;;  %v4223_v40 = vadd.f32 %v4213_v44, %v4195_v34 }
 0x69c   : > { %10571 = vst [vmem:[#allocation15_spill] sm:$0xff] %v8602_v19  ;;  %v8624_v26 = vpop.permute.xlu1 %2390  ;;  %v1598_v62 = vsel %vm1591_vm12, %v10581_v6, %v10580_v9  ;;  %v8632_v54 = vsel %vm3692_vm5, %v10583_v18, %v10582_v35  ;;  %v10587_v36 = vld [vmem:[#allocation139_spill] sm:$0xff]  ;;  %v3673_v52 = vadd.f32 %v3663_v58, %v3645_v15  ;;  %v3351_v35 = vmul.f32 %v10545_v20, %v10534_v17 }
 0x69d   : > { %10572 = vst [vmem:[#allocation8_spill] sm:$0xff] %v8608_v25  ;;  %v8610_v46 = vpop.permute.xlu0 %3293  ;;  %v8637_v50 = vsel %vm1375_vm8, %v8494_v27, %v8624_v26  ;;  %v3229_v25 = vmul.f32 %v10586_v47, %v6455_v57  ;;  %v3408_v11 = vsel %vm1686_vm10, %v10541_v37, %v10587_v36  ;;  %v4020_v44 = vmul.f32 0.0, %v10506_v30 }
 0x69e   : > { %10573 = vst [vmem:[#allocation9_spill] sm:$0xff] %v8610_v46  ;;  %v10585_v46 = vld [vmem:[#allocation145_spill] sm:$0xff]  ;;  %v4002_v34 = vmul.f32 %v10504_v0, %v6592_v24  ;;  %v8651_v18 = vadd.f32 %v1593_v3, %v1444_v5  ;;  %v3707_v37 = vmul.f32 %v8632_v54, %v3673_v52  ;;  %v8659_v15 = vadd.f32 %v1595_v8, %v1446_v2  ;;  %v10590_v0 = vld [vmem:[#allocation63_spill] sm:$0xff]  ;;  %v10594_v2 = vld [vmem:[#allocation32_spill] sm:$0xff] }
 0x69f   : > { %10579 = vst [vmem:[#allocation104_spill] sm:$0xff] %v8624_v26  ;;  %v3103_v53 = vmul.f32 %v10585_v46, %v3069_v56  ;;  %v4257_v26 = vmul.f32 %v8622_v28, %v4223_v40  ;;  %v8654_v46 = vadd.f32 %v10574_v59, %v1447_v49  ;;  %v1450_v56 = vadd.f32 %v1431_v51, %v8418_v16  ;;  %v10591_v24 = vld [vmem:[#allocation153_spill] sm:$0xff]  ;;  %v10592_v49 = vld [vmem:[#allocation20_spill] sm:$0xff]  ;;  %v10595_v52 = vld [vmem:[#allocation95_spill] sm:$0xff] }
 0x6a0   : > { %10584 = vst [vmem:[#allocation103_spill] sm:$0xff] %v8637_v50  ;;  %v8662_v58 = vmul.f32 0.0, %v10586_v47  ;;  %v3427_v30 = vadd.f32 %v3408_v11, %v3351_v35  ;;  %v1812_v5 = vsel %vm1758_vm11, %v10591_v24, %v10590_v0  ;;  %v3410_v16 = vsel %vm1686_vm10, %v10592_v49, %v10517_v63  ;;  %v10593_v11 = vld [vmem:[#allocation129_spill] sm:$0xff] }
 0x6a1   : > { %10588 = vst [vmem:[#allocation7_spill] sm:$0xff] %v8651_v18  ;;  %v1617_v51 = vadd.f32 %v1598_v62, %v1450_v56  ;;  %v3239_v3 = vadd.f32 %v3229_v25, %v8497_v12  ;;  %v1429_v59 = vsel %vm1424_vm14, %v10594_v2, %v10593_v11  ;;  %v3445_v8 = vmul.f32 %v10554_v14, %v6455_v57  ;;  %v10602_v0 = vld [vmem:[#allocation169_spill] sm:$0xff] }
 0x6a2   : > { %10589 = vst [vmem:[#allocation6_spill] sm:$0xff] %v8654_v46  ;;  %3132 = vrot.lane.b32.xlu2 %v3103_v53, %s5658_s19  ;;  %3733 = vrot.lane.b32.xlu1 %v3707_v37, %s5661_s21  ;;  %v10596_v53 = vld [vmem:[#allocation77_spill] sm:$0xff]  ;;  %v4030_v63 = vadd.f32 %v4020_v44, %v4002_v34  ;;  %v1430_v12 = vsel %vm1424_vm14, %v10593_v11, %v10576_v38  ;;  %v10600_v44 = vld [vmem:[#allocation36_spill] sm:$0xff]  ;;  %v10608_v46 = vld [vmem:[#allocation55_spill] sm:$0xff]  ;;  %vm2616_vm5 = vcmask 384000  }
 0x6a3   : > { %4284 = vrot.lane.b32.xlu0 %v4257_v26, %s5664_s29  ;;  %v8673_v47 = vpop.permute.xlu2 %2606  ;;  %v2027_v26 = vsel %vm2021_vm2, %v10596_v53, %v10595_v52  ;;  %v3273_v25 = vmul.f32 %v8542_v33, %v3239_v3  ;;  %v1832_v40 = vadd.f32 %v1812_v5, %v1617_v51  ;;  %v3455_v56 = vadd.f32 %v3445_v8, %v3427_v30  ;;  %v10598_v37 = vld [vmem:[#allocation41_spill] sm:$0xff]  ;;  %v10599_v52 = vld [vmem:[#allocation84_spill] sm:$0xff]  ;;  %v10604_v51 = vld [vmem:[#allocation47_spill] sm:$0xff] }
 0x6a4   : > { %v8689_v35 = vpop.permute.xlu1 %2600  ;;  %v4162_v49 = vmul.f32 %v10598_v37, %v6435_v39  ;;  %v4058_v2 = vadd.f32 %v8524_v60, %v4030_v63  ;;  %v2242_v34 = vsel %vm2236_vm3, %v10600_v44, %v10599_v52  ;;  %v3448_v33 = vmul.f32 %v10382_v31, %v6641_v45  ;;  %v10603_v5 = vld [vmem:[#allocation165_spill] sm:$0xff]  ;;  %v10605_v11 = vld [vmem:[#allocation176_spill] sm:$0xff]  ;;  %v10606_v63 = vld [vmem:[#allocation62_spill] sm:$0xff] }
 0x6a5   : > { %v8683_v62 = vpop.permute.xlu0 %3516  ;;  %v3621_v30 = vsel %vm1686_vm10, %v10604_v51, %v10603_v5  ;;  %v2047_v3 = vadd.f32 %v2027_v26, %v1832_v40  ;;  %v4180_v8 = vmul.f32 %v10605_v11, %v10534_v17  ;;  %v4208_v52 = vmul.f32 %v10606_v63, %v6455_v57  ;;  %v10609_v40 = vld [vmem:[#allocation82_spill] sm:$0xff] }
 0x6a6   : > { %10597 = vst [vmem:[#allocation73_spill] sm:$0xff] %v8683_v62  ;;  %v10601_v62 = vld [vmem:[#allocation164_spill] sm:$0xff]  ;;  %v4092_v60 = vmul.f32 %v10555_v22, %v4058_v2  ;;  %v2408_v18 = vsel %vm1375_vm8, %v8476_v48, %v8367_v7  ;;  %v3489_v50 = vmul.f32 %v10608_v46, %v3455_v56  ;;  %v3430_v26 = vadd.f32 %v3410_v16, %v8518_v1  ;;  %v10610_v22 = vld [vmem:[#allocation21_spill] sm:$0xff] }
 0x6a7   : > { %v1808_v38 = vsel %vm1758_vm11, %v10602_v0, %v10601_v62  ;;  %v10607_v0 = vld [vmem:[#allocation157_spill] sm:$0xff]  ;;  %v2262_v5 = vadd.f32 %v2242_v34, %v2047_v3  ;;  %v8719_v2 = vadd.f32 %v1429_v59, %v10609_v40  ;;  %v2622_v51 = vsel %vm2616_vm5, %v8556_v32, %v10610_v22  ;;  %v10612_v59 = vld [vmem:[#allocation162_spill] sm:$0xff]  ;;  %v10613_v3 = vld [vmem:[#allocation35_spill] sm:$0xff] }
 0x6a8   : > { %v3564_v31 = vmul.f32 %v10607_v0, %v6445_v10  ;;  %v4190_v7 = vadd.f32 %v4180_v8, %v4162_v49  ;;  %v10611_v0 = vld [vmem:[#allocation135_spill] sm:$0xff]  ;;  %v1827_v56 = vadd.f32 %v1808_v38, %v8558_v42  ;;  %v1449_v16 = vadd.f32 %v1430_v12, %v8547_v23 }
 0x6a9   : > { %v1597_v46 = vsel %vm1591_vm12, %v10611_v0, %v10581_v6  ;;  %v8736_v40 = vsel %vm3477_vm4, %v10613_v3, %v10612_v59  ;;  %v10614_v6 = vld [vmem:[#allocation171_spill] sm:$0xff]  ;;  %vm4408_vm4 = vcmask 146432  }
 0x6aa   : > { %3295 = vrot.lane.b32.xlu2 %v3273_v25, %s5659_s25  ;;  %v3640_v34 = vadd.f32 %v3621_v30, %v3564_v31  ;;  %v2427_v25 = vadd.f32 %v2408_v18, %v2262_v5  ;;  %3512 = vrot.lane.b32.xlu1 %v3489_v50, %s5660_s26  ;;  %v4218_v8 = vadd.f32 %v4208_v52, %v4190_v7  ;;  %v10616_v12 = vld [vmem:[#allocation147_spill] sm:$0xff]  ;;  %v10620_v52 = vld [vmem:[#allocation74_spill] sm:$0xff] }
 0x6ab   : > { %4121 = vrot.lane.b32.xlu0 %v4092_v60, %s5663_s2  ;;  %v8730_v1 = vpop.permute.xlu2 %2224  ;;  %v3458_v60 = vadd.f32 %v3448_v33, %v3430_v26  ;;  %v3658_v42 = vmul.f32 %v10614_v6, %v6435_v39  ;;  %v1616_v23 = vadd.f32 %v1597_v46, %v1449_v16  ;;  %v10617_v30 = vld [vmem:[#allocation167_spill] sm:$0xff]  ;;  %v10621_v46 = vld [vmem:[#allocation170_spill] sm:$0xff] }
 0x6ac   : > { %v2642_v38 = vadd.f32 %v2622_v51, %v2427_v25  ;;  %v8740_v18 = vpop.permute.xlu1 %2911  ;;  %v2023_v31 = vsel %vm2021_vm2, %v10617_v30, %v10616_v12  ;;  %v10618_v5 = vld [vmem:[#allocation19_spill] sm:$0xff]  ;;  %v1811_v16 = vsel %vm1758_vm11, %v10621_v46, %v10591_v24  ;;  %v4252_v22 = vmul.f32 %v8622_v28, %v4218_v8  ;;  %v10623_v24 = vld [vmem:[#allocation146_spill] sm:$0xff] }
 0x6ad   : > { %v3123_v49 = vpop.permute.xlu0 %3122  ;;  %v10619_v59 = vld [vmem:[#allocation163_spill] sm:$0xff]  ;;  %v2925_v33 = vsel %vm2919_vm9, %v8740_v18, %v10620_v52  ;;  %v3492_v51 = vmul.f32 %v8736_v40, %v3458_v60  ;;  %v3668_v26 = vadd.f32 %v3658_v42, %v3640_v34  ;;  %v2042_v25 = vadd.f32 %v2023_v31, %v1827_v56  ;;  %v10624_v31 = vld [vmem:[#allocation156_spill] sm:$0xff]  ;;  %v10625_v28 = vld [vmem:[#allocation182_spill] sm:$0xff] }
 0x6ae   : > { %v8744_v50 = vsel %vm3134_vm7, %v8544_v43, %v3123_v49  ;;  %v2238_v7 = vsel %vm2236_vm3, %v10619_v59, %v10618_v5  ;;  %v8756_v3 = vadd.f32 %v2925_v33, %v2642_v38  ;;  %v10622_v49 = vld [vmem:[#allocation58_spill] sm:$0xff]  ;;  %v2404_v43 = vsel %vm1375_vm8, %v8602_v19, %v8494_v27 }
 0x6af   : > { %10615 = vst [vmem:[#allocation148_spill] sm:$0xff] %v8744_v50  ;;  %v4351_v50 = vmul.f32 %v10622_v49, %v6641_v45  ;;  %v3349_v60 = vmul.f32 %v10545_v20, %v6445_v10  ;;  %v3240_v56 = vadd.f32 %v8662_v58, %v8484_v41  ;;  %v3702_v34 = vmul.f32 %v8632_v54, %v3668_v26  ;;  %v10626_v33 = vld [vmem:[#allocation30_spill] sm:$0xff]  ;;  %v10627_v54 = vld [vmem:[#allocation160_spill] sm:$0xff] }
 0x6b0   : > { %v2257_v42 = vadd.f32 %v2238_v7, %v2042_v25  ;;  %v3406_v38 = vsel %vm1686_vm10, %v10623_v24, %v10542_v4  ;;  %v2026_v27 = vsel %vm2021_vm2, %v10624_v31, %v10596_v53  ;;  %v4333_v8 = vmul.f32 %v10625_v28, %v6576_v29  ;;  %v10630_v24 = vld [vmem:[#allocation79_spill] sm:$0xff] }
 0x6b1   : > { %v4379_v49 = vmul.f32 %v10626_v33, %v6561_v21  ;;  %v1831_v41 = vadd.f32 %v1811_v16, %v1616_v23  ;;  %v3783_v7 = vmul.f32 0.0, %v10627_v54  ;;  %v2241_v28 = vsel %vm2236_vm3, %v10630_v24, %v10600_v44  ;;  %v10632_v16 = vld [vmem:[#allocation168_spill] sm:$0xff] }
 0x6b2   : > { %3518 = vrot.lane.b32.xlu2 %v3492_v51, %s5660_s26  ;;  %v10628_v51 = vld [vmem:[#allocation118_spill] sm:$0xff]  ;;  %v2422_v25 = vadd.f32 %v2404_v43, %v2257_v42  ;;  %3723 = vrot.lane.b32.xlu1 %v3702_v34, %s5661_s21  ;;  %v4361_v53 = vadd.f32 %v4351_v50, %v4333_v8  ;;  %v10633_v43 = vld [vmem:[#allocation16_spill] sm:$0xff] }
 0x6b3   : > { %4274 = vrot.lane.b32.xlu0 %v4252_v22, %s5664_s29  ;;  %v3877_v26 = vmul.f32 %v10628_v51, %v6576_v29  ;;  %v8788_v4 = vpop.permute.xlu2 %2598  ;;  %v3859_v33 = vadd.f32 %v10632_v16, %v3783_v7  ;;  %v2046_v52 = vadd.f32 %v2026_v27, %v1831_v41  ;;  %v10634_v42 = vld [vmem:[#allocation180_spill] sm:$0xff]  ;;  %v10637_v7 = vld [vmem:[#allocation181_spill] sm:$0xff]  ;;  %v3425_v41 = vadd.f32 %v3406_v38, %v3349_v60  ;;  %v10640_v60 = vld [vmem:[#allocation122_spill] sm:$0xff] }
 0x6b4   : > { %10629 = vst [vmem:[#allocation175_spill] sm:$0xff] %v8788_v4  ;;  %v2618_v22 = vsel %vm2616_vm5, %v8788_v4, %v8689_v35  ;;  %v8802_v34 = vsel %vm4408_vm4, %v10634_v42, %v10633_v43  ;;  %v8804_v19 = vpop.permute.xlu1 %2614  ;;  %v10636_v8 = vld [vmem:[#allocation132_spill] sm:$0xff]  ;;  %v2407_v27 = vsel %vm1375_vm8, %v10637_v7, %v8476_v48  ;;  %v10638_v16 = vld [vmem:[#allocation105_spill] sm:$0xff] }
 0x6b5   : > { %v8796_v23 = vpop.permute.xlu0 %3506  ;;  %10635 = vst [vmem:[#allocation130_spill] sm:$0xff] %v8804_v19  ;;  %v8806_v50 = vadd.f32 %v2618_v22, %v2422_v25  ;;  %v1432_v44 = vsel %vm1424_vm14, %v10575_v13, %v10636_v8  ;;  %v1452_v4 = vadd.f32 %v10636_v8, %v8564_v61  ;;  %v3274_v43 = vmul.f32 %v10638_v16, %v3240_v56  ;;  %v10639_v19 = vld [vmem:[#allocation40_spill] sm:$0xff] }
 0x6b6   : > { %10631 = vst [vmem:[#allocation86_spill] sm:$0xff] %v8796_v23  ;;  %v4389_v23 = vadd.f32 %v4379_v49, %v4361_v53  ;;  %v3887_v42 = vadd.f32 %v3877_v26, %v3859_v33  ;;  %v2261_v59 = vadd.f32 %v2241_v28, %v2046_v52  ;;  %v3409_v25 = vsel %vm1686_vm10, %v10587_v36, %v10639_v19  ;;  %v10641_v19 = vld [vmem:[#allocation144_spill] sm:$0xff] }
 0x6b7   : > { %v4163_v13 = vmul.f32 %v10598_v37, %v10534_v17  ;;  %v2621_v61 = vsel %vm2616_vm5, %v8673_v47, %v8556_v32  ;;  %v1451_v48 = vadd.f32 %v1432_v44, %v8531_v55  ;;  %v3352_v49 = vmul.f32 %v10545_v20, %v6455_v57  ;;  %v10642_v20 = vld [vmem:[#allocation29_spill] sm:$0xff]  ;;  %v10643_v28 = vld [vmem:[#allocation140_spill] sm:$0xff] }
 0x6b8   : > { %v4423_v22 = vmul.f32 %v8802_v34, %v4389_v23  ;;  %v3921_v52 = vmul.f32 %v10640_v60, %v3887_v42  ;;  %v2426_v56 = vadd.f32 %v2407_v27, %v2261_v59  ;;  %v3443_v36 = vmul.f32 %v10554_v14, %v6435_v39  ;;  %v10645_v16 = vld [vmem:[#allocation96_spill] sm:$0xff] }
 0x6b9   : > { %v1809_v38 = vsel %vm1758_vm11, %v10601_v62, %v10641_v19  ;;  %v4181_v32 = vmul.f32 %v10605_v11, %v6455_v57  ;;  %v8839_v55 = vmul.f32 0.0, %v10606_v63  ;;  %v1596_v59 = vsel %vm1591_vm12, %v10642_v20, %v10611_v0  ;;  %v10650_v20 = vld [vmem:[#allocation3_spill] sm:$0xff] }
 0x6ba   : > { %3297 = vrot.lane.b32.xlu2 %v3274_v43, %s5659_s25  ;;  %v1599_v33 = vsel %vm1591_vm12, %v10580_v9, %v10643_v28  ;;  %v3428_v26 = vadd.f32 %v3409_v25, %v3352_v49  ;;  %v2641_v53 = vadd.f32 %v2621_v61, %v2426_v56  ;;  %3946 = vrot.lane.b32.xlu1 %v3921_v52, %s5662_s20  ;;  %v10644_v43 = vld [vmem:[#allocation93_spill] sm:$0xff]  ;;  %v3446_v27 = vmul.f32 0.0, %v10554_v14  ;;  %v10646_v25 = vld [vmem:[#allocation178_spill] sm:$0xff] }
 0x6bb   : > { %4449 = vrot.lane.b32.xlu0 %v4423_v22, %s5665_s30  ;;  %v8849_v62 = vpop.permute.xlu2 %2909  ;;  %v3453_v23 = vadd.f32 %v3443_v36, %v3425_v41  ;;  %v2024_v42 = vsel %vm2021_vm2, %v10616_v12, %v10644_v43  ;;  %v4191_v8 = vadd.f32 %v4181_v32, %v4163_v13  ;;  %v1828_v9 = vadd.f32 %v1809_v38, %v8659_v15  ;;  %v10649_v36 = vld [vmem:[#allocation142_spill] sm:$0xff] }
 0x6bc   : > { %v2924_v0 = vsel %vm2919_vm9, %v8849_v62, %v8740_v18  ;;  %v8864_v22 = vsel %vm4241_vm15, %v10646_v25, %v10645_v16  ;;  %v8866_v41 = vpop.permute.xlu1 %2903  ;;  %v1615_v12 = vadd.f32 %v1596_v59, %v8719_v2  ;;  %v8872_v13 = vadd.f32 %v10643_v28, %v1452_v4  ;;  %v10648_v18 = vld [vmem:[#allocation102_spill] sm:$0xff]  ;;  %v10651_v59 = vld [vmem:[#allocation24_spill] sm:$0xff] }
 0x6bd   : > { %v8857_v44 = vpop.permute.xlu0 %3522  ;;  %10647 = vst [vmem:[#allocation127_spill] sm:$0xff] %v8864_v22  ;;  %v8868_v61 = vadd.f32 %v2924_v0, %v2641_v53  ;;  %v2239_v15 = vsel %vm2236_vm3, %v10618_v5, %v10648_v18  ;;  %v4219_v14 = vadd.f32 %v8839_v55, %v4191_v8  ;;  %v3456_v49 = vadd.f32 %v3446_v27, %v3428_v26  ;;  %v10652_v53 = vld [vmem:[#allocation22_spill] sm:$0xff]  ;;  %v10653_v8 = vld [vmem:[#allocation155_spill] sm:$0xff] }
 0x6be   : > { %v2043_v52 = vadd.f32 %v2024_v42, %v1828_v9  ;;  %v3487_v56 = vmul.f32 %v8736_v40, %v3453_v23  ;;  %v3568_v38 = vmul.f32 0.0, %v10649_v36  ;;  %v8880_v32 = vadd.f32 %v1599_v33, %v1451_v48  ;;  %v10654_v42 = vld [vmem:[#allocation60_spill] sm:$0xff]  ;;  %v10656_v33 = vld [vmem:[#allocation141_spill] sm:$0xff]  ;;  %v10658_v27 = vld [vmem:[#allocation111_spill] sm:$0xff] }
 0x6bf   : > { %v3241_v2 = vadd.f32 %v8662_v58, %v10650_v20  ;;  %v4253_v4 = vmul.f32 %v8864_v22, %v4219_v14  ;;  %v4328_v28 = vmul.f32 %v10651_v59, %v6445_v10  ;;  %v3490_v5 = vmul.f32 %v10652_v53, %v3456_v49  ;;  %v10655_v48 = vld [vmem:[#allocation8_spill] sm:$0xff]  ;;  %v10657_v58 = vld [vmem:[#allocation166_spill] sm:$0xff]  ;;  %v10659_v14 = vld [vmem:[#allocation43_spill] sm:$0xff] }
 0x6c0   : > { %v3662_v26 = vmul.f32 %v10653_v8, %v6576_v29  ;;  %v3778_v0 = vmul.f32 0.0, %v10654_v42  ;;  %v2258_v40 = vadd.f32 %v2239_v15, %v2043_v52  ;;  %v8894_v23 = vadd.f32 %v10656_v33, %v10655_v48  ;;  %v10660_v20 = vld [vmem:[#allocation158_spill] sm:$0xff]  ;;  %v10662_v53 = vld [vmem:[#allocation121_spill] sm:$0xff]  ;;  %v10663_v22 = vld [vmem:[#allocation103_spill] sm:$0xff] }
 0x6c1   : > { %v1810_v9 = vsel %vm1758_vm11, %v10641_v19, %v10657_v58  ;;  %v4374_v25 = vmul.f32 %v10658_v27, %v10534_v17  ;;  %v4346_v49 = vmul.f32 %v10659_v14, %v6435_v39  ;;  %v8905_v15 = vmul.f32 %v10660_v20, %v3241_v2  ;;  %v10661_v52 = vld [vmem:[#allocation134_spill] sm:$0xff] }
 0x6c2   : > { %3508 = vrot.lane.b32.xlu2 %v3487_v56, %s5660_s26  ;;  %v3644_v56 = vadd.f32 %v10661_v52, %v3568_v38  ;;  %v3854_v48 = vadd.f32 %v10662_v53, %v3778_v0  ;;  %v2423_v63 = vadd.f32 %v10663_v22, %v2258_v40  ;;  %3514 = vrot.lane.b32.xlu1 %v3490_v5, %s5660_s26  ;;  %v10665_v0 = vld [vmem:[#allocation6_spill] sm:$0xff]  ;;  %v10666_v5 = vld [vmem:[#allocation99_spill] sm:$0xff]  ;;  %vm3526_vm14 = vcmask 318464   ;;  %s5334_s26 = sshll.u32 %s10778_s28, 5 }
 0x6c3   : > { %4276 = vrot.lane.b32.xlu0 %v4253_v4, %s5664_s29  ;;  %v8911_v19 = vpop.permute.xlu2 %2602  ;;  %v1830_v58 = vadd.f32 %v10621_v46, %v1615_v12  ;;  %v8916_v42 = vmul.f32 %v10649_v36, %v6561_v21  ;;  %v4356_v4 = vadd.f32 %v4346_v49, %v4328_v28  ;;  %v1829_v20 = vadd.f32 %v1810_v9, %v10665_v0  ;;  %v10667_v12 = vld [vmem:[#allocation169_spill] sm:$0xff]  ;;  %v10668_v28 = vld [vmem:[#allocation90_spill] sm:$0xff] }
 0x6c4   : > { %v2619_v2 = vsel %vm2616_vm5, %v8689_v35, %v8911_v19  ;;  %v3672_v22 = vadd.f32 %v3662_v26, %v3644_v56  ;;  %v3872_v40 = vmul.f32 %v10666_v5, %v6445_v10  ;;  %v8926_v52 = vpop.permute.xlu1 %3126  ;;  %v1807_v53 = vsel %vm1758_vm11, %v10656_v33, %v10667_v12  ;;  %v10669_v49 = vld [vmem:[#allocation174_spill] sm:$0xff]  ;;  %v10671_v26 = vld [vmem:[#allocation37_spill] sm:$0xff]  ;;  %v10673_v12 = vld [vmem:[#allocation7_spill] sm:$0xff] }
 0x6c5   : > { %v8921_v38 = vpop.permute.xlu0 %3735  ;;  %v2638_v46 = vadd.f32 %v2619_v2, %v2423_v63  ;;  %v3842_v29 = vsel %vm1686_vm10, %v10669_v49, %v10668_v28  ;;  %v4384_v35 = vadd.f32 %v4374_v25, %v4356_v4  ;;  %v10670_v36 = vld [vmem:[#allocation114_spill] sm:$0xff]  ;;  %v4164_v33 = vmul.f32 %v10598_v37, %v6455_v57 }
 0x6c6   : > { %10664 = vst [vmem:[#allocation67_spill] sm:$0xff] %v8921_v38  ;;  %v3140_v9 = vsel %vm3134_vm7, %v8926_v52, %v10670_v36  ;;  %v3706_v56 = vmul.f32 %v10671_v26, %v3672_v22  ;;  %v3882_v0 = vadd.f32 %v3872_v40, %v3854_v48  ;;  %v3786_v38 = vmul.f32 %v10627_v54, %v6561_v21  ;;  %v10674_v22 = vld [vmem:[#allocation157_spill] sm:$0xff] }
 0x6c7   : > { %v8941_v63 = vadd.f32 %v3140_v9, %v8756_v3  ;;  %v4182_v2 = vmul.f32 0.0, %v10605_v11  ;;  %v4418_v25 = vmul.f32 %v8802_v34, %v4384_v35  ;;  %v2045_v4 = vadd.f32 %v10624_v31, %v1830_v58  ;;  %v10675_v9 = vld [vmem:[#allocation92_spill] sm:$0xff]  ;;  %v10676_v31 = vld [vmem:[#allocation150_spill] sm:$0xff]  ;;  %v10680_v35 = vld [vmem:[#allocation159_spill] sm:$0xff] }
 0x6c8   : > { %v8949_v5 = vadd.f32 %v1807_v53, %v10673_v12  ;;  %v3563_v48 = vmul.f32 0.0, %v10674_v22  ;;  %v3862_v40 = vadd.f32 %v3842_v29, %v3786_v38  ;;  %v3916_v36 = vmul.f32 %v10640_v60, %v3882_v0  ;;  %v10677_v58 = vld [vmem:[#allocation172_spill] sm:$0xff]  ;;  %v10678_v38 = vld [vmem:[#allocation161_spill] sm:$0xff] }
 0x6c9   : > { %10672 = vst [vmem:[#allocation126_spill] sm:$0xff] %v8941_v63  ;;  %v3657_v3 = vmul.f32 %v10614_v6, %v6445_v10  ;;  %v8958_v11 = vmul.f32 %v10653_v8, %v10675_v9  ;;  %v2260_v34 = vadd.f32 %v10630_v24, %v2045_v4  ;;  %v1814_v29 = vsel %vm1758_vm11, %v10677_v58, %v10676_v31  ;;  %v10679_v53 = vld [vmem:[#allocation44_spill] sm:$0xff]  ;;  %v10681_v0 = vld [vmem:[#allocation177_spill] sm:$0xff] }
 0x6ca   : > { %3731 = vrot.lane.b32.xlu2 %v3706_v56, %s5661_s21  ;;  %v2025_v60 = vsel %vm2021_vm2, %v10644_v43, %v10678_v38  ;;  %v2029_v6 = vsel %vm2021_vm2, %v10680_v35, %v10679_v53  ;;  %v3880_v56 = vmul.f32 %v10628_v51, %v10675_v9  ;;  %3936 = vrot.lane.b32.xlu1 %v3916_v36, %s5662_s20  ;;  %v4349_v12 = vmul.f32 0.0, %v10659_v14  ;;  %v10683_v53 = vld [vmem:[#allocation12_spill] sm:$0xff] }
 0x6cb   : > { %4439 = vrot.lane.b32.xlu0 %v4418_v25, %s5665_s30  ;;  %v10682_v25 = vld [vmem:[#allocation64_spill] sm:$0xff]  ;;  %v4192_v22 = vadd.f32 %v4182_v2, %v4164_v33  ;;  %v2406_v36 = vsel %vm1375_vm8, %v10683_v53, %v10637_v7  ;;  %v4331_v33 = vmul.f32 %v10651_v59, %v6455_v57  ;;  %v1834_v7 = vadd.f32 %v1814_v29, %v8872_v13 }
 0x6cc   : > { %v8974_v24 = vpop.permute.xlu2 %2901  ;;  %v8979_v4 = vsel %vm3907_vm6, %v10682_v25, %v10681_v0  ;;  %v3890_v38 = vadd.f32 %v3880_v56, %v3862_v40  ;;  %v8988_v37 = vpop.permute.xlu1 %2905  ;;  %v2425_v14 = vadd.f32 %v2406_v36, %v2260_v34  ;;  %v10685_v56 = vld [vmem:[#allocation38_spill] sm:$0xff]  ;;  %v9014_v34 = vmul.f32 0.0, %v10658_v27  ;;  %v10690_v36 = vld [vmem:[#allocation143_spill] sm:$0xff] }
 0x6cd   : > { %v2921_v43 = vsel %vm2919_vm9, %v8974_v24, %v8866_v41  ;;  %v3525_v31 = vpop.permute.xlu0 %3524  ;;  %v4220_v2 = vadd.f32 %v8839_v55, %v4192_v22  ;;  %v2922_v40 = vsel %vm2919_vm9, %v8866_v41, %v8988_v37  ;;  %v2044_v13 = vadd.f32 %v2025_v60, %v1829_v20  ;;  %v10688_v22 = vld [vmem:[#allocation69_spill] sm:$0xff] }
 0x6ce   : > { %v2940_v10 = vadd.f32 %v2921_v43, %v8806_v50  ;;  %v8993_v63 = vsel %vm3526_vm14, %v8857_v44, %v3525_v31  ;;  %v2022_v50 = vsel %vm2021_vm2, %v10685_v56, %v10617_v30  ;;  %v10686_v43 = vld [vmem:[#allocation47_spill] sm:$0xff]  ;;  %v9006_v31 = vadd.f32 %v2922_v40, %v2638_v46  ;;  %10687 = vst [vmem:[#allocation173_spill] sm:$0xff] %v9014_v34  ;;  %v10692_v60 = vld [vmem:[#allocation49_spill] sm:$0xff] }
 0x6cf   : > { %10684 = vst [vmem:[#allocation46_spill] sm:$0xff] %v8993_v63  ;;  %v3639_v53 = vadd.f32 %v10686_v43, %v3563_v48  ;;  %v9010_v63 = vadd.f32 %v10685_v56, %v8894_v23  ;;  %v4254_v55 = vmul.f32 %v10645_v16, %v4220_v2  ;;  %v2640_v41 = vadd.f32 %v8673_v47, %v2425_v14  ;;  %v10689_v23 = vld [vmem:[#allocation63_spill] sm:$0xff]  ;;  %v10691_v2 = vld [vmem:[#allocation4_spill] sm:$0xff] }
 0x6d0   : > { %v2049_v29 = vadd.f32 %v2029_v6, %v1834_v7  ;;  %v4000_v30 = vmul.f32 %v10688_v22, %v6641_v45  ;;  %v3924_v48 = vmul.f32 %v8979_v4, %v3890_v38  ;;  %v1813_v46 = vsel %vm1758_vm11, %v10689_v23, %v10677_v58  ;;  %v10693_v6 = vld [vmem:[#allocation152_spill] sm:$0xff]  ;;  %v10704_v16 = vld [vmem:[#allocation95_spill] sm:$0xff] }
 0x6d1   : > { %v2244_v40 = vsel %vm2236_vm3, %v10691_v2, %v10690_v36  ;;  %v2943_v47 = vadd.f32 %v8849_v62, %v2640_v41  ;;  %v4359_v14 = vadd.f32 %v4349_v12, %v4331_v33  ;;  %v3667_v20 = vadd.f32 %v3657_v3, %v3639_v53  ;;  %v10695_v56 = vld [vmem:[#allocation76_spill] sm:$0xff] }
 0x6d2   : > { %3299 = vrot.lane.b32.xlu2 %v8905_v15, %s5659_s25  ;;  %v3627_v38 = vsel %vm1686_vm10, %v10693_v6, %v10692_v60  ;;  %v10694_v15 = vld [vmem:[#allocation56_spill] sm:$0xff]  ;;  %v4046_v58 = vmul.f32 %v10695_v56, %v10675_v9  ;;  %3952 = vrot.lane.b32.xlu1 %v3924_v48, %s5662_s20  ;;  %v2240_v62 = vsel %vm2236_vm3, %v10648_v18, %v8730_v1  ;;  %v10697_v1 = vld [vmem:[#allocation51_spill] sm:$0xff]  ;;  %vm3311_vm11 = vcmask 883712  }
 0x6d3   : > { %4278 = vrot.lane.b32.xlu0 %v4254_v55, %s5664_s29  ;;  %v4018_v7 = vmul.f32 %v10694_v15, %v6561_v21  ;;  %v4387_v53 = vadd.f32 %v9014_v34, %v4359_v14  ;;  %v3787_v55 = vmul.f32 %v10627_v54, %v10675_v9  ;;  %v2264_v23 = vadd.f32 %v2244_v40, %v2049_v29  ;;  %v10700_v14 = vld [vmem:[#allocation28_spill] sm:$0xff] }
 0x6d4   : > { %v3125_v43 = vpop.permute.xlu2 %3124  ;;  %v9048_v36 = vpop.permute.xlu1 %3116  ;;  %v3647_v6 = vadd.f32 %v3627_v38, %v8916_v42  ;;  %v3843_v18 = vsel %vm1686_vm10, %v10668_v28, %v10697_v1  ;;  %v3701_v29 = vmul.f32 %v10671_v26, %v3667_v20  ;;  %v2041_v42 = vadd.f32 %v2022_v50, %v8949_v5  ;;  %v10701_v28 = vld [vmem:[#allocation130_spill] sm:$0xff]  ;;  %v10707_v20 = vld [vmem:[#allocation48_spill] sm:$0xff] }
 0x6d5   : > { %v3139_v3 = vsel %vm3134_vm7, %v3125_v43, %v8926_v52  ;;  %v3158_v12 = vadd.f32 %v3125_v43, %v2943_v47  ;;  %v9043_v33 = vpop.permute.xlu0 %3725  ;;  %v4028_v41 = vadd.f32 %v4018_v7, %v4000_v30  ;;  %v10698_v52 = vld [vmem:[#allocation23_spill] sm:$0xff]  ;;  %v10699_v47 = vld [vmem:[#allocation138_spill] sm:$0xff]  ;;  %v3136_v30 = vsel %vm3134_vm7, %v9048_v36, %v10700_v14 }
 0x6d6   : > { %10696 = vst [vmem:[#allocation81_spill] sm:$0xff] %v9043_v33  ;;  %v3159_v48 = vadd.f32 %v3139_v3, %v8868_v61  ;;  %v9058_v43 = vsel %vm4074_vm13, %v10699_v47, %v10698_v52  ;;  %v2259_v7 = vadd.f32 %v2240_v62, %v2044_v13  ;;  %v9064_v61 = vadd.f32 %v3136_v30, %v2940_v10  ;;  %v10702_v3 = vld [vmem:[#allocation53_spill] sm:$0xff]  ;;  %v10703_v52 = vld [vmem:[#allocation59_spill] sm:$0xff]  ;;  %v10705_v13 = vld [vmem:[#allocation120_spill] sm:$0xff] }
 0x6d7   : > { %v4056_v40 = vadd.f32 %v4046_v58, %v4028_v41  ;;  %v1833_v38 = vadd.f32 %v1813_v46, %v8880_v32  ;;  %v2624_v1 = vsel %vm2616_vm5, %v10702_v3, %v10701_v28  ;;  %v4421_v34 = vmul.f32 %v10703_v52, %v4387_v53  ;;  %v10706_v46 = vld [vmem:[#allocation163_spill] sm:$0xff]  ;;  %v10709_v53 = vld [vmem:[#allocation104_spill] sm:$0xff] }
 0x6d8   : > { %v2028_v33 = vsel %vm2021_vm2, %v10704_v16, %v10680_v35  ;;  %v3863_v27 = vadd.f32 %v3843_v18, %v3787_v55  ;;  %v2429_v10 = vadd.f32 %v10705_v13, %v2264_v23  ;;  %v3675_v5 = vadd.f32 %v8958_v11, %v3647_v6  ;;  %v10708_v16 = vld [vmem:[#allocation84_spill] sm:$0xff]  ;;  %v10711_v6 = vld [vmem:[#allocation15_spill] sm:$0xff] }
 0x6d9   : > { %v4090_v26 = vmul.f32 %v9058_v43, %v4056_v40  ;;  %v3785_v32 = vmul.f32 %v10627_v54, %v6641_v45  ;;  %v3881_v50 = vmul.f32 0.0, %v10628_v51  ;;  %v2237_v58 = vsel %vm2236_vm3, %v10707_v20, %v10706_v46  ;;  %v10710_v54 = vld [vmem:[#allocation80_spill] sm:$0xff]  ;;  %v10712_v18 = vld [vmem:[#allocation75_spill] sm:$0xff] }
 0x6da   : > { %3721 = vrot.lane.b32.xlu2 %v3701_v29, %s5661_s21  ;;  %v2243_v35 = vsel %vm2236_vm3, %v10708_v16, %v10691_v2  ;;  %v2644_v62 = vadd.f32 %v2624_v1, %v2429_v10  ;;  %v2424_v55 = vadd.f32 %v10709_v53, %v2259_v7  ;;  %v3841_v41 = vsel %vm1686_vm10, %v10710_v54, %v10669_v49  ;;  %v10713_v40 = vld [vmem:[#allocation108_spill] sm:$0xff]  ;;  %v10714_v46 = vld [vmem:[#allocation175_spill] sm:$0xff] }
 0x6db   : > { %4445 = vrot.lane.b32.xlu0 %v4421_v34, %s5665_s30  ;;  %4117 = vrot.lane.b32.xlu1 %v4090_v26, %s5663_s2  ;;  %v2048_v23 = vadd.f32 %v2028_v33, %v1833_v38  ;;  %v2403_v34 = vsel %vm1375_vm8, %v10712_v18, %v10711_v6  ;;  %v3891_v29 = vadd.f32 %v3881_v50, %v3863_v27  ;;  %v10715_v16 = vld [vmem:[#allocation124_spill] sm:$0xff]  ;;  %v10716_v33 = vld [vmem:[#allocation14_spill] sm:$0xff]  ;;  %vm4457_vm12 = vcmask 752640  }
 0x6dc   : > { %v2605_v11 = vpop.permute.xlu2 %2604  ;;  %v3709_v28 = vmul.f32 %v10713_v40, %v3675_v5  ;;  %v2256_v1 = vadd.f32 %v2237_v58, %v2041_v42  ;;  %v3302_v26 = vpop.permute.xlu1 %3301  ;;  %v2617_v49 = vsel %vm2616_vm5, %v10715_v16, %v10714_v46  ;;  %v10718_v42 = vld [vmem:[#allocation98_spill] sm:$0xff]  ;;  %v2255_v58 = vadd.f32 %v10707_v20, %v9010_v63 }
 0x6dd   : > { %v2620_v30 = vsel %vm2616_vm5, %v8911_v19, %v2605_v11  ;;  %v9099_v2 = vpop.permute.xlu0 %3948  ;;  %v2263_v10 = vadd.f32 %v2243_v35, %v2048_v23  ;;  %v3316_v38 = vsel %vm3311_vm11, %v3302_v26, %v10716_v33  ;;  %v9107_v53 = vadd.f32 %v3302_v26, %v3158_v12  ;;  %v10717_v19 = vld [vmem:[#allocation5_spill] sm:$0xff]  ;;  %v10719_v35 = vld [vmem:[#allocation116_spill] sm:$0xff]  ;;  %v10720_v12 = vld [vmem:[#allocation11_spill] sm:$0xff] }
 0x6de   : > { %v2639_v7 = vadd.f32 %v2620_v30, %v2424_v55  ;;  %v2402_v11 = vsel %vm1375_vm8, %v10717_v19, %v10712_v18  ;;  %v2421_v27 = vadd.f32 %v2403_v34, %v2256_v1  ;;  %v9112_v50 = vadd.f32 %v3316_v38, %v3159_v48  ;;  %v10722_v34 = vld [vmem:[#allocation72_spill] sm:$0xff]  ;;  %v10725_v26 = vld [vmem:[#allocation142_spill] sm:$0xff] }
 0x6df   : > { %v9115_v5 = vadd.f32 %v10718_v42, %v2644_v62  ;;  %v2920_v55 = vsel %vm2919_vm9, %v10719_v35, %v8974_v24  ;;  %v3861_v54 = vadd.f32 %v3841_v41, %v3785_v32  ;;  %v4013_v23 = vmul.f32 %v10720_v12, %v10534_v17  ;;  %v10721_v62 = vld [vmem:[#allocation25_spill] sm:$0xff] }
 0x6e0   : > { %v2636_v6 = vadd.f32 %v2617_v49, %v2421_v27  ;;  %v3925_v18 = vmul.f32 %v10681_v0, %v3891_v29  ;;  %v3879_v48 = vmul.f32 %v10628_v51, %v6561_v21  ;;  %v2409_v63 = vsel %vm1375_vm8, %v10721_v62, %v10705_v13  ;;  %v10723_v32 = vld [vmem:[#allocation97_spill] sm:$0xff]  ;;  %v10729_v62 = vld [vmem:[#allocation87_spill] sm:$0xff] }
 0x6e1   : > { %v2420_v20 = vadd.f32 %v2402_v11, %v2255_v58  ;;  %v3995_v24 = vmul.f32 %v10722_v34, %v6435_v39  ;;  %v4041_v41 = vmul.f32 %v10723_v32, %v6455_v57  ;;  %v2428_v30 = vadd.f32 %v2409_v63, %v2263_v10  ;;  %v10726_v11 = vld [vmem:[#allocation33_spill] sm:$0xff] }
 0x6e2   : > { %3737 = vrot.lane.b32.xlu2 %v3709_v28, %s5661_s21  ;;  %v2939_v40 = vadd.f32 %v2920_v55, %v2636_v6  ;;  %v10724_v28 = vld [vmem:[#allocation39_spill] sm:$0xff]  ;;  %v3572_v46 = vmul.f32 %v10725_v26, %v10675_v9  ;;  %v3889_v49 = vadd.f32 %v3879_v48, %v3861_v54  ;;  %v3628_v27 = vsel %vm1686_vm10, %v10692_v60, %v10726_v11  ;;  %v10727_v42 = vld [vmem:[#allocation21_spill] sm:$0xff]  ;;  %v10734_v26 = vld [vmem:[#allocation114_spill] sm:$0xff] }
 0x6e3   : > { %3954 = vrot.lane.b32.xlu1 %v3925_v18, %s5662_s20  ;;  %v3909_v51 = vsel %vm3907_vm6, %v10724_v28, %v10682_v25  ;;  %v4023_v38 = vadd.f32 %v4013_v23, %v3995_v24  ;;  %v2623_v25 = vsel %vm2616_vm5, %v10727_v42, %v10702_v3  ;;  %v2635_v58 = vadd.f32 %v10715_v16, %v2420_v20  ;;  %v10728_v48 = vld [vmem:[#allocation91_spill] sm:$0xff]  ;;  %v10730_v24 = vld [vmem:[#allocation94_spill] sm:$0xff] }
 0x6e4   : > { %v3115_v29 = vpop.permute.xlu2 %3114  ;;  %v2908_v19 = vpop.permute.xlu1 %2907  ;;  %v3923_v55 = vmul.f32 %v3909_v51, %v3889_v49  ;;  %v2643_v54 = vadd.f32 %v2623_v25, %v2428_v30  ;;  %v3648_v23 = vadd.f32 %v3628_v27, %v3572_v46  ;;  %v4166_v63 = vmul.f32 %v10729_v62, %v10728_v48  ;;  %v10731_v3 = vld [vmem:[#allocation74_spill] sm:$0xff]  ;;  %v10737_v27 = vld [vmem:[#allocation100_spill] sm:$0xff]  ;;  %v10738_v25 = vld [vmem:[#allocation9_spill] sm:$0xff] }
 0x6e5   : > { %v3135_v1 = vsel %vm3134_vm7, %v3115_v29, %v9048_v36  ;;  %v9141_v13 = vpop.permute.xlu0 %3727  ;;  %v2923_v36 = vsel %vm2919_vm9, %v8988_v37, %v2908_v19  ;;  %v4051_v6 = vadd.f32 %v4041_v41, %v4023_v38  ;;  %v2926_v16 = vsel %vm2919_vm9, %v10731_v3, %v10730_v24  ;;  %v10733_v30 = vld [vmem:[#allocation66_spill] sm:$0xff]  ;;  %v10742_v24 = vld [vmem:[#allocation61_spill] sm:$0xff] }
 0x6e6   : > { %v3154_v10 = vadd.f32 %v3135_v1, %v2939_v40  ;;  %v9154_v18 = vadd.f32 %v2923_v36, %v2639_v7  ;;  %v2938_v20 = vadd.f32 %v10719_v35, %v2635_v58  ;;  %v3666_v37 = vmul.f32 0.0, %v10653_v8  ;;  %v10732_v7 = vld [vmem:[#allocation179_spill] sm:$0xff]  ;;  %v10736_v11 = vld [vmem:[#allocation42_spill] sm:$0xff] }
 0x6e7   : > { %v4085_v60 = vmul.f32 %v9058_v43, %v4051_v6  ;;  %v4184_v41 = vmul.f32 %v10732_v7, %v6641_v45  ;;  %v4212_v40 = vmul.f32 %v10733_v30, %v6561_v21  ;;  %v2946_v43 = vadd.f32 %v2926_v16, %v2643_v54 }
 0x6e8   : > { %v3153_v1 = vadd.f32 %v3115_v29, %v2938_v20  ;;  %v3676_v38 = vadd.f32 %v3666_v37, %v3648_v23  ;;  %v4242_v42 = vsel %vm4241_vm15, %v10737_v27, %v10736_v11  ;;  %v4014_v16 = vmul.f32 %v10720_v12, %v6455_v57  ;;  %v10744_v20 = vld [vmem:[#allocation99_spill] sm:$0xff]  ;;  %v10746_v11 = vld [vmem:[#allocation126_spill] sm:$0xff] }
 0x6e9   : > { %v4194_v35 = vadd.f32 %v4184_v41, %v4166_v63  ;;  %v10743_v63 = vld [vmem:[#allocation60_spill] sm:$0xff]  ;;  %v3874_v37 = vmul.f32 %v10744_v20, %v10534_v17  ;;  %vm3741_vm8 = vcmask 310272   ;;  %vm3956_vm6 = vcmask 302080  }
 0x6ea   : > { %3950 = vrot.lane.b32.xlu2 %v3923_v55, %s5662_s20  ;;  %v10740_v55 = vld [vmem:[#allocation70_spill] sm:$0xff]  ;;  %v3780_v3 = vmul.f32 %v10743_v63, %v6435_v39  ;;  %vm4290_vm9 = vcmask 769024  }
 0x6eb   : > { %4107 = vrot.lane.b32.xlu1 %v4085_v60, %s5663_s2  ;;  %v3710_v29 = vmul.f32 %v10740_v55, %v3676_v38  ;;  %v4222_v6 = vadd.f32 %v4212_v40, %v4194_v35  ;;  %v10741_v60 = vld [vmem:[#allocation50_spill] sm:$0xff]  ;;  %v3999_v55 = vmul.f32 %v10688_v22, %v10728_v48  ;;  %v10748_v22 = vld [vmem:[#allocation85_spill] sm:$0xff] }
 0x6ec   : > { %v3131_v28 = vpop.permute.xlu2 %3130  ;;  %v3292_v19 = vpop.permute.xlu1 %3291  ;;  %v3837_v23 = vsel %vm1686_vm10, %v10742_v24, %v10741_v60 }
 0x6ed   : > { %v3141_v46 = vsel %vm3134_vm7, %v10734_v26, %v3131_v28  ;;  %v9172_v49 = vpop.permute.xlu0 %3938  ;;  %v3312_v58 = vsel %vm3311_vm11, %v3292_v19, %v10738_v25  ;;  %v9179_v36 = vadd.f32 %v3292_v19, %v3153_v1  ;;  %v4256_v41 = vmul.f32 %v4242_v42, %v4222_v6 }
 0x6ee   : > { %10735 = vst [vmem:[#allocation34_spill] sm:$0xff] %v9172_v49  ;;  %v3161_v8 = vadd.f32 %v3141_v46, %v2946_v43  ;;  %v9182_v54 = vadd.f32 %v3312_v58, %v3154_v10  ;;  %v3996_v10 = vmul.f32 %v10722_v34, %v10534_v17  ;;  %v3856_v40 = vadd.f32 %v3837_v23, %v3780_v3  ;;  %v10755_v49 = vld [vmem:[#allocation58_spill] sm:$0xff] }
 0x6ef   : > { %10739 = vst [vmem:[#allocation10_spill] sm:$0xff] %v9179_v36  ;;  %v9197_v43 = vmul.f32 0.0, %v10723_v32 }
 0x6f0   : > { %v3884_v38 = vadd.f32 %v3874_v37, %v3856_v40  ;;  %v4024_v35 = vadd.f32 %v4014_v16, %v3996_v10  ;;  %v4017_v16 = vmul.f32 %v10694_v15, %v6641_v45  ;;  %v10749_v10 = vld [vmem:[#allocation41_spill] sm:$0xff]  ;;  %v10753_v15 = vld [vmem:[#allocation62_spill] sm:$0xff] }
 0x6f1   : > { %v4161_v40 = vmul.f32 %v10749_v10, %v10748_v22 }
 0x6f2   : > { %3739 = vrot.lane.b32.xlu2 %v3710_v29, %s5661_s21  ;;  %v10747_v29 = vld [vmem:[#allocation101_spill] sm:$0xff]  ;;  %v3918_v23 = vmul.f32 %v3909_v51, %v3884_v38  ;;  %v10751_v51 = vld [vmem:[#allocation176_spill] sm:$0xff]  ;;  %v4027_v38 = vadd.f32 %v4017_v16, %v3999_v55 }
 0x6f3   : > { %4282 = vrot.lane.b32.xlu1 %v4256_v41, %s5664_s29  ;;  %v3137_v6 = vsel %vm3134_vm7, %v10700_v14, %v10747_v29  ;;  %v4045_v41 = vmul.f32 %v10695_v56, %v6561_v21  ;;  %v10754_v29 = vld [vmem:[#allocation54_spill] sm:$0xff] }
 0x6f4   : > { %v3306_v1 = vpop.permute.xlu2 %3305  ;;  %v3308_v19 = vpop.permute.xlu1 %3307  ;;  %v9215_v37 = vadd.f32 %v3137_v6, %v9006_v31  ;;  %v4075_v6 = vsel %vm4074_vm13, %v10754_v29, %v10699_v47  ;;  %v4350_v47 = vmul.f32 %v10755_v49, %v10728_v48 }
 0x6f5   : > { %v3317_v26 = vsel %vm3311_vm11, %v10716_v33, %v3306_v1  ;;  %v9202_v46 = vpop.permute.xlu0 %4113  ;;  %v3318_v24 = vsel %vm3311_vm11, %v3306_v1, %v3308_v19  ;;  %v4052_v33 = vadd.f32 %v9197_v43, %v4024_v35  ;;  %v4179_v1 = vmul.f32 %v10751_v51, %v6435_v39 }
 0x6f6   : > { %10745 = vst [vmem:[#allocation71_spill] sm:$0xff] %v9202_v46  ;;  %v9205_v58 = vadd.f32 %v3317_v26, %v10746_v11  ;;  %v3338_v3 = vadd.f32 %v3318_v24, %v3161_v8  ;;  %v10750_v26 = vld [vmem:[#allocation68_spill] sm:$0xff]  ;;  %v10752_v8 = vld [vmem:[#allocation65_spill] sm:$0xff]  ;;  %v4207_v35 = vmul.f32 %v10753_v15, %v10534_v17  ;;  %v3781_v11 = vmul.f32 %v10743_v63, %v10534_v17 }
 0x6f7   : > { %v4086_v14 = vmul.f32 %v10750_v26, %v4052_v33  ;;  %v3838_v31 = vsel %vm1686_vm10, %v10741_v60, %v10752_v8  ;;  %v4055_v33 = vadd.f32 %v4045_v41, %v4027_v38  ;;  %v4189_v60 = vadd.f32 %v4179_v1, %v4161_v40  ;;  %v10756_v40 = vld [vmem:[#allocation182_spill] sm:$0xff] }
 0x6f8   : > { %v3875_v41 = vmul.f32 %v10744_v20, %v6455_v57  ;;  %v10757_v1 = vld [vmem:[#allocation30_spill] sm:$0xff] }
 0x6f9   : > { %v4089_v29 = vmul.f32 %v4075_v6, %v4055_v33  ;;  %v4217_v36 = vadd.f32 %v4207_v35, %v4189_v60  ;;  %v4378_v38 = vmul.f32 %v10757_v1, %v6641_v45 }
 0x6fa   : > { %3940 = vrot.lane.b32.xlu2 %v3918_v23, %s5662_s20 }
 0x6fb   : > { %4109 = vrot.lane.b32.xlu1 %v4086_v14, %s5663_s2  ;;  %v3857_v14 = vadd.f32 %v3838_v31, %v3781_v11 }
 0x6fc   : > { %v3133_v56 = vpop.permute.xlu2 %3132  ;;  %v3521_v55 = vpop.permute.xlu1 %3520 }
 0x6fd   : > { %v3142_v24 = vsel %vm3134_vm7, %v3131_v28, %v3133_v56  ;;  %v3730_v23 = vpop.permute.xlu0 %3729  ;;  %v3533_v46 = vsel %vm3526_vm14, %v3521_v55, %v8857_v44  ;;  %v4251_v56 = vmul.f32 %v4242_v42, %v4217_v36  ;;  %v3885_v31 = vadd.f32 %v3875_v41, %v3857_v14 }
 0x6fe   : > { %v3162_v16 = vadd.f32 %v3142_v24, %v9115_v5  ;;  %v9242_v26 = vsel %vm3741_vm8, %v9141_v13, %v3730_v23  ;;  %v9248_v28 = vadd.f32 %v3533_v46, %v3338_v3  ;;  %v4332_v5 = vmul.f32 0.0, %v10756_v40 }
 0x6ff   : > { %v4012_v42 = vmul.f32 %v10720_v12, %v6435_v39  ;;  %v3919_v60 = vmul.f32 %v8979_v4, %v3885_v31  ;;  %v4015_v14 = vmul.f32 0.0, %v10720_v12 }
 0x700   : > { %v4360_v11 = vadd.f32 %v4350_v47, %v4332_v5  ;;  %v4040_v47 = vmul.f32 %v10723_v32, %v10534_v17  ;;  %v10759_v5 = vld [vmem:[#allocation73_spill] sm:$0xff] }
 0x702   : > { %4115 = vrot.lane.b32.xlu2 %v4089_v29, %s5663_s2  ;;  %v4388_v23 = vadd.f32 %v4378_v38, %v4360_v11 }
 0x703   : > { %4272 = vrot.lane.b32.xlu1 %v4251_v56, %s5664_s29 }
 0x704   : > { %v3296_v44 = vpop.permute.xlu2 %3295  ;;  %v3310_v35 = vpop.permute.xlu1 %3309 }
 0x705   : > { %v3313_v46 = vsel %vm3311_vm11, %v10738_v25, %v3296_v44  ;;  %v9259_v3 = vpop.permute.xlu0 %4103  ;;  %v3319_v33 = vsel %vm3311_vm11, %v3308_v19, %v3310_v35  ;;  %v3994_v25 = vmul.f32 %v10722_v34, %v10748_v22  ;;  %v3997_v19 = vmul.f32 %v10722_v34, %v6455_v57 }
 0x706   : > { %v9262_v24 = vadd.f32 %v3313_v46, %v9064_v61  ;;  %v9267_v36 = vadd.f32 %v3319_v33, %v3162_v16  ;;  %v10758_v61 = vld [vmem:[#allocation180_spill] sm:$0xff]  ;;  %v4327_v35 = vmul.f32 0.0, %v10651_v59  ;;  %v4165_v33 = vmul.f32 0.0, %v10729_v62 }
 0x707   : > { %v4422_v29 = vmul.f32 %v10758_v61, %v4388_v23  ;;  %v4022_v41 = vadd.f32 %v4012_v42, %v3994_v25  ;;  %v4025_v4 = vadd.f32 %v4015_v14, %v3997_v19  ;;  %v10760_v42 = vld [vmem:[#allocation148_spill] sm:$0xff]  ;;  %v10762_v25 = vld [vmem:[#allocation26_spill] sm:$0xff] }
 0x709   : > { %v4050_v32 = vadd.f32 %v4040_v47, %v4022_v41  ;;  %v4053_v34 = vadd.f32 %v9197_v43, %v4025_v4  ;;  %v4183_v43 = vmul.f32 %v10732_v7, %v10728_v48  ;;  %v3782_v4 = vmul.f32 %v10743_v63, %v6455_v57 }
 0x70a   : > { %3942 = vrot.lane.b32.xlu2 %v3919_v60, %s5662_s20  ;;  %v9294_v60 = vadd.f32 %v10760_v42, %v9154_v18  ;;  %v3876_v63 = vmul.f32 0.0, %v10744_v20 }
 0x70b   : > { %4447 = vrot.lane.b32.xlu1 %v4422_v29, %s5665_s30  ;;  %v4084_v23 = vmul.f32 %v4075_v6, %v4050_v32  ;;  %v4087_v47 = vmul.f32 %v10762_v25, %v4053_v34  ;;  %v10764_v29 = vld [vmem:[#allocation52_spill] sm:$0xff]  ;;  %v4193_v19 = vadd.f32 %v4183_v43, %v4165_v33  ;;  %v10765_v33 = vld [vmem:[#allocation67_spill] sm:$0xff]  ;;  %v10766_v43 = vld [vmem:[#allocation86_spill] sm:$0xff] }
 0x70c   : > { %v3519_v16 = vpop.permute.xlu2 %3518  ;;  %v3511_v31 = vpop.permute.xlu1 %3510  ;;  %v3839_v18 = vsel %vm1686_vm10, %v10752_v8, %v10764_v29  ;;  %vm4123_vm10 = vcmask 785408  }
 0x70d   : > { %v3531_v12 = vsel %vm3526_vm14, %v10759_v5, %v3519_v16  ;;  %v3532_v38 = vsel %vm3526_vm14, %v3519_v16, %v3521_v55  ;;  %v9283_v56 = vpop.permute.xlu0 %4119  ;;  %v10761_v55 = vld [vmem:[#allocation43_spill] sm:$0xff]  ;;  %v3858_v8 = vadd.f32 %v3839_v18, %v3782_v4 }
 0x70e   : > { %v9286_v11 = vadd.f32 %v3531_v12, %v9112_v50  ;;  %v3552_v46 = vadd.f32 %v3532_v38, %v9205_v58  ;;  %v4345_v14 = vmul.f32 %v10761_v55, %v10748_v22  ;;  %v4211_v50 = vmul.f32 %v10733_v30, %v6641_v45  ;;  %v10763_v58 = vld [vmem:[#allocation111_spill] sm:$0xff] }
 0x70f   : > { %v4373_v6 = vmul.f32 %v10763_v58, %v6435_v39 }
 0x710   : > { %v4355_v16 = vadd.f32 %v4345_v14, %v4327_v35  ;;  %v4221_v38 = vadd.f32 %v4211_v50, %v4193_v19  ;;  %v3886_v50 = vadd.f32 %v3876_v63, %v3858_v8 }
 0x712   : > { %4105 = vrot.lane.b32.xlu2 %v4084_v23, %s5663_s2  ;;  %v4383_v23 = vadd.f32 %v4373_v6, %v4355_v16  ;;  %v4255_v25 = vmul.f32 %v10737_v27, %v4221_v38  ;;  %v10767_v38 = vld [vmem:[#allocation149_spill] sm:$0xff] }
 0x713   : > { %4111 = vrot.lane.b32.xlu1 %v4087_v47, %s5663_s2  ;;  %v4381_v47 = vmul.f32 0.0, %v10757_v1  ;;  %s575_s2 = scalar_lea.vmem %s9702_s18, %s5334_s26 }
 0x714   : > { %v9310_v41 = vpop.permute.xlu2 %3297  ;;  %v3734_v32 = vpop.permute.xlu1 %3733  ;;  %v4417_v14 = vmul.f32 %v10758_v61, %v4383_v23  ;;  %v9346_v23 = vsel %vm4408_vm4, %v10767_v38, %v10703_v52 }
 0x715   : > { %v3314_v48 = vsel %vm3311_vm11, %v3296_v44, %v9310_v41  ;;  %v9316_v12 = vpop.permute.xlu0 %4284  ;;  %v3747_v42 = vsel %vm3741_vm8, %v3734_v32, %v10765_v33  ;;  %v4353_v44 = vmul.f32 %v10755_v49, %v10675_v9 }
 0x716   : > { %v3333_v34 = vadd.f32 %v3314_v48, %v9215_v37  ;;  %v9322_v35 = vadd.f32 %v3747_v42, %v3552_v46  ;;  %v4335_v37 = vmul.f32 %v10756_v40, %v6561_v21  ;;  %v3920_v48 = vmul.f32 %v10681_v0, %v3886_v50 }
 0x717   : > { %v4354_v42 = vmul.f32 0.0, %v10755_v49  ;;  %v4206_v0 = vmul.f32 %v10753_v15, %v6435_v39 }
 0x718   : > { %v4363_v18 = vadd.f32 %v4353_v44, %v4335_v37 }
 0x71a   : > { %4280 = vrot.lane.b32.xlu2 %v4255_v25, %s5664_s29  ;;  %v4391_v25 = vadd.f32 %v4381_v47, %v4363_v18  ;;  %v10768_v18 = vld [vmem:[#allocation81_spill] sm:$0xff] }
 0x71b   : > { %4437 = vrot.lane.b32.xlu1 %v4417_v14, %s5665_s30  ;;  %v4178_v14 = vmul.f32 %v10751_v51, %v10748_v22  ;;  %v4168_v51 = vmul.f32 %v10729_v62, %v6561_v21 }
 0x71c   : > { %v3509_v46 = vpop.permute.xlu2 %3508  ;;  %v3513_v61 = vpop.permute.xlu1 %3512  ;;  %v4425_v44 = vmul.f32 %v9346_v23, %v4391_v25 }
 0x71d   : > { %v3527_v20 = vsel %vm3526_vm14, %v10766_v43, %v3509_v46  ;;  %v3528_v6 = vsel %vm3526_vm14, %v3509_v46, %v3511_v31  ;;  %v4122_v29 = vpop.permute.xlu0 %4121  ;;  %v3529_v8 = vsel %vm3526_vm14, %v3511_v31, %v3513_v61  ;;  %v3550_v31 = vadd.f32 %v10759_v5, %v9107_v53 }
 0x71e   : > { %v3546_v19 = vadd.f32 %v3527_v20, %v9182_v54  ;;  %v3547_v16 = vadd.f32 %v3528_v6, %v9262_v24  ;;  %v9340_v4 = vsel %vm4123_vm10, %v9283_v56, %v4122_v29  ;;  %v4160_v54 = vmul.f32 0.0, %v10749_v10 }
 0x71f   : > { %v9351_v63 = vadd.f32 %v3529_v8, %v3333_v34  ;;  %v4336_v24 = vmul.f32 %v10756_v40, %v10675_v9 }
 0x720   : > { %v4188_v50 = vadd.f32 %v4178_v14, %v4160_v54  ;;  %v10770_v14 = vld [vmem:[#allocation46_spill] sm:$0xff] }
 0x721   : > { %v4364_v34 = vadd.f32 %v4354_v42, %v4336_v24 }
 0x722   : > { %3944 = vrot.lane.b32.xlu2 %v3920_v48, %s5662_s20  ;;  %v4216_v20 = vadd.f32 %v4206_v0, %v4188_v50  ;;  %v4186_v48 = vmul.f32 %v10732_v7, %v10675_v9  ;;  %v4352_v0 = vmul.f32 %v10755_v49, %v6561_v21  ;;  %v10771_v50 = vld [vmem:[#allocation10_spill] sm:$0xff]  ;;  %v10772_v21 = vld [vmem:[#allocation16_spill] sm:$0xff] }
 0x723   : > { %4453 = vrot.lane.b32.xlu1 %v4425_v44, %s5665_s30  ;;  %v4392_v29 = vadd.f32 %v4381_v47, %v4364_v34  ;;  %v4410_v49 = vsel %vm4408_vm4, %v10772_v21, %v10767_v38 }
 0x724   : > { %v3732_v10 = vpop.permute.xlu2 %3731  ;;  %v3724_v15 = vpop.permute.xlu1 %3723  ;;  %v4250_v53 = vmul.f32 %v10737_v27, %v4216_v20 }
 0x725   : > { %v3746_v37 = vsel %vm3741_vm8, %v3732_v10, %v3734_v32  ;;  %v3765_v46 = vadd.f32 %v3732_v10, %v3550_v31  ;;  %v3743_v22 = vsel %vm3741_vm8, %v3724_v15, %v10768_v18  ;;  %v4214_v32 = vmul.f32 0.0, %v10733_v30 }
 0x726   : > { %v3766_v6 = vadd.f32 %v3746_v37, %v9286_v11  ;;  %v9371_v5 = vadd.f32 %v3743_v22, %v3547_v16  ;;  %v4426_v8 = vmul.f32 %v10703_v52, %v4392_v29  ;;  %v4196_v11 = vadd.f32 %v4186_v48, %v4168_v51  ;;  %v10769_v52 = vld [vmem:[#allocation127_spill] sm:$0xff] }
 0x727   : > { %v3554_v31 = vadd.f32 %v10770_v14, %v9267_v36  ;;  %v3545_v10 = vadd.f32 %v10766_v43, %v10771_v50  ;;  %v4169_v29 = vmul.f32 %v10729_v62, %v10675_v9  ;;  %v4329_v62 = vmul.f32 %v10651_v59, %v6435_v39 }
 0x728   : > { %v4224_v27 = vadd.f32 %v4214_v32, %v4196_v11  ;;  %v10774_v11 = vld [vmem:[#allocation96_spill] sm:$0xff] }
 0x72a   : > { %4270 = vrot.lane.b32.xlu2 %v4250_v53, %s5664_s29  ;;  %v4258_v24 = vmul.f32 %v10769_v52, %v4224_v27 }
 0x72b   : > { %4455 = vrot.lane.b32.xlu1 %v4426_v8, %s5665_s30  ;;  %v10773_v8 = vld [vmem:[#allocation34_spill] sm:$0xff] }
 0x72c   : > { %v3300_v47 = vpop.permute.xlu2 %3299  ;;  %v3947_v16 = vpop.permute.xlu1 %3946 }
 0x72d   : > { %v3315_v42 = vsel %vm3311_vm11, %v9310_v41, %v3300_v47  ;;  %v3961_v54 = vsel %vm3956_vm6, %v3947_v16, %v9099_v2  ;;  %v9384_v30 = vadd.f32 %v3947_v16, %v3765_v46  ;;  %v4334_v41 = vmul.f32 %v10756_v40, %v6641_v45 }
 0x72e   : > { %v3334_v25 = vadd.f32 %v3315_v42, %v9294_v60  ;;  %v9389_v44 = vadd.f32 %v3961_v54, %v3766_v6  ;;  %v4380_v60 = vmul.f32 %v10757_v1, %v10675_v9  ;;  %v4187_v1 = vmul.f32 0.0, %v10732_v7 }
 0x72f   : > { %v4362_v34 = vadd.f32 %v4352_v0, %v4334_v41  ;;  %v4375_v42 = vmul.f32 %v10763_v58, %v6455_v57  ;;  %v4330_v16 = vmul.f32 %v10651_v59, %v10534_v17  ;;  %v3744_v58 = vsel %vm3741_vm8, %v10768_v18, %v9141_v13  ;;  %v10775_v41 = vld [vmem:[#allocation173_spill] sm:$0xff] }
 0x730   : > { %v4197_v51 = vadd.f32 %v4187_v1, %v4169_v29 }
 0x731   : > { %v4390_v20 = vadd.f32 %v4380_v60, %v4362_v34 }
 0x732   : > { %4286 = vrot.lane.b32.xlu2 %v4258_v24, %s5664_s29  ;;  %v4348_v24 = vmul.f32 %v10761_v55, %v6455_v57 }
 0x733   : > { %v4424_v43 = vmul.f32 %v4410_v49, %v4390_v20 }
 0x734   : > { %v3722_v37 = vpop.permute.xlu2 %3721  ;;  %v3515_v6 = vpop.permute.xlu1 %3514 }
 0x735   : > { %v3742_v46 = vsel %vm3741_vm8, %v3722_v37, %v3724_v15  ;;  %v3760_v36 = vadd.f32 %v3722_v37, %v3545_v10  ;;  %v3530_v40 = vsel %vm3526_vm14, %v3513_v61, %v3515_v6  ;;  %v4225_v15 = vadd.f32 %v4214_v32, %v4197_v51 }
 0x736   : > { %v3761_v45 = vadd.f32 %v3742_v46, %v3546_v19  ;;  %v3549_v22 = vadd.f32 %v3530_v40, %v3334_v25  ;;  %vm4933_vm14 = vcmask 1043456  }
 0x737   : > { %v4259_v9 = vmul.f32 %v10774_v11, %v4225_v15 }
 0x738   : > { %v3764_v20 = vadd.f32 %v9242_v26, %v3549_v22  ;;  %v10776_v26 = vld [vmem:[#allocation71_spill] sm:$0xff] }
 0x73a   : > { %4451 = vrot.lane.b32.xlu2 %v4424_v43, %s5665_s30 }
 0x73c   : > { %v3738_v53 = vpop.permute.xlu2 %3737  ;;  %v3937_v48 = vpop.permute.xlu1 %3936 }
 0x73d   : > { %v3748_v38 = vsel %vm3741_vm8, %v10765_v33, %v3738_v53  ;;  %v3957_v61 = vsel %vm3956_vm6, %v3937_v48, %v10773_v8  ;;  %v9414_v7 = vadd.f32 %v3937_v48, %v3760_v36  ;;  %v4347_v33 = vmul.f32 %v10761_v55, %v10534_v17 }
 0x73e   : > { %v3768_v19 = vadd.f32 %v3748_v38, %v9248_v28  ;;  %v9419_v47 = vadd.f32 %v3957_v61, %v3761_v45  ;;  %v4358_v17 = vadd.f32 %v4348_v24, %v4330_v16 }
 0x73f   : > { %v4357_v28 = vadd.f32 %v4347_v33, %v4329_v62 }
 0x740   : > { %v4386_v60 = vadd.f32 %v10775_v41, %v4358_v17 }
 0x741   : > { %v4385_v25 = vadd.f32 %v4375_v42, %v4357_v28 }
 0x742   : > { %4288 = vrot.lane.b32.xlu2 %v4259_v9, %s5664_s29  ;;  %v4420_v57 = vmul.f32 %v9346_v23, %v4386_v60 }
 0x743   : > { %v4419_v0 = vmul.f32 %v4410_v49, %v4385_v25 }
 0x744   : > { %v3951_v32 = vpop.permute.xlu2 %3950  ;;  %v3953_v39 = vpop.permute.xlu1 %3952 }
 0x745   : > { %v3962_v27 = vsel %vm3956_vm6, %v9099_v2, %v3951_v32  ;;  %v3963_v52 = vsel %vm3956_vm6, %v3951_v32, %v3953_v39  ;;  %v3763_v2 = vadd.f32 %v3744_v58, %v9351_v63 }
 0x746   : > { %v3982_v54 = vadd.f32 %v3962_v27, %v9322_v35  ;;  %v3983_v14 = vadd.f32 %v3963_v52, %v3768_v19 }
 0x74a   : > { %4441 = vrot.lane.b32.xlu2 %v4419_v0, %s5665_s30 }
 0x74c   : > { %v3740_v59 = vpop.permute.xlu2 %3739 }
 0x74d   : > { %v3749_v35 = vsel %vm3741_vm8, %v3738_v53, %v3740_v59  ;;  %v4118_v50 = vpop.permute.xlu1 %4117  ;;  %v9458_v53 = vpop.permute.xlu0 %4274 }
 0x74e   : > { %v3769_v10 = vadd.f32 %v3749_v35, %v3554_v31  ;;  %v4130_v13 = vsel %vm4123_vm10, %v4118_v50, %v9283_v56 }
 0x74f   : > { %v9443_v18 = vadd.f32 %v4130_v13, %v3983_v14  ;;  %v4142_v14 = vadd.f32 %v9259_v3, %v9414_v7 }
 0x752   : > { %4443 = vrot.lane.b32.xlu2 %v4420_v57, %s5665_s30 }
 0x754   : > { %v3941_v55 = vpop.permute.xlu2 %3940 }
 0x755   : > { %v3958_v63 = vsel %vm3956_vm6, %v10773_v8, %v3941_v55  ;;  %v3955_v34 = vpop.permute.xlu1 %3954  ;;  %v4450_v19 = vpop.permute.xlu0 %4449  ;;  %v4147_v8 = vadd.f32 %v10776_v26, %v9384_v30 }
 0x756   : > { %v3977_v37 = vadd.f32 %v3958_v63, %v9371_v5  ;;  %v3964_v21 = vsel %vm3956_vm6, %v3953_v39, %v3955_v34 }
 0x757   : > { %v3984_v49 = vadd.f32 %v3964_v21, %v3769_v10 }
 0x759   : > { %v4151_v25 = vadd.f32 %v9340_v4, %v3984_v49 }
 0x75c   : > { %v4116_v31 = vpop.permute.xlu2 %4115 }
 0x75d   : > { %v4129_v46 = vsel %vm4123_vm10, %v4116_v31, %v4118_v50  ;;  %v4108_v56 = vpop.permute.xlu1 %4107  ;;  %v4128_v22 = vsel %vm4123_vm10, %v10776_v26, %v4116_v31 }
 0x75e   : > { %v4149_v36 = vadd.f32 %v4129_v46, %v3982_v54  ;;  %v4148_v11 = vadd.f32 %v4128_v22, %v9389_v44  ;;  %v9480_v54 = vpop.permute.xlu0 %4276 }
 0x764   : > { %v3943_v23 = vpop.permute.xlu2 %3942 }
 0x765   : > { %v3959_v6 = vsel %vm3956_vm6, %v3941_v55, %v3943_v23  ;;  %v4283_v45 = vpop.permute.xlu1 %4282 }
 0x766   : > { %v3978_v40 = vadd.f32 %v3959_v6, %v3763_v2  ;;  %v4440_v60 = vpop.permute.xlu0 %4439  ;;  %v4296_v55 = vsel %vm4290_vm9, %v4283_v45, %v9316_v12 }
 0x767   : > { %v4316_v63 = vadd.f32 %v4296_v55, %v4149_v36 }
 0x76c   : > { %v4106_v1 = vpop.permute.xlu2 %4105 }
 0x76d   : > { %v4125_v29 = vsel %vm4123_vm10, %v4106_v1, %v4108_v56  ;;  %v4110_v43 = vpop.permute.xlu1 %4109  ;;  %v4124_v4 = vsel %vm4123_vm10, %v9259_v3, %v4106_v1 }
 0x76e   : > { %v9455_v5 = vadd.f32 %v4125_v29, %v3977_v37  ;;  %v4126_v51 = vsel %vm4123_vm10, %v4108_v56, %v4110_v43  ;;  %v4143_v17 = vadd.f32 %v4124_v4, %v9419_v47  ;;  %v4293_v29 = vsel %vm4290_vm9, %v9458_v53, %v9480_v54 }
 0x76f   : > { %v9460_v38 = vadd.f32 %v4126_v51, %v3978_v40 }
 0x774   : > { %v4281_v15 = vpop.permute.xlu2 %4280 }
 0x775   : > { %v4273_v48 = vpop.permute.xlu1 %4272  ;;  %v4295_v61 = vsel %vm4290_vm9, %v4281_v15, %v4283_v45  ;;  %v4314_v62 = vadd.f32 %v4281_v15, %v4147_v8 }
 0x776   : > { %v4315_v33 = vadd.f32 %v4295_v61, %v4148_v11 }
 0x77c   : > { %v3945_v9 = vpop.permute.xlu2 %3944 }
 0x77d   : > { %v3960_v42 = vsel %vm3956_vm6, %v3943_v23, %v3945_v9  ;;  %v4448_v28 = vpop.permute.xlu1 %4447 }
 0x77e   : > { %v3979_v32 = vadd.f32 %v3960_v42, %v3764_v20  ;;  %v4462_v27 = vsel %vm4457_vm12, %v4448_v28, %v4450_v19  ;;  %v9470_v16 = vadd.f32 %v4448_v28, %v4314_v62  ;;  %v4292_v20 = vsel %vm4290_vm9, %v4273_v48, %v9458_v53 }
 0x77f   : > { %v9473_v39 = vadd.f32 %v4462_v27, %v4315_v33  ;;  %v4311_v23 = vadd.f32 %v4292_v20, %v9455_v5  ;;  %v4312_v5 = vadd.f32 %v4293_v29, %v9460_v38 }
 0x780   : > { %v4555_v30 = vmul.f32 %v9470_v16, %v9470_v16 }
 0x781   : > { %v4556_v44 = vmul.f32 %v9473_v39, %v9473_v39 }
 0x782   : > { %4580 = vrot.lane.b32.xlu2 %v4555_v30, %s5650_s23 }
 0x783   : > { %4582 = vrot.lane.b32.xlu1 %v4556_v44, %s5650_s23 }
 0x784   : > { %v4271_v58 = vpop.permute.xlu2 %4270 }
 0x785   : > { %v4112_v52 = vpop.permute.xlu1 %4111  ;;  %v4291_v2 = vsel %vm4290_vm9, %v4271_v58, %v4273_v48  ;;  %v4309_v41 = vadd.f32 %v4271_v58, %v4142_v14  ;;  %v4279_v48 = vpop.permute.xlu0 %4278 }
 0x786   : > { %v4127_v24 = vsel %vm4123_vm10, %v4110_v43, %v4112_v52  ;;  %v4310_v35 = vadd.f32 %v4291_v2, %v4143_v17  ;;  %v4294_v9 = vsel %vm4290_vm9, %v9480_v54, %v4279_v48 }
 0x787   : > { %v4146_v0 = vadd.f32 %v4127_v24, %v3979_v32 }
 0x789   : > { %v4313_v42 = vadd.f32 %v4294_v9, %v4146_v0 }
 0x78c   : > { %v4287_v59 = vpop.permute.xlu2 %4286 }
 0x78d   : > { %v4438_v50 = vpop.permute.xlu1 %4437  ;;  %v4297_v47 = vsel %vm4290_vm9, %v9316_v12, %v4287_v59  ;;  %v4446_v61 = vpop.permute.xlu0 %4445 }
 0x78e   : > { %v4458_v10 = vsel %vm4457_vm12, %v4438_v50, %v4440_v60  ;;  %v9491_v13 = vadd.f32 %v4438_v50, %v4309_v41  ;;  %v4317_v21 = vadd.f32 %v4297_v47, %v9443_v18 }
 0x78f   : > { %v9493_v57 = vadd.f32 %v4458_v10, %v4310_v35 }
 0x790   : > { %v4550_v3 = vmul.f32 %v9491_v13, %v9491_v13 }
 0x791   : > { %v4551_v7 = vmul.f32 %v9493_v57, %v9493_v57 }
 0x792   : > { %4570 = vrot.lane.b32.xlu2 %v4550_v3, %s5650_s23 }
 0x793   : > { %4572 = vrot.lane.b32.xlu1 %v4551_v7, %s5650_s23 }
 0x794   : > { %v4452_v34 = vpop.permute.xlu2 %4451 }
 0x795   : > { %v4463_v37 = vsel %vm4457_vm12, %v4450_v19, %v4452_v34  ;;  %v4454_v49 = vpop.permute.xlu1 %4453 }
 0x796   : > { %v9507_v31 = vadd.f32 %v4463_v37, %v4316_v63  ;;  %v4464_v46 = vsel %vm4457_vm12, %v4452_v34, %v4454_v49 }
 0x797   : > { %v9510_v56 = vadd.f32 %v4464_v46, %v4317_v21 }
 0x798   : > { %v4557_v12 = vmul.f32 %v9507_v31, %v9507_v31 }
 0x799   : > { %v4558_v36 = vmul.f32 %v9510_v56, %v9510_v56 }
 0x79a   : > { %4584 = vrot.lane.b32.xlu0 %v4557_v12, %s5650_s23 }
 0x79b   : > { %4514 = vrot.lane.b32.xlu1 %v9470_v16, %s5650_s23  ;;  %4586 = vrot.lane.b32.xlu2 %v4558_v36, %s5650_s23 }
 0x79c   : > { %v4289_v18 = vpop.permute.xlu2 %4288 }
 0x79d   : > { %v4298_v51 = vsel %vm4290_vm9, %v4287_v59, %v4289_v18  ;;  %v4456_v22 = vpop.permute.xlu1 %4455 }
 0x79e   : > { %v4318_v19 = vadd.f32 %v4298_v51, %v4151_v25  ;;  %v4465_v53 = vsel %vm4457_vm12, %v4454_v49, %v4456_v22 }
 0x7a0   : > { %v9547_v38 = vadd.f32 %v4465_v53, %v4318_v19 }
 0x7a2   : > { %v4559_v11 = vmul.f32 %v9547_v38, %v9547_v38 }
 0x7a3   : > { %4518 = vrot.lane.b32.xlu2 %v9507_v31, %s5650_s23 }
 0x7a4   : > { %v4442_v6 = vpop.permute.xlu2 %4441 }
 0x7a5   : > { %v4459_v45 = vsel %vm4457_vm12, %v4440_v60, %v4442_v6 }
 0x7a6   : > { %v9526_v40 = vadd.f32 %v4459_v45, %v4311_v23 }
 0x7a8   : > { %v4552_v1 = vmul.f32 %v9526_v40, %v9526_v40 }
 0x7aa   : > { %4574 = vrot.lane.b32.xlu0 %v4552_v1, %s5650_s23 }
 0x7ab   : > { %4504 = vrot.lane.b32.xlu2 %v9491_v13, %s5650_s23 }
 0x7ac   : > { %v4444_v43 = vpop.permute.xlu2 %4443 }
 0x7ad   : > { %v4460_v15 = vsel %vm4457_vm12, %v4442_v6, %v4444_v43  ;;  %v4461_v62 = vsel %vm4457_vm12, %v4444_v43, %v4446_v61 }
 0x7ae   : > { %v9539_v26 = vadd.f32 %v4460_v15, %v4312_v5  ;;  %v9559_v33 = vadd.f32 %v4461_v62, %v4313_v42  ;;  %v4486_v62 = vld [vmem:[%s9693_s9] sm:$0xff] }
 0x7b0   : > { %v4553_v8 = vmul.f32 %v9539_v26, %v9539_v26  ;;  %v4554_v28 = vmul.f32 %v9559_v33, %v9559_v33 }
 0x7b2   : > { %4576 = vrot.lane.b32.xlu1 %v4553_v8, %s5650_s23  ;;  %4516 = vrot.lane.b32.xlu0 %v9473_v39, %s5650_s23 }
 0x7b3   : > { %4520 = vrot.lane.b32.xlu2 %v9510_v56, %s5650_s23 }
 0x7ba   : > { %4506 = vrot.lane.b32.xlu1 %v9493_v57, %s5650_s23  ;;  %4588 = vrot.lane.b32.xlu0 %v4559_v11, %s5650_s23 }
 0x7bb   : > { %4522 = vrot.lane.b32.xlu2 %v9547_v38, %s5650_s23 }
 0x7c2   : > { %4578 = vrot.lane.b32.xlu1 %v4554_v28, %s5650_s23  ;;  %4508 = vrot.lane.b32.xlu0 %v9526_v40, %s5650_s23  ;;  %v4487_v28 = vld [vmem:[%s9693_s9 + $0x8] sm:$0xff] }
 0x7ca   : > { %4512 = vrot.lane.b32.xlu1 %v9559_v33, %s5650_s23  ;;  %4510 = vrot.lane.b32.xlu0 %v9539_v26, %s5650_s23 }
 0x7dc   : > { %v4581_v32 = vpop.permute.xlu2 %4580 }
 0x7ec   : > { %v4571_v27 = vpop.permute.xlu2 %4570 }
 0x7f5   : > { %v4587_v25 = vpop.permute.xlu2 %4586  ;;  %v4583_v44 = vpop.permute.xlu1 %4582 }
 0x7f6   : > { %v4594_v50 = vsel %vm4408_vm4, %v4581_v32, %v4583_v44  ;;  %v4488_v32 = vld [vmem:[%s9693_s9 + $0x10] sm:$0xff] }
 0x7fd   : > { %v4519_v30 = vpop.permute.xlu2 %4518 }
 0x805   : > { %v4573_v54 = vpop.permute.xlu1 %4572  ;;  %v4505_v58 = vpop.permute.xlu2 %4504 }
 0x806   : > { %v4590_v36 = vsel %vm4408_vm4, %v4571_v27, %v4573_v54  ;;  %v4489_v27 = vld [vmem:[%s9693_s9 + $0x18] sm:$0xff] }
 0x80c   : > { %v4585_v52 = vpop.permute.xlu0 %4584 }
 0x80d   : > { %v4515_v24 = vpop.permute.xlu1 %4514  ;;  %v4521_v0 = vpop.permute.xlu2 %4520  ;;  %v4595_v17 = vsel %vm4408_vm4, %v4583_v44, %v4585_v52  ;;  %v4596_v63 = vsel %vm4408_vm4, %v4585_v52, %v4587_v25  ;;  %v4492_v44 = vld [vmem:[%s9692_s8] sm:$0xff] }
 0x80e   : > { %v4530_v10 = vsel %vm4408_vm4, %v4519_v30, %v4521_v0  ;;  %v4611_v55 = vadd.f32 %v4595_v17, %v4594_v50 }
 0x810   : > { %v4612_v34 = vadd.f32 %v4611_v55, %v4596_v63 }
 0x815   : > { %v4523_v60 = vpop.permute.xlu2 %4522 }
 0x816   : > { %v4531_v7 = vsel %vm4408_vm4, %v4521_v0, %v4523_v60 }
 0x81c   : > { %v4575_v4 = vpop.permute.xlu0 %4574 }
 0x81d   : > { %v4591_v12 = vsel %vm4408_vm4, %v4573_v54, %v4575_v4 }
 0x81e   : > { %v4606_v20 = vadd.f32 %v4591_v12, %v4590_v36  ;;  %v4491_v12 = vld [vmem:[%s9691_s7 + $0x8] sm:$0xff] }
 0x81f   : > { %v4493_v36 = vld [vmem:[%s9692_s8 + $0x8] sm:$0xff] }
 0x824   : > { %v4577_v14 = vpop.permute.xlu1 %4576  ;;  %v4517_v2 = vpop.permute.xlu0 %4516 }
 0x825   : > { %v4528_v59 = vsel %vm4408_vm4, %v4515_v24, %v4517_v2  ;;  %v4529_v41 = vsel %vm4408_vm4, %v4517_v2, %v4519_v30  ;;  %v4592_v18 = vsel %vm4408_vm4, %v4575_v4, %v4577_v14 }
 0x826   : > { %v4545_v35 = vadd.f32 %v4529_v41, %v4528_v59  ;;  %v4607_v23 = vadd.f32 %v4606_v20, %v4592_v18 }
 0x828   : > { %v4546_v3 = vadd.f32 %v4545_v35, %v4530_v10 }
 0x82a   : > { %v4547_v47 = vadd.f32 %v4546_v3, %v4531_v7 }
 0x82c   : > { %v4507_v37 = vpop.permute.xlu1 %4506  ;;  %4548 = vadd.xlane.f32.xlu1 %v4547_v47  ;;  %v4589_v21 = vpop.permute.xlu0 %4588 }
 0x82d   : > { %v4597_v49 = vsel %vm4408_vm4, %v4587_v25, %v4589_v21  ;;  %v4524_v5 = vsel %vm4408_vm4, %v4505_v58, %v4507_v37  ;;  %v4490_v21 = vld [vmem:[%s9691_s7] sm:$0xff] }
 0x82e   : > { %v4613_v46 = vadd.f32 %v4612_v34, %v4597_v49 }
 0x830   : > { %4614 = vadd.xlane.f32.xlu0 %v4613_v46 }
 0x834   : > { %v4579_v6 = vpop.permute.xlu1 %4578  ;;  %v4509_v45 = vpop.permute.xlu0 %4508 }
 0x835   : > { %v4593_v1 = vsel %vm4408_vm4, %v4577_v14, %v4579_v6  ;;  %v4525_v43 = vsel %vm4408_vm4, %v4507_v37, %v4509_v45 }
 0x836   : > { %v4608_v29 = vadd.f32 %v4607_v23, %v4593_v1  ;;  %v4540_v51 = vadd.f32 %v4525_v43, %v4524_v5 }
 0x838   : > { %4609 = vadd.xlane.f32.xlu2 %v4608_v29 }
 0x83c   : > { %v4513_v15 = vpop.permute.xlu1 %4512  ;;  %v4511_v48 = vpop.permute.xlu0 %4510 }
 0x83d   : > { %v4526_v22 = vsel %vm4408_vm4, %v4509_v45, %v4511_v48  ;;  %v4527_v8 = vsel %vm4408_vm4, %v4511_v48, %v4513_v15 }
 0x83e   : > { %v4541_v19 = vadd.f32 %v4540_v51, %v4526_v22 }
 0x840   : > { %v4542_v53 = vadd.f32 %v4541_v19, %v4527_v8 }
 0x842   : > { %4543 = vadd.xlane.f32.xlu2 %v4542_v53 }
 0x89f   : > { %v4549_v9 = vpop.xlane.xlu1 %4548 }
 0x8a3   : > { %v4615_v61 = vpop.xlane.xlu0 %4614 }
 0x8a4   : > { %4640 = vmatpush.msrb.mxu1 %v4615_v61 }
 0x8ab   : > { %v4610_v11 = vpop.xlane.xlu2 %4609 }
 0x8ac   : > { %4641 = vmatpush.msrb.mxu1 %v4610_v11 }
 0x8ae   : > { %4642 = vmatpush.msrb.mxu1 %v4549_v9 }
 0x8b5   : > { %v4544_v42 = vpop.xlane.xlu2 %4543 }
 0x8b6   : > { %4643 = vmatpush.msrb.mxu1 %v4544_v42 }
 0x8b7   : > { %5318 = vmatmul.msk.f32.vlgmr.msrb.gmra.mxu1 %vm969_vm1, %v4486_v62 }
 0x8bf   : > { %5319 = vmatmul.msk.f32.gmra.mxu1 %vm969_vm1, %v4487_v28 }
 0x8c7   : > { %5320 = vmatmul.msk.f32.gmra.mxu1 %vm969_vm1, %v4488_v32 }
 0x8cf   : > { %5321 = vmatmul.msk.f32.gmra.mxu1 %vm969_vm1, %v4489_v27  ;;  %v5064_v27 = vld [vmem:[%s9699_s15] sm:$0xff] }
 0x934   : > { %v4645_v25 = vpop.f32.mrf.mxu1 }
 0x935   : > { %4687 = vperm.xlu2 %5528, %v4645_v25   ;;  %v4657_v54 = vmul.f32 %v4645_v25, %v4645_v25 }
 0x93c   : > { %v4648_v30 = vpop.f32.mrf.mxu1 }
 0x93d   : > { %4692 = vperm.xlu0 %5526, %v4648_v30   ;;  %v4658_v4 = vmul.f32 %v4648_v30, %v4648_v30 }
 0x944   : > { %v4651_v58 = vpop.f32.mrf.mxu1 }
 0x945   : > { %v4659_v52 = vsub.f32 %v4651_v58, %v4657_v54  ;;  %4747 = vperm.xlu0 %5526, %v4492_v44  }
 0x947   : > { %v4661_v24 = vmax.f32 %v4659_v52, 0.0 }
 0x949   : > { %v4663_v0 = vadd.f32 1e-05, %v4661_v24 }
 0x94b   : > { %5558 = vrsqrt.f32 %v4663_v0  ;;  %vm4671_vm13 = vweird.f32 %v4663_v0 }
 0x94c   : > { %v4654_v14 = vpop.f32.mrf.mxu1 }
 0x94d   : > { %v4660_v2 = vsub.f32 %v4654_v14, %v4658_v4 }
 0x94f   : > { %v4662_v17 = vmax.f32 %v4660_v2, 0.0 }
 0x951   : > { %v5559_v59 = vpop.eup %5558  ;;  %v4664_v41 = vadd.f32 1e-05, %v4662_v17 }
 0x952   : > { %v4666_v60 = vmul.f32 %v5559_v59, %v4663_v0  ;;  %vm4672_vm1 = vweird.f32 %v5559_v59 }
 0x953   : > { %5560 = vrsqrt.f32 %v4664_v41  ;;  %vm4673_vm2 = vmor %vm4671_vm13, %vm4672_vm1  ;;  %vm4681_vm5 = vweird.f32 %v4664_v41 }
 0x954   : > { %v4667_v35 = vmul.f32 %v5559_v59, %v4666_v60 }
 0x956   : > { %v4668_v50 = vmul.f32 0.5, %v4667_v35 }
 0x958   : > { %v4669_v10 = vsub.f32 1.5, %v4668_v50 }
 0x959   : > { %v5561_v55 = vpop.eup %5560 }
 0x95a   : > { %v4676_v3 = vmul.f32 %v5561_v55, %v4664_v41  ;;  %v4670_v7 = vmul.f32 %v5559_v59, %v4669_v10  ;;  %vm4682_vm3 = vweird.f32 %v5561_v55 }
 0x95b   : > { %vm4683_vm7 = vmor %vm4681_vm5, %vm4682_vm3 }
 0x95c   : > { %v4677_v47 = vmul.f32 %v5561_v55, %v4676_v3  ;;  %v4674_v63 = vsel %vm4673_vm2, %v5559_v59, %v4670_v7 }
 0x95d   : > { %4707 = vperm.xlu2 %5528, %v4674_v63  }
 0x95e   : > { %v4678_v34 = vmul.f32 0.5, %v4677_v47 }
 0x960   : > { %v4679_v37 = vsub.f32 1.5, %v4678_v34 }
 0x962   : > { %v4680_v49 = vmul.f32 %v5561_v55, %v4679_v37 }
 0x964   : > { %v4684_v46 = vsel %vm4683_vm7, %v5561_v55, %v4680_v49 }
 0x965   : > { %4727 = vperm.xlu2 %5528, %v4490_v21   ;;  %4712 = vperm.xlu1 %5527, %v4684_v46  }
 0x96d   : > { %4732 = vperm.xlu1 %5527, %v4491_v12  }
 0x975   : > { %4752 = vperm.xlu1 %5527, %v4493_v36  }
 0x98f   : > { %v4688_v18 = vpop.permute.xlu2 %4687 }
 0x990   : > { %v4695_v6 = vsub.f32 %v9491_v13, %v4688_v18  ;;  %v4696_v45 = vsub.f32 %v9493_v57, %v4688_v18  ;;  %v4698_v1 = vsub.f32 %v9539_v26, %v4688_v18  ;;  %v4699_v29 = vsub.f32 %v9559_v33, %v4688_v18 }
 0x991   : > { %v4697_v30 = vsub.f32 %v9526_v40, %v4688_v18 }
 0x9af   : > { %v4693_v20 = vpop.permute.xlu0 %4692 }
 0x9b0   : > { %v4700_v52 = vsub.f32 %v9470_v16, %v4693_v20  ;;  %v4701_v24 = vsub.f32 %v9473_v39, %v4693_v20  ;;  %v4702_v0 = vsub.f32 %v9507_v31, %v4693_v20  ;;  %v4703_v17 = vsub.f32 %v9510_v56, %v4693_v20 }
 0x9b1   : > { %v4704_v41 = vsub.f32 %v9547_v38, %v4693_v20 }
 0x9b7   : > { %v4708_v23 = vpop.permute.xlu2 %4707  ;;  %v4748_v15 = vpop.permute.xlu0 %4747 }
 0x9b8   : > { %v4715_v43 = vmul.f32 %v4708_v23, %v4695_v6  ;;  %v4716_v5 = vmul.f32 %v4708_v23, %v4696_v45  ;;  %v4718_v48 = vmul.f32 %v4708_v23, %v4698_v1  ;;  %v4719_v22 = vmul.f32 %v4708_v23, %v4699_v29 }
 0x9b9   : > { %v4717_v44 = vmul.f32 %v4708_v23, %v4697_v30 }
 0x9bf   : > { %v4728_v51 = vpop.permute.xlu2 %4727 }
 0x9c0   : > { %v4735_v19 = vmul.f32 %v4728_v51, %v4715_v43  ;;  %v4736_v8 = vmul.f32 %v4728_v51, %v4716_v5  ;;  %v4738_v53 = vmul.f32 %v4728_v51, %v4718_v48  ;;  %v4739_v61 = vmul.f32 %v4728_v51, %v4719_v22 }
 0x9c1   : > { %v4737_v58 = vmul.f32 %v4728_v51, %v4717_v44 }
 0x9c2   : > { %v4755_v11 = vadd.f32 %v4748_v15, %v4735_v19  ;;  %v4756_v9 = vadd.f32 %v4748_v15, %v4736_v8  ;;  %v4758_v42 = vadd.f32 %v4748_v15, %v4738_v53  ;;  %v4759_v57 = vadd.f32 %v4748_v15, %v4739_v61 }
 0x9c3   : > { %v4757_v59 = vadd.f32 %v4748_v15, %v4737_v58 }
 0x9c4   : > { %v4765_v62 = vmax.f32 %v4755_v11, 0.0  ;;  %v4766_v13 = vmax.f32 %v4756_v9, 0.0  ;;  %v4768_v26 = vmax.f32 %v4758_v42, 0.0  ;;  %v4769_v33 = vmax.f32 %v4759_v57, 0.0 }
 0x9c5   : > { %v4767_v39 = vmax.f32 %v4757_v59, 0.0  ;;  %v5666_v9 = vmov 0.001953125  }
 0x9c6   : > { %v5534_v28 = vpack.i.bf16 %v4766_v13, %v4765_v62  ;;  %v5549_v32 = vpack.i.bf16 %v4769_v33, %v4768_v26  ;;  %v4902_v26 = vld [vmem:[%s9694_s10 + $0x8] sm:$0xff]  ;;  %v4901_v33 = vld [vmem:[%s9694_s10] sm:$0xff] }
 0x9c8   : > { %5535 = vrot.lane.b32.xlu2 %v5534_v28, %s5650_s23 }
 0x9d0   : > { %5550 = vrot.lane.b32.xlu2 %v5549_v32, %s5650_s23  ;;  %v4928_v32 = vld [vmem:[%s9696_s12] sm:$0xf] }
 0x9d7   : > { %v4713_v25 = vpop.permute.xlu1 %4712 }
 0x9d8   : > { %5143 = vperm.xlu2 %5528, %v5064_v27   ;;  %v4720_v4 = vmul.f32 %v4713_v25, %v4700_v52  ;;  %v4721_v14 = vmul.f32 %v4713_v25, %v4701_v24  ;;  %v4722_v2 = vmul.f32 %v4713_v25, %v4702_v0  ;;  %v4723_v50 = vmul.f32 %v4713_v25, %v4703_v17  ;;  %v4903_v24 = vld [vmem:[%s9695_s11] sm:$0x1] }
 0x9d9   : > { %v4724_v55 = vmul.f32 %v4713_v25, %v4704_v41 }
 0x9df   : > { %v4733_v54 = vpop.permute.xlu1 %4732 }
 0x9e0   : > { %v4740_v60 = vmul.f32 %v4733_v54, %v4720_v4  ;;  %v4741_v35 = vmul.f32 %v4733_v54, %v4721_v14  ;;  %v4742_v40 = vmul.f32 %v4733_v54, %v4722_v2  ;;  %v4743_v47 = vmul.f32 %v4733_v54, %v4723_v50  ;;  %v4929_v2 = vld [vmem:[%s9697_s13] sm:$0x1] }
 0x9e1   : > { %v4744_v31 = vmul.f32 %v4733_v54, %v4724_v55 }
 0x9e7   : > { %v4753_v10 = vpop.permute.xlu1 %4752 }
 0x9e8   : > { %v4760_v3 = vadd.f32 %v4753_v10, %v4740_v60  ;;  %v4761_v16 = vadd.f32 %v4753_v10, %v4741_v35  ;;  %v4762_v7 = vadd.f32 %v4753_v10, %v4742_v40  ;;  %v4763_v21 = vadd.f32 %v4753_v10, %v4743_v47 }
 0x9e9   : > { %v4764_v56 = vadd.f32 %v4753_v10, %v4744_v31 }
 0x9ea   : > { %v4770_v63 = vmax.f32 %v4760_v3, 0.0  ;;  %v4771_v34 = vmax.f32 %v4761_v16, 0.0  ;;  %v4772_v37 = vmax.f32 %v4762_v7, 0.0  ;;  %v4773_v38 = vmax.f32 %v4763_v21, 0.0 }
 0x9eb   : > { %v4774_v12 = vmax.f32 %v4764_v56, 0.0 }
 0x9ec   : > { %v5539_v49 = vpack.i.bf16 %v4767_v39, %v4772_v37  ;;  %v5529_v46 = vpack.i.bf16 %v4771_v34, %v4770_v63  ;;  %v4976_v34 = vld [vmem:[%s9698_s14] sm:$0xff] }
 0x9ed   : > { %v5544_v36 = vpack.i.bf16 %v4774_v12, %v4773_v38 }
 0x9ee   : > { %5540 = vrot.lane.b32.xlu0 %v5539_v49, %s5650_s23  ;;  %5530 = vrot.lane.b32.xlu1 %v5529_v46, %s5650_s23 }
 0x9f6   : > { %5545 = vrot.lane.b32.xlu1 %v5544_v36, %s5650_s23 }
 0xa22   : > { %v5536_v18 = vpop.permute.xlu2 %5535 }
 0xa23   : > { %v5538_v1 = vunpack.i.h.bf16 %v5536_v18  ;;  %v5537_v29 = vunpack.i.l.bf16 %v5536_v18 }
 0xa25   : > { %v4805_v15 = vsel %vm4408_vm4, %v5537_v29, %v5538_v1 }
 0xa2a   : > { %v5551_v51 = vpop.permute.xlu2 %5550 }
 0xa2b   : > { %v5553_v61 = vunpack.i.h.bf16 %v5551_v51  ;;  %v5552_v11 = vunpack.i.l.bf16 %v5551_v51  ;;  %v5062_v51 = vld [vmem:[%s9701_s17] sm:$0xff] }
 0xa2d   : > { %v4808_v28 = vsel %vm4408_vm4, %v5552_v11, %v5553_v61 }
 0xa60   : > { %v5531_v20 = vpop.permute.xlu1 %5530  ;;  %v5541_v23 = vpop.permute.xlu0 %5540 }
 0xa61   : > { %v5533_v6 = vunpack.i.h.bf16 %v5531_v20  ;;  %v5532_v45 = vunpack.i.l.bf16 %v5531_v20  ;;  %v5542_v5 = vunpack.i.l.bf16 %v5541_v23  ;;  %v5543_v48 = vunpack.i.h.bf16 %v5541_v23 }
 0xa63   : > { %v4809_v43 = vsel %vm4408_vm4, %v5532_v45, %v5533_v6  ;;  %v4810_v19 = vsel %vm4408_vm4, %v5533_v6, %v5542_v5  ;;  %v4806_v42 = vsel %vm4408_vm4, %v5538_v1, %v5543_v48  ;;  %v4807_v57 = vsel %vm4408_vm4, %v5543_v48, %v5552_v11  ;;  %v5063_v48 = vld [vmem:[%s9701_s17 + $0x8] sm:$0xff] }
 0xa64   : > { %4835 = vmatpush.xpose.msrb.mxu3 %v4809_v43 }
 0xa68   : > { %v5546_v22 = vpop.permute.xlu1 %5545  ;;  %4836 = vmatpush.xpose.msrb.mxu3 %v4805_v15 }
 0xa69   : > { %v5548_v8 = vunpack.i.h.bf16 %v5546_v22  ;;  %v5547_v53 = vunpack.i.l.bf16 %v5546_v22 }
 0xa6b   : > { %4837 = vmatmul.f32.vlgmr.msrb.gmra.mxu3 %v5666_v9  ;;  %v4811_v62 = vsel %vm4408_vm4, %v5542_v5, %v5547_v53  ;;  %v4812_v13 = vsel %vm4408_vm4, %v5547_v53, %v5548_v8 }
 0xa6c   : > { %4855 = vmatpush.xpose.msra.mxu3 %v4810_v19  ;;  %4875 = vmatpush.xpose.msrb.mxu2 %v4811_v62 }
 0xa6d   : > { %5036 = vmatpush.msra.mxu0 %v4811_v62  ;;  %5056 = vmatpush.msra.mxu1 %v4812_v13 }
 0xa6f   : > { %5037 = vmatpush.msra.mxu0 %v4807_v57  ;;  %5057 = vmatpush.msra.mxu1 %v4808_v28 }
 0xa70   : > { %4856 = vmatpush.xpose.msra.mxu3 %v4806_v42  ;;  %4876 = vmatpush.xpose.msrb.mxu2 %v4807_v57 }
 0xa73   : > { %4857 = vmatmul.f32.vlgmr.msra.gmra.mxu3 %v5666_v9  ;;  %4877 = vmatmul.f32.vlgmr.msrb.gmra.mxu2 %v5666_v9 }
 0xa74   : > { %4895 = vmatpush.xpose.msrb.mxu3 %v4812_v13  ;;  %4921 = vmatpush.msra.mxu2 %v4902_v26 }
 0xa76   : > { %4922 = vmatpush.msra.mxu2 %v4901_v33  ;;  %v5065_v33 = vld [vmem:[%s9700_s16] sm:$0xff] }
 0xa78   : > { %4896 = vmatpush.xpose.msrb.mxu3 %v4808_v28  ;;  %4996 = vmatpush.msrb.mxu2 %v4809_v43 }
 0xa7a   : > { %4997 = vmatpush.msrb.mxu2 %v4805_v15 }
 0xa7b   : > { %4897 = vmatmul.f32.vlgmr.msrb.gmra.mxu3 %v5666_v9 }
 0xa7c   : > { %5323 = vmatpush.msk.msra.mxu3 %vm4933_vm14, %v4928_v32  ;;  %v5144_v32 = vpop.permute.xlu2 %5143 }
 0xa7e   : > { %5016 = vmatpush.msrb.mxu3 %v4810_v19 }
 0xa80   : > { %5017 = vmatpush.msrb.mxu3 %v4806_v42 }
 0xaee   : > { %v4838_v27 = vpop.f32.mrf.mxu3 }
 0xaf6   : > { %v4858_v25 = vpop.f32.mrf.mxu3  ;;  %v4878_v44 = vpop.f32.mrf.mxu2 }
 0xaf7   : > { %v4859_v30 = vadd.f32 %v4858_v25, %v4838_v27 }
 0xaf9   : > { %v4879_v54 = vadd.f32 %v4878_v44, %v4859_v30 }
 0xafe   : > { %v4898_v58 = vpop.f32.mrf.mxu3 }
 0xaff   : > { %v4899_v52 = vadd.f32 %v4898_v58, %v4879_v54 }
 0xb01   : > { %5322 = vmatmul.msk.f32.vlgmr.msra.gmra.mxu2 %vm4241_vm15, %v4899_v52 }
 0xb84   : > { %v4924_v0 = vpop.f32.mrf.mxu2 }
 0xb85   : > { %v4925_v4 = vadd.f32 %v4924_v0, %v4903_v24 }
 0xb87   : > { %v4927_v14 = vmax.f32 %v4925_v4, 0.0 }
 0xb89   : > { %5324 = vmatmul.msk.f32.vlgmr.msra.gmra.mxu3 %vm642_vm0, %v4927_v14 }
 0xc0c   : > { %v4954_v17 = vpop.f32.mrf.mxu3 }
 0xc0d   : > { %v4955_v59 = vadd.f32 %v4954_v17, %v4929_v2 }
 0xc0f   : > { %v4957_v41 = vsub.f32 0.0, %v4955_v59 }
 0xc11   : > { %v4958_v60 = vmul.f32 1.442695, %v4957_v41 }
 0xc13   : > { %5562 = vpow2.f32 %v4958_v60 }
 0xc19   : > { %v5563_v35 = vpop.eup %5562 }
 0xc1a   : > { %v4960_v40 = vadd.f32 1.0, %v5563_v35 }
 0xc1c   : > { %5564 = vrcp.f32 %v4960_v40  ;;  %v4972_v3 = vand.u32 2147483648, %v4960_v40  ;;  %v4970_v7 = vand.u32 2147483647, %v4960_v40  ;;  %vm4966_vm0 = vweird.f32 %v4960_v40 }
 0xc1e   : > { %v4973_v47 = vor.u32 1.1754944e-38, %v4972_v3  ;;  %vm4971_vm8 = vcmp.eq.f32.partialorder %v4970_v7, 8.507059e+37 }
 0xc22   : > { %v5565_v50 = vpop.eup %5564 }
 0xc23   : > { %v4962_v10 = vmul.f32 %v5565_v50, %v4960_v40  ;;  %vm4967_vm4 = vweird.f32 %v5565_v50 }
 0xc24   : > { %vm4968_vm11 = vmor %vm4966_vm0, %vm4967_vm4 }
 0xc25   : > { %v4963_v55 = vsub.f32 1.0, %v4962_v10 }
 0xc27   : > { %v4964_v16 = vmul.f32 %v5565_v50, %v4963_v55 }
 0xc29   : > { %v4965_v39 = vadd.f32 %v5565_v50, %v4964_v16 }
 0xc2b   : > { %v4969_v31 = vsel %vm4968_vm11, %v5565_v50, %v4965_v39 }
 0xc2c   : > { %v4974_v63 = vsel %vm4971_vm8, %v4973_v47, %v4969_v31 }
 0xc2d   : > { %v4977_v37 = vperm.slane %v4974_v63, 0 }
 0xc2f   : > { %v4978_v21 = vmul.f32 %v4977_v37, %v4976_v34 }
 0xc31   : > { %5325 = vmatmul.msk.f32.vlgmr.msrb.gmra.mxu2 %vm4241_vm15, %v4978_v21  ;;  %5326 = vmatmul.msk.f32.vlgmr.msrb.gmra.mxu3 %vm4241_vm15, %v4978_v21 }
 0xc32   : > { %5327 = vmatmul.msk.f32.vlgmr.msra.gmra.mxu0 %vm4241_vm15, %v4978_v21  ;;  %5328 = vmatmul.msk.f32.vlgmr.msra.gmra.mxu1 %vm4241_vm15, %v4978_v21 }
 0xcaf   : > { %v5039_v56 = vpop.f32.mrf.mxu0  ;;  %v5059_v18 = vpop.f32.mrf.mxu1 }
 0xcb0   : > { %v5073_v20 = vmul.f32 %v5039_v56, %v5039_v56  ;;  %v5074_v45 = vmul.f32 %v5059_v18, %v5059_v18 }
 0xcb4   : > { %v4999_v49 = vpop.f32.mrf.mxu2  ;;  %v5019_v46 = vpop.f32.mrf.mxu3 }
 0xcb5   : > { %v5071_v38 = vmul.f32 %v4999_v49, %v4999_v49  ;;  %v5066_v12 = vadd.f32 %v5019_v46, %v4999_v49  ;;  %v5072_v36 = vmul.f32 %v5019_v46, %v5019_v46 }
 0xcb7   : > { %v5067_v23 = vadd.f32 %v5066_v12, %v5039_v56  ;;  %v5075_v6 = vadd.f32 %v5072_v36, %v5071_v38 }
 0xcb9   : > { %v5076_v1 = vadd.f32 %v5075_v6, %v5073_v20  ;;  %v5068_v29 = vadd.f32 %v5067_v23, %v5059_v18 }
 0xcbb   : > { %5069 = vadd.xlane.f32.xlu1 %v5068_v29  ;;  %v5077_v43 = vadd.f32 %v5076_v1, %v5074_v45 }
 0xcbd   : > { %5078 = vadd.xlane.f32.xlu0 %v5077_v43 }
 0xd2e   : > { %v5070_v15 = vpop.xlane.xlu1 %5069 }
 0xd30   : > { %v5079_v5 = vpop.xlane.xlu0 %5078 }
 0xd31   : > { %5100 = vmatpush.msra.mxu2 %v5079_v5 }
 0xd33   : > { %5101 = vmatpush.msra.mxu2 %v5070_v15 }
 0xd34   : > { %5329 = vmatmul.msk.f32.vlgmr.msra.gmra.mxu2 %vm4241_vm15, %v5062_v51 }
 0xd3c   : > { %5330 = vmatmul.msk.f32.gmra.mxu2 %vm4241_vm15, %v5063_v48 }
 0xdb7   : > { %v5103_v22 = vpop.f32.mrf.mxu2 }
 0xdb8   : > { %5125 = vperm.xlu2 %5528, %v5103_v22   ;;  %v5109_v19 = vmul.f32 %v5103_v22, %v5103_v22 }
 0xdbf   : > { %v5106_v8 = vpop.f32.mrf.mxu2 }
 0xdc0   : > { %v5110_v53 = vsub.f32 %v5106_v8, %v5109_v19 }
 0xdc2   : > { %v5111_v61 = vmax.f32 %v5110_v53, 0.0 }
 0xdc4   : > { %v5112_v11 = vadd.f32 1e-05, %v5111_v61 }
 0xdc6   : > { %5566 = vrsqrt.f32 %v5112_v11  ;;  %vm5119_vm6 = vweird.f32 %v5112_v11 }
 0xdcc   : > { %v5567_v9 = vpop.eup %5566 }
 0xdcd   : > { %v5114_v62 = vmul.f32 %v5567_v9, %v5112_v11  ;;  %vm5120_vm10 = vweird.f32 %v5567_v9 }
 0xdce   : > { %vm5121_vm9 = vmor %vm5119_vm6, %vm5120_vm10 }
 0xdcf   : > { %v5115_v13 = vmul.f32 %v5567_v9, %v5114_v62 }
 0xdd1   : > { %v5116_v42 = vmul.f32 0.5, %v5115_v13 }
 0xdd3   : > { %v5117_v57 = vsub.f32 1.5, %v5116_v42 }
 0xdd5   : > { %v5118_v28 = vmul.f32 %v5567_v9, %v5117_v57 }
 0xdd7   : > { %v5122_v26 = vsel %vm5121_vm9, %v5567_v9, %v5118_v28 }
 0xdd8   : > { %5134 = vperm.xlu2 %5528, %v5122_v26  }
 0xde0   : > { %5152 = vperm.xlu2 %5528, %v5065_v33  }
 0xe12   : > { %v5126_v27 = vpop.permute.xlu2 %5125 }
 0xe13   : > { %v5128_v30 = vsub.f32 %v4999_v49, %v5126_v27  ;;  %v5129_v44 = vsub.f32 %v5019_v46, %v5126_v27  ;;  %v5130_v54 = vsub.f32 %v5039_v56, %v5126_v27  ;;  %v5131_v58 = vsub.f32 %v5059_v18, %v5126_v27 }
 0xe32   : > { %v5135_v25 = vpop.permute.xlu2 %5134 }
 0xe33   : > { %v5137_v52 = vmul.f32 %v5135_v25, %v5128_v30  ;;  %v5138_v24 = vmul.f32 %v5135_v25, %v5129_v44  ;;  %v5139_v0 = vmul.f32 %v5135_v25, %v5130_v54  ;;  %v5140_v4 = vmul.f32 %v5135_v25, %v5131_v58 }
 0xe35   : > { %v5146_v14 = vmul.f32 %v5144_v32, %v5137_v52  ;;  %v5147_v2 = vmul.f32 %v5144_v32, %v5138_v24  ;;  %v5148_v17 = vmul.f32 %v5144_v32, %v5139_v0  ;;  %v5149_v59 = vmul.f32 %v5144_v32, %v5140_v4 }
 0xe3a   : > { %v5153_v41 = vpop.permute.xlu2 %5152 }
 0xe3b   : > { %v5155_v60 = vadd.f32 %v5153_v41, %v5146_v14  ;;  %v5156_v35 = vadd.f32 %v5153_v41, %v5147_v2  ;;  %v5157_v40 = vadd.f32 %v5153_v41, %v5148_v17  ;;  %v5158_v50 = vadd.f32 %v5153_v41, %v5149_v59 }
 0xe3d   : > { %5159 = vst [vmem:[%s575_s2] sm:$0xff] %v5155_v60 }
 0xe3e   : > { %5160 = vst [vmem:[%s575_s2 + $0x8] sm:$0xff] %v5156_v35 }
 0xe3f   : > { %5161 = vst [vmem:[%s575_s2 + $0x10] sm:$0xff] %v5157_v40 }
 0xe40   : > { %5162 = vst [vmem:[%s575_s2 + $0x18] sm:$0xff] %v5158_v50 }
 0xe41 PF: > { %s28_s27 = sadd.s32 1, %s5581_s27  }
 0xe42   : > { %p25_p4 = scmp.ge.s32.totalorder %s28_s27, 4  }
 0xe44   :  { %27 = sbr.rel (!%p25_p4) target bundleno = 4 (0x4), region = 137 }

</bundles_post_ra>
